<compile_context>
chip_gen: v7x
topology: tpu7x:2x2x1
jax: 0.10.0
libtpu: 0.0.40
codegen_flags: <defaults>
</compile_context>

<pallas_src>
import functools
import math

import jax
import jax.numpy as jnp
import numpy as np
from jax.experimental import pallas as pl
from jax.experimental.pallas import tpu as pltpu

LANE = 128                                   # channel padding / lane width
TAPS = ((0, 0), (0, 1), (1, 0), (1, 1))      # (dp, dq) shift offsets


def _round_up(x, m):
    return (x + m - 1) // m * m


# ----------------------------------------------------------------------------
# Pallas kernels
# ----------------------------------------------------------------------------
def _conv_taps(y_ref, w_ref, nb, Ho, Wo):
    """Stride-2 3x3 conv for image `nb` as four shifted bf16 matmuls (f32 acc).

    y_ref[nb] is the flattened parity-stacked input of shape
    ((Ho+1)*(Wo+1)+1, Kpad); w_ref is (4, Kpad, 128).  Returns (Ho*(Wo+1), 128)
    f32; rows with wo == Wo are junk and are never consumed downstream.
    """
    L = Ho * (Wo + 1)
    acc = jnp.zeros((L, LANE), jnp.float32)
    for t, (dp, dq) in enumerate(TAPS):
        off = dp * (Wo + 1) + dq
        tap = y_ref[nb, pl.ds(off, L), :]                       # (L, Kpad) bf16
        acc = acc + jnp.dot(tap, w_ref[t], preferred_element_type=jnp.float32)
    return acc


def _epilogue(acc, p_ref):
    """conv bias + LeakyReLU(0.2) + folded eval-mode BatchNorm, all f32."""
    z = acc + p_ref[0:1, :]                                     # conv bias
    z = jnp.where(z >= 0.0, z, 0.2 * z)                         # LeakyReLU(0.2)
    # TODO(synk): Dropout2d(0.25) is identity in eval mode; training-mode
    # channel dropout is not implemented here.
    return z * p_ref[1:2, :] + p_ref[2:3, :]                    # BatchNorm (running stats)


def conv_block_kernel(y_ref, w_ref, p_ref, o_ref, *, Ho, Wo, NB):
    for nb in range(NB):
        z = _epilogue(_conv_taps(y_ref, w_ref, nb, Ho, Wo), p_ref)
        o_ref[nb] = z.astype(o_ref.dtype)


def conv_head_kernel(y_ref, w_ref, p_ref, hw_ref, o_ref, *, Ho, Wo, NB):
    """Last conv block fused with Linear(128*ds*ds -> 1) + Sigmoid."""
    ds = Ho                                                     # final map is ds x ds
    for nb in range(NB):
        z = _epilogue(_conv_taps(y_ref, w_ref, nb, Ho, Wo), p_ref)
        logit = jnp.zeros((1, LANE), jnp.float32)
        for i in range(ds):                                     # linear over (i, j, c)
            for j in range(ds):
                r = i * (Wo + 1) + j
                logit = logit + jnp.dot(z[r:r + 1, :].astype(jnp.bfloat16),
                                        hw_ref[i * ds + j],
                                        preferred_element_type=jnp.float32)
        logit = logit + p_ref[3:4, :]                           # head bias (col 0 real)
        o_ref[nb] = 1.0 / (1.0 + jnp.exp(-logit))               # Sigmoid


# ----------------------------------------------------------------------------
# pallas_call wrappers
# ----------------------------------------------------------------------------
def _compiler_params():
    return pltpu.CompilerParams(
        dimension_semantics=("parallel",),          # shard batch across cores (v7x)
        vmem_limit_bytes=32 * 1024 * 1024,          # explicit, portable across gens
    )


def run_conv_block(y, w, p, *, Ho, Wo):
    N, Pin, Kp = y.shape
    L = Ho * (Wo + 1)
    NB = math.gcd(N, 8)                             # batch tile; divides N, tiny VMEM
    kern = functools.partial(conv_block_kernel, Ho=Ho, Wo=Wo, NB=NB)
    return pl.pallas_call(
        kern,
        out_shape=jax.ShapeDtypeStruct((N, L, LANE), jnp.bfloat16),
        grid=(N // NB,),
        in_specs=[
            pl.BlockSpec((NB, Pin, Kp), lambda i: (i, 0, 0)),
            pl.BlockSpec((4, Kp, LANE), lambda i: (0, 0, 0)),   # resident tap weights
            pl.BlockSpec((8, LANE), lambda i: (0, 0)),          # bias/scale/shift pack
        ],
        out_specs=pl.BlockSpec((NB, L, LANE), lambda i: (i, 0, 0)),
        compiler_params=_compiler_params(),
    )(y, w, p)


def run_conv_head(y, w, p, hw, *, Ho, Wo):
    N, Pin, Kp = y.shape
    NB = math.gcd(N, 8)
    kern = functools.partial(conv_head_kernel, Ho=Ho, Wo=Wo, NB=NB)
    return pl.pallas_call(
        kern,
        out_shape=jax.ShapeDtypeStruct((N, 1, LANE), jnp.float32),
        grid=(N // NB,),
        in_specs=[
            pl.BlockSpec((NB, Pin, Kp), lambda i: (i, 0, 0)),
            pl.BlockSpec((4, Kp, LANE), lambda i: (0, 0, 0)),
            pl.BlockSpec((8, LANE), lambda i: (0, 0)),
            pl.BlockSpec(hw.shape, lambda i: (0, 0, 0)),        # (ds*ds, 128, 128)
        ],
        out_specs=pl.BlockSpec((NB, 1, LANE), lambda i: (i, 0, 0)),
        compiler_params=_compiler_params(),
    )(y, w, p, hw)


# ----------------------------------------------------------------------------
# Wrapper glue (XLA side): parity stacking, ~1x activation volume, no transposes
# ----------------------------------------------------------------------------
def build_tap_input(x):
    """NHWC activation -> flattened 2x2 parity stack feeding the conv kernel.

    x: (N, H, W, C), H and W even.  Returns (y, Ho, Wo) with
    y[n, p*(Wo+1)+q, (a*2+b)*C + ci] = xpad[n, 2p+a, 2q+b, ci] (xpad: zero-pad 1),
    channel dim zero-padded up to a multiple of 128, plus one trailing zero row.
    """
    N, H, W, C = x.shape
    Ho, Wo = H // 2, W // 2
    xp = jnp.pad(x, ((0, 0), (1, 1), (1, 1), (0, 0)))
    y = jnp.concatenate([xp[:, a::2, b::2, :] for a in (0, 1) for b in (0, 1)],
                        axis=-1)                                # (N, Ho+1, Wo+1, 4C)
    kpad = _round_up(4 * C, LANE)
    if kpad > 4 * C:
        y = jnp.pad(y, ((0, 0), (0, 0), (0, 0), (0, kpad - 4 * C)))
    y = y.reshape(N, (Ho + 1) * (Wo + 1), kpad)
    y = jnp.pad(y, ((0, 0), (0, 1), (0, 0)))                    # extra row for (1,1) tap
    return y.astype(jnp.bfloat16), Ho, Wo


@jax.jit
def discriminator_forward(params, img):
    """img: (N, C, H, W) -> validity (N, 1), eval-mode Discriminator_CNN."""
    N = img.shape[0]
    x = jnp.transpose(img.astype(jnp.float32), (0, 2, 3, 1))    # single NCHW->NHWC
    n_blocks = len(params["blocks"])
    out = None
    for li, blk in enumerate(params["blocks"]):
        y, Ho, Wo = build_tap_input(x)
        if li < n_blocks - 1:
            o = run_conv_block(y, blk["w"], blk["p"], Ho=Ho, Wo=Wo)   # (N, Ho*(Wo+1), 128)
            x = o.reshape(N, Ho, Wo + 1, LANE)[:, :, :Wo, :]          # drop junk column
        else:
            out = run_conv_head(y, blk["w"], blk["p"], params["head_w"], Ho=Ho, Wo=Wo)
    return out[:, 0, :1]                                              # (N, 1) f32


# ----------------------------------------------------------------------------
# Parameter construction (packed for the kernels + raw for the XLA reference)
# ----------------------------------------------------------------------------
def init_params(key, img_shape):
    C0, H, W = img_shape
    assert H == W, "Discriminator_CNN assumes square images (ds from img_shape[1])"
    assert H % 16 == 0, "spatial size must be divisible by 2**4"
    ds = H // 16                                   # matches img_shape[1] // 2**4
    layer_defs = [(C0, 16, False), (16, 32, True), (32, 64, True), (64, 128, True)]
    keys = jax.random.split(key, len(layer_defs) + 1)

    # ----- head (raw + packed) -----
    khw, khb = jax.random.split(keys[-1])
    feat = 128 * ds * ds
    hw_raw = jax.random.normal(khw, (ds, ds, 128), jnp.float32) / np.sqrt(feat)
    hb_raw = jax.random.normal(khb, (1,), jnp.float32) * 0.01
    hw_pack = np.zeros((ds * ds, LANE, LANE), np.float32)
    hw_pack[:, :, 0] = np.asarray(hw_raw).reshape(ds * ds, 128)  # only out-col 0 is real

    blocks, raw_convs = [], []
    c_carry = C0                                   # channel width of carried activation
    for li, (lk, (cin, cout, bn)) in enumerate(zip(keys[:-1], layer_defs)):
        kw_, kb_ = jax.random.split(lk)
        w = jax.random.normal(kw_, (3, 3, cin, cout), jnp.float32) / np.sqrt(cin * 9)
        b = jax.random.normal(kb_, (cout,), jnp.float32) * 0.01
        if bn:
            eps = 0.8                              # nn.BatchNorm2d(out_filters, 0.8)
            scale = np.full((cout,), 1.0 / np.sqrt(1.0 + eps), np.float32)
        else:
            scale = np.ones((cout,), np.float32)
        shift = np.zeros((cout,), np.float32)
        raw_convs.append((w, b, jnp.asarray(scale), jnp.asarray(shift)))

        # pack the 3x3 conv into the 4 shifted-matmul weights, zero-padded to lanes
        kpad = _round_up(4 * c_carry, LANE)
        w_np = np.asarray(w)
        w2 = np.zeros((4, kpad, LANE), np.float32)
        for dp, dq in TAPS:
            t = dp * 2 + dq
            for a in (0, 1):
                for bq in (0, 1):
                    dh, dw = 2 * dp + a, 2 * dq + bq
                    if dh < 3 and dw < 3:
                        r0 = (a * 2 + bq) * c_carry
                        w2[t, r0:r0 + cin, :cout] = w_np[dh, dw]
        p_np = np.zeros((8, LANE), np.float32)
        p_np[0, :cout] = np.asarray(b)             # conv bias
        p_np[1, :] = 1.0
        p_np[1, :cout] = scale                     # BN scale (eval, folded)
        p_np[2, :cout] = shift                     # BN shift
        if li == len(layer_defs) - 1:
            p_np[3, 0] = float(hb_raw[0])          # head bias rides with layer 4
        blocks.append({"w": jnp.asarray(w2, jnp.bfloat16), "p": jnp.asarray(p_np)})
        c_carry = LANE                             # outputs carried 128-channel padded

    params = {"blocks": blocks, "head_w": jnp.asarray(hw_pack, jnp.bfloat16)}
    raw = {"convs": raw_convs, "head_w": hw_raw, "head_b": hb_raw}
    return params, raw


# ----------------------------------------------------------------------------
# Pure-XLA float32 reference (same parameterization) for a runtime self-check
# ----------------------------------------------------------------------------
def reference_forward(raw, img):
    x = jnp.transpose(img.astype(jnp.float32), (0, 2, 3, 1))
    for w, b, scale, shift in raw["convs"]:
        x = jax.lax.conv_general_dilated(
            x, w, window_strides=(2, 2), padding=((1, 1), (1, 1)),
            dimension_numbers=("NHWC", "HWIO", "NHWC"))
        x = x + b
        x = jnp.where(x >= 0.0, x, 0.2 * x)
        x = x * scale + shift
    feat = x.reshape(x.shape[0], -1)               # (i, j, c) feature order
    logit = feat @ raw["head_w"].reshape(-1, 1) + raw["head_b"]
    return jax.nn.sigmoid(logit)


if __name__ == "__main__":
    img_shape = (4, 16, 16)                        # (C, H, W); ds_size = 16 // 16 = 1
    batch = 2

    key = jax.random.PRNGKey(0)
    k_params, k_img = jax.random.split(key)
    params, raw = init_params(k_params, img_shape)
    img = jax.random.normal(k_img, (batch,) + img_shape, jnp.float32)

    validity = discriminator_forward(params, img)
    jax.block_until_ready(validity)
    assert validity.shape == (batch, 1)
    assert bool(jnp.all((validity >= 0.0) & (validity <= 1.0)))

    ref = reference_forward(raw, img)
    err = float(jnp.max(jnp.abs(validity - ref)))
    assert err < 5e-2, f"mismatch vs XLA reference (max abs err = {err})"
    print("KERNEL_OK")
</pallas_src>

<mosaic_0001>
module attributes {stable_mosaic.version = 11 : i64} {
  func.func @conv_block_kernel(%arg0: i32, %arg1: memref<2x82x128xbf16, #tpu.memory_space<vmem>>, %arg2: memref<4x128x128xbf16, #tpu.memory_space<vmem>>, %arg3: memref<8x128xf32, #tpu.memory_space<vmem>>, %arg4: memref<2x72x128xbf16, #tpu.memory_space<vmem>>) attributes {dimension_semantics = [#tpu.dimension_semantics<parallel>], iteration_bounds = array<i64: 1>, scalar_prefetch = 0 : i64, scratch_operands = 0 : i64, tpu.core_type = #tpu.core_type<tc>, window_params = [{transform_indices = @transform_0, window_bounds = array<i64: 2, 82, 128>}, {pipeline_mode = #tpu.pipeline_mode<synchronous>, transform_indices = @transform_1, window_bounds = array<i64: 4, 128, 128>}, {pipeline_mode = #tpu.pipeline_mode<synchronous>, transform_indices = @transform_2, window_bounds = array<i64: 8, 128>}, {transform_indices = @transform_3, window_bounds = array<i64: 2, 72, 128>}]} {
    %cst = arith.constant 0.000000e+00 : f32
    %0 = vector.broadcast %cst : f32 to vector<72x128xf32>
    %c0 = arith.constant 0 : index
    %c0_0 = arith.constant 0 : index
    %c0_1 = arith.constant 0 : index
    %1 = vector.load %arg1[%c0, %c0_0, %c0_1] : memref<2x82x128xbf16, #tpu.memory_space<vmem>>, vector<1x72x128xbf16>
    %2 = vector.shape_cast %1 : vector<1x72x128xbf16> to vector<72x128xbf16>
    %c0_2 = arith.constant 0 : index
    %c0_3 = arith.constant 0 : index
    %c0_4 = arith.constant 0 : index
    %3 = vector.load %arg2[%c0_2, %c0_3, %c0_4] : memref<4x128x128xbf16, #tpu.memory_space<vmem>>, vector<1x128x128xbf16>
    %4 = vector.shape_cast %3 : vector<1x128x128xbf16> to vector<128x128xbf16>
    %cst_5 = arith.constant dense<0.000000e+00> : vector<72x128xf32>
    %5 = tpu.matmul %2, %4, %cst_5 {dimension_numbers = #tpu.dot_dimension_numbers<[1], [0], [0], [1], [0, 0, 1, 1], [], []>} : vector<72x128xbf16>, vector<128x128xbf16>, vector<72x128xf32> -> vector<72x128xf32>
    %6 = arith.addf %0, %5 : vector<72x128xf32>
    %c0_6 = arith.constant 0 : index
    %c1 = arith.constant 1 : index
    %c0_7 = arith.constant 0 : index
    %7 = vector.load %arg1[%c0_6, %c1, %c0_7] : memref<2x82x128xbf16, #tpu.memory_space<vmem>>, vector<1x72x128xbf16>
    %8 = vector.shape_cast %7 : vector<1x72x128xbf16> to vector<72x128xbf16>
    %c1_8 = arith.constant 1 : index
    %c0_9 = arith.constant 0 : index
    %c0_10 = arith.constant 0 : index
    %9 = vector.load %arg2[%c1_8, %c0_9, %c0_10] : memref<4x128x128xbf16, #tpu.memory_space<vmem>>, vector<1x128x128xbf16>
    %10 = vector.shape_cast %9 : vector<1x128x128xbf16> to vector<128x128xbf16>
    %cst_11 = arith.constant dense<0.000000e+00> : vector<72x128xf32>
    %11 = tpu.matmul %8, %10, %cst_11 {dimension_numbers = #tpu.dot_dimension_numbers<[1], [0], [0], [1], [0, 0, 1, 1], [], []>} : vector<72x128xbf16>, vector<128x128xbf16>, vector<72x128xf32> -> vector<72x128xf32>
    %12 = arith.addf %6, %11 : vector<72x128xf32>
    %c0_12 = arith.constant 0 : index
    %c9 = arith.constant 9 : index
    %c0_13 = arith.constant 0 : index
    %13 = vector.load %arg1[%c0_12, %c9, %c0_13] : memref<2x82x128xbf16, #tpu.memory_space<vmem>>, vector<1x72x128xbf16>
    %14 = vector.shape_cast %13 : vector<1x72x128xbf16> to vector<72x128xbf16>
    %c2 = arith.constant 2 : index
    %c0_14 = arith.constant 0 : index
    %c0_15 = arith.constant 0 : index
    %15 = vector.load %arg2[%c2, %c0_14, %c0_15] : memref<4x128x128xbf16, #tpu.memory_space<vmem>>, vector<1x128x128xbf16>
    %16 = vector.shape_cast %15 : vector<1x128x128xbf16> to vector<128x128xbf16>
    %cst_16 = arith.constant dense<0.000000e+00> : vector<72x128xf32>
    %17 = tpu.matmul %14, %16, %cst_16 {dimension_numbers = #tpu.dot_dimension_numbers<[1], [0], [0], [1], [0, 0, 1, 1], [], []>} : vector<72x128xbf16>, vector<128x128xbf16>, vector<72x128xf32> -> vector<72x128xf32>
    %18 = arith.addf %12, %17 : vector<72x128xf32>
    %c0_17 = arith.constant 0 : index
    %c10 = arith.constant 10 : index
    %c0_18 = arith.constant 0 : index
    %19 = vector.load %arg1[%c0_17, %c10, %c0_18] : memref<2x82x128xbf16, #tpu.memory_space<vmem>>, vector<1x72x128xbf16>
    %20 = vector.shape_cast %19 : vector<1x72x128xbf16> to vector<72x128xbf16>
    %c3 = arith.constant 3 : index
    %c0_19 = arith.constant 0 : index
    %c0_20 = arith.constant 0 : index
    %21 = vector.load %arg2[%c3, %c0_19, %c0_20] : memref<4x128x128xbf16, #tpu.memory_space<vmem>>, vector<1x128x128xbf16>
    %22 = vector.shape_cast %21 : vector<1x128x128xbf16> to vector<128x128xbf16>
    %cst_21 = arith.constant dense<0.000000e+00> : vector<72x128xf32>
    %23 = tpu.matmul %20, %22, %cst_21 {dimension_numbers = #tpu.dot_dimension_numbers<[1], [0], [0], [1], [0, 0, 1, 1], [], []>} : vector<72x128xbf16>, vector<128x128xbf16>, vector<72x128xf32> -> vector<72x128xf32>
    %24 = arith.addf %18, %23 : vector<72x128xf32>
    %c0_22 = arith.constant 0 : index
    %c0_23 = arith.constant 0 : index
    %25 = vector.load %arg3[%c0_22, %c0_23] : memref<8x128xf32, #tpu.memory_space<vmem>>, vector<1x128xf32>
    %26 = vector.broadcast %25 : vector<1x128xf32> to vector<72x128xf32>
    %27 = arith.addf %24, %26 : vector<72x128xf32>
    %cst_24 = arith.constant 0.000000e+00 : f32
    %28 = vector.broadcast %cst_24 : f32 to vector<72x128xf32>
    %29 = arith.cmpf oge, %27, %28 : vector<72x128xf32>
    %cst_25 = arith.constant 2.000000e-01 : f32
    %30 = vector.broadcast %cst_25 : f32 to vector<72x128xf32>
    %31 = arith.mulf %30, %27 : vector<72x128xf32>
    %32 = arith.select %29, %27, %31 : vector<72x128xi1>, vector<72x128xf32>
    %c1_26 = arith.constant 1 : index
    %c0_27 = arith.constant 0 : index
    %33 = vector.load %arg3[%c1_26, %c0_27] : memref<8x128xf32, #tpu.memory_space<vmem>>, vector<1x128xf32>
    %34 = vector.broadcast %33 : vector<1x128xf32> to vector<72x128xf32>
    %35 = arith.mulf %32, %34 : vector<72x128xf32>
    %c2_28 = arith.constant 2 : index
    %c0_29 = arith.constant 0 : index
    %36 = vector.load %arg3[%c2_28, %c0_29] : memref<8x128xf32, #tpu.memory_space<vmem>>, vector<1x128xf32>
    %37 = vector.broadcast %36 : vector<1x128xf32> to vector<72x128xf32>
    %38 = arith.addf %35, %37 : vector<72x128xf32>
    %39 = arith.truncf %38 : vector<72x128xf32> to vector<72x128xbf16>
    %c0_30 = arith.constant 0 : index
    %c0_31 = arith.constant 0 : index
    %c0_32 = arith.constant 0 : index
    %40 = vector.load %arg4[%c0_30, %c0_31, %c0_32] : memref<2x72x128xbf16, #tpu.memory_space<vmem>>, vector<1x72x128xbf16>
    %41 = vector.shape_cast %40 : vector<1x72x128xbf16> to vector<72x128xbf16>
    %42 = vector.shape_cast %39 : vector<72x128xbf16> to vector<1x72x128xbf16>
    tpu.vector_store %arg4[%c0_30, %c0_31, %c0_32], %42 {strides = array<i32>} : memref<2x72x128xbf16, #tpu.memory_space<vmem>>, vector<1x72x128xbf16>,
    %cst_33 = arith.constant 0.000000e+00 : f32
    %43 = vector.broadcast %cst_33 : f32 to vector<72x128xf32>
    %c1_34 = arith.constant 1 : index
    %c0_35 = arith.constant 0 : index
    %c0_36 = arith.constant 0 : index
    %44 = vector.load %arg1[%c1_34, %c0_35, %c0_36] : memref<2x82x128xbf16, #tpu.memory_space<vmem>>, vector<1x72x128xbf16>
    %45 = vector.shape_cast %44 : vector<1x72x128xbf16> to vector<72x128xbf16>
    %c0_37 = arith.constant 0 : index
    %c0_38 = arith.constant 0 : index
    %c0_39 = arith.constant 0 : index
    %46 = vector.load %arg2[%c0_37, %c0_38, %c0_39] : memref<4x128x128xbf16, #tpu.memory_space<vmem>>, vector<1x128x128xbf16>
    %47 = vector.shape_cast %46 : vector<1x128x128xbf16> to vector<128x128xbf16>
    %cst_40 = arith.constant dense<0.000000e+00> : vector<72x128xf32>
    %48 = tpu.matmul %45, %47, %cst_40 {dimension_numbers = #tpu.dot_dimension_numbers<[1], [0], [0], [1], [0, 0, 1, 1], [], []>} : vector<72x128xbf16>, vector<128x128xbf16>, vector<72x128xf32> -> vector<72x128xf32>
    %49 = arith.addf %43, %48 : vector<72x128xf32>
    %c1_41 = arith.constant 1 : index
    %c1_42 = arith.constant 1 : index
    %c0_43 = arith.constant 0 : index
    %50 = vector.load %arg1[%c1_41, %c1_42, %c0_43] : memref<2x82x128xbf16, #tpu.memory_space<vmem>>, vector<1x72x128xbf16>
    %51 = vector.shape_cast %50 : vector<1x72x128xbf16> to vector<72x128xbf16>
    %c1_44 = arith.constant 1 : index
    %c0_45 = arith.constant 0 : index
    %c0_46 = arith.constant 0 : index
    %52 = vector.load %arg2[%c1_44, %c0_45, %c0_46] : memref<4x128x128xbf16, #tpu.memory_space<vmem>>, vector<1x128x128xbf16>
    %53 = vector.shape_cast %52 : vector<1x128x128xbf16> to vector<128x128xbf16>
    %cst_47 = arith.constant dense<0.000000e+00> : vector<72x128xf32>
    %54 = tpu.matmul %51, %53, %cst_47 {dimension_numbers = #tpu.dot_dimension_numbers<[1], [0], [0], [1], [0, 0, 1, 1], [], []>} : vector<72x128xbf16>, vector<128x128xbf16>, vector<72x128xf32> -> vector<72x128xf32>
    %55 = arith.addf %49, %54 : vector<72x128xf32>
    %c1_48 = arith.constant 1 : index
    %c9_49 = arith.constant 9 : index
    %c0_50 = arith.constant 0 : index
    %56 = vector.load %arg1[%c1_48, %c9_49, %c0_50] : memref<2x82x128xbf16, #tpu.memory_space<vmem>>, vector<1x72x128xbf16>
    %57 = vector.shape_cast %56 : vector<1x72x128xbf16> to vector<72x128xbf16>
    %c2_51 = arith.constant 2 : index
    %c0_52 = arith.constant 0 : index
    %c0_53 = arith.constant 0 : index
    %58 = vector.load %arg2[%c2_51, %c0_52, %c0_53] : memref<4x128x128xbf16, #tpu.memory_space<vmem>>, vector<1x128x128xbf16>
    %59 = vector.shape_cast %58 : vector<1x128x128xbf16> to vector<128x128xbf16>
    %cst_54 = arith.constant dense<0.000000e+00> : vector<72x128xf32>
    %60 = tpu.matmul %57, %59, %cst_54 {dimension_numbers = #tpu.dot_dimension_numbers<[1], [0], [0], [1], [0, 0, 1, 1], [], []>} : vector<72x128xbf16>, vector<128x128xbf16>, vector<72x128xf32> -> vector<72x128xf32>
    %61 = arith.addf %55, %60 : vector<72x128xf32>
    %c1_55 = arith.constant 1 : index
    %c10_56 = arith.constant 10 : index
    %c0_57 = arith.constant 0 : index
    %62 = vector.load %arg1[%c1_55, %c10_56, %c0_57] : memref<2x82x128xbf16, #tpu.memory_space<vmem>>, vector<1x72x128xbf16>
    %63 = vector.shape_cast %62 : vector<1x72x128xbf16> to vector<72x128xbf16>
    %c3_58 = arith.constant 3 : index
    %c0_59 = arith.constant 0 : index
    %c0_60 = arith.constant 0 : index
    %64 = vector.load %arg2[%c3_58, %c0_59, %c0_60] : memref<4x128x128xbf16, #tpu.memory_space<vmem>>, vector<1x128x128xbf16>
    %65 = vector.shape_cast %64 : vector<1x128x128xbf16> to vector<128x128xbf16>
    %cst_61 = arith.constant dense<0.000000e+00> : vector<72x128xf32>
    %66 = tpu.matmul %63, %65, %cst_61 {dimension_numbers = #tpu.dot_dimension_numbers<[1], [0], [0], [1], [0, 0, 1, 1], [], []>} : vector<72x128xbf16>, vector<128x128xbf16>, vector<72x128xf32> -> vector<72x128xf32>
    %67 = arith.addf %61, %66 : vector<72x128xf32>
    %c0_62 = arith.constant 0 : index
    %c0_63 = arith.constant 0 : index
    %68 = vector.load %arg3[%c0_62, %c0_63] : memref<8x128xf32, #tpu.memory_space<vmem>>, vector<1x128xf32>
    %69 = vector.broadcast %68 : vector<1x128xf32> to vector<72x128xf32>
    %70 = arith.addf %67, %69 : vector<72x128xf32>
    %cst_64 = arith.constant 0.000000e+00 : f32
    %71 = vector.broadcast %cst_64 : f32 to vector<72x128xf32>
    %72 = arith.cmpf oge, %70, %71 : vector<72x128xf32>
    %cst_65 = arith.constant 2.000000e-01 : f32
    %73 = vector.broadcast %cst_65 : f32 to vector<72x128xf32>
    %74 = arith.mulf %73, %70 : vector<72x128xf32>
    %75 = arith.select %72, %70, %74 : vector<72x128xi1>, vector<72x128xf32>
    %c1_66 = arith.constant 1 : index
    %c0_67 = arith.constant 0 : index
    %76 = vector.load %arg3[%c1_66, %c0_67] : memref<8x128xf32, #tpu.memory_space<vmem>>, vector<1x128xf32>
    %77 = vector.broadcast %76 : vector<1x128xf32> to vector<72x128xf32>
    %78 = arith.mulf %75, %77 : vector<72x128xf32>
    %c2_68 = arith.constant 2 : index
    %c0_69 = arith.constant 0 : index
    %79 = vector.load %arg3[%c2_68, %c0_69] : memref<8x128xf32, #tpu.memory_space<vmem>>, vector<1x128xf32>
    %80 = vector.broadcast %79 : vector<1x128xf32> to vector<72x128xf32>
    %81 = arith.addf %78, %80 : vector<72x128xf32>
    %82 = arith.truncf %81 : vector<72x128xf32> to vector<72x128xbf16>
    %c1_70 = arith.constant 1 : index
    %c0_71 = arith.constant 0 : index
    %c0_72 = arith.constant 0 : index
    %83 = vector.load %arg4[%c1_70, %c0_71, %c0_72] : memref<2x72x128xbf16, #tpu.memory_space<vmem>>, vector<1x72x128xbf16>
    %84 = vector.shape_cast %83 : vector<1x72x128xbf16> to vector<72x128xbf16>
    %85 = vector.shape_cast %82 : vector<72x128xbf16> to vector<1x72x128xbf16>
    tpu.vector_store %arg4[%c1_70, %c0_71, %c0_72], %85 {strides = array<i32>} : memref<2x72x128xbf16, #tpu.memory_space<vmem>>, vector<1x72x128xbf16>,
    return
  }
  func.func @transform_0(%arg0: i32) -> (i32, i32, i32) {
    %c0_i32 = arith.constant 0 : i32
    %c0_i32_0 = arith.constant 0 : i32
    %c0_i32_1 = arith.constant 0 : i32
    return %arg0, %c0_i32, %c0_i32_0 : i32, i32, i32
  }
  func.func @transform_1(%arg0: i32) -> (i32, i32, i32) {
    %c0_i32 = arith.constant 0 : i32
    %c0_i32_0 = arith.constant 0 : i32
    %c0_i32_1 = arith.constant 0 : i32
    %c0_i32_2 = arith.constant 0 : i32
    return %c0_i32, %c0_i32_0, %c0_i32_1 : i32, i32, i32
  }
  func.func @transform_2(%arg0: i32) -> (i32, i32) {
    %c0_i32 = arith.constant 0 : i32
    %c0_i32_0 = arith.constant 0 : i32
    %c0_i32_1 = arith.constant 0 : i32
    return %c0_i32, %c0_i32_0 : i32, i32
  }
  func.func @transform_3(%arg0: i32) -> (i32, i32, i32) {
    %c0_i32 = arith.constant 0 : i32
    %c0_i32_0 = arith.constant 0 : i32
    %c0_i32_1 = arith.constant 0 : i32
    return %arg0, %c0_i32, %c0_i32_0 : i32, i32, i32
  }
}

module attributes {stable_mosaic.version = 11 : i64} {
  func.func @conv_block_kernel(%arg0: i32, %arg1: memref<2x26x512xbf16, #tpu.memory_space<vmem>>, %arg2: memref<4x512x128xbf16, #tpu.memory_space<vmem>>, %arg3: memref<8x128xf32, #tpu.memory_space<vmem>>, %arg4: memref<2x20x128xbf16, #tpu.memory_space<vmem>>) attributes {dimension_semantics = [#tpu.dimension_semantics<parallel>], iteration_bounds = array<i64: 1>, scalar_prefetch = 0 : i64, scratch_operands = 0 : i64, tpu.core_type = #tpu.core_type<tc>, window_params = [{transform_indices = @transform_0, window_bounds = array<i64: 2, 26, 512>}, {pipeline_mode = #tpu.pipeline_mode<synchronous>, transform_indices = @transform_1, window_bounds = array<i64: 4, 512, 128>}, {pipeline_mode = #tpu.pipeline_mode<synchronous>, transform_indices = @transform_2, window_bounds = array<i64: 8, 128>}, {transform_indices = @transform_3, window_bounds = array<i64: 2, 20, 128>}]} {
    %cst = arith.constant 0.000000e+00 : f32
    %0 = vector.broadcast %cst : f32 to vector<20x128xf32>
    %c0 = arith.constant 0 : index
    %c0_0 = arith.constant 0 : index
    %c0_1 = arith.constant 0 : index
    %1 = vector.load %arg1[%c0, %c0_0, %c0_1] : memref<2x26x512xbf16, #tpu.memory_space<vmem>>, vector<1x20x512xbf16>
    %2 = vector.shape_cast %1 : vector<1x20x512xbf16> to vector<20x512xbf16>
    %c0_2 = arith.constant 0 : index
    %c0_3 = arith.constant 0 : index
    %c0_4 = arith.constant 0 : index
    %3 = vector.load %arg2[%c0_2, %c0_3, %c0_4] : memref<4x512x128xbf16, #tpu.memory_space<vmem>>, vector<1x512x128xbf16>
    %4 = vector.shape_cast %3 : vector<1x512x128xbf16> to vector<512x128xbf16>
    %cst_5 = arith.constant dense<0.000000e+00> : vector<20x128xf32>
    %5 = tpu.matmul %2, %4, %cst_5 {dimension_numbers = #tpu.dot_dimension_numbers<[1], [0], [0], [1], [0, 0, 1, 1], [], []>} : vector<20x512xbf16>, vector<512x128xbf16>, vector<20x128xf32> -> vector<20x128xf32>
    %6 = arith.addf %0, %5 : vector<20x128xf32>
    %c0_6 = arith.constant 0 : index
    %c1 = arith.constant 1 : index
    %c0_7 = arith.constant 0 : index
    %7 = vector.load %arg1[%c0_6, %c1, %c0_7] : memref<2x26x512xbf16, #tpu.memory_space<vmem>>, vector<1x20x512xbf16>
    %8 = vector.shape_cast %7 : vector<1x20x512xbf16> to vector<20x512xbf16>
    %c1_8 = arith.constant 1 : index
    %c0_9 = arith.constant 0 : index
    %c0_10 = arith.constant 0 : index
    %9 = vector.load %arg2[%c1_8, %c0_9, %c0_10] : memref<4x512x128xbf16, #tpu.memory_space<vmem>>, vector<1x512x128xbf16>
    %10 = vector.shape_cast %9 : vector<1x512x128xbf16> to vector<512x128xbf16>
    %cst_11 = arith.constant dense<0.000000e+00> : vector<20x128xf32>
    %11 = tpu.matmul %8, %10, %cst_11 {dimension_numbers = #tpu.dot_dimension_numbers<[1], [0], [0], [1], [0, 0, 1, 1], [], []>} : vector<20x512xbf16>, vector<512x128xbf16>, vector<20x128xf32> -> vector<20x128xf32>
    %12 = arith.addf %6, %11 : vector<20x128xf32>
    %c0_12 = arith.constant 0 : index
    %c5 = arith.constant 5 : index
    %c0_13 = arith.constant 0 : index
    %13 = vector.load %arg1[%c0_12, %c5, %c0_13] : memref<2x26x512xbf16, #tpu.memory_space<vmem>>, vector<1x20x512xbf16>
    %14 = vector.shape_cast %13 : vector<1x20x512xbf16> to vector<20x512xbf16>
    %c2 = arith.constant 2 : index
    %c0_14 = arith.constant 0 : index
    %c0_15 = arith.constant 0 : index
    %15 = vector.load %arg2[%c2, %c0_14, %c0_15] : memref<4x512x128xbf16, #tpu.memory_space<vmem>>, vector<1x512x128xbf16>
    %16 = vector.shape_cast %15 : vector<1x512x128xbf16> to vector<512x128xbf16>
    %cst_16 = arith.constant dense<0.000000e+00> : vector<20x128xf32>
    %17 = tpu.matmul %14, %16, %cst_16 {dimension_numbers = #tpu.dot_dimension_numbers<[1], [0], [0], [1], [0, 0, 1, 1], [], []>} : vector<20x512xbf16>, vector<512x128xbf16>, vector<20x128xf32> -> vector<20x128xf32>
    %18 = arith.addf %12, %17 : vector<20x128xf32>
    %c0_17 = arith.constant 0 : index
    %c6 = arith.constant 6 : index
    %c0_18 = arith.constant 0 : index
    %19 = vector.load %arg1[%c0_17, %c6, %c0_18] : memref<2x26x512xbf16, #tpu.memory_space<vmem>>, vector<1x20x512xbf16>
    %20 = vector.shape_cast %19 : vector<1x20x512xbf16> to vector<20x512xbf16>
    %c3 = arith.constant 3 : index
    %c0_19 = arith.constant 0 : index
    %c0_20 = arith.constant 0 : index
    %21 = vector.load %arg2[%c3, %c0_19, %c0_20] : memref<4x512x128xbf16, #tpu.memory_space<vmem>>, vector<1x512x128xbf16>
    %22 = vector.shape_cast %21 : vector<1x512x128xbf16> to vector<512x128xbf16>
    %cst_21 = arith.constant dense<0.000000e+00> : vector<20x128xf32>
    %23 = tpu.matmul %20, %22, %cst_21 {dimension_numbers = #tpu.dot_dimension_numbers<[1], [0], [0], [1], [0, 0, 1, 1], [], []>} : vector<20x512xbf16>, vector<512x128xbf16>, vector<20x128xf32> -> vector<20x128xf32>
    %24 = arith.addf %18, %23 : vector<20x128xf32>
    %c0_22 = arith.constant 0 : index
    %c0_23 = arith.constant 0 : index
    %25 = vector.load %arg3[%c0_22, %c0_23] : memref<8x128xf32, #tpu.memory_space<vmem>>, vector<1x128xf32>
    %26 = vector.broadcast %25 : vector<1x128xf32> to vector<20x128xf32>
    %27 = arith.addf %24, %26 : vector<20x128xf32>
    %cst_24 = arith.constant 0.000000e+00 : f32
    %28 = vector.broadcast %cst_24 : f32 to vector<20x128xf32>
    %29 = arith.cmpf oge, %27, %28 : vector<20x128xf32>
    %cst_25 = arith.constant 2.000000e-01 : f32
    %30 = vector.broadcast %cst_25 : f32 to vector<20x128xf32>
    %31 = arith.mulf %30, %27 : vector<20x128xf32>
    %32 = arith.select %29, %27, %31 : vector<20x128xi1>, vector<20x128xf32>
    %c1_26 = arith.constant 1 : index
    %c0_27 = arith.constant 0 : index
    %33 = vector.load %arg3[%c1_26, %c0_27] : memref<8x128xf32, #tpu.memory_space<vmem>>, vector<1x128xf32>
    %34 = vector.broadcast %33 : vector<1x128xf32> to vector<20x128xf32>
    %35 = arith.mulf %32, %34 : vector<20x128xf32>
    %c2_28 = arith.constant 2 : index
    %c0_29 = arith.constant 0 : index
    %36 = vector.load %arg3[%c2_28, %c0_29] : memref<8x128xf32, #tpu.memory_space<vmem>>, vector<1x128xf32>
    %37 = vector.broadcast %36 : vector<1x128xf32> to vector<20x128xf32>
    %38 = arith.addf %35, %37 : vector<20x128xf32>
    %39 = arith.truncf %38 : vector<20x128xf32> to vector<20x128xbf16>
    %c0_30 = arith.constant 0 : index
    %c0_31 = arith.constant 0 : index
    %c0_32 = arith.constant 0 : index
    %40 = vector.load %arg4[%c0_30, %c0_31, %c0_32] : memref<2x20x128xbf16, #tpu.memory_space<vmem>>, vector<1x20x128xbf16>
    %41 = vector.shape_cast %40 : vector<1x20x128xbf16> to vector<20x128xbf16>
    %42 = vector.shape_cast %39 : vector<20x128xbf16> to vector<1x20x128xbf16>
    tpu.vector_store %arg4[%c0_30, %c0_31, %c0_32], %42 {strides = array<i32>} : memref<2x20x128xbf16, #tpu.memory_space<vmem>>, vector<1x20x128xbf16>,
    %cst_33 = arith.constant 0.000000e+00 : f32
    %43 = vector.broadcast %cst_33 : f32 to vector<20x128xf32>
    %c1_34 = arith.constant 1 : index
    %c0_35 = arith.constant 0 : index
    %c0_36 = arith.constant 0 : index
    %44 = vector.load %arg1[%c1_34, %c0_35, %c0_36] : memref<2x26x512xbf16, #tpu.memory_space<vmem>>, vector<1x20x512xbf16>
    %45 = vector.shape_cast %44 : vector<1x20x512xbf16> to vector<20x512xbf16>
    %c0_37 = arith.constant 0 : index
    %c0_38 = arith.constant 0 : index
    %c0_39 = arith.constant 0 : index
    %46 = vector.load %arg2[%c0_37, %c0_38, %c0_39] : memref<4x512x128xbf16, #tpu.memory_space<vmem>>, vector<1x512x128xbf16>
    %47 = vector.shape_cast %46 : vector<1x512x128xbf16> to vector<512x128xbf16>
    %cst_40 = arith.constant dense<0.000000e+00> : vector<20x128xf32>
    %48 = tpu.matmul %45, %47, %cst_40 {dimension_numbers = #tpu.dot_dimension_numbers<[1], [0], [0], [1], [0, 0, 1, 1], [], []>} : vector<20x512xbf16>, vector<512x128xbf16>, vector<20x128xf32> -> vector<20x128xf32>
    %49 = arith.addf %43, %48 : vector<20x128xf32>
    %c1_41 = arith.constant 1 : index
    %c1_42 = arith.constant 1 : index
    %c0_43 = arith.constant 0 : index
    %50 = vector.load %arg1[%c1_41, %c1_42, %c0_43] : memref<2x26x512xbf16, #tpu.memory_space<vmem>>, vector<1x20x512xbf16>
    %51 = vector.shape_cast %50 : vector<1x20x512xbf16> to vector<20x512xbf16>
    %c1_44 = arith.constant 1 : index
    %c0_45 = arith.constant 0 : index
    %c0_46 = arith.constant 0 : index
    %52 = vector.load %arg2[%c1_44, %c0_45, %c0_46] : memref<4x512x128xbf16, #tpu.memory_space<vmem>>, vector<1x512x128xbf16>
    %53 = vector.shape_cast %52 : vector<1x512x128xbf16> to vector<512x128xbf16>
    %cst_47 = arith.constant dense<0.000000e+00> : vector<20x128xf32>
    %54 = tpu.matmul %51, %53, %cst_47 {dimension_numbers = #tpu.dot_dimension_numbers<[1], [0], [0], [1], [0, 0, 1, 1], [], []>} : vector<20x512xbf16>, vector<512x128xbf16>, vector<20x128xf32> -> vector<20x128xf32>
    %55 = arith.addf %49, %54 : vector<20x128xf32>
    %c1_48 = arith.constant 1 : index
    %c5_49 = arith.constant 5 : index
    %c0_50 = arith.constant 0 : index
    %56 = vector.load %arg1[%c1_48, %c5_49, %c0_50] : memref<2x26x512xbf16, #tpu.memory_space<vmem>>, vector<1x20x512xbf16>
    %57 = vector.shape_cast %56 : vector<1x20x512xbf16> to vector<20x512xbf16>
    %c2_51 = arith.constant 2 : index
    %c0_52 = arith.constant 0 : index
    %c0_53 = arith.constant 0 : index
    %58 = vector.load %arg2[%c2_51, %c0_52, %c0_53] : memref<4x512x128xbf16, #tpu.memory_space<vmem>>, vector<1x512x128xbf16>
    %59 = vector.shape_cast %58 : vector<1x512x128xbf16> to vector<512x128xbf16>
    %cst_54 = arith.constant dense<0.000000e+00> : vector<20x128xf32>
    %60 = tpu.matmul %57, %59, %cst_54 {dimension_numbers = #tpu.dot_dimension_numbers<[1], [0], [0], [1], [0, 0, 1, 1], [], []>} : vector<20x512xbf16>, vector<512x128xbf16>, vector<20x128xf32> -> vector<20x128xf32>
    %61 = arith.addf %55, %60 : vector<20x128xf32>
    %c1_55 = arith.constant 1 : index
    %c6_56 = arith.constant 6 : index
    %c0_57 = arith.constant 0 : index
    %62 = vector.load %arg1[%c1_55, %c6_56, %c0_57] : memref<2x26x512xbf16, #tpu.memory_space<vmem>>, vector<1x20x512xbf16>
    %63 = vector.shape_cast %62 : vector<1x20x512xbf16> to vector<20x512xbf16>
    %c3_58 = arith.constant 3 : index
    %c0_59 = arith.constant 0 : index
    %c0_60 = arith.constant 0 : index
    %64 = vector.load %arg2[%c3_58, %c0_59, %c0_60] : memref<4x512x128xbf16, #tpu.memory_space<vmem>>, vector<1x512x128xbf16>
    %65 = vector.shape_cast %64 : vector<1x512x128xbf16> to vector<512x128xbf16>
    %cst_61 = arith.constant dense<0.000000e+00> : vector<20x128xf32>
    %66 = tpu.matmul %63, %65, %cst_61 {dimension_numbers = #tpu.dot_dimension_numbers<[1], [0], [0], [1], [0, 0, 1, 1], [], []>} : vector<20x512xbf16>, vector<512x128xbf16>, vector<20x128xf32> -> vector<20x128xf32>
    %67 = arith.addf %61, %66 : vector<20x128xf32>
    %c0_62 = arith.constant 0 : index
    %c0_63 = arith.constant 0 : index
    %68 = vector.load %arg3[%c0_62, %c0_63] : memref<8x128xf32, #tpu.memory_space<vmem>>, vector<1x128xf32>
    %69 = vector.broadcast %68 : vector<1x128xf32> to vector<20x128xf32>
    %70 = arith.addf %67, %69 : vector<20x128xf32>
    %cst_64 = arith.constant 0.000000e+00 : f32
    %71 = vector.broadcast %cst_64 : f32 to vector<20x128xf32>
    %72 = arith.cmpf oge, %70, %71 : vector<20x128xf32>
    %cst_65 = arith.constant 2.000000e-01 : f32
    %73 = vector.broadcast %cst_65 : f32 to vector<20x128xf32>
    %74 = arith.mulf %73, %70 : vector<20x128xf32>
    %75 = arith.select %72, %70, %74 : vector<20x128xi1>, vector<20x128xf32>
    %c1_66 = arith.constant 1 : index
    %c0_67 = arith.constant 0 : index
    %76 = vector.load %arg3[%c1_66, %c0_67] : memref<8x128xf32, #tpu.memory_space<vmem>>, vector<1x128xf32>
    %77 = vector.broadcast %76 : vector<1x128xf32> to vector<20x128xf32>
    %78 = arith.mulf %75, %77 : vector<20x128xf32>
    %c2_68 = arith.constant 2 : index
    %c0_69 = arith.constant 0 : index
    %79 = vector.load %arg3[%c2_68, %c0_69] : memref<8x128xf32, #tpu.memory_space<vmem>>, vector<1x128xf32>
    %80 = vector.broadcast %79 : vector<1x128xf32> to vector<20x128xf32>
    %81 = arith.addf %78, %80 : vector<20x128xf32>
    %82 = arith.truncf %81 : vector<20x128xf32> to vector<20x128xbf16>
    %c1_70 = arith.constant 1 : index
    %c0_71 = arith.constant 0 : index
    %c0_72 = arith.constant 0 : index
    %83 = vector.load %arg4[%c1_70, %c0_71, %c0_72] : memref<2x20x128xbf16, #tpu.memory_space<vmem>>, vector<1x20x128xbf16>
    %84 = vector.shape_cast %83 : vector<1x20x128xbf16> to vector<20x128xbf16>
    %85 = vector.shape_cast %82 : vector<20x128xbf16> to vector<1x20x128xbf16>
    tpu.vector_store %arg4[%c1_70, %c0_71, %c0_72], %85 {strides = array<i32>} : memref<2x20x128xbf16, #tpu.memory_space<vmem>>, vector<1x20x128xbf16>,
    return
  }
  func.func @transform_0(%arg0: i32) -> (i32, i32, i32) {
    %c0_i32 = arith.constant 0 : i32
    %c0_i32_0 = arith.constant 0 : i32
    %c0_i32_1 = arith.constant 0 : i32
    return %arg0, %c0_i32, %c0_i32_0 : i32, i32, i32
  }
  func.func @transform_1(%arg0: i32) -> (i32, i32, i32) {
    %c0_i32 = arith.constant 0 : i32
    %c0_i32_0 = arith.constant 0 : i32
    %c0_i32_1 = arith.constant 0 : i32
    %c0_i32_2 = arith.constant 0 : i32
    return %c0_i32, %c0_i32_0, %c0_i32_1 : i32, i32, i32
  }
  func.func @transform_2(%arg0: i32) -> (i32, i32) {
    %c0_i32 = arith.constant 0 : i32
    %c0_i32_0 = arith.constant 0 : i32
    %c0_i32_1 = arith.constant 0 : i32
    return %c0_i32, %c0_i32_0 : i32, i32
  }
  func.func @transform_3(%arg0: i32) -> (i32, i32, i32) {
    %c0_i32 = arith.constant 0 : i32
    %c0_i32_0 = arith.constant 0 : i32
    %c0_i32_1 = arith.constant 0 : i32
    return %arg0, %c0_i32, %c0_i32_0 : i32, i32, i32
  }
}

module attributes {stable_mosaic.version = 11 : i64} {
  func.func @conv_head_kernel(%arg0: i32, %arg1: memref<2x5x512xbf16, #tpu.memory_space<vmem>>, %arg2: memref<4x512x128xbf16, #tpu.memory_space<vmem>>, %arg3: memref<8x128xf32, #tpu.memory_space<vmem>>, %arg4: memref<1x128x128xbf16, #tpu.memory_space<vmem>>, %arg5: memref<2x1x128xf32, #tpu.memory_space<vmem>>) attributes {dimension_semantics = [#tpu.dimension_semantics<parallel>], iteration_bounds = array<i64: 1>, scalar_prefetch = 0 : i64, scratch_operands = 0 : i64, tpu.core_type = #tpu.core_type<tc>, window_params = [{transform_indices = @transform_0, window_bounds = array<i64: 2, 5, 512>}, {pipeline_mode = #tpu.pipeline_mode<synchronous>, transform_indices = @transform_1, window_bounds = array<i64: 4, 512, 128>}, {pipeline_mode = #tpu.pipeline_mode<synchronous>, transform_indices = @transform_2, window_bounds = array<i64: 8, 128>}, {pipeline_mode = #tpu.pipeline_mode<synchronous>, transform_indices = @transform_3, window_bounds = array<i64: 1, 128, 128>}, {transform_indices = @transform_4, window_bounds = array<i64: 2, 1, 128>}]} {
    %cst = arith.constant 0.000000e+00 : f32
    %0 = vector.broadcast %cst : f32 to vector<2x128xf32>
    %c0 = arith.constant 0 : index
    %c0_0 = arith.constant 0 : index
    %c0_1 = arith.constant 0 : index
    %1 = vector.load %arg1[%c0, %c0_0, %c0_1] : memref<2x5x512xbf16, #tpu.memory_space<vmem>>, vector<1x2x512xbf16>
    %2 = vector.shape_cast %1 : vector<1x2x512xbf16> to vector<2x512xbf16>
    %c0_2 = arith.constant 0 : index
    %c0_3 = arith.constant 0 : index
    %c0_4 = arith.constant 0 : index
    %3 = vector.load %arg2[%c0_2, %c0_3, %c0_4] : memref<4x512x128xbf16, #tpu.memory_space<vmem>>, vector<1x512x128xbf16>
    %4 = vector.shape_cast %3 : vector<1x512x128xbf16> to vector<512x128xbf16>
    %cst_5 = arith.constant dense<0.000000e+00> : vector<2x128xf32>
    %5 = tpu.matmul %2, %4, %cst_5 {dimension_numbers = #tpu.dot_dimension_numbers<[1], [0], [0], [1], [0, 0, 1, 1], [], []>} : vector<2x512xbf16>, vector<512x128xbf16>, vector<2x128xf32> -> vector<2x128xf32>
    %6 = arith.addf %0, %5 : vector<2x128xf32>
    %c0_6 = arith.constant 0 : index
    %c1 = arith.constant 1 : index
    %c0_7 = arith.constant 0 : index
    %7 = vector.load %arg1[%c0_6, %c1, %c0_7] : memref<2x5x512xbf16, #tpu.memory_space<vmem>>, vector<1x2x512xbf16>
    %8 = vector.shape_cast %7 : vector<1x2x512xbf16> to vector<2x512xbf16>
    %c1_8 = arith.constant 1 : index
    %c0_9 = arith.constant 0 : index
    %c0_10 = arith.constant 0 : index
    %9 = vector.load %arg2[%c1_8, %c0_9, %c0_10] : memref<4x512x128xbf16, #tpu.memory_space<vmem>>, vector<1x512x128xbf16>
    %10 = vector.shape_cast %9 : vector<1x512x128xbf16> to vector<512x128xbf16>
    %cst_11 = arith.constant dense<0.000000e+00> : vector<2x128xf32>
    %11 = tpu.matmul %8, %10, %cst_11 {dimension_numbers = #tpu.dot_dimension_numbers<[1], [0], [0], [1], [0, 0, 1, 1], [], []>} : vector<2x512xbf16>, vector<512x128xbf16>, vector<2x128xf32> -> vector<2x128xf32>
    %12 = arith.addf %6, %11 : vector<2x128xf32>
    %c0_12 = arith.constant 0 : index
    %c2 = arith.constant 2 : index
    %c0_13 = arith.constant 0 : index
    %13 = vector.load %arg1[%c0_12, %c2, %c0_13] : memref<2x5x512xbf16, #tpu.memory_space<vmem>>, vector<1x2x512xbf16>
    %14 = vector.shape_cast %13 : vector<1x2x512xbf16> to vector<2x512xbf16>
    %c2_14 = arith.constant 2 : index
    %c0_15 = arith.constant 0 : index
    %c0_16 = arith.constant 0 : index
    %15 = vector.load %arg2[%c2_14, %c0_15, %c0_16] : memref<4x512x128xbf16, #tpu.memory_space<vmem>>, vector<1x512x128xbf16>
    %16 = vector.shape_cast %15 : vector<1x512x128xbf16> to vector<512x128xbf16>
    %cst_17 = arith.constant dense<0.000000e+00> : vector<2x128xf32>
    %17 = tpu.matmul %14, %16, %cst_17 {dimension_numbers = #tpu.dot_dimension_numbers<[1], [0], [0], [1], [0, 0, 1, 1], [], []>} : vector<2x512xbf16>, vector<512x128xbf16>, vector<2x128xf32> -> vector<2x128xf32>
    %18 = arith.addf %12, %17 : vector<2x128xf32>
    %c0_18 = arith.constant 0 : index
    %c3 = arith.constant 3 : index
    %c0_19 = arith.constant 0 : index
    %19 = vector.load %arg1[%c0_18, %c3, %c0_19] : memref<2x5x512xbf16, #tpu.memory_space<vmem>>, vector<1x2x512xbf16>
    %20 = vector.shape_cast %19 : vector<1x2x512xbf16> to vector<2x512xbf16>
    %c3_20 = arith.constant 3 : index
    %c0_21 = arith.constant 0 : index
    %c0_22 = arith.constant 0 : index
    %21 = vector.load %arg2[%c3_20, %c0_21, %c0_22] : memref<4x512x128xbf16, #tpu.memory_space<vmem>>, vector<1x512x128xbf16>
    %22 = vector.shape_cast %21 : vector<1x512x128xbf16> to vector<512x128xbf16>
    %cst_23 = arith.constant dense<0.000000e+00> : vector<2x128xf32>
    %23 = tpu.matmul %20, %22, %cst_23 {dimension_numbers = #tpu.dot_dimension_numbers<[1], [0], [0], [1], [0, 0, 1, 1], [], []>} : vector<2x512xbf16>, vector<512x128xbf16>, vector<2x128xf32> -> vector<2x128xf32>
    %24 = arith.addf %18, %23 : vector<2x128xf32>
    %c0_24 = arith.constant 0 : index
    %c0_25 = arith.constant 0 : index
    %25 = vector.load %arg3[%c0_24, %c0_25] : memref<8x128xf32, #tpu.memory_space<vmem>>, vector<1x128xf32>
    %26 = vector.broadcast %25 : vector<1x128xf32> to vector<2x128xf32>
    %27 = arith.addf %24, %26 : vector<2x128xf32>
    %cst_26 = arith.constant 0.000000e+00 : f32
    %28 = vector.broadcast %cst_26 : f32 to vector<2x128xf32>
    %29 = arith.cmpf oge, %27, %28 : vector<2x128xf32>
    %cst_27 = arith.constant 2.000000e-01 : f32
    %30 = vector.broadcast %cst_27 : f32 to vector<2x128xf32>
    %31 = arith.mulf %30, %27 : vector<2x128xf32>
    %32 = arith.select %29, %27, %31 : vector<2x128xi1>, vector<2x128xf32>
    %c1_28 = arith.constant 1 : index
    %c0_29 = arith.constant 0 : index
    %33 = vector.load %arg3[%c1_28, %c0_29] : memref<8x128xf32, #tpu.memory_space<vmem>>, vector<1x128xf32>
    %34 = vector.broadcast %33 : vector<1x128xf32> to vector<2x128xf32>
    %35 = arith.mulf %32, %34 : vector<2x128xf32>
    %c2_30 = arith.constant 2 : index
    %c0_31 = arith.constant 0 : index
    %36 = vector.load %arg3[%c2_30, %c0_31] : memref<8x128xf32, #tpu.memory_space<vmem>>, vector<1x128xf32>
    %37 = vector.broadcast %36 : vector<1x128xf32> to vector<2x128xf32>
    %38 = arith.addf %35, %37 : vector<2x128xf32>
    %cst_32 = arith.constant 0.000000e+00 : f32
    %39 = vector.broadcast %cst_32 : f32 to vector<1x128xf32>
    %40 = vector.extract_strided_slice %38 {offsets = [0, 0], sizes = [1, 128], strides = [1, 1]} : vector<2x128xf32> to vector<1x128xf32>
    %41 = arith.truncf %40 : vector<1x128xf32> to vector<1x128xbf16>
    %c0_33 = arith.constant 0 : index
    %c0_34 = arith.constant 0 : index
    %c0_35 = arith.constant 0 : index
    %42 = vector.load %arg4[%c0_33, %c0_34, %c0_35] : memref<1x128x128xbf16, #tpu.memory_space<vmem>>, vector<1x128x128xbf16>
    %43 = vector.shape_cast %42 : vector<1x128x128xbf16> to vector<128x128xbf16>
    %cst_36 = arith.constant dense<0.000000e+00> : vector<1x128xf32>
    %44 = tpu.matmul %41, %43, %cst_36 {dimension_numbers = #tpu.dot_dimension_numbers<[1], [0], [0], [1], [0, 0, 1, 1], [], []>} : vector<1x128xbf16>, vector<128x128xbf16>, vector<1x128xf32> -> vector<1x128xf32>
    %45 = arith.addf %39, %44 : vector<1x128xf32>
    %c3_37 = arith.constant 3 : index
    %c0_38 = arith.constant 0 : index
    %46 = vector.load %arg3[%c3_37, %c0_38] : memref<8x128xf32, #tpu.memory_space<vmem>>, vector<1x128xf32>
    %47 = arith.addf %45, %46 : vector<1x128xf32>
    %cst_39 = arith.constant 0.000000e+00 : f32
    %48 = vector.broadcast %cst_39 : f32 to vector<1x128xf32>
    %49 = arith.subf %48, %47 : vector<1x128xf32>
    %50 = math.exp %49 : vector<1x128xf32>
    %cst_40 = arith.constant 1.000000e+00 : f32
    %51 = vector.broadcast %cst_40 : f32 to vector<1x128xf32>
    %52 = arith.addf %51, %50 : vector<1x128xf32>
    %cst_41 = arith.constant 1.000000e+00 : f32
    %53 = vector.broadcast %cst_41 : f32 to vector<1x128xf32>
    %54 = arith.divf %53, %52 : vector<1x128xf32>
    %c0_42 = arith.constant 0 : index
    %c0_43 = arith.constant 0 : index
    %c0_44 = arith.constant 0 : index
    %55 = vector.load %arg5[%c0_42, %c0_43, %c0_44] : memref<2x1x128xf32, #tpu.memory_space<vmem>>, vector<1x1x128xf32>
    %56 = vector.shape_cast %55 : vector<1x1x128xf32> to vector<1x128xf32>
    %57 = vector.shape_cast %54 : vector<1x128xf32> to vector<1x1x128xf32>
    tpu.vector_store %arg5[%c0_42, %c0_43, %c0_44], %57 {strides = array<i32>} : memref<2x1x128xf32, #tpu.memory_space<vmem>>, vector<1x1x128xf32>,
    %cst_45 = arith.constant 0.000000e+00 : f32
    %58 = vector.broadcast %cst_45 : f32 to vector<2x128xf32>
    %c1_46 = arith.constant 1 : index
    %c0_47 = arith.constant 0 : index
    %c0_48 = arith.constant 0 : index
    %59 = vector.load %arg1[%c1_46, %c0_47, %c0_48] : memref<2x5x512xbf16, #tpu.memory_space<vmem>>, vector<1x2x512xbf16>
    %60 = vector.shape_cast %59 : vector<1x2x512xbf16> to vector<2x512xbf16>
    %c0_49 = arith.constant 0 : index
    %c0_50 = arith.constant 0 : index
    %c0_51 = arith.constant 0 : index
    %61 = vector.load %arg2[%c0_49, %c0_50, %c0_51] : memref<4x512x128xbf16, #tpu.memory_space<vmem>>, vector<1x512x128xbf16>
    %62 = vector.shape_cast %61 : vector<1x512x128xbf16> to vector<512x128xbf16>
    %cst_52 = arith.constant dense<0.000000e+00> : vector<2x128xf32>
    %63 = tpu.matmul %60, %62, %cst_52 {dimension_numbers = #tpu.dot_dimension_numbers<[1], [0], [0], [1], [0, 0, 1, 1], [], []>} : vector<2x512xbf16>, vector<512x128xbf16>, vector<2x128xf32> -> vector<2x128xf32>
    %64 = arith.addf %58, %63 : vector<2x128xf32>
    %c1_53 = arith.constant 1 : index
    %c1_54 = arith.constant 1 : index
    %c0_55 = arith.constant 0 : index
    %65 = vector.load %arg1[%c1_53, %c1_54, %c0_55] : memref<2x5x512xbf16, #tpu.memory_space<vmem>>, vector<1x2x512xbf16>
    %66 = vector.shape_cast %65 : vector<1x2x512xbf16> to vector<2x512xbf16>
    %c1_56 = arith.constant 1 : index
    %c0_57 = arith.constant 0 : index
    %c0_58 = arith.constant 0 : index
    %67 = vector.load %arg2[%c1_56, %c0_57, %c0_58] : memref<4x512x128xbf16, #tpu.memory_space<vmem>>, vector<1x512x128xbf16>
    %68 = vector.shape_cast %67 : vector<1x512x128xbf16> to vector<512x128xbf16>
    %cst_59 = arith.constant dense<0.000000e+00> : vector<2x128xf32>
    %69 = tpu.matmul %66, %68, %cst_59 {dimension_numbers = #tpu.dot_dimension_numbers<[1], [0], [0], [1], [0, 0, 1, 1], [], []>} : vector<2x512xbf16>, vector<512x128xbf16>, vector<2x128xf32> -> vector<2x128xf32>
    %70 = arith.addf %64, %69 : vector<2x128xf32>
    %c1_60 = arith.constant 1 : index
    %c2_61 = arith.constant 2 : index
    %c0_62 = arith.constant 0 : index
    %71 = vector.load %arg1[%c1_60, %c2_61, %c0_62] : memref<2x5x512xbf16, #tpu.memory_space<vmem>>, vector<1x2x512xbf16>
    %72 = vector.shape_cast %71 : vector<1x2x512xbf16> to vector<2x512xbf16>
    %c2_63 = arith.constant 2 : index
    %c0_64 = arith.constant 0 : index
    %c0_65 = arith.constant 0 : index
    %73 = vector.load %arg2[%c2_63, %c0_64, %c0_65] : memref<4x512x128xbf16, #tpu.memory_space<vmem>>, vector<1x512x128xbf16>
    %74 = vector.shape_cast %73 : vector<1x512x128xbf16> to vector<512x128xbf16>
    %cst_66 = arith.constant dense<0.000000e+00> : vector<2x128xf32>
    %75 = tpu.matmul %72, %74, %cst_66 {dimension_numbers = #tpu.dot_dimension_numbers<[1], [0], [0], [1], [0, 0, 1, 1], [], []>} : vector<2x512xbf16>, vector<512x128xbf16>, vector<2x128xf32> -> vector<2x128xf32>
    %76 = arith.addf %70, %75 : vector<2x128xf32>
    %c1_67 = arith.constant 1 : index
    %c3_68 = arith.constant 3 : index
    %c0_69 = arith.constant 0 : index
    %77 = vector.load %arg1[%c1_67, %c3_68, %c0_69] : memref<2x5x512xbf16, #tpu.memory_space<vmem>>, vector<1x2x512xbf16>
    %78 = vector.shape_cast %77 : vector<1x2x512xbf16> to vector<2x512xbf16>
    %c3_70 = arith.constant 3 : index
    %c0_71 = arith.constant 0 : index
    %c0_72 = arith.constant 0 : index
    %79 = vector.load %arg2[%c3_70, %c0_71, %c0_72] : memref<4x512x128xbf16, #tpu.memory_space<vmem>>, vector<1x512x128xbf16>
    %80 = vector.shape_cast %79 : vector<1x512x128xbf16> to vector<512x128xbf16>
    %cst_73 = arith.constant dense<0.000000e+00> : vector<2x128xf32>
    %81 = tpu.matmul %78, %80, %cst_73 {dimension_numbers = #tpu.dot_dimension_numbers<[1], [0], [0], [1], [0, 0, 1, 1], [], []>} : vector<2x512xbf16>, vector<512x128xbf16>, vector<2x128xf32> -> vector<2x128xf32>
    %82 = arith.addf %76, %81 : vector<2x128xf32>
    %c0_74 = arith.constant 0 : index
    %c0_75 = arith.constant 0 : index
    %83 = vector.load %arg3[%c0_74, %c0_75] : memref<8x128xf32, #tpu.memory_space<vmem>>, vector<1x128xf32>
    %84 = vector.broadcast %83 : vector<1x128xf32> to vector<2x128xf32>
    %85 = arith.addf %82, %84 : vector<2x128xf32>
    %cst_76 = arith.constant 0.000000e+00 : f32
    %86 = vector.broadcast %cst_76 : f32 to vector<2x128xf32>
    %87 = arith.cmpf oge, %85, %86 : vector<2x128xf32>
    %cst_77 = arith.constant 2.000000e-01 : f32
    %88 = vector.broadcast %cst_77 : f32 to vector<2x128xf32>
    %89 = arith.mulf %88, %85 : vector<2x128xf32>
    %90 = arith.select %87, %85, %89 : vector<2x128xi1>, vector<2x128xf32>
    %c1_78 = arith.constant 1 : index
    %c0_79 = arith.constant 0 : index
    %91 = vector.load %arg3[%c1_78, %c0_79] : memref<8x128xf32, #tpu.memory_space<vmem>>, vector<1x128xf32>
    %92 = vector.broadcast %91 : vector<1x128xf32> to vector<2x128xf32>
    %93 = arith.mulf %90, %92 : vector<2x128xf32>
    %c2_80 = arith.constant 2 : index
    %c0_81 = arith.constant 0 : index
    %94 = vector.load %arg3[%c2_80, %c0_81] : memref<8x128xf32, #tpu.memory_space<vmem>>, vector<1x128xf32>
    %95 = vector.broadcast %94 : vector<1x128xf32> to vector<2x128xf32>
    %96 = arith.addf %93, %95 : vector<2x128xf32>
    %cst_82 = arith.constant 0.000000e+00 : f32
    %97 = vector.broadcast %cst_82 : f32 to vector<1x128xf32>
    %98 = vector.extract_strided_slice %96 {offsets = [0, 0], sizes = [1, 128], strides = [1, 1]} : vector<2x128xf32> to vector<1x128xf32>
    %99 = arith.truncf %98 : vector<1x128xf32> to vector<1x128xbf16>
    %c0_83 = arith.constant 0 : index
    %c0_84 = arith.constant 0 : index
    %c0_85 = arith.constant 0 : index
    %100 = vector.load %arg4[%c0_83, %c0_84, %c0_85] : memref<1x128x128xbf16, #tpu.memory_space<vmem>>, vector<1x128x128xbf16>
    %101 = vector.shape_cast %100 : vector<1x128x128xbf16> to vector<128x128xbf16>
    %cst_86 = arith.constant dense<0.000000e+00> : vector<1x128xf32>
    %102 = tpu.matmul %99, %101, %cst_86 {dimension_numbers = #tpu.dot_dimension_numbers<[1], [0], [0], [1], [0, 0, 1, 1], [], []>} : vector<1x128xbf16>, vector<128x128xbf16>, vector<1x128xf32> -> vector<1x128xf32>
    %103 = arith.addf %97, %102 : vector<1x128xf32>
    %c3_87 = arith.constant 3 : index
    %c0_88 = arith.constant 0 : index
    %104 = vector.load %arg3[%c3_87, %c0_88] : memref<8x128xf32, #tpu.memory_space<vmem>>, vector<1x128xf32>
    %105 = arith.addf %103, %104 : vector<1x128xf32>
    %cst_89 = arith.constant 0.000000e+00 : f32
    %106 = vector.broadcast %cst_89 : f32 to vector<1x128xf32>
    %107 = arith.subf %106, %105 : vector<1x128xf32>
    %108 = math.exp %107 : vector<1x128xf32>
    %cst_90 = arith.constant 1.000000e+00 : f32
    %109 = vector.broadcast %cst_90 : f32 to vector<1x128xf32>
    %110 = arith.addf %109, %108 : vector<1x128xf32>
    %cst_91 = arith.constant 1.000000e+00 : f32
    %111 = vector.broadcast %cst_91 : f32 to vector<1x128xf32>
    %112 = arith.divf %111, %110 : vector<1x128xf32>
    %c1_92 = arith.constant 1 : index
    %c0_93 = arith.constant 0 : index
    %c0_94 = arith.constant 0 : index
    %113 = vector.load %arg5[%c1_92, %c0_93, %c0_94] : memref<2x1x128xf32, #tpu.memory_space<vmem>>, vector<1x1x128xf32>
    %114 = vector.shape_cast %113 : vector<1x1x128xf32> to vector<1x128xf32>
    %115 = vector.shape_cast %112 : vector<1x128xf32> to vector<1x1x128xf32>
    tpu.vector_store %arg5[%c1_92, %c0_93, %c0_94], %115 {strides = array<i32>} : memref<2x1x128xf32, #tpu.memory_space<vmem>>, vector<1x1x128xf32>,
    return
  }
  func.func @transform_0(%arg0: i32) -> (i32, i32, i32) {
    %c0_i32 = arith.constant 0 : i32
    %c0_i32_0 = arith.constant 0 : i32
    %c0_i32_1 = arith.constant 0 : i32
    return %arg0, %c0_i32, %c0_i32_0 : i32, i32, i32
  }
  func.func @transform_1(%arg0: i32) -> (i32, i32, i32) {
    %c0_i32 = arith.constant 0 : i32
    %c0_i32_0 = arith.constant 0 : i32
    %c0_i32_1 = arith.constant 0 : i32
    %c0_i32_2 = arith.constant 0 : i32
    return %c0_i32, %c0_i32_0, %c0_i32_1 : i32, i32, i32
  }
  func.func @transform_2(%arg0: i32) -> (i32, i32) {
    %c0_i32 = arith.constant 0 : i32
    %c0_i32_0 = arith.constant 0 : i32
    %c0_i32_1 = arith.constant 0 : i32
    return %c0_i32, %c0_i32_0 : i32, i32
  }
  func.func @transform_3(%arg0: i32) -> (i32, i32, i32) {
    %c0_i32 = arith.constant 0 : i32
    %c0_i32_0 = arith.constant 0 : i32
    %c0_i32_1 = arith.constant 0 : i32
    %c0_i32_2 = arith.constant 0 : i32
    return %c0_i32, %c0_i32_0, %c0_i32_1 : i32, i32, i32
  }
  func.func @transform_4(%arg0: i32) -> (i32, i32, i32) {
    %c0_i32 = arith.constant 0 : i32
    %c0_i32_0 = arith.constant 0 : i32
    %c0_i32_1 = arith.constant 0 : i32
    return %arg0, %c0_i32, %c0_i32_0 : i32, i32, i32
  }
}

module attributes {stable_mosaic.version = 11 : i64} {
  func.func @conv_block_kernel(%arg0: i32, %arg1: memref<2x10x512xbf16, #tpu.memory_space<vmem>>, %arg2: memref<4x512x128xbf16, #tpu.memory_space<vmem>>, %arg3: memref<8x128xf32, #tpu.memory_space<vmem>>, %arg4: memref<2x6x128xbf16, #tpu.memory_space<vmem>>) attributes {dimension_semantics = [#tpu.dimension_semantics<parallel>], iteration_bounds = array<i64: 1>, scalar_prefetch = 0 : i64, scratch_operands = 0 : i64, tpu.core_type = #tpu.core_type<tc>, window_params = [{transform_indices = @transform_0, window_bounds = array<i64: 2, 10, 512>}, {pipeline_mode = #tpu.pipeline_mode<synchronous>, transform_indices = @transform_1, window_bounds = array<i64: 4, 512, 128>}, {pipeline_mode = #tpu.pipeline_mode<synchronous>, transform_indices = @transform_2, window_bounds = array<i64: 8, 128>}, {transform_indices = @transform_3, window_bounds = array<i64: 2, 6, 128>}]} {
    %cst = arith.constant 0.000000e+00 : f32
    %0 = vector.broadcast %cst : f32 to vector<6x128xf32>
    %c0 = arith.constant 0 : index
    %c0_0 = arith.constant 0 : index
    %c0_1 = arith.constant 0 : index
    %1 = vector.load %arg1[%c0, %c0_0, %c0_1] : memref<2x10x512xbf16, #tpu.memory_space<vmem>>, vector<1x6x512xbf16>
    %2 = vector.shape_cast %1 : vector<1x6x512xbf16> to vector<6x512xbf16>
    %c0_2 = arith.constant 0 : index
    %c0_3 = arith.constant 0 : index
    %c0_4 = arith.constant 0 : index
    %3 = vector.load %arg2[%c0_2, %c0_3, %c0_4] : memref<4x512x128xbf16, #tpu.memory_space<vmem>>, vector<1x512x128xbf16>
    %4 = vector.shape_cast %3 : vector<1x512x128xbf16> to vector<512x128xbf16>
    %cst_5 = arith.constant dense<0.000000e+00> : vector<6x128xf32>
    %5 = tpu.matmul %2, %4, %cst_5 {dimension_numbers = #tpu.dot_dimension_numbers<[1], [0], [0], [1], [0, 0, 1, 1], [], []>} : vector<6x512xbf16>, vector<512x128xbf16>, vector<6x128xf32> -> vector<6x128xf32>
    %6 = arith.addf %0, %5 : vector<6x128xf32>
    %c0_6 = arith.constant 0 : index
    %c1 = arith.constant 1 : index
    %c0_7 = arith.constant 0 : index
    %7 = vector.load %arg1[%c0_6, %c1, %c0_7] : memref<2x10x512xbf16, #tpu.memory_space<vmem>>, vector<1x6x512xbf16>
    %8 = vector.shape_cast %7 : vector<1x6x512xbf16> to vector<6x512xbf16>
    %c1_8 = arith.constant 1 : index
    %c0_9 = arith.constant 0 : index
    %c0_10 = arith.constant 0 : index
    %9 = vector.load %arg2[%c1_8, %c0_9, %c0_10] : memref<4x512x128xbf16, #tpu.memory_space<vmem>>, vector<1x512x128xbf16>
    %10 = vector.shape_cast %9 : vector<1x512x128xbf16> to vector<512x128xbf16>
    %cst_11 = arith.constant dense<0.000000e+00> : vector<6x128xf32>
    %11 = tpu.matmul %8, %10, %cst_11 {dimension_numbers = #tpu.dot_dimension_numbers<[1], [0], [0], [1], [0, 0, 1, 1], [], []>} : vector<6x512xbf16>, vector<512x128xbf16>, vector<6x128xf32> -> vector<6x128xf32>
    %12 = arith.addf %6, %11 : vector<6x128xf32>
    %c0_12 = arith.constant 0 : index
    %c3 = arith.constant 3 : index
    %c0_13 = arith.constant 0 : index
    %13 = vector.load %arg1[%c0_12, %c3, %c0_13] : memref<2x10x512xbf16, #tpu.memory_space<vmem>>, vector<1x6x512xbf16>
    %14 = vector.shape_cast %13 : vector<1x6x512xbf16> to vector<6x512xbf16>
    %c2 = arith.constant 2 : index
    %c0_14 = arith.constant 0 : index
    %c0_15 = arith.constant 0 : index
    %15 = vector.load %arg2[%c2, %c0_14, %c0_15] : memref<4x512x128xbf16, #tpu.memory_space<vmem>>, vector<1x512x128xbf16>
    %16 = vector.shape_cast %15 : vector<1x512x128xbf16> to vector<512x128xbf16>
    %cst_16 = arith.constant dense<0.000000e+00> : vector<6x128xf32>
    %17 = tpu.matmul %14, %16, %cst_16 {dimension_numbers = #tpu.dot_dimension_numbers<[1], [0], [0], [1], [0, 0, 1, 1], [], []>} : vector<6x512xbf16>, vector<512x128xbf16>, vector<6x128xf32> -> vector<6x128xf32>
    %18 = arith.addf %12, %17 : vector<6x128xf32>
    %c0_17 = arith.constant 0 : index
    %c4 = arith.constant 4 : index
    %c0_18 = arith.constant 0 : index
    %19 = vector.load %arg1[%c0_17, %c4, %c0_18] : memref<2x10x512xbf16, #tpu.memory_space<vmem>>, vector<1x6x512xbf16>
    %20 = vector.shape_cast %19 : vector<1x6x512xbf16> to vector<6x512xbf16>
    %c3_19 = arith.constant 3 : index
    %c0_20 = arith.constant 0 : index
    %c0_21 = arith.constant 0 : index
    %21 = vector.load %arg2[%c3_19, %c0_20, %c0_21] : memref<4x512x128xbf16, #tpu.memory_space<vmem>>, vector<1x512x128xbf16>
    %22 = vector.shape_cast %21 : vector<1x512x128xbf16> to vector<512x128xbf16>
    %cst_22 = arith.constant dense<0.000000e+00> : vector<6x128xf32>
    %23 = tpu.matmul %20, %22, %cst_22 {dimension_numbers = #tpu.dot_dimension_numbers<[1], [0], [0], [1], [0, 0, 1, 1], [], []>} : vector<6x512xbf16>, vector<512x128xbf16>, vector<6x128xf32> -> vector<6x128xf32>
    %24 = arith.addf %18, %23 : vector<6x128xf32>
    %c0_23 = arith.constant 0 : index
    %c0_24 = arith.constant 0 : index
    %25 = vector.load %arg3[%c0_23, %c0_24] : memref<8x128xf32, #tpu.memory_space<vmem>>, vector<1x128xf32>
    %26 = vector.broadcast %25 : vector<1x128xf32> to vector<6x128xf32>
    %27 = arith.addf %24, %26 : vector<6x128xf32>
    %cst_25 = arith.constant 0.000000e+00 : f32
    %28 = vector.broadcast %cst_25 : f32 to vector<6x128xf32>
    %29 = arith.cmpf oge, %27, %28 : vector<6x128xf32>
    %cst_26 = arith.constant 2.000000e-01 : f32
    %30 = vector.broadcast %cst_26 : f32 to vector<6x128xf32>
    %31 = arith.mulf %30, %27 : vector<6x128xf32>
    %32 = arith.select %29, %27, %31 : vector<6x128xi1>, vector<6x128xf32>
    %c1_27 = arith.constant 1 : index
    %c0_28 = arith.constant 0 : index
    %33 = vector.load %arg3[%c1_27, %c0_28] : memref<8x128xf32, #tpu.memory_space<vmem>>, vector<1x128xf32>
    %34 = vector.broadcast %33 : vector<1x128xf32> to vector<6x128xf32>
    %35 = arith.mulf %32, %34 : vector<6x128xf32>
    %c2_29 = arith.constant 2 : index
    %c0_30 = arith.constant 0 : index
    %36 = vector.load %arg3[%c2_29, %c0_30] : memref<8x128xf32, #tpu.memory_space<vmem>>, vector<1x128xf32>
    %37 = vector.broadcast %36 : vector<1x128xf32> to vector<6x128xf32>
    %38 = arith.addf %35, %37 : vector<6x128xf32>
    %39 = arith.truncf %38 : vector<6x128xf32> to vector<6x128xbf16>
    %c0_31 = arith.constant 0 : index
    %c0_32 = arith.constant 0 : index
    %c0_33 = arith.constant 0 : index
    %40 = vector.load %arg4[%c0_31, %c0_32, %c0_33] : memref<2x6x128xbf16, #tpu.memory_space<vmem>>, vector<1x6x128xbf16>
    %41 = vector.shape_cast %40 : vector<1x6x128xbf16> to vector<6x128xbf16>
    %42 = vector.shape_cast %39 : vector<6x128xbf16> to vector<1x6x128xbf16>
    tpu.vector_store %arg4[%c0_31, %c0_32, %c0_33], %42 {strides = array<i32>} : memref<2x6x128xbf16, #tpu.memory_space<vmem>>, vector<1x6x128xbf16>,
    %cst_34 = arith.constant 0.000000e+00 : f32
    %43 = vector.broadcast %cst_34 : f32 to vector<6x128xf32>
    %c1_35 = arith.constant 1 : index
    %c0_36 = arith.constant 0 : index
    %c0_37 = arith.constant 0 : index
    %44 = vector.load %arg1[%c1_35, %c0_36, %c0_37] : memref<2x10x512xbf16, #tpu.memory_space<vmem>>, vector<1x6x512xbf16>
    %45 = vector.shape_cast %44 : vector<1x6x512xbf16> to vector<6x512xbf16>
    %c0_38 = arith.constant 0 : index
    %c0_39 = arith.constant 0 : index
    %c0_40 = arith.constant 0 : index
    %46 = vector.load %arg2[%c0_38, %c0_39, %c0_40] : memref<4x512x128xbf16, #tpu.memory_space<vmem>>, vector<1x512x128xbf16>
    %47 = vector.shape_cast %46 : vector<1x512x128xbf16> to vector<512x128xbf16>
    %cst_41 = arith.constant dense<0.000000e+00> : vector<6x128xf32>
    %48 = tpu.matmul %45, %47, %cst_41 {dimension_numbers = #tpu.dot_dimension_numbers<[1], [0], [0], [1], [0, 0, 1, 1], [], []>} : vector<6x512xbf16>, vector<512x128xbf16>, vector<6x128xf32> -> vector<6x128xf32>
    %49 = arith.addf %43, %48 : vector<6x128xf32>
    %c1_42 = arith.constant 1 : index
    %c1_43 = arith.constant 1 : index
    %c0_44 = arith.constant 0 : index
    %50 = vector.load %arg1[%c1_42, %c1_43, %c0_44] : memref<2x10x512xbf16, #tpu.memory_space<vmem>>, vector<1x6x512xbf16>
    %51 = vector.shape_cast %50 : vector<1x6x512xbf16> to vector<6x512xbf16>
    %c1_45 = arith.constant 1 : index
    %c0_46 = arith.constant 0 : index
    %c0_47 = arith.constant 0 : index
    %52 = vector.load %arg2[%c1_45, %c0_46, %c0_47] : memref<4x512x128xbf16, #tpu.memory_space<vmem>>, vector<1x512x128xbf16>
    %53 = vector.shape_cast %52 : vector<1x512x128xbf16> to vector<512x128xbf16>
    %cst_48 = arith.constant dense<0.000000e+00> : vector<6x128xf32>
    %54 = tpu.matmul %51, %53, %cst_48 {dimension_numbers = #tpu.dot_dimension_numbers<[1], [0], [0], [1], [0, 0, 1, 1], [], []>} : vector<6x512xbf16>, vector<512x128xbf16>, vector<6x128xf32> -> vector<6x128xf32>
    %55 = arith.addf %49, %54 : vector<6x128xf32>
    %c1_49 = arith.constant 1 : index
    %c3_50 = arith.constant 3 : index
    %c0_51 = arith.constant 0 : index
    %56 = vector.load %arg1[%c1_49, %c3_50, %c0_51] : memref<2x10x512xbf16, #tpu.memory_space<vmem>>, vector<1x6x512xbf16>
    %57 = vector.shape_cast %56 : vector<1x6x512xbf16> to vector<6x512xbf16>
    %c2_52 = arith.constant 2 : index
    %c0_53 = arith.constant 0 : index
    %c0_54 = arith.constant 0 : index
    %58 = vector.load %arg2[%c2_52, %c0_53, %c0_54] : memref<4x512x128xbf16, #tpu.memory_space<vmem>>, vector<1x512x128xbf16>
    %59 = vector.shape_cast %58 : vector<1x512x128xbf16> to vector<512x128xbf16>
    %cst_55 = arith.constant dense<0.000000e+00> : vector<6x128xf32>
    %60 = tpu.matmul %57, %59, %cst_55 {dimension_numbers = #tpu.dot_dimension_numbers<[1], [0], [0], [1], [0, 0, 1, 1], [], []>} : vector<6x512xbf16>, vector<512x128xbf16>, vector<6x128xf32> -> vector<6x128xf32>
    %61 = arith.addf %55, %60 : vector<6x128xf32>
    %c1_56 = arith.constant 1 : index
    %c4_57 = arith.constant 4 : index
    %c0_58 = arith.constant 0 : index
    %62 = vector.load %arg1[%c1_56, %c4_57, %c0_58] : memref<2x10x512xbf16, #tpu.memory_space<vmem>>, vector<1x6x512xbf16>
    %63 = vector.shape_cast %62 : vector<1x6x512xbf16> to vector<6x512xbf16>
    %c3_59 = arith.constant 3 : index
    %c0_60 = arith.constant 0 : index
    %c0_61 = arith.constant 0 : index
    %64 = vector.load %arg2[%c3_59, %c0_60, %c0_61] : memref<4x512x128xbf16, #tpu.memory_space<vmem>>, vector<1x512x128xbf16>
    %65 = vector.shape_cast %64 : vector<1x512x128xbf16> to vector<512x128xbf16>
    %cst_62 = arith.constant dense<0.000000e+00> : vector<6x128xf32>
    %66 = tpu.matmul %63, %65, %cst_62 {dimension_numbers = #tpu.dot_dimension_numbers<[1], [0], [0], [1], [0, 0, 1, 1], [], []>} : vector<6x512xbf16>, vector<512x128xbf16>, vector<6x128xf32> -> vector<6x128xf32>
    %67 = arith.addf %61, %66 : vector<6x128xf32>
    %c0_63 = arith.constant 0 : index
    %c0_64 = arith.constant 0 : index
    %68 = vector.load %arg3[%c0_63, %c0_64] : memref<8x128xf32, #tpu.memory_space<vmem>>, vector<1x128xf32>
    %69 = vector.broadcast %68 : vector<1x128xf32> to vector<6x128xf32>
    %70 = arith.addf %67, %69 : vector<6x128xf32>
    %cst_65 = arith.constant 0.000000e+00 : f32
    %71 = vector.broadcast %cst_65 : f32 to vector<6x128xf32>
    %72 = arith.cmpf oge, %70, %71 : vector<6x128xf32>
    %cst_66 = arith.constant 2.000000e-01 : f32
    %73 = vector.broadcast %cst_66 : f32 to vector<6x128xf32>
    %74 = arith.mulf %73, %70 : vector<6x128xf32>
    %75 = arith.select %72, %70, %74 : vector<6x128xi1>, vector<6x128xf32>
    %c1_67 = arith.constant 1 : index
    %c0_68 = arith.constant 0 : index
    %76 = vector.load %arg3[%c1_67, %c0_68] : memref<8x128xf32, #tpu.memory_space<vmem>>, vector<1x128xf32>
    %77 = vector.broadcast %76 : vector<1x128xf32> to vector<6x128xf32>
    %78 = arith.mulf %75, %77 : vector<6x128xf32>
    %c2_69 = arith.constant 2 : index
    %c0_70 = arith.constant 0 : index
    %79 = vector.load %arg3[%c2_69, %c0_70] : memref<8x128xf32, #tpu.memory_space<vmem>>, vector<1x128xf32>
    %80 = vector.broadcast %79 : vector<1x128xf32> to vector<6x128xf32>
    %81 = arith.addf %78, %80 : vector<6x128xf32>
    %82 = arith.truncf %81 : vector<6x128xf32> to vector<6x128xbf16>
    %c1_71 = arith.constant 1 : index
    %c0_72 = arith.constant 0 : index
    %c0_73 = arith.constant 0 : index
    %83 = vector.load %arg4[%c1_71, %c0_72, %c0_73] : memref<2x6x128xbf16, #tpu.memory_space<vmem>>, vector<1x6x128xbf16>
    %84 = vector.shape_cast %83 : vector<1x6x128xbf16> to vector<6x128xbf16>
    %85 = vector.shape_cast %82 : vector<6x128xbf16> to vector<1x6x128xbf16>
    tpu.vector_store %arg4[%c1_71, %c0_72, %c0_73], %85 {strides = array<i32>} : memref<2x6x128xbf16, #tpu.memory_space<vmem>>, vector<1x6x128xbf16>,
    return
  }
  func.func @transform_0(%arg0: i32) -> (i32, i32, i32) {
    %c0_i32 = arith.constant 0 : i32
    %c0_i32_0 = arith.constant 0 : i32
    %c0_i32_1 = arith.constant 0 : i32
    return %arg0, %c0_i32, %c0_i32_0 : i32, i32, i32
  }
  func.func @transform_1(%arg0: i32) -> (i32, i32, i32) {
    %c0_i32 = arith.constant 0 : i32
    %c0_i32_0 = arith.constant 0 : i32
    %c0_i32_1 = arith.constant 0 : i32
    %c0_i32_2 = arith.constant 0 : i32
    return %c0_i32, %c0_i32_0, %c0_i32_1 : i32, i32, i32
  }
  func.func @transform_2(%arg0: i32) -> (i32, i32) {
    %c0_i32 = arith.constant 0 : i32
    %c0_i32_0 = arith.constant 0 : i32
    %c0_i32_1 = arith.constant 0 : i32
    return %c0_i32, %c0_i32_0 : i32, i32
  }
  func.func @transform_3(%arg0: i32) -> (i32, i32, i32) {
    %c0_i32 = arith.constant 0 : i32
    %c0_i32_0 = arith.constant 0 : i32
    %c0_i32_1 = arith.constant 0 : i32
    return %arg0, %c0_i32, %c0_i32_0 : i32, i32, i32
  }
}

</mosaic_0001>

<bundles_post_ra>
// kernel: discriminator_forward.4
= control target key start
LH: loop header
LB: loop body
LE: loop exit
PB: predicated region body
PF: predicated region fallthrough
CT: control target
= control target key end

     0   :  { %v2529_v0 = vmov 0.0   ;;  %vm2530_vm0 = vmmov 0   ;;  %vm83_vm1 = vsmask.f32 7424  ;;  %vm620_vm2 = vcmask 1046528   ;;  %s3151_s1 = inlined_call_operand.vmem [shape: bf16[4,128,128], index: 1, kind: input, shape index: {}]   ;;  %s3152_s0 = inlined_call_operand.vmem [shape: bf16[2,82,128], index: 0, kind: input, shape index: {}]   ;;  %s3153_s2 = inlined_call_operand.vmem [shape: f32[8,128], index: 2, kind: input, shape index: {}]   ;;  %s3154_s3 = inlined_call_operand.vmem [shape: bf16[2,72,128], index: 3, kind: output, shape index: {}]  }
   0x1   :  { %2151 = vmatprep.subr.bf16.mxu0 %v2529_v0  ;;  %2187 = vmatprep.subr.bf16.mxu1 %v2529_v0  ;;  %v2441_v1 = vld [vmem:[%s3151_s1 + $0x40] sm:$0xff]   ;;  %v2443_v3 = vld [vmem:[%s3151_s1 + $0x48] sm:$0xff]   ;;  %v2445_v5 = vld [vmem:[%s3151_s1 + $0x50] sm:$0xff]  }
   0x2   :  { %v2442_v2 = vld [vmem:[%s3151_s1] sm:$0xff]   ;;  %2167 = vmatprep.mubr.msk.bf16.mxu0 %vm2530_vm0, %v2529_v0  ;;  %2203 = vmatprep.mubr.msk.bf16.mxu1 %vm2530_vm0, %v2529_v0  ;;  %v2444_v4 = vld [vmem:[%s3151_s1 + $0x8] sm:$0xff]   ;;  %v2446_v6 = vld [vmem:[%s3151_s1 + $0x10] sm:$0xff]  }
   0x3   :  { %2152 = vmatpush3.bf16.msra.mxu0 %v2441_v1  ;;  %2188 = vmatpush3.bf16.msra.mxu1 %v2442_v2  ;;  %v2447_v7 = vld [vmem:[%s3151_s1 + $0x58] sm:$0xff]   ;;  %v2449_v9 = vld [vmem:[%s3151_s1 + $0x60] sm:$0xff]   ;;  %v2451_v11 = vld [vmem:[%s3151_s1 + $0x68] sm:$0xff]  }
   0x4   :  { %2153 = vmatprep.subr.bf16.mxu0 %v2529_v0  ;;  %2189 = vmatprep.subr.bf16.mxu1 %v2529_v0  ;;  %v2448_v8 = vld [vmem:[%s3151_s1 + $0x18] sm:$0xff]   ;;  %v2450_v10 = vld [vmem:[%s3151_s1 + $0x20] sm:$0xff]   ;;  %v2458_v13 = vld [vmem:[%s3152_s0 + $0x8] sm:$0xff]  }
   0x5   :  { %v2457_v12 = vld [vmem:[%s3152_s0] sm:$0xff]   ;;  %v2452_v14 = vld [vmem:[%s3151_s1 + $0x28] sm:$0xff]   ;;  %v2453_v16 = vld [vmem:[%s3151_s1 + $0x70] sm:$0xff]   ;;  %v92_v19 = vshll.u32 %v2458_v13, 16  ;;  %v96_v28 = vshrl.u32 %v2458_v13, 16 }
   0x6   :  { %v87_v15 = vshll.u32 %v2457_v12, 16  ;;  %v85_v17 = vshrl.u32 %v2457_v12, 16  ;;  %v2454_v20 = vld [vmem:[%s3151_s1 + $0x30] sm:$0xff]   ;;  %v2455_v21 = vld [vmem:[%s3151_s1 + $0x78] sm:$0xff]   ;;  %v2459_v27 = vld [vmem:[%s3151_s1 + $0x80] sm:$0xff]  }
   0x7   :  { %2154 = vmatpush3.bf16.msra.mxu0 %v2443_v3  ;;  %2190 = vmatpush3.bf16.msra.mxu1 %v2444_v4  ;;  %v94_v23 = vrot.slane %v92_v19, 1  ;;  %v2623_v24 = vld [vmem:[%s3152_s0 + $0x10] sm:$0xff]   ;;  %v2456_v25 = vld [vmem:[%s3151_s1 + $0x38] sm:$0xff]   ;;  %v2460_v30 = vld [vmem:[%s3151_s1 + $0xc0] sm:$0xff]  }
   0x8   :  { %2155 = vmatprep.subr.bf16.mxu0 %v2529_v0  ;;  %2191 = vmatprep.subr.bf16.mxu1 %v2529_v0  ;;  %v89_v18 = vrot.slane %v87_v15, 1  ;;  %v100_v29 = vshll.u32 %v2623_v24, 16  ;;  %v2461_v31 = vld [vmem:[%s3151_s1 + $0x88] sm:$0xff]   ;;  %v2646_v34 = vld [vmem:[%s3152_s0 + $0x18] sm:$0xff]   ;;  %v2660_v36 = vld [vmem:[%s3152_s0 + $0x20] sm:$0xf] }
   0x9   :  { %v98_v32 = vor.u32 %v96_v28, %v94_v23  ;;  %v2463_v35 = vld [vmem:[%s3151_s1 + $0xc8] sm:$0xff]   ;;  %v40_v37 = vld [vmem:[%s3152_s0 + $0x24] sm:$0x1]  ;;  %v2464_v39 = vld [vmem:[%s3151_s1 + $0x90] sm:$0xff]   ;;  %v104_v40 = vshrl.u32 %v2623_v24, 16  ;;  %v108_v41 = vshll.u32 %v2646_v34, 16 }
   0xa   :  { %v90_v22 = vor.u32 %v89_v18, %v85_v17  ;;  %v102_v33 = vrot.slane %v100_v29, 1  ;;  %v2465_v42 = vld [vmem:[%s3151_s1 + $0xd0] sm:$0xff]   ;;  %v1764_v43 = vcombine.low %v2660_v36, %v40_v37  ;;  %v2467_v46 = vld [vmem:[%s3151_s1 + $0x98] sm:$0xff]   ;;  %v2469_v50 = vld [vmem:[%s3151_s1 + $0xa0] sm:$0xff]   ;;  %v112_v51 = vshrl.u32 %v2646_v34, 16 }
   0xb   :  { %2156 = vmatpush3.bf16.msra.mxu0 %v2445_v5  ;;  %2192 = vmatpush3.bf16.msra.mxu1 %v2446_v6  ;;  %v110_v45 = vrot.slane %v108_v41, 1  ;;  %v2468_v47 = vld [vmem:[%s3151_s1 + $0xd8] sm:$0xff]   ;;  %v2470_v52 = vld [vmem:[%s3151_s1 + $0xe0] sm:$0xff]   ;;  %v2472_v54 = vld [vmem:[%s3151_s1 + $0xa8] sm:$0xff]  }
   0xc   :  { %2157 = vmatprep.subr.bf16.mxu0 %v2529_v0  ;;  %2193 = vmatprep.subr.bf16.mxu1 %v2529_v0  ;;  %v95_v26 = vsel %vm83_vm1, %v90_v22, %v94_v23  ;;  %v103_v38 = vsel %vm83_vm1, %v98_v32, %v102_v33  ;;  %v106_v44 = vor.u32 %v104_v40, %v102_v33  ;;  %v116_v48 = vshll.u32 %v1764_v43, 16  ;;  %v374_v55 = vld [vmem:[%s3152_s0 + $0x4] sm:$0xf]  ;;  %v375_v57 = vld [vmem:[%s3152_s0 + $0x8] sm:$0xf]  ;;  %v2474_v61 = vld [vmem:[%s3151_s1 + $0xb0] sm:$0xff]  }
   0xd   :  { %v114_v56 = vor.u32 %v112_v51, %v110_v45  ;;  %v2473_v58 = vld [vmem:[%s3151_s1 + $0xe8] sm:$0xff]   ;;  %v1798_v59 = vcombine.low %v374_v55, %v375_v57  ;;  %v120_v62 = vshrl.u32 %v1764_v43, 16  ;;  %v2476_v63 = vld [vmem:[%s3151_s1 + $0xf0] sm:$0xff]   ;;  %v2477_v1 = vld [vmem:[%s3151_s1 + $0xb8] sm:$0xff]  }
   0xe   :  { %v111_v49 = vsel %vm83_vm1, %v106_v44, %v110_v45  ;;  %v118_v53 = vrot.slane %v116_v48, 1  ;;  %v2480_v2 = vld [vmem:[%s3152_s0 + $0xc] sm:$0xff]   ;;  %v2478_v4 = vld [vmem:[%s3151_s1 + $0xf8] sm:$0xff]   ;;  %v599_v5 = vld [vmem:[%s3152_s0 + $0x4] sm:$0xe] }
   0xf   :  { %2158 = vmatpush3.bf16.msra.mxu0 %v2447_v7  ;;  %2194 = vmatpush3.bf16.msra.mxu1 %v2448_v8  ;;  %v429_v3 = vshll.u32 %v1798_v59, 16  ;;  %v1773_v7 = vcombine.low %v2660_v36, %v2660_v36  ;;  %v427_v8 = vshrl.u32 %v1798_v59, 16  ;;  %v2482_v17 = vld [vmem:[%s3151_s1 + $0x40] sm:$0xff]   ;;  %v438_v19 = vshrl.u32 %v2480_v2, 16  ;;  %v2486_v28 = vld [vmem:[%s3151_s1 + $0x8] sm:$0xff]   ;;  %v2487_v29 = vld [vmem:[%s3151_s1 + $0x50] sm:$0xff]  }
  0x10   :  { %2159 = vmatprep.subr.bf16.mxu0 %v2529_v0  ;;  %2195 = vmatprep.subr.bf16.mxu1 %v2529_v0  ;;  %v119_v60 = vsel %vm83_vm1, %v114_v56, %v118_v53  ;;  %v122_v6 = vor.u32 %v120_v62, %v118_v53  ;;  %v2483_v22 = vld [vmem:[%s3151_s1] sm:$0xff]   ;;  %v2490_v36 = vld [vmem:[%s3151_s1 + $0x58] sm:$0xff]   ;;  %v2496_v51 = vld [vmem:[%s3151_s1 + $0x28] sm:$0xff]  }
  0x11   :  { %v2768_v23 = vld [vmem:[%s3152_s0 + $0x1c] sm:$0xff]   ;;  %v2501_v53 = vld [vmem:[%s3152_s0 + $0x2c] sm:$0xff]  }
  0x12   :  { %v2491_v40 = vld [vmem:[%s3151_s1 + $0x18] sm:$0xff]   ;;  %v454_v43 = vshrl.u32 %v2768_v23, 16  ;;  %v2497_v55 = vld [vmem:[%s3151_s1 + $0x70] sm:$0xff]   ;;  %v950_v59 = vshll.u32 %v2501_v53, 16 }
  0x13   :  { %2160 = vmatpush3.bf16.msra.mxu0 %v2449_v9  ;;  %2196 = vmatpush3.bf16.msra.mxu1 %v2450_v10  ;;  %v431_v9 = vrot.slane %v429_v3, 1  ;;  %v434_v10 = vshll.u32 %v2480_v2, 16  ;;  %v2498_v56 = vld [vmem:[%s3151_s1 + $0x30] sm:$0xff]  }
  0x14   :  { %2161 = vmatprep.subr.bf16.mxu0 %v2529_v0  ;;  %2197 = vmatprep.subr.bf16.mxu1 %v2529_v0 }
  0x17   :  { %2162 = vmatpush3.bf16.msra.mxu0 %v2451_v11  ;;  %2198 = vmatpush3.bf16.msra.mxu1 %v2452_v14  ;;  %v1827_v11 = vcombine.low %v599_v5, %v375_v57  ;;  %v2485_v14 = vld [vmem:[%s3152_s0 + $0x14] sm:$0xff]   ;;  %v2506_v5 = vld [vmem:[%s3152_s0 + $0x3c] sm:$0xff]  }
  0x18   :  { %2163 = vmatprep.subr.bf16.mxu0 %v2529_v0  ;;  %2199 = vmatprep.subr.bf16.mxu1 %v2529_v0 }
  0x19   :  { %v621_v15 = vrot.slane %v1827_v11, 1  ;;  %v2505_v11 = vld [vmem:[%s3151_s1 + $0x88] sm:$0xff]  }
  0x1b   :  { %2164 = vmatpush3.bf16.msra.mxu0 %v2453_v16  ;;  %2200 = vmatpush3.bf16.msra.mxu1 %v2454_v20  ;;  %v622_v16 = vrot.slane %v2480_v2, 1  ;;  %v442_v20 = vshll.u32 %v2485_v14, 16 }
  0x1c   :  { %2165 = vmatprep.subr.bf16.mxu0 %v2529_v0  ;;  %2201 = vmatprep.subr.bf16.mxu1 %v2529_v0 }
  0x1f   :  { %2166 = vmatpush3.bf16.msra.mxu0 %v2455_v21  ;;  %2202 = vmatpush3.bf16.msra.mxu1 %v2456_v25  ;;  %v623_v21 = vsel %vm620_vm2, %v621_v15, %v622_v16  ;;  %v2507_v15 = vld [vmem:[%s3151_s1 + $0xc8] sm:$0xff]  }
  0x20   :  { %2223 = vmatprep.subr.bf16.mxu0 %v2529_v0  ;;  %2259 = vmatprep.subr.bf16.mxu1 %v2529_v0 }
  0x22   :  { %2168 = vmatmul.mubr.bf16.vlgmr.msra.gmra.mrb[0].mxu0 %v95_v26  ;;  %2204 = vmatmul.mubr.bf16.vlgmr.msra.gmra.mrb[0].mxu1 %v2457_v12  ;;  %v432_v12 = vor.u32 %v431_v9, %v427_v8  ;;  %v444_v26 = vrot.slane %v442_v20, 1  ;;  %v963_v9 = vshll.u32 %v2506_v5, 16  ;;  %v2509_v20 = vld [vmem:[%s3151_s1 + $0xd0] sm:$0xff]  }
  0x23   :  { %2224 = vmatpush3.bf16.msra.mxu0 %v2459_v27  ;;  %2260 = vmatpush3.bf16.msra.mxu1 %v2460_v30  ;;  %v624_v27 = vrot.slane %v2485_v14, 1  ;;  %v446_v30 = vshrl.u32 %v2485_v14, 16  ;;  %v2882_v14 = vld [vmem:[%s3152_s0 + $0x44] sm:$0xff]  }
  0x24   :  { %2225 = vmatprep.subr.bf16.mxu0 %v2529_v0  ;;  %2171 = vmatprep.mubr.msk.bf16.mxu0 %vm2530_vm0, %v2529_v0 }
  0x25   :  { %2207 = vmatprep.mubr.msk.bf16.mxu1 %vm2530_vm0, %v2529_v0  ;;  %2261 = vmatprep.subr.bf16.mxu1 %v2529_v0  ;;  %v625_v33 = vsel %vm620_vm2, %v622_v16, %v624_v27  ;;  %v448_v37 = vor.u32 %v446_v30, %v444_v26  ;;  %v975_v30 = vshrl.u32 %v2882_v14, 16 }
  0x27   :  { %2226 = vmatpush3.bf16.msra.mxu0 %v2461_v31  ;;  %2262 = vmatpush3.bf16.msra.mxu1 %v2463_v35  ;;  %v450_v31 = vshll.u32 %v2768_v23, 16 }
  0x28   :  { %2227 = vmatprep.subr.bf16.mxu0 %v2529_v0  ;;  %2263 = vmatprep.subr.bf16.mxu1 %v2529_v0 }
  0x29   :  { %v452_v35 = vrot.slane %v450_v31, 1 }
  0x2a   :  { %2172 = vmatmul.mubr.bf16.gmra.mrb[4].mxu0 %v103_v38  ;;  %2208 = vmatmul.mubr.bf16.gmra.mrb[4].mxu1 %v2458_v13  ;;  %v436_v13 = vrot.slane %v434_v10, 1  ;;  %v2494_v38 = vld [vmem:[%s3152_s0 + $0x24] sm:$0x1f]  }
  0x2b   :  { %2228 = vmatpush3.bf16.msra.mxu0 %v2464_v39  ;;  %2264 = vmatpush3.bf16.msra.mxu1 %v2465_v42  ;;  %v626_v39 = vrot.slane %v2768_v23, 1  ;;  %v453_v41 = vsel %vm83_vm1, %v448_v37, %v452_v35  ;;  %v2492_v42 = vld [vmem:[%s3151_s1 + $0x60] sm:$0xff]   ;;  %v458_v44 = vshll.u32 %v2494_v38, 16  ;;  %v462_v57 = vshrl.u32 %v2494_v38, 16  ;;  %v1897_v37 = vld [vmem:[%s3152_s0 + $0x34] sm:$0xf] }
  0x2c   :  { %2175 = vmatprep.mubr.msk.bf16.mxu0 %vm2530_vm0, %v2529_v0  ;;  %2211 = vmatprep.mubr.msk.bf16.mxu1 %vm2530_vm0, %v2529_v0  ;;  %v437_v18 = vsel %vm83_vm1, %v432_v12, %v436_v13  ;;  %v440_v25 = vor.u32 %v438_v19, %v436_v13  ;;  %v2504_v10 = vld [vmem:[%s3151_s1 + $0xc0] sm:$0xff]   ;;  %v965_v13 = vrot.slane %v963_v9, 1  ;;  %v971_v19 = vshll.u32 %v2882_v14, 16 }
  0x2d   :  { %2229 = vmatprep.subr.bf16.mxu0 %v2529_v0  ;;  %2265 = vmatprep.subr.bf16.mxu1 %v2529_v0  ;;  %v627_v45 = vsel %vm620_vm2, %v624_v27, %v626_v39  ;;  %v460_v48 = vrot.slane %v458_v44, 1  ;;  %v2512_v27 = vld [vmem:[%s3151_s1 + $0xd8] sm:$0xff]  }
  0x2e   :  { %v445_v32 = vsel %vm83_vm1, %v440_v25, %v444_v26  ;;  %v2511_v25 = vld [vmem:[%s3151_s1 + $0x98] sm:$0xff]  }
  0x2f   :  { %2230 = vmatpush3.bf16.msra.mxu0 %v2467_v46  ;;  %2266 = vmatpush3.bf16.msra.mxu1 %v2468_v47  ;;  %v2493_v46 = vld [vmem:[%s3151_s1 + $0x20] sm:$0xff]   ;;  %v456_v47 = vor.u32 %v454_v43, %v452_v35  ;;  %v464_v62 = vor.u32 %v462_v57, %v460_v48  ;;  %v2516_v35 = vld [vmem:[%s3151_s1 + $0xa8] sm:$0xff]   ;;  %v2524_v44 = vld [vmem:[%s3152_s0 + $0x38] sm:$0xff]  }
  0x30   :  { %2231 = vmatprep.subr.bf16.mxu0 %v2529_v0  ;;  %2267 = vmatprep.subr.bf16.mxu1 %v2529_v0  ;;  %v2526_v57 = vld [vmem:[%s3152_s0 + $0x40] sm:$0xff]  }
  0x32   :  { %2176 = vmatmul.mubr.bf16.gmra.mrb[8].mxu0 %v111_v49  ;;  %2212 = vmatmul.mubr.bf16.gmra.mrb[8].mxu1 %v2623_v24  ;;  %v2484_v24 = vld [vmem:[%s3151_s1 + $0x48] sm:$0xff]  }
  0x33   :  { %2232 = vmatpush3.bf16.msra.mxu0 %v2469_v50  ;;  %2179 = vmatprep.mubr.msk.bf16.mxu0 %vm2530_vm0, %v2529_v0  ;;  %v2495_v49 = vld [vmem:[%s3151_s1 + $0x68] sm:$0xff]   ;;  %v628_v50 = vrot.slane %v2494_v38, 1 }
  0x34   :  { %2215 = vmatprep.mubr.msk.bf16.mxu1 %vm2530_vm0, %v2529_v0  ;;  %2268 = vmatpush3.bf16.msra.mxu1 %v2470_v52  ;;  %v461_v52 = vsel %vm83_vm1, %v456_v47, %v460_v48  ;;  %v2517_v38 = vld [vmem:[%s3151_s1 + $0xe8] sm:$0xff]   ;;  %v2522_v47 = vld [vmem:[%s3151_s1 + $0xf8] sm:$0xff]   ;;  %v1935_v48 = vld [vmem:[%s3152_s0 + $0x30] sm:$0xe] }
  0x35   :  { %2233 = vmatprep.subr.bf16.mxu0 %v2529_v0  ;;  %2269 = vmatprep.subr.bf16.mxu1 %v2529_v0 }
  0x37   :  { %2234 = vmatpush3.bf16.msra.mxu0 %v2472_v54  ;;  %v629_v54 = vsel %vm620_vm2, %v626_v39, %v628_v50 }
  0x38   :  { %2235 = vmatprep.subr.bf16.mxu0 %v2529_v0  ;;  %2270 = vmatpush3.bf16.msra.mxu1 %v2473_v58  ;;  %v2502_v58 = vld [vmem:[%s3152_s0 + $0x34] sm:$0xff]  }
  0x39   :  { %2271 = vmatprep.subr.bf16.mxu1 %v2529_v0  ;;  %v955_v2 = vshll.u32 %v2502_v58, 16  ;;  %v959_v8 = vshrl.u32 %v2502_v58, 16 }
  0x3a   :  { %2180 = vmatmul.mubr.bf16.gmra.mrb[12].mxu0 %v119_v60  ;;  %2216 = vmatmul.mubr.bf16.gmra.mrb[12].mxu1 %v2646_v34  ;;  %v2488_v34 = vld [vmem:[%s3151_s1 + $0x10] sm:$0xff]   ;;  %v2499_v60 = vld [vmem:[%s3151_s1 + $0x78] sm:$0xff]  }
  0x3b   :  { %2183 = vmatprep.mubr.msk.bf16.mxu0 %vm2530_vm0, %v2529_v0  ;;  %2219 = vmatprep.mubr.msk.bf16.mxu1 %vm2530_vm0, %v2529_v0 }
  0x3c   :  { %2236 = vmatpush3.bf16.msra.mxu0 %v2474_v61  ;;  %2272 = vmatpush3.bf16.msra.mxu1 %v2476_v63  ;;  %v2500_v61 = vld [vmem:[%s3151_s1 + $0x38] sm:$0xff]   ;;  %v948_v63 = vshrl.u32 %v2501_v53, 16 }
  0x3d   :  { %2237 = vmatprep.subr.bf16.mxu0 %v2529_v0  ;;  %2273 = vmatprep.subr.bf16.mxu1 %v2529_v0 }
  0x40   :  { %2238 = vmatpush3.bf16.msra.mxu0 %v2477_v1  ;;  %2274 = vmatpush3.bf16.msra.mxu1 %v2478_v4  ;;  %v952_v1 = vrot.slane %v950_v59, 1  ;;  %v957_v4 = vrot.slane %v955_v2, 1  ;;  %v1482_v59 = vrot.slane %v2524_v44, 1 }
  0x41   :  { %2295 = vmatprep.subr.bf16.mxu0 %v2529_v0  ;;  %2331 = vmatprep.subr.bf16.mxu1 %v2529_v0 }
  0x42   :  { %2184 = vmatmul.mubr.bf16.gmra.mrb[16].mxu0 %v122_v6  ;;  %2220 = vmatmul.mubr.bf16.gmra.mrb[16].mxu1 %v1773_v7  ;;  %v953_v3 = vor.u32 %v952_v1, %v948_v63  ;;  %v2503_v7 = vld [vmem:[%s3151_s1 + $0x80] sm:$0xff]   ;;  %v961_v12 = vor.u32 %v959_v8, %v957_v4 }
  0x43   :  { %2239 = vmatprep.mubr.msk.bf16.mxu0 %vm2530_vm0, %v2529_v0  ;;  %2275 = vmatprep.mubr.msk.bf16.mxu1 %vm2530_vm0, %v2529_v0 }
  0x44   :  { %v958_v6 = vsel %vm83_vm1, %v953_v3, %v957_v4  ;;  %v966_v16 = vsel %vm83_vm1, %v961_v12, %v965_v13  ;;  %v2527_v3 = vld [vmem:[%s3152_s0 + $0x48] sm:$0xff]   ;;  %v1484_v4 = vrot.slane %v2526_v57, 1 }
  0x45   :  { %v1486_v12 = vrot.slane %v2527_v3, 1 }
  0x46   :  { %v1485_v8 = vsel %vm620_vm2, %v1482_v59, %v1484_v4 }
  0x4a   :  { %2240 = vmatmul.mubr.bf16.vlgmr.msra.gmra.mrb[20].mxu0 %v437_v18  ;;  %2276 = vmatmul.mubr.bf16.vlgmr.msra.gmra.mrb[20].mxu1 %v623_v21  ;;  %v967_v18 = vshrl.u32 %v2506_v5, 16  ;;  %v2905_v21 = vld [vmem:[%s3152_s0 + $0x4c] sm:$0xf] }
  0x4b   :  { %2296 = vmatpush3.bf16.msra.mxu0 %v2482_v17  ;;  %2332 = vmatpush3.bf16.msra.mxu1 %v2483_v22  ;;  %v2508_v17 = vld [vmem:[%s3151_s1 + $0x90] sm:$0xff]  }
  0x4c   :  { %2297 = vmatprep.subr.bf16.mxu0 %v2529_v0  ;;  %2243 = vmatprep.mubr.msk.bf16.mxu0 %vm2530_vm0, %v2529_v0  ;;  %v1857_v22 = vld [vmem:[%s3152_s0 + $0x50] sm:$0x1]  ;;  %v969_v23 = vor.u32 %v967_v18, %v965_v13 }
  0x4d   :  { %2279 = vmatprep.mubr.msk.bf16.mxu1 %vm2530_vm0, %v2529_v0  ;;  %2333 = vmatprep.subr.bf16.mxu1 %v2529_v0  ;;  %v1878_v26 = vcombine.low %v2905_v21, %v1857_v22 }
  0x4f   :  { %2298 = vmatpush3.bf16.msra.mxu0 %v2484_v24  ;;  %2334 = vmatpush3.bf16.msra.mxu1 %v2486_v28  ;;  %v973_v24 = vrot.slane %v971_v19, 1  ;;  %v979_v31 = vshll.u32 %v1878_v26, 16  ;;  %v983_v43 = vshrl.u32 %v1878_v26, 16 }
  0x50   :  { %2299 = vmatprep.subr.bf16.mxu0 %v2529_v0  ;;  %2335 = vmatprep.subr.bf16.mxu1 %v2529_v0 }
  0x51   :  { %v974_v28 = vsel %vm83_vm1, %v969_v23, %v973_v24 }
  0x52   :  { %2244 = vmatmul.mubr.bf16.gmra.mrb[24].mxu0 %v445_v32  ;;  %2280 = vmatmul.mubr.bf16.gmra.mrb[24].mxu1 %v625_v33  ;;  %v2514_v32 = vld [vmem:[%s3151_s1 + $0xe0] sm:$0xff]   ;;  %v977_v33 = vor.u32 %v975_v30, %v973_v24 }
  0x53   :  { %2300 = vmatpush3.bf16.msra.mxu0 %v2487_v29  ;;  %2336 = vmatpush3.bf16.msra.mxu1 %v2488_v34  ;;  %v2513_v29 = vld [vmem:[%s3151_s1 + $0xa0] sm:$0xff]   ;;  %v981_v34 = vrot.slane %v979_v31, 1 }
  0x54   :  { %2247 = vmatprep.mubr.msk.bf16.mxu0 %vm2530_vm0, %v2529_v0  ;;  %2283 = vmatprep.mubr.msk.bf16.mxu1 %vm2530_vm0, %v2529_v0 }
  0x55   :  { %2301 = vmatprep.subr.bf16.mxu0 %v2529_v0  ;;  %2337 = vmatprep.subr.bf16.mxu1 %v2529_v0  ;;  %v982_v39 = vsel %vm83_vm1, %v977_v33, %v981_v34 }
  0x57   :  { %2302 = vmatpush3.bf16.msra.mxu0 %v2490_v36  ;;  %2338 = vmatpush3.bf16.msra.mxu1 %v2491_v40  ;;  %v1896_v36 = vld [vmem:[%s3152_s0 + $0x30] sm:$0xf] }
  0x58   :  { %2303 = vmatprep.subr.bf16.mxu0 %v2529_v0  ;;  %2339 = vmatprep.subr.bf16.mxu1 %v2529_v0  ;;  %v1922_v40 = vcombine.low %v1896_v36, %v1897_v37 }
  0x5a   :  { %2248 = vmatmul.mubr.bf16.gmra.mrb[28].mxu0 %v453_v41  ;;  %2284 = vmatmul.mubr.bf16.gmra.mrb[28].mxu1 %v627_v45  ;;  %v2518_v41 = vld [vmem:[%s3151_s1 + $0xb0] sm:$0xff]   ;;  %v1291_v45 = vshll.u32 %v1922_v40, 16 }
  0x5b   :  { %2304 = vmatpush3.bf16.msra.mxu0 %v2492_v42  ;;  %2251 = vmatprep.mubr.msk.bf16.mxu0 %vm2530_vm0, %v2529_v0  ;;  %v2520_v42 = vld [vmem:[%s3151_s1 + $0xf0] sm:$0xff]  }
  0x5c   :  { %2287 = vmatprep.mubr.msk.bf16.mxu1 %vm2530_vm0, %v2529_v0  ;;  %2340 = vmatpush3.bf16.msra.mxu1 %v2493_v46  ;;  %v2521_v46 = vld [vmem:[%s3151_s1 + $0xb8] sm:$0xff]  }
  0x5d   :  { %2305 = vmatprep.subr.bf16.mxu0 %v2529_v0  ;;  %2341 = vmatprep.subr.bf16.mxu1 %v2529_v0 }
  0x5f   :  { %2306 = vmatpush3.bf16.msra.mxu0 %v2495_v49  ;;  %v985_v49 = vor.u32 %v983_v43, %v981_v34 }
  0x60   :  { %2307 = vmatprep.subr.bf16.mxu0 %v2529_v0  ;;  %2342 = vmatpush3.bf16.msra.mxu1 %v2496_v51  ;;  %v1289_v51 = vshrl.u32 %v1922_v40, 16 }
  0x61   :  { %2343 = vmatprep.subr.bf16.mxu1 %v2529_v0 }
  0x62   :  { %2252 = vmatmul.mubr.bf16.gmra.mrb[32].mxu0 %v461_v52  ;;  %2288 = vmatmul.mubr.bf16.gmra.mrb[32].mxu1 %v629_v54  ;;  %v1293_v52 = vrot.slane %v1291_v45, 1  ;;  %v1952_v54 = vcombine.low %v1935_v48, %v1897_v37 }
  0x63   :  { %2255 = vmatprep.mubr.msk.bf16.mxu0 %vm2530_vm0, %v2529_v0  ;;  %2291 = vmatprep.mubr.msk.bf16.mxu1 %vm2530_vm0, %v2529_v0 }
  0x64   :  { %2308 = vmatpush3.bf16.msra.mxu0 %v2497_v55  ;;  %2344 = vmatpush3.bf16.msra.mxu1 %v2498_v56  ;;  %v1294_v55 = vor.u32 %v1293_v52, %v1289_v51 }
  0x65   :  { %2309 = vmatprep.subr.bf16.mxu0 %v2529_v0  ;;  %2345 = vmatprep.subr.bf16.mxu1 %v2529_v0 }
  0x68   :  { %2310 = vmatpush3.bf16.msra.mxu0 %v2499_v60  ;;  %2346 = vmatpush3.bf16.msra.mxu1 %v2500_v61  ;;  %v1300_v61 = vshrl.u32 %v2524_v44, 16 }
  0x69   :  { %2367 = vmatprep.subr.bf16.mxu0 %v2529_v0  ;;  %2403 = vmatprep.subr.bf16.mxu1 %v2529_v0 }
  0x6a   :  { %2256 = vmatmul.mubr.bf16.gmra.mrb[36].mxu0 %v464_v62  ;;  %2292 = vmatmul.mubr.bf16.gmra.mrb[36].mxu1 %v628_v50  ;;  %v1887_v50 = vcombine.low %v2905_v21, %v2905_v21  ;;  %v1304_v62 = vshll.u32 %v2526_v57, 16 }
  0x6b   :  { %2311 = vmatprep.mubr.msk.bf16.mxu0 %vm2530_vm0, %v2529_v0  ;;  %2347 = vmatprep.mubr.msk.bf16.mxu1 %vm2530_vm0, %v2529_v0 }
  0x6c   :  { %v1306_v2 = vrot.slane %v1304_v62, 1 }
  0x72   :  { %2312 = vmatmul.mubr.bf16.vlgmr.msra.gmra.mrb[40].mxu0 %v958_v6  ;;  %2348 = vmatmul.mubr.bf16.vlgmr.msra.gmra.mrb[40].mxu1 %v2501_v53  ;;  %v1296_v53 = vshll.u32 %v2524_v44, 16  ;;  %v1308_v6 = vshrl.u32 %v2526_v57, 16 }
  0x73   :  { %2368 = vmatpush3.bf16.msra.mxu0 %v2503_v7  ;;  %2404 = vmatpush3.bf16.msra.mxu1 %v2504_v10  ;;  %v1312_v7 = vshll.u32 %v2527_v3, 16 }
  0x74   :  { %2369 = vmatprep.subr.bf16.mxu0 %v2529_v0  ;;  %2315 = vmatprep.mubr.msk.bf16.mxu0 %vm2530_vm0, %v2529_v0  ;;  %v1298_v56 = vrot.slane %v1296_v53, 1  ;;  %v1310_v9 = vor.u32 %v1308_v6, %v1306_v2 }
  0x75   :  { %2351 = vmatprep.mubr.msk.bf16.mxu1 %vm2530_vm0, %v2529_v0  ;;  %2405 = vmatprep.subr.bf16.mxu1 %v2529_v0  ;;  %v1314_v10 = vrot.slane %v1312_v7, 1 }
  0x76   :  { %v1299_v60 = vsel %vm83_vm1, %v1294_v55, %v1298_v56  ;;  %v1302_v1 = vor.u32 %v1300_v61, %v1298_v56 }
  0x77   :  { %2370 = vmatpush3.bf16.msra.mxu0 %v2505_v11  ;;  %2406 = vmatpush3.bf16.msra.mxu1 %v2507_v15  ;;  %v2528_v11 = vld [vmem:[%s3152_s0 + $0x50] sm:$0x1f]   ;;  %v1315_v13 = vsel %vm83_vm1, %v1310_v9, %v1314_v10 }
  0x78   :  { %2371 = vmatprep.subr.bf16.mxu0 %v2529_v0  ;;  %2407 = vmatprep.subr.bf16.mxu1 %v2529_v0  ;;  %v1320_v15 = vshll.u32 %v2528_v11, 16  ;;  %v1488_v19 = vrot.slane %v2528_v11, 1  ;;  %v1324_v22 = vshrl.u32 %v2528_v11, 16 }
  0x7a   :  { %2316 = vmatmul.mubr.bf16.gmra.mrb[44].mxu0 %v966_v16  ;;  %2352 = vmatmul.mubr.bf16.gmra.mrb[44].mxu1 %v2502_v58  ;;  %v1481_v58 = vrot.slane %v1952_v54, 1  ;;  %v1487_v16 = vsel %vm620_vm2, %v1484_v4, %v1486_v12  ;;  %v1322_v18 = vrot.slane %v1320_v15, 1  ;;  %v1489_v21 = vsel %vm620_vm2, %v1486_v12, %v1488_v19 }
  0x7b   :  { %2372 = vmatpush3.bf16.msra.mxu0 %v2508_v17  ;;  %2408 = vmatpush3.bf16.msra.mxu1 %v2509_v20 }
  0x7c   :  { %2319 = vmatprep.mubr.msk.bf16.mxu0 %vm2530_vm0, %v2529_v0  ;;  %2355 = vmatprep.mubr.msk.bf16.mxu1 %vm2530_vm0, %v2529_v0  ;;  %v1483_v63 = vsel %vm620_vm2, %v1481_v58, %v1482_v59  ;;  %v1326_v23 = vor.u32 %v1324_v22, %v1322_v18 }
  0x7d   :  { %2373 = vmatprep.subr.bf16.mxu0 %v2529_v0  ;;  %2409 = vmatprep.subr.bf16.mxu1 %v2529_v0 }
  0x7f   :  { %2374 = vmatpush3.bf16.msra.mxu0 %v2511_v25  ;;  %2410 = vmatpush3.bf16.msra.mxu1 %v2512_v27 }
  0x80   :  { %2375 = vmatprep.subr.bf16.mxu0 %v2529_v0  ;;  %2411 = vmatprep.subr.bf16.mxu1 %v2529_v0 }
  0x82   :  { %2320 = vmatmul.mubr.bf16.gmra.mrb[48].mxu0 %v974_v28  ;;  %2356 = vmatmul.mubr.bf16.gmra.mrb[48].mxu1 %v2506_v5  ;;  %v1307_v5 = vsel %vm83_vm1, %v1302_v1, %v1306_v2 }
  0x83   :  { %2376 = vmatpush3.bf16.msra.mxu0 %v2513_v29  ;;  %2323 = vmatprep.mubr.msk.bf16.mxu0 %vm2530_vm0, %v2529_v0 }
  0x84   :  { %2359 = vmatprep.mubr.msk.bf16.mxu1 %vm2530_vm0, %v2529_v0  ;;  %2412 = vmatpush3.bf16.msra.mxu1 %v2514_v32 }
  0x85   :  { %2377 = vmatprep.subr.bf16.mxu0 %v2529_v0  ;;  %2413 = vmatprep.subr.bf16.mxu1 %v2529_v0 }
  0x87   :  { %2378 = vmatpush3.bf16.msra.mxu0 %v2516_v35 }
  0x88   :  { %2379 = vmatprep.subr.bf16.mxu0 %v2529_v0  ;;  %2414 = vmatpush3.bf16.msra.mxu1 %v2517_v38 }
  0x89   :  { %2415 = vmatprep.subr.bf16.mxu1 %v2529_v0 }
  0x8a   :  { %2324 = vmatmul.mubr.bf16.gmra.mrb[52].mxu0 %v982_v39  ;;  %2360 = vmatmul.mubr.bf16.gmra.mrb[52].mxu1 %v2882_v14  ;;  %v1316_v14 = vshrl.u32 %v2527_v3, 16 }
  0x8b   :  { %2327 = vmatprep.mubr.msk.bf16.mxu0 %vm2530_vm0, %v2529_v0  ;;  %2363 = vmatprep.mubr.msk.bf16.mxu1 %vm2530_vm0, %v2529_v0 }
  0x8c   :  { %2380 = vmatpush3.bf16.msra.mxu0 %v2518_v41  ;;  %2416 = vmatpush3.bf16.msra.mxu1 %v2520_v42  ;;  %v1318_v17 = vor.u32 %v1316_v14, %v1314_v10 }
  0x8d   :  { %2381 = vmatprep.subr.bf16.mxu0 %v2529_v0  ;;  %2417 = vmatprep.subr.bf16.mxu1 %v2529_v0 }
  0x8e   :  { %v1323_v20 = vsel %vm83_vm1, %v1318_v17, %v1322_v18 }
  0x90   :  { %2382 = vmatpush3.bf16.msra.mxu0 %v2521_v46  ;;  %2418 = vmatpush3.bf16.msra.mxu1 %v2522_v47 }
  0x92   :  { %2328 = vmatmul.mubr.bf16.gmra.mrb[56].mxu0 %v985_v49  ;;  %2364 = vmatmul.mubr.bf16.gmra.mrb[56].mxu1 %v1887_v50 }
  0x93   :  { %2383 = vmatprep.mubr.msk.bf16.mxu0 %vm2530_vm0, %v2529_v0  ;;  %2419 = vmatprep.mubr.msk.bf16.mxu1 %vm2530_vm0, %v2529_v0 }
  0x9a   :  { %2384 = vmatmul.mubr.bf16.vlgmr.msra.gmra.mrb[60].mxu0 %v1299_v60  ;;  %2420 = vmatmul.mubr.bf16.vlgmr.msra.gmra.mrb[60].mxu1 %v1483_v63 }
  0x9b   :  { %2387 = vmatprep.mubr.msk.bf16.mxu0 %vm2530_vm0, %v2529_v0  ;;  %2423 = vmatprep.mubr.msk.bf16.mxu1 %vm2530_vm0, %v2529_v0 }
  0xa2   :  { %2388 = vmatmul.mubr.bf16.gmra.mrb[64].mxu0 %v1307_v5  ;;  %2424 = vmatmul.mubr.bf16.gmra.mrb[64].mxu1 %v1485_v8 }
  0xa3   :  { %2391 = vmatprep.mubr.msk.bf16.mxu0 %vm2530_vm0, %v2529_v0  ;;  %2427 = vmatprep.mubr.msk.bf16.mxu1 %vm2530_vm0, %v2529_v0 }
  0xaa   :  { %2392 = vmatmul.mubr.bf16.gmra.mrb[68].mxu0 %v1315_v13  ;;  %2428 = vmatmul.mubr.bf16.gmra.mrb[68].mxu1 %v1487_v16  ;;  %v3034_v13 = vld [vmem:[%s3153_s2] ss:$0 sm:$0xff] }
  0xab   :  { %2395 = vmatprep.mubr.msk.bf16.mxu0 %vm2530_vm0, %v2529_v0  ;;  %2431 = vmatprep.mubr.msk.bf16.mxu1 %vm2530_vm0, %v2529_v0 }
  0xb2   :  { %2396 = vmatmul.mubr.bf16.gmra.mrb[72].mxu0 %v1323_v20  ;;  %2432 = vmatmul.mubr.bf16.gmra.mrb[72].mxu1 %v1489_v21 }
  0xb3   :  { %2399 = vmatprep.mubr.msk.bf16.mxu0 %vm2530_vm0, %v2529_v0  ;;  %2435 = vmatprep.mubr.msk.bf16.mxu1 %vm2530_vm0, %v2529_v0 }
  0xba   :  { %2400 = vmatmul.mubr.bf16.gmra.mrb[76].mxu0 %v1326_v23  ;;  %2436 = vmatmul.mubr.bf16.gmra.mrb[76].mxu1 %v1488_v19 }
  0xf5   :  { %v210_v24 = vpop.f32.mrb[0].mxu0  ;;  %v336_v25 = vpop.f32.mrb[0].mxu1 }
  0xf6   :  { %v2169_v26 = vpop.f32.mrb[1].mxu0  ;;  %v337_v27 = vadd.f32 %v336_v25, %v210_v24  ;;  %v2205_v28 = vpop.f32.mrb[1].mxu1  ;;  %v3040_v24 = vld [vmem:[%s3153_s2 + $0x1] ss:$0 sm:$0xff] }
  0xf7   :  { %v213_v29 = vpop.f32.mrb[2].mxu0  ;;  %v339_v30 = vpop.f32.mrb[2].mxu1 }
  0xf8   :  { %v2170_v31 = vpop.f32.mrb[3].mxu0  ;;  %v340_v32 = vadd.f32 %v339_v30, %v213_v29  ;;  %v2206_v33 = vpop.f32.mrb[3].mxu1 }
  0xfd   :  { %v218_v34 = vpop.f32.mrb[4].mxu0  ;;  %v344_v35 = vpop.f32.mrb[4].mxu1 }
  0xfe   :  { %v2173_v36 = vpop.f32.mrb[5].mxu0  ;;  %v345_v37 = vadd.f32 %v344_v35, %v218_v34  ;;  %v2209_v38 = vpop.f32.mrb[5].mxu1  ;;  %v3047_v35 = vld [vmem:[%s3153_s2 + $0x2] ss:$0 sm:$0xff] }
  0xff   :  { %v221_v39 = vpop.f32.mrb[6].mxu0  ;;  %v347_v0 = vpop.f32.mrb[6].mxu1 }
 0x100   :  { %v2174_v40 = vpop.f32.mrb[7].mxu0  ;;  %v3019_v41 = vadd.f32 %v347_v0, %v221_v39  ;;  %v2210_v42 = vpop.f32.mrb[7].mxu1 }
 0x105   :  { %v226_v43 = vpop.f32.mrb[8].mxu0  ;;  %v352_v44 = vpop.f32.mrb[8].mxu1 }
 0x106   :  { %v2177_v45 = vpop.f32.mrb[9].mxu0  ;;  %v3021_v46 = vadd.f32 %v352_v44, %v226_v43  ;;  %v2213_v47 = vpop.f32.mrb[9].mxu1 }
 0x107   :  { %v229_v48 = vpop.f32.mrb[10].mxu0  ;;  %v355_v49 = vpop.f32.mrb[10].mxu1 }
 0x108   :  { %v2178_v50 = vpop.f32.mrb[11].mxu0  ;;  %v3023_v51 = vadd.f32 %v355_v49, %v229_v48  ;;  %v2214_v52 = vpop.f32.mrb[11].mxu1 }
 0x10d   :  { %v234_v53 = vpop.f32.mrb[12].mxu0  ;;  %v360_v54 = vpop.f32.mrb[12].mxu1 }
 0x10e   :  { %v2181_v55 = vpop.f32.mrb[13].mxu0  ;;  %v3025_v56 = vadd.f32 %v360_v54, %v234_v53  ;;  %v2217_v57 = vpop.f32.mrb[13].mxu1 }
 0x10f   :  { %v237_v58 = vpop.f32.mrb[14].mxu0  ;;  %v363_v59 = vpop.f32.mrb[14].mxu1 }
 0x110   :  { %v2182_v60 = vpop.f32.mrb[15].mxu0  ;;  %v3027_v61 = vadd.f32 %v363_v59, %v237_v58  ;;  %v2218_v62 = vpop.f32.mrb[15].mxu1 }
 0x115   :  { %v242_v63 = vpop.f32.mrb[16].mxu0  ;;  %v368_v1 = vpop.f32.mrb[16].mxu1 }
 0x116   :  { %v2185_v2 = vpop.f32.mrb[17].mxu0  ;;  %v3029_v3 = vadd.f32 %v368_v1, %v242_v63  ;;  %v2221_v4 = vpop.f32.mrb[17].mxu1 }
 0x117   :  { %v245_v5 = vpop.f32.mrb[18].mxu0  ;;  %v371_v6 = vpop.f32.mrb[18].mxu1 }
 0x118   :  { %v2186_v7 = vpop.f32.mrb[19].mxu0  ;;  %v2222_v8 = vpop.f32.mrb[19].mxu1 }
 0x11d   :  { %v552_v9 = vpop.f32.mrb[20].mxu0  ;;  %v717_v11 = vpop.f32.mrb[20].mxu1 }
 0x11e   :  { %v590_v10 = vadd.f32 %v552_v9, %v337_v27  ;;  %v2241_v12 = vpop.f32.mrb[21].mxu0  ;;  %v2277_v14 = vpop.f32.mrb[21].mxu1 }
 0x11f   :  { %v555_v15 = vpop.f32.mrb[22].mxu0  ;;  %v720_v18 = vpop.f32.mrb[22].mxu1 }
 0x120   :  { %v755_v16 = vadd.f32 %v717_v11, %v590_v10  ;;  %v591_v17 = vadd.f32 %v555_v15, %v340_v32  ;;  %v2242_v19 = vpop.f32.mrb[23].mxu0  ;;  %v2278_v20 = vpop.f32.mrb[23].mxu1 }
 0x122   :  { %v769_v21 = vadd.f32 %v3034_v13, %v755_v16  ;;  %v756_v22 = vadd.f32 %v720_v18, %v591_v17 }
 0x124   :  { %vm778_vm3 = vcmp.ge.f32.partialorder %v769_v21, 0.0  ;;  %v787_v23 = vmul.f32 0.2, %v769_v21  ;;  %v770_v25 = vadd.f32 %v3034_v13, %v756_v22 }
 0x125   :  { %v560_v26 = vpop.f32.mrb[24].mxu0  ;;  %v725_v30 = vpop.f32.mrb[24].mxu1 }
 0x126   :  { %v796_v27 = vsel %vm778_vm3, %v769_v21, %v787_v23  ;;  %vm779_vm4 = vcmp.ge.f32.partialorder %v770_v25, 0.0  ;;  %v788_v28 = vmul.f32 0.2, %v770_v25  ;;  %v592_v29 = vadd.f32 %v560_v26, %v345_v37  ;;  %v2245_v31 = vpop.f32.mrb[25].mxu0  ;;  %v2281_v33 = vpop.f32.mrb[25].mxu1 }
 0x127   :  { %v810_v32 = vmul.f32 %v3040_v24, %v796_v27  ;;  %v563_v34 = vpop.f32.mrb[26].mxu0  ;;  %v728_v0 = vpop.f32.mrb[26].mxu1 }
 0x128   :  { %v797_v36 = vsel %vm779_vm4, %v770_v25, %v788_v28  ;;  %v757_v38 = vadd.f32 %v725_v30, %v592_v29  ;;  %v593_v39 = vadd.f32 %v563_v34, %v3019_v41  ;;  %v2246_v40 = vpop.f32.mrb[27].mxu0  ;;  %v2282_v37 = vpop.f32.mrb[27].mxu1 }
 0x129   :  { %v811_v42 = vmul.f32 %v3040_v24, %v797_v36  ;;  %v824_v45 = vadd.f32 %v3047_v35, %v810_v32 }
 0x12a   :  { %v771_v43 = vadd.f32 %v3034_v13, %v757_v38  ;;  %v758_v44 = vadd.f32 %v728_v0, %v593_v39 }
 0x12b   :  { %v825_v47 = vadd.f32 %v3047_v35, %v811_v42 }
 0x12c   :  { %vm780_vm5 = vcmp.ge.f32.partialorder %v771_v43, 0.0  ;;  %v789_v48 = vmul.f32 0.2, %v771_v43  ;;  %v772_v49 = vadd.f32 %v3034_v13, %v758_v44 }
 0x12d   :  { %v2003_v50 = vpack.c.bf16 %v825_v47, %v824_v45  ;;  %v568_v52 = vpop.f32.mrb[28].mxu0  ;;  %v733_v55 = vpop.f32.mrb[28].mxu1 }
 0x12e   :  { %v798_v53 = vsel %vm780_vm5, %v771_v43, %v789_v48  ;;  %vm781_vm6 = vcmp.ge.f32.partialorder %v772_v49, 0.0  ;;  %v790_v41 = vmul.f32 0.2, %v772_v49  ;;  %v594_v54 = vadd.f32 %v568_v52, %v3021_v46  ;;  %v2249_v57 = vpop.f32.mrb[29].mxu0  ;;  %v2285_v59 = vpop.f32.mrb[29].mxu1 }
 0x12f   :  { %2004 = vst [vmem:[%s3154_s3] sm:$0xff] %v2003_v50   ;;  %v812_v58 = vmul.f32 %v3040_v24, %v798_v53  ;;  %v571_v60 = vpop.f32.mrb[30].mxu0  ;;  %v736_v2 = vpop.f32.mrb[30].mxu1 }
 0x130   :  { %v799_v62 = vsel %vm781_vm6, %v772_v49, %v790_v41  ;;  %v759_v63 = vadd.f32 %v733_v55, %v594_v54  ;;  %v595_v1 = vadd.f32 %v571_v60, %v3023_v51  ;;  %v2250_v4 = vpop.f32.mrb[31].mxu0  ;;  %v2286_v6 = vpop.f32.mrb[31].mxu1 }
 0x131   :  { %v813_v5 = vmul.f32 %v3040_v24, %v799_v62  ;;  %v826_v8 = vadd.f32 %v3047_v35, %v812_v58 }
 0x132   :  { %v773_v46 = vadd.f32 %v3034_v13, %v759_v63  ;;  %v760_v7 = vadd.f32 %v736_v2, %v595_v1 }
 0x133   :  { %v827_v9 = vadd.f32 %v3047_v35, %v813_v5 }
 0x134   :  { %vm782_vm7 = vcmp.ge.f32.partialorder %v773_v46, 0.0  ;;  %v791_v10 = vmul.f32 0.2, %v773_v46  ;;  %v774_v11 = vadd.f32 %v3034_v13, %v760_v7 }
 0x135   :  { %v2008_v12 = vpack.c.bf16 %v827_v9, %v826_v8  ;;  %v576_v14 = vpop.f32.mrb[32].mxu0  ;;  %v741_v17 = vpop.f32.mrb[32].mxu1 }
 0x136   :  { %v800_v15 = vsel %vm782_vm7, %v773_v46, %v791_v10  ;;  %vm783_vm8 = vcmp.ge.f32.partialorder %v774_v11, 0.0  ;;  %v792_v51 = vmul.f32 0.2, %v774_v11  ;;  %v596_v16 = vadd.f32 %v576_v14, %v3025_v56  ;;  %v2253_v18 = vpop.f32.mrb[33].mxu0  ;;  %v2289_v20 = vpop.f32.mrb[33].mxu1 }
 0x137   :  { %2040 = vst [vmem:[%s3154_s3 + $0x8] sm:$0xff] %v2008_v12   ;;  %v814_v19 = vmul.f32 %v3040_v24, %v800_v15  ;;  %v579_v21 = vpop.f32.mrb[34].mxu0  ;;  %v744_v26 = vpop.f32.mrb[34].mxu1 }
 0x138   :  { %v801_v22 = vsel %vm783_vm8, %v774_v11, %v792_v51  ;;  %v761_v23 = vadd.f32 %v741_v17, %v596_v16  ;;  %v597_v25 = vadd.f32 %v579_v21, %v3027_v61  ;;  %v2254_v27 = vpop.f32.mrb[35].mxu0  ;;  %v2290_v29 = vpop.f32.mrb[35].mxu1 }
 0x139   :  { %v815_v28 = vmul.f32 %v3040_v24, %v801_v22  ;;  %v828_v31 = vadd.f32 %v3047_v35, %v814_v19 }
 0x13a   :  { %v775_v56 = vadd.f32 %v3034_v13, %v761_v23  ;;  %v762_v30 = vadd.f32 %v744_v26, %v597_v25 }
 0x13b   :  { %v829_v32 = vadd.f32 %v3047_v35, %v815_v28 }
 0x13c   :  { %vm784_vm9 = vcmp.ge.f32.partialorder %v775_v56, 0.0  ;;  %v793_v33 = vmul.f32 0.2, %v775_v56  ;;  %v776_v34 = vadd.f32 %v3034_v13, %v762_v30 }
 0x13d   :  { %v2013_v36 = vpack.c.bf16 %v829_v32, %v828_v31  ;;  %v584_v38 = vpop.f32.mrb[36].mxu0  ;;  %v749_v40 = vpop.f32.mrb[36].mxu1 }
 0x13e   :  { %v802_v39 = vsel %vm784_vm9, %v775_v56, %v793_v33  ;;  %vm785_vm10 = vcmp.ge.f32.partialorder %v776_v34, 0.0  ;;  %v794_v61 = vmul.f32 0.2, %v776_v34  ;;  %v598_v0 = vadd.f32 %v584_v38, %v3029_v3  ;;  %v2257_v42 = vpop.f32.mrb[37].mxu0  ;;  %v2293_v43 = vpop.f32.mrb[37].mxu1 }
 0x13f   :  { %2041 = vst [vmem:[%s3154_s3 + $0x10] sm:$0xff] %v2013_v36   ;;  %v816_v37 = vmul.f32 %v3040_v24, %v802_v39  ;;  %v587_v44 = vpop.f32.mrb[38].mxu0  ;;  %v752_v48 = vpop.f32.mrb[38].mxu1 }
 0x140   :  { %v803_v45 = vsel %vm785_vm10, %v776_v34, %v794_v61  ;;  %v763_v47 = vadd.f32 %v749_v40, %v598_v0  ;;  %v2258_v49 = vpop.f32.mrb[39].mxu0  ;;  %v2294_v52 = vpop.f32.mrb[39].mxu1 }
 0x141   :  { %v817_v50 = vmul.f32 %v3040_v24, %v803_v45  ;;  %v830_v3 = vadd.f32 %v3047_v35, %v816_v37 }
 0x142   :  { %v777_v53 = vadd.f32 %v3034_v13, %v763_v47 }
 0x143   :  { %v831_v41 = vadd.f32 %v3047_v35, %v817_v50 }
 0x144   :  { %vm786_vm11 = vcmp.ge.f32.partialorder %v777_v53, 0.0  ;;  %v795_v54 = vmul.f32 0.2, %v777_v53 }
 0x145   :  { %v2018_v55 = vpack.c.bf16 %v831_v41, %v830_v3  ;;  %v1073_v57 = vpop.f32.mrb[40].mxu0  ;;  %v1199_v59 = vpop.f32.mrb[40].mxu1 }
 0x146   :  { %v804_v58 = vsel %vm786_vm11, %v777_v53, %v795_v54  ;;  %v2313_v60 = vpop.f32.mrb[41].mxu0  ;;  %v1200_v63 = vadd.f32 %v1199_v59, %v1073_v57  ;;  %v2349_v1 = vpop.f32.mrb[41].mxu1 }
 0x147   :  { %2042 = vst [vmem:[%s3154_s3 + $0x18] sm:$0xff] %v2018_v55   ;;  %v818_v62 = vmul.f32 %v3040_v24, %v804_v58  ;;  %v1076_v2 = vpop.f32.mrb[42].mxu0  ;;  %v1202_v4 = vpop.f32.mrb[42].mxu1 }
 0x148   :  { %v2314_v5 = vpop.f32.mrb[43].mxu0  ;;  %v1203_v46 = vadd.f32 %v1202_v4, %v1076_v2  ;;  %v2350_v7 = vpop.f32.mrb[43].mxu1 }
 0x149   :  { %v832_v6 = vadd.f32 %v3047_v35, %v818_v62 }
 0x14b   :  { %v1990_v8 = vpack.c.bf16 %v832_v6, %v832_v6 }
 0x14d   :  { %878 = vst [vmem:[%s3154_s3 + $0x20] sm:$0xf] %v1990_v8  ;;  %v1081_v9 = vpop.f32.mrb[44].mxu0  ;;  %v1207_v10 = vpop.f32.mrb[44].mxu1 }
 0x14e   :  { %v2317_v11 = vpop.f32.mrb[45].mxu0  ;;  %v1208_v12 = vadd.f32 %v1207_v10, %v1081_v9  ;;  %v2353_v14 = vpop.f32.mrb[45].mxu1 }
 0x14f   :  { %v1084_v15 = vpop.f32.mrb[46].mxu0  ;;  %v1210_v51 = vpop.f32.mrb[46].mxu1 }
 0x150   :  { %v2318_v16 = vpop.f32.mrb[47].mxu0  ;;  %v1211_v17 = vadd.f32 %v1210_v51, %v1084_v15  ;;  %v2354_v18 = vpop.f32.mrb[47].mxu1 }
 0x155   :  { %v1089_v19 = vpop.f32.mrb[48].mxu0  ;;  %v1215_v20 = vpop.f32.mrb[48].mxu1 }
 0x156   :  { %v2321_v21 = vpop.f32.mrb[49].mxu0  ;;  %v3094_v22 = vadd.f32 %v1215_v20, %v1089_v19  ;;  %v2357_v23 = vpop.f32.mrb[49].mxu1 }
 0x157   :  { %v1092_v25 = vpop.f32.mrb[50].mxu0  ;;  %v1218_v26 = vpop.f32.mrb[50].mxu1 }
 0x158   :  { %v2322_v27 = vpop.f32.mrb[51].mxu0  ;;  %v3096_v28 = vadd.f32 %v1218_v26, %v1092_v25  ;;  %v2358_v29 = vpop.f32.mrb[51].mxu1 }
 0x15d   :  { %v1097_v56 = vpop.f32.mrb[52].mxu0  ;;  %v1223_v30 = vpop.f32.mrb[52].mxu1 }
 0x15e   :  { %v2325_v31 = vpop.f32.mrb[53].mxu0  ;;  %v3098_v32 = vadd.f32 %v1223_v30, %v1097_v56  ;;  %v2361_v33 = vpop.f32.mrb[53].mxu1 }
 0x15f   :  { %v1100_v34 = vpop.f32.mrb[54].mxu0  ;;  %v1226_v36 = vpop.f32.mrb[54].mxu1 }
 0x160   :  { %v2326_v38 = vpop.f32.mrb[55].mxu0  ;;  %v3100_v39 = vadd.f32 %v1226_v36, %v1100_v34  ;;  %v2362_v61 = vpop.f32.mrb[55].mxu1 }
 0x165   :  { %v1105_v0 = vpop.f32.mrb[56].mxu0  ;;  %v1231_v40 = vpop.f32.mrb[56].mxu1 }
 0x166   :  { %v2329_v42 = vpop.f32.mrb[57].mxu0  ;;  %v3102_v37 = vadd.f32 %v1231_v40, %v1105_v0  ;;  %v2365_v43 = vpop.f32.mrb[57].mxu1 }
 0x167   :  { %v1108_v44 = vpop.f32.mrb[58].mxu0  ;;  %v1234_v45 = vpop.f32.mrb[58].mxu1 }
 0x168   :  { %v2330_v47 = vpop.f32.mrb[59].mxu0  ;;  %v2366_v48 = vpop.f32.mrb[59].mxu1 }
 0x16d   :  { %v1414_v49 = vpop.f32.mrb[60].mxu0  ;;  %v1577_v52 = vpop.f32.mrb[60].mxu1 }
 0x16e   :  { %v1452_v50 = vadd.f32 %v1414_v49, %v1200_v63  ;;  %v2385_v53 = vpop.f32.mrb[61].mxu0  ;;  %v2421_v3 = vpop.f32.mrb[61].mxu1 }
 0x16f   :  { %v1417_v41 = vpop.f32.mrb[62].mxu0  ;;  %v1580_v57 = vpop.f32.mrb[62].mxu1 }
 0x170   :  { %v1615_v54 = vadd.f32 %v1577_v52, %v1452_v50  ;;  %v1453_v55 = vadd.f32 %v1417_v41, %v1203_v46  ;;  %v2386_v58 = vpop.f32.mrb[63].mxu0  ;;  %v2422_v59 = vpop.f32.mrb[63].mxu1 }
 0x172   :  { %v1629_v60 = vadd.f32 %v3034_v13, %v1615_v54  ;;  %v1616_v62 = vadd.f32 %v1580_v57, %v1453_v55 }
 0x174   :  { %vm1638_vm12 = vcmp.ge.f32.partialorder %v1629_v60, 0.0  ;;  %v1647_v1 = vmul.f32 0.2, %v1629_v60  ;;  %v1630_v2 = vadd.f32 %v3034_v13, %v1616_v62 }
 0x175   :  { %v1422_v4 = vpop.f32.mrb[64].mxu0  ;;  %v1585_v7 = vpop.f32.mrb[64].mxu1 }
 0x176   :  { %v1656_v5 = vsel %vm1638_vm12, %v1629_v60, %v1647_v1  ;;  %v1648_v6 = vmul.f32 0.2, %v1630_v2  ;;  %v1454_v63 = vadd.f32 %v1422_v4, %v1208_v12  ;;  %v2389_v8 = vpop.f32.mrb[65].mxu0  ;;  %vm1639_vm13 = vcmp.ge.f32.partialorder %v1630_v2, 0.0  ;;  %v2425_v46 = vpop.f32.mrb[65].mxu1 }
 0x177   :  { %v1670_v9 = vmul.f32 %v3040_v24, %v1656_v5  ;;  %v1425_v10 = vpop.f32.mrb[66].mxu0  ;;  %v1588_v15 = vpop.f32.mrb[66].mxu1 }
 0x178   :  { %v1617_v11 = vadd.f32 %v1585_v7, %v1454_v63  ;;  %v1455_v14 = vadd.f32 %v1425_v10, %v1211_v17  ;;  %v2390_v51 = vpop.f32.mrb[67].mxu0  ;;  %v2426_v18 = vpop.f32.mrb[67].mxu1  ;;  %v1657_v19 = vsel %vm1639_vm13, %v1630_v2, %v1648_v6 }
 0x179   :  { %v1684_v16 = vadd.f32 %v3047_v35, %v1670_v9  ;;  %v1671_v17 = vmul.f32 %v3040_v24, %v1657_v19 }
 0x17a   :  { %v1631_v20 = vadd.f32 %v3034_v13, %v1617_v11  ;;  %v1618_v21 = vadd.f32 %v1588_v15, %v1455_v14 }
 0x17b   :  { %v1991_v23 = vpack.c.bf16 %v1684_v16, %v1684_v16  ;;  %v1685_v42 = vadd.f32 %v3047_v35, %v1671_v17 }
 0x17c   :  { %vm1640_vm14 = vcmp.ge.f32.partialorder %v1631_v20, 0.0  ;;  %v1649_v12 = vmul.f32 0.2, %v1631_v20  ;;  %v1632_v25 = vadd.f32 %v3034_v13, %v1618_v21 }
 0x17d   :  { %1973 = vst [vmem:[%s3154_s3 + $0x24] sm:$0xf] %v1991_v23  ;;  %v1430_v26 = vpop.f32.mrb[68].mxu0  ;;  %v1593_v30 = vpop.f32.mrb[68].mxu1 }
 0x17e   :  { %v1658_v27 = vsel %vm1640_vm14, %v1631_v20, %v1649_v12  ;;  %v1650_v29 = vmul.f32 0.2, %v1632_v25  ;;  %v1456_v56 = vadd.f32 %v1430_v26, %v3094_v22  ;;  %v2393_v31 = vpop.f32.mrb[69].mxu0  ;;  %vm1641_vm15 = vcmp.ge.f32.partialorder %v1632_v25, 0.0  ;;  %v2429_v34 = vpop.f32.mrb[69].mxu1 }
 0x17f   :  { %v1672_v33 = vmul.f32 %v3040_v24, %v1658_v27  ;;  %v1433_v36 = vpop.f32.mrb[70].mxu0  ;;  %v1596_v0 = vpop.f32.mrb[70].mxu1 }
 0x180   :  { %v1619_v38 = vadd.f32 %v1593_v30, %v1456_v56  ;;  %v1457_v61 = vadd.f32 %v1433_v36, %v3096_v28  ;;  %v2394_v40 = vpop.f32.mrb[71].mxu0  ;;  %v2430_v44 = vpop.f32.mrb[71].mxu1  ;;  %v1659_v45 = vsel %vm1641_vm15, %v1632_v25, %v1650_v29 }
 0x181   :  { %v1686_v43 = vadd.f32 %v3047_v35, %v1672_v33  ;;  %v1673_v28 = vmul.f32 %v3040_v24, %v1659_v45 }
 0x182   :  { %v1633_v22 = vadd.f32 %v3034_v13, %v1619_v38  ;;  %v1620_v47 = vadd.f32 %v1596_v0, %v1457_v61 }
 0x183   :  { %v2023_v48 = vpack.c.bf16 %v1686_v43, %v1685_v42  ;;  %v1687_v4 = vadd.f32 %v3047_v35, %v1673_v28 }
 0x184   :  { %vm1642_vm0 = vcmp.ge.f32.partialorder %v1633_v22, 0.0  ;;  %v1651_v49 = vmul.f32 0.2, %v1633_v22  ;;  %v1634_v50 = vadd.f32 %v3034_v13, %v1620_v47 }
 0x185   :  { %2043 = vst [vmem:[%s3154_s3 + $0x28] sm:$0xff] %v2023_v48   ;;  %v1438_v52 = vpop.f32.mrb[72].mxu0  ;;  %v1601_v54 = vpop.f32.mrb[72].mxu1 }
 0x186   :  { %v1660_v53 = vsel %vm1642_vm0, %v1633_v22, %v1651_v49  ;;  %v1652_v3 = vmul.f32 0.2, %v1634_v50  ;;  %v1458_v41 = vadd.f32 %v1438_v52, %v3098_v32  ;;  %v2397_v55 = vpop.f32.mrb[73].mxu0  ;;  %vm1643_vm1 = vcmp.ge.f32.partialorder %v1634_v50, 0.0  ;;  %v2433_v58 = vpop.f32.mrb[73].mxu1 }
 0x187   :  { %v1674_v57 = vmul.f32 %v3040_v24, %v1660_v53  ;;  %v1441_v59 = vpop.f32.mrb[74].mxu0  ;;  %v1604_v1 = vpop.f32.mrb[74].mxu1 }
 0x188   :  { %v1621_v60 = vadd.f32 %v1601_v54, %v1458_v41  ;;  %v1459_v62 = vadd.f32 %v1441_v59, %v3100_v39  ;;  %v2398_v2 = vpop.f32.mrb[75].mxu0  ;;  %v2434_v6 = vpop.f32.mrb[75].mxu1  ;;  %v1661_v63 = vsel %vm1643_vm1, %v1634_v50, %v1652_v3 }
 0x189   :  { %v1688_v5 = vadd.f32 %v3047_v35, %v1674_v57  ;;  %v1675_v39 = vmul.f32 %v3040_v24, %v1661_v63 }
 0x18a   :  { %v1635_v32 = vadd.f32 %v3034_v13, %v1621_v60  ;;  %v1622_v7 = vadd.f32 %v1604_v1, %v1459_v62 }
 0x18b   :  { %v2028_v8 = vpack.c.bf16 %v1688_v5, %v1687_v4  ;;  %v1689_v25 = vadd.f32 %v3047_v35, %v1675_v39 }
 0x18c   :  { %vm1644_vm2 = vcmp.ge.f32.partialorder %v1635_v32, 0.0  ;;  %v1653_v9 = vmul.f32 0.2, %v1635_v32  ;;  %v1636_v46 = vadd.f32 %v3034_v13, %v1622_v7 }
 0x18d   :  { %2044 = vst [vmem:[%s3154_s3 + $0x30] sm:$0xff] %v2028_v8   ;;  %v1446_v10 = vpop.f32.mrb[76].mxu0  ;;  %v1609_v51 = vpop.f32.mrb[76].mxu1 }
 0x18e   :  { %v1662_v11 = vsel %vm1644_vm2, %v1635_v32, %v1653_v9  ;;  %v1654_v14 = vmul.f32 0.2, %v1636_v46  ;;  %v1460_v15 = vadd.f32 %v1446_v10, %v3102_v37  ;;  %v2401_v16 = vpop.f32.mrb[77].mxu0  ;;  %vm1645_vm3 = vcmp.ge.f32.partialorder %v1636_v46, 0.0  ;;  %v2437_v19 = vpop.f32.mrb[77].mxu1 }
 0x18f   :  { %v1676_v18 = vmul.f32 %v3040_v24, %v1662_v11  ;;  %v1449_v20 = vpop.f32.mrb[78].mxu0  ;;  %v1612_v23 = vpop.f32.mrb[78].mxu1 }
 0x190   :  { %v1623_v21 = vadd.f32 %v1609_v51, %v1460_v15  ;;  %v2402_v12 = vpop.f32.mrb[79].mxu0  ;;  %v2438_v26 = vpop.f32.mrb[79].mxu1  ;;  %v1663_v27 = vsel %vm1645_vm3, %v1636_v46, %v1654_v14 }
 0x191   :  { %v1690_v17 = vadd.f32 %v3047_v35, %v1676_v18  ;;  %v1677_v30 = vmul.f32 %v3040_v24, %v1663_v27 }
 0x192   :  { %v1637_v29 = vadd.f32 %v3034_v13, %v1623_v21 }
 0x193   :  { %v2033_v56 = vpack.c.bf16 %v1690_v17, %v1689_v25  ;;  %v1691_v34 = vadd.f32 %v3047_v35, %v1677_v30 }
 0x194   :  { %vm1646_vm4 = vcmp.ge.f32.partialorder %v1637_v29, 0.0  ;;  %v1655_v37 = vmul.f32 0.2, %v1637_v29 }
 0x195   :  { %2045 = vst [vmem:[%s3154_s3 + $0x38] sm:$0xff] %v2033_v56  }
 0x196   :  { %v1664_v31 = vsel %vm1646_vm4, %v1637_v29, %v1655_v37 }
 0x197   :  { %v1678_v33 = vmul.f32 %v3040_v24, %v1664_v31 }
 0x199   :  { %v1692_v36 = vadd.f32 %v3047_v35, %v1678_v33 }
 0x19b   :  { %v2038_v38 = vpack.c.bf16 %v1692_v36, %v1691_v34 }
 0x19d   :  { %2046 = vst [vmem:[%s3154_s3 + $0x40] sm:$0xff] %v2038_v38  }

// kernel: discriminator_forward.5
= control target key start
LH: loop header
LB: loop body
LE: loop exit
PB: predicated region body
PF: predicated region fallthrough
CT: control target
= control target key end

     0   :  { %vm178_vm0 = vsmask.f32 7424  ;;  %vm946_vm1 = vsmask.f32 5376  ;;  %vm1391_vm2 = vcmask 1044480   ;;  %s6078_s1 = inlined_call_operand.vmem [shape: bf16[4,512,128], index: 1, kind: input, shape index: {}]   ;;  %s6079_s0 = inlined_call_operand.vmem [shape: bf16[2,26,512], index: 0, kind: input, shape index: {}]   ;;  %s6080_s2 = inlined_call_operand.vmem [shape: f32[8,128], index: 2, kind: input, shape index: {}]   ;;  %s6081_s3 = inlined_call_operand.vmem [shape: bf16[2,20,128], index: 3, kind: output, shape index: {}]  }
   0x1   :  { %v4669_v0 = vld [vmem:[%s6078_s1 + $0x140] sm:$0xff]   ;;  %v4673_v4 = vld [vmem:[%s6078_s1 + $0x148] sm:$0xff]   ;;  %v4677_v8 = vld [vmem:[%s6078_s1 + $0x150] sm:$0xff]  }
   0x2   :  { %v4670_v1 = vld [vmem:[%s6078_s1 + $0x1c0] sm:$0xff]   ;;  %4221 = vmatprep.subr.bf16.mxu0 %v4669_v0  ;;  %v4674_v5 = vld [vmem:[%s6078_s1 + $0x1c8] sm:$0xff]   ;;  %v4678_v9 = vld [vmem:[%s6078_s1 + $0x1d0] sm:$0xff]  }
   0x3   :  { %v4671_v2 = vld [vmem:[%s6078_s1 + $0x100] sm:$0xff]   ;;  %4249 = vmatprep.subr.bf16.mxu1 %v4670_v1  ;;  %v4675_v6 = vld [vmem:[%s6078_s1 + $0x108] sm:$0xff]   ;;  %v4679_v10 = vld [vmem:[%s6078_s1 + $0x110] sm:$0xff]  }
   0x4   :  { %v4672_v3 = vld [vmem:[%s6078_s1 + $0x180] sm:$0xff]   ;;  %4222 = vmatpush3.bf16.msra.mxu0 %v4671_v2  ;;  %v4676_v7 = vld [vmem:[%s6078_s1 + $0x188] sm:$0xff]   ;;  %v4680_v11 = vld [vmem:[%s6078_s1 + $0x190] sm:$0xff]  }
   0x5   :  { %4250 = vmatpush3.bf16.msra.mxu1 %v4672_v3  ;;  %4223 = vmatprep.subr.bf16.mxu0 %v4673_v4  ;;  %v4681_v12 = vld [vmem:[%s6078_s1 + $0x158] sm:$0xff]   ;;  %v4685_v16 = vld [vmem:[%s6078_s1 + $0x160] sm:$0xff]   ;;  %v4689_v20 = vld [vmem:[%s6078_s1 + $0x168] sm:$0xff]  }
   0x6   :  { %4251 = vmatprep.subr.bf16.mxu1 %v4674_v5  ;;  %v4682_v13 = vld [vmem:[%s6078_s1 + $0x1d8] sm:$0xff]   ;;  %v4686_v17 = vld [vmem:[%s6078_s1 + $0x1e0] sm:$0xff]   ;;  %v4690_v21 = vld [vmem:[%s6078_s1 + $0x1e8] sm:$0xff]  }
   0x7   :  { %v4683_v14 = vld [vmem:[%s6078_s1 + $0x118] sm:$0xff]   ;;  %v4687_v18 = vld [vmem:[%s6078_s1 + $0x120] sm:$0xff]   ;;  %v4691_v22 = vld [vmem:[%s6078_s1 + $0x128] sm:$0xff]  }
   0x8   :  { %4224 = vmatpush3.bf16.msra.mxu0 %v4675_v6  ;;  %v4684_v15 = vld [vmem:[%s6078_s1 + $0x198] sm:$0xff]   ;;  %v4688_v19 = vld [vmem:[%s6078_s1 + $0x1a0] sm:$0xff]   ;;  %v4692_v23 = vld [vmem:[%s6078_s1 + $0x1a8] sm:$0xff]  }
   0x9   :  { %4252 = vmatpush3.bf16.msra.mxu1 %v4676_v7  ;;  %4225 = vmatprep.subr.bf16.mxu0 %v4677_v8  ;;  %v4693_v24 = vld [vmem:[%s6078_s1 + $0x170] sm:$0xff]   ;;  %v4697_v28 = vld [vmem:[%s6078_s1 + $0x178] sm:$0xff]   ;;  %v15_v32 = vld [vmem:[%s6079_s0] sm:$0xff] }
   0xa   :  { %4253 = vmatprep.subr.bf16.mxu1 %v4678_v9  ;;  %v4694_v25 = vld [vmem:[%s6078_s1 + $0x1f0] sm:$0xff]   ;;  %v4698_v29 = vld [vmem:[%s6078_s1 + $0x1f8] sm:$0xff]   ;;  %v85_v34 = vld [vmem:[%s6079_s0 + $0x20] sm:$0x77] }
   0xb   :  { %v4695_v26 = vld [vmem:[%s6078_s1 + $0x130] sm:$0xff]   ;;  %v4699_v30 = vld [vmem:[%s6078_s1 + $0x138] sm:$0xff]   ;;  %v3558_v36 = vcombine.high %v85_v34, %v85_v34  ;;  %v16_v37 = vld [vmem:[%s6079_s0 + $0x8] sm:$0xff]  ;;  %v5125_v41 = vcombine.low %v85_v34, %v85_v34 }
   0xc   :  { %4226 = vmatpush3.bf16.msra.mxu0 %v4679_v10  ;;  %v4696_v27 = vld [vmem:[%s6078_s1 + $0x1b0] sm:$0xff]   ;;  %v4700_v31 = vld [vmem:[%s6078_s1 + $0x1b8] sm:$0xff]   ;;  %v86_v39 = vld [vmem:[%s6079_s0 + $0x28] sm:$0x77] }
   0xd   :  { %4254 = vmatpush3.bf16.msra.mxu1 %v4680_v11  ;;  %4227 = vmatprep.subr.bf16.mxu0 %v4681_v12  ;;  %v5103_v33 = vld [vmem:[%s6079_s0 + $0x10] sm:$0xff]  ;;  %v5117_v38 = vld [vmem:[%s6079_s0 + $0x18] sm:$0xff]  ;;  %v3560_v43 = vcombine.high %v86_v39, %v86_v39  ;;  %v5133_v45 = vcombine.low %v86_v39, %v86_v39  ;;  %v4709_v46 = vld [vmem:[%s6078_s1 + $0x40] sm:$0xff]   ;;  %v199_v49 = vshll.u32 %v3558_v36, 16  ;;  %v187_v57 = vshll.u32 %v5125_v41, 16 }
   0xe   :  { %4255 = vmatprep.subr.bf16.mxu1 %v4682_v13  ;;  %v5109_v35 = vcombine.high %v15_v32, %v5103_v33  ;;  %v5123_v40 = vcombine.low %v15_v32, %v5103_v33  ;;  %v5128_v42 = vcombine.high %v16_v37, %v5117_v38  ;;  %v5131_v44 = vcombine.low %v16_v37, %v5117_v38  ;;  %v4710_v59 = vld [vmem:[%s6078_s1 + $0xc0] sm:$0xff]   ;;  %v4713_v10 = vld [vmem:[%s6078_s1 + $0x48] sm:$0xff]   ;;  %v4723_v32 = vld [vmem:[%s6078_s1 + $0x18] sm:$0xff]  }
   0xf   :  { %v223_v53 = vshll.u32 %v3560_v43, 16  ;;  %v201_v56 = vrot.slane %v199_v49, 1  ;;  %v4711_v0 = vld [vmem:[%s6078_s1] sm:$0xff]   ;;  %v189_v2 = vrot.slane %v187_v57, 1  ;;  %v211_v3 = vshll.u32 %v5133_v45, 16  ;;  %v4724_v34 = vld [vmem:[%s6078_s1 + $0x98] sm:$0xff]  }
  0x10   :  { %4228 = vmatpush3.bf16.msra.mxu0 %v4683_v14  ;;  %v192_v47 = vshrl.u32 %v5109_v35, 16  ;;  %v194_v48 = vshll.u32 %v5109_v35, 16  ;;  %v180_v50 = vshrl.u32 %v5123_v40, 16  ;;  %v216_v51 = vshrl.u32 %v5128_v42, 16  ;;  %v4712_v7 = vld [vmem:[%s6078_s1 + $0x80] sm:$0xff]   ;;  %v4714_v14 = vld [vmem:[%s6078_s1 + $0xc8] sm:$0xff]  }
  0x11   :  { %4256 = vmatpush3.bf16.msra.mxu1 %v4684_v15  ;;  %4229 = vmatprep.subr.bf16.mxu0 %v4685_v16  ;;  %v218_v52 = vshll.u32 %v5128_v42, 16  ;;  %v182_v54 = vshll.u32 %v5123_v40, 16  ;;  %v204_v58 = vshrl.u32 %v5131_v44, 16  ;;  %v225_v61 = vrot.slane %v223_v53, 1  ;;  %v4715_v16 = vld [vmem:[%s6078_s1 + $0x8] sm:$0xff]   ;;  %v4726_v37 = vld [vmem:[%s6078_s1 + $0xe0] sm:$0xff]  }
  0x12   :  { %4257 = vmatprep.subr.bf16.mxu1 %v4686_v17  ;;  %v196_v55 = vrot.slane %v194_v48, 1  ;;  %v206_v63 = vshll.u32 %v5131_v44, 16  ;;  %v213_v9 = vrot.slane %v211_v3, 1  ;;  %v230_v15 = vshrl.u32 %v3558_v36, 16  ;;  %v4725_v36 = vld [vmem:[%s6078_s1 + $0x60] sm:$0xff]   ;;  %v4735_v48 = vld [vmem:[%s6078_s1 + $0x30] sm:$0xff]  }
  0x13   :  { %v220_v60 = vrot.slane %v218_v52, 1  ;;  %v184_v62 = vrot.slane %v182_v54, 1  ;;  %v236_v17 = vshrl.u32 %v3560_v43, 16  ;;  %v4727_v39 = vld [vmem:[%s6078_s1 + $0x20] sm:$0xff]   ;;  %v4731_v43 = vld [vmem:[%s6078_s1 + $0x28] sm:$0xff]   ;;  %v4736_v49 = vld [vmem:[%s6078_s1 + $0xb0] sm:$0xff]  }
  0x14   :  { %4230 = vmatpush3.bf16.msra.mxu0 %v4687_v18  ;;  %v197_v1 = vor.u32 %v196_v55, %v192_v47  ;;  %v208_v6 = vrot.slane %v206_v63, 1  ;;  %v4734_v47 = vld [vmem:[%s6078_s1 + $0xf0] sm:$0xff]   ;;  %v4739_v52 = vld [vmem:[%s6078_s1 + $0x38] sm:$0xff]   ;;  %v4741_v54 = vld [vmem:[%s6078_s1 + $0x240] sm:$0xff]  }
  0x15   :  { %4258 = vmatpush3.bf16.msra.mxu1 %v4688_v19  ;;  %4231 = vmatprep.subr.bf16.mxu0 %v4689_v20  ;;  %v221_v4 = vor.u32 %v220_v60, %v216_v51  ;;  %v185_v5 = vor.u32 %v184_v62, %v180_v50  ;;  %v4716_v19 = vld [vmem:[%s6078_s1 + $0x88] sm:$0xff]   ;;  %v232_v20 = vor.u32 %v230_v15, %v201_v56  ;;  %v4737_v50 = vld [vmem:[%s6078_s1 + $0x78] sm:$0xff]   ;;  %v4742_v55 = vld [vmem:[%s6078_s1 + $0x2c0] sm:$0xff]  }
  0x16   :  { %4259 = vmatprep.subr.bf16.mxu1 %v4690_v21  ;;  %v202_v8 = vsel %vm178_vm0, %v197_v1, %v201_v56  ;;  %v209_v13 = vor.u32 %v208_v6, %v204_v58  ;;  %v227_v21 = vshrl.u32 %v5125_v41, 16  ;;  %v4729_v41 = vld [vmem:[%s6078_s1 + $0x68] sm:$0xff]   ;;  %v4738_v51 = vld [vmem:[%s6078_s1 + $0xf8] sm:$0xff]   ;;  %v4743_v56 = vld [vmem:[%s6078_s1 + $0x200] sm:$0xff]  }
  0x17   :  { %471 = vmatprep.mubr.bf16.mxu0 %v202_v8  ;;  %v226_v11 = vsel %vm178_vm0, %v221_v4, %v225_v61  ;;  %v190_v12 = vsel %vm178_vm0, %v185_v5, %v189_v2  ;;  %v4740_v53 = vld [vmem:[%s6078_s1 + $0xb8] sm:$0xff]   ;;  %v4744_v57 = vld [vmem:[%s6078_s1 + $0x280] sm:$0xff]   ;;  %v4745_v58 = vld [vmem:[%s6078_s1 + $0x248] sm:$0xff]  }
  0x18   :  { %4232 = vmatpush3.bf16.msra.mxu0 %v4691_v22  ;;  %519 = vmatprep.mubr.bf16.mxu1 %v226_v11  ;;  %v214_v18 = vsel %vm178_vm0, %v209_v13, %v213_v9  ;;  %v4717_v22 = vld [vmem:[%s6078_s1 + $0x50] sm:$0xff]   ;;  %v4747_v60 = vld [vmem:[%s6078_s1 + $0x208] sm:$0xff]   ;;  %v19_v62 = vld [vmem:[%s6079_s0 + $0x20] sm:$0x33] }
  0x19   :  { %4260 = vmatpush3.bf16.msra.mxu1 %v4692_v23  ;;  %4233 = vmatprep.subr.bf16.mxu0 %v4693_v24  ;;  %v238_v23 = vor.u32 %v236_v17, %v225_v61  ;;  %v233_v24 = vshrl.u32 %v5133_v45, 16  ;;  %v4732_v45 = vld [vmem:[%s6078_s1 + $0xa8] sm:$0xff]   ;;  %v3594_v63 = vcombine.high %v19_v62, %v19_v62  ;;  %v3593_v1 = vcombine.low %v19_v62, %v19_v62  ;;  %v4754_v3 = vld [vmem:[%s6078_s1 + $0x210] sm:$0xff]   ;;  %v4757_v6 = vld [vmem:[%s6078_s1 + $0x258] sm:$0xff]  }
  0x1a   :  { %4261 = vmatprep.subr.bf16.mxu1 %v4694_v25  ;;  %v4718_v25 = vld [vmem:[%s6078_s1 + $0xd0] sm:$0xff]   ;;  %v4748_v61 = vld [vmem:[%s6078_s1 + $0x288] sm:$0xff]   ;;  %v4759_v8 = vld [vmem:[%s6078_s1 + $0x218] sm:$0xff]  }
  0x1b   :  { %v4755_v4 = vld [vmem:[%s6078_s1 + $0x290] sm:$0xff]   ;;  %v4762_v11 = vld [vmem:[%s6078_s1 + $0x2e0] sm:$0xff]   ;;  %v4766_v15 = vld [vmem:[%s6078_s1 + $0x2e8] sm:$0xff]  }
  0x1c   :  { %4234 = vmatpush3.bf16.msra.mxu0 %v4695_v26  ;;  %v4719_v26 = vld [vmem:[%s6078_s1 + $0x10] sm:$0xff]   ;;  %v4764_v13 = vld [vmem:[%s6078_s1 + $0x2a0] sm:$0xff]   ;;  %v4768_v17 = vld [vmem:[%s6078_s1 + $0x2a8] sm:$0xff]  }
  0x1d   :  { %4262 = vmatpush3.bf16.msra.mxu1 %v4696_v27  ;;  %4235 = vmatprep.subr.bf16.mxu0 %v4697_v28  ;;  %v229_v27 = vor.u32 %v227_v21, %v189_v2  ;;  %v4720_v28 = vld [vmem:[%s6078_s1 + $0x90] sm:$0xff]   ;;  %v20_v2 = vld [vmem:[%s6079_s0 + $0x28] sm:$0x33] }
  0x1e   :  { %4263 = vmatprep.subr.bf16.mxu1 %v4698_v29  ;;  %v4721_v29 = vld [vmem:[%s6078_s1 + $0x58] sm:$0xff]   ;;  %v3595_v5 = vcombine.low %v20_v2, %v20_v2  ;;  %v4772_v21 = vld [vmem:[%s6078_s1 + $0x2b0] sm:$0xff]  }
  0x20   :  { %4236 = vmatpush3.bf16.msra.mxu0 %v4699_v30  ;;  %v235_v30 = vor.u32 %v233_v24, %v213_v9  ;;  %v4760_v9 = vld [vmem:[%s6078_s1 + $0x298] sm:$0xff]  }
  0x21   :  { %4264 = vmatpush3.bf16.msra.mxu1 %v4700_v31  ;;  %4277 = vmatprep.subr.bf16.mxu0 %v4709_v46  ;;  %v4722_v31 = vld [vmem:[%s6078_s1 + $0xd8] sm:$0xff]   ;;  %v4733_v46 = vld [vmem:[%s6078_s1 + $0x70] sm:$0xff]  }
  0x22   :  { %4305 = vmatprep.subr.bf16.mxu1 %v4710_v59  ;;  %v4746_v59 = vld [vmem:[%s6078_s1 + $0x2c8] sm:$0xff]   ;;  %v4775_v24 = vld [vmem:[%s6078_s1 + $0x238] sm:$0xff]  }
  0x23   :  { %472 = vmatmul.mubr.bf16.vlgmr.msra.gmra.mrb[0].mxu0 %v190_v12  ;;  %v4763_v12 = vld [vmem:[%s6078_s1 + $0x220] sm:$0xff]  }
  0x24   :  { %4278 = vmatpush3.bf16.msra.mxu0 %v4711_v0  ;;  %520 = vmatmul.mubr.bf16.vlgmr.msra.gmra.mrb[0].mxu1 %v214_v18  ;;  %v4752_v0 = vld [vmem:[%s6078_s1 + $0x2d0] sm:$0xff]  }
  0x25   :  { %4279 = vmatprep.subr.bf16.mxu0 %v4713_v10  ;;  %4306 = vmatpush3.bf16.msra.mxu1 %v4712_v7  ;;  %v4758_v7 = vld [vmem:[%s6078_s1 + $0x2d8] sm:$0xff]   ;;  %v4761_v10 = vld [vmem:[%s6078_s1 + $0x260] sm:$0xff]   ;;  %v4769_v18 = vld [vmem:[%s6078_s1 + $0x270] sm:$0xff]  }
  0x26   :  { %479 = vmatprep.mubr.bf16.mxu0 %v232_v20  ;;  %4307 = vmatprep.subr.bf16.mxu1 %v4714_v14  ;;  %v4765_v14 = vld [vmem:[%s6078_s1 + $0x268] sm:$0xff]   ;;  %v4771_v20 = vld [vmem:[%s6078_s1 + $0x230] sm:$0xff]  }
  0x27   :  { %527 = vmatprep.mubr.bf16.mxu1 %v238_v23  ;;  %v4774_v23 = vld [vmem:[%s6078_s1 + $0x2f8] sm:$0xff]  }
  0x28   :  { %4280 = vmatpush3.bf16.msra.mxu0 %v4715_v16  ;;  %v4767_v16 = vld [vmem:[%s6078_s1 + $0x228] sm:$0xff]  }
  0x29   :  { %4281 = vmatprep.subr.bf16.mxu0 %v4717_v22  ;;  %4308 = vmatpush3.bf16.msra.mxu1 %v4716_v19  ;;  %v4770_v19 = vld [vmem:[%s6078_s1 + $0x2f0] sm:$0xff]   ;;  %v4773_v22 = vld [vmem:[%s6078_s1 + $0x278] sm:$0xff]  }
  0x2a   :  { %4309 = vmatprep.subr.bf16.mxu1 %v4718_v25  ;;  %v841_v25 = vld [vmem:[%s6079_s0] sm:$0xcc] }
  0x2b   :  { %480 = vmatmul.mubr.bf16.gmra.mrb[4].mxu0 %v229_v27  ;;  %v3693_v27 = vcombine.low %v841_v25, %v5103_v33 }
  0x2c   :  { %4282 = vmatpush3.bf16.msra.mxu0 %v4719_v26  ;;  %777 = vmatprep.mubr.bf16.mxu0 %v5109_v35  ;;  %v4728_v35 = vld [vmem:[%s6078_s1 + $0xa0] sm:$0xff]   ;;  %v4776_v26 = vld [vmem:[%s6078_s1 + $0x2b8] sm:$0xff]  }
  0x2d   :  { %4283 = vmatprep.subr.bf16.mxu0 %v4721_v29  ;;  %528 = vmatmul.mubr.bf16.gmra.mrb[4].mxu1 %v235_v30  ;;  %v5361_v29 = vld [vmem:[%s6079_s0 + $0x24] ss:$16 sps:$4 sm:$0x1f]   ;;  %v842_v30 = vld [vmem:[%s6079_s0 + $0x8] sm:$0xcc] }
  0x2e   :  { %4310 = vmatpush3.bf16.msra.mxu1 %v4720_v28  ;;  %825 = vmatprep.mubr.bf16.mxu1 %v5128_v42  ;;  %v4730_v42 = vld [vmem:[%s6078_s1 + $0xe8] sm:$0xff]   ;;  %v3694_v28 = vcombine.high %v841_v25, %v5103_v33  ;;  %v3696_v33 = vcombine.high %v842_v30, %v5117_v38  ;;  %v4796_v25 = vld [vmem:[%s6078_s1 + $0x3d0] sm:$0xff]  }
  0x2f   :  { %4311 = vmatprep.subr.bf16.mxu1 %v4722_v31  ;;  %v4787_v31 = vld [vmem:[%s6078_s1 + $0x340] sm:$0xff]  }
  0x30   :  { %4284 = vmatpush3.bf16.msra.mxu0 %v4723_v32  ;;  %v965_v32 = vshrl.u32 %v3694_v28, 16 }
  0x31   :  { %4285 = vmatprep.subr.bf16.mxu0 %v4725_v36  ;;  %v5373_v36 = vld [vmem:[%s6079_s0 + $0x20] ss:$16 sps:$4 sm:$0x1f]  }
  0x32   :  { %4312 = vmatpush3.bf16.msra.mxu1 %v4724_v34  ;;  %v968_v34 = vshll.u32 %v3694_v28, 16  ;;  %v959_v62 = vshll.u32 %v5373_v36, 16  ;;  %v4798_v28 = vld [vmem:[%s6078_s1 + $0x390] sm:$0xff]  }
  0x33   :  { %4313 = vmatprep.subr.bf16.mxu1 %v4726_v37  ;;  %v973_v37 = vshrl.u32 %v5361_v29, 16 }
  0x34   :  { %4286 = vmatpush3.bf16.msra.mxu0 %v4727_v39  ;;  %v976_v39 = vshll.u32 %v5361_v29, 16 }
  0x35   :  { %4287 = vmatprep.subr.bf16.mxu0 %v4729_v41  ;;  %v967_v41 = vrot.slane %v965_v32, 2  ;;  %v4803_v32 = vld [vmem:[%s6078_s1 + $0x360] sm:$0xff]  }
  0x36   :  { %4314 = vmatpush3.bf16.msra.mxu1 %v4728_v35  ;;  %v948_v35 = vshrl.u32 %v3693_v27, 16 }
  0x37   :  { %4315 = vmatprep.subr.bf16.mxu1 %v4730_v42  ;;  %v970_v42 = vrot.slane %v968_v34, 3  ;;  %v4802_v34 = vld [vmem:[%s6078_s1 + $0x398] sm:$0xff]  }
  0x38   :  { %4288 = vmatpush3.bf16.msra.mxu0 %v4731_v43  ;;  %v3695_v43 = vcombine.low %v842_v30, %v5117_v38  ;;  %v4800_v30 = vld [vmem:[%s6078_s1 + $0x3d8] sm:$0xff]  }
  0x39   :  { %4289 = vmatprep.subr.bf16.mxu0 %v4733_v46  ;;  %v999_v46 = vshrl.u32 %v3696_v33, 16 }
  0x3a   :  { %4316 = vmatpush3.bf16.msra.mxu1 %v4732_v45  ;;  %v5381_v45 = vld [vmem:[%s6079_s0 + $0x2c] ss:$16 sps:$4 sm:$0x1f]  }
  0x3b   :  { %4317 = vmatprep.subr.bf16.mxu1 %v4734_v47  ;;  %v975_v47 = vrot.slane %v973_v37, 2  ;;  %v1010_v38 = vshll.u32 %v5381_v45, 16  ;;  %v4805_v37 = vld [vmem:[%s6078_s1 + $0x320] sm:$0xff]  }
  0x3c   :  { %4290 = vmatpush3.bf16.msra.mxu0 %v4735_v48  ;;  %v978_v48 = vrot.slane %v976_v39, 3  ;;  %v4807_v39 = vld [vmem:[%s6078_s1 + $0x368] sm:$0xff]  }
  0x3d   :  { %4291 = vmatprep.subr.bf16.mxu0 %v4737_v50  ;;  %v1002_v50 = vshll.u32 %v3696_v33, 16  ;;  %v4804_v33 = vld [vmem:[%s6078_s1 + $0x3e0] sm:$0xff]  }
  0x3e   :  { %4318 = vmatpush3.bf16.msra.mxu1 %v4736_v49  ;;  %v5386_v49 = vld [vmem:[%s6079_s0 + $0x28] ss:$16 sps:$4 sm:$0x1f]  }
  0x3f   :  { %4319 = vmatprep.subr.bf16.mxu1 %v4738_v51  ;;  %v950_v51 = vrot.slane %v948_v35, 2  ;;  %v4806_v35 = vld [vmem:[%s6078_s1 + $0x3a0] sm:$0xff]  }
  0x40   :  { %4292 = vmatpush3.bf16.msra.mxu0 %v4739_v52  ;;  %v971_v52 = vor.u32 %v970_v42, %v967_v41  ;;  %v4808_v41 = vld [vmem:[%s6078_s1 + $0x3e8] sm:$0xff]  }
  0x41   :  { %4333 = vmatprep.subr.bf16.mxu0 %v4741_v54  ;;  %v1007_v54 = vshrl.u32 %v5381_v45, 16  ;;  %v4809_v42 = vld [vmem:[%s6078_s1 + $0x328] sm:$0xff]  }
  0x42   :  { %4320 = vmatpush3.bf16.msra.mxu1 %v4740_v53  ;;  %v1001_v53 = vrot.slane %v999_v46, 2  ;;  %v4810_v46 = vld [vmem:[%s6078_s1 + $0x3a8] sm:$0xff]  }
  0x43   :  { %778 = vmatmul.mubr.bf16.vlgmr.msra.gmra.mrb[8].mxu0 %v5123_v40  ;;  %4361 = vmatprep.subr.bf16.mxu1 %v4742_v55  ;;  %v4751_v40 = vld [vmem:[%s6078_s1 + $0x250] sm:$0xff]   ;;  %v4788_v55 = vld [vmem:[%s6078_s1 + $0x3c0] sm:$0xff]  }
  0x44   :  { %4334 = vmatpush3.bf16.msra.mxu0 %v4743_v56  ;;  %785 = vmatprep.mubr.bf16.mxu0 %v3594_v63  ;;  %v979_v56 = vor.u32 %v978_v48, %v975_v47  ;;  %v982_v63 = vshrl.u32 %v3695_v43, 16  ;;  %v4812_v47 = vld [vmem:[%s6078_s1 + $0x3f0] sm:$0xff]  }
  0x45   :  { %826 = vmatmul.mubr.bf16.vlgmr.msra.gmra.mrb[8].mxu1 %v5131_v44  ;;  %4335 = vmatprep.subr.bf16.mxu0 %v4745_v58  ;;  %v3596_v44 = vcombine.high %v20_v2, %v20_v2  ;;  %v951_v58 = vshll.u32 %v3693_v27, 16  ;;  %v4799_v27 = vld [vmem:[%s6078_s1 + $0x358] sm:$0xff]   ;;  %v4813_v48 = vld [vmem:[%s6078_s1 + $0x330] sm:$0xff]  }
  0x46   :  { %4362 = vmatpush3.bf16.msra.mxu1 %v4744_v57  ;;  %v1004_v57 = vrot.slane %v1002_v50, 3  ;;  %v4815_v50 = vld [vmem:[%s6078_s1 + $0x378] sm:$0xff]  }
  0x47   :  { %4363 = vmatprep.subr.bf16.mxu1 %v4746_v59  ;;  %833 = vmatprep.mubr.bf16.mxu1 %v3596_v44  ;;  %v956_v59 = vshrl.u32 %v5373_v36, 16 }
  0x48   :  { %4336 = vmatpush3.bf16.msra.mxu0 %v4747_v60  ;;  %v1009_v60 = vrot.slane %v1007_v54, 2  ;;  %v1314_v54 = vld [vmem:[%s6079_s0] sm:$0x88] }
  0x49   :  { %4337 = vmatprep.subr.bf16.mxu0 %v4751_v40  ;;  %v980_v40 = vsel %vm946_vm1, %v971_v52, %v979_v56  ;;  %v958_v2 = vrot.slane %v956_v59, 2  ;;  %v1396_v52 = vrot.slane %v5361_v29, 3  ;;  %v4817_v29 = vld [vmem:[%s6078_s1 + $0x338] sm:$0xff]  }
  0x4a   :  { %4364 = vmatpush3.bf16.msra.mxu1 %v4748_v61  ;;  %v1012_v61 = vrot.slane %v1010_v38, 3  ;;  %v1315_v38 = vld [vmem:[%s6079_s0 + $0x8] sm:$0x88]  ;;  %v4978_v59 = vld [vmem:[%s6079_s0 + $0x18] sm:$0xff] }
  0x4b   :  { %786 = vmatmul.mubr.bf16.gmra.mrb[12].mxu0 %v3593_v1  ;;  %4365 = vmatprep.subr.bf16.mxu1 %v4752_v0  ;;  %v1005_v0 = vor.u32 %v1004_v57, %v1001_v53  ;;  %v953_v1 = vrot.slane %v951_v58, 3  ;;  %v4816_v53 = vld [vmem:[%s6078_s1 + $0x3f8] sm:$0xff]  }
  0x4c   :  { %4338 = vmatpush3.bf16.msra.mxu0 %v4754_v3  ;;  %1247 = vmatprep.mubr.bf16.mxu0 %v980_v40  ;;  %v1013_v44 = vor.u32 %v1012_v61, %v1009_v60  ;;  %v961_v3 = vrot.slane %v959_v62, 3  ;;  %v3799_v60 = vcombine.low %v1315_v38, %v4978_v59  ;;  %v1393_v61 = vrot.slane %v5373_v36, 3  ;;  %v4823_v40 = vld [vmem:[%s6078_s1 + $0x140] sm:$0xff]  }
  0x4d   :  { %834 = vmatmul.mubr.bf16.gmra.mrb[12].mxu1 %v3595_v5  ;;  %4339 = vmatprep.subr.bf16.mxu0 %v4757_v6  ;;  %v985_v5 = vshll.u32 %v3695_v43, 16  ;;  %v954_v6 = vor.u32 %v953_v1, %v950_v51  ;;  %v4811_v43 = vld [vmem:[%s6078_s1 + $0x370] sm:$0xff]   ;;  %v3800_v62 = vcombine.high %v1315_v38, %v4978_v59 }
  0x4e   :  { %4366 = vmatpush3.bf16.msra.mxu1 %v4755_v4  ;;  %v984_v4 = vrot.slane %v982_v63, 2  ;;  %v4814_v51 = vld [vmem:[%s6078_s1 + $0x3b0] sm:$0xff]   ;;  %v1399_v63 = vrot.slane %v5386_v49, 3 }
  0x4f   :  { %4367 = vmatprep.subr.bf16.mxu1 %v4758_v7  ;;  %v990_v7 = vshrl.u32 %v5386_v49, 16  ;;  %v1401_v36 = vrot.slane %v3800_v62, 3 }
  0x50   :  { %4340 = vmatpush3.bf16.msra.mxu0 %v4759_v8  ;;  %v993_v8 = vshll.u32 %v5386_v49, 16 }
  0x51   :  { %4341 = vmatprep.subr.bf16.mxu0 %v4761_v10  ;;  %v962_v10 = vor.u32 %v961_v3, %v958_v2  ;;  %v1398_v2 = vrot.slane %v3799_v60, 3  ;;  %v4825_v3 = vld [vmem:[%s6078_s1 + $0x100] sm:$0xff]  }
  0x52   :  { %4368 = vmatpush3.bf16.msra.mxu1 %v4760_v9  ;;  %v1014_v9 = vsel %vm946_vm1, %v1005_v0, %v1013_v44 }
  0x53   :  { %4369 = vmatprep.subr.bf16.mxu1 %v4762_v11  ;;  %v987_v11 = vrot.slane %v985_v5, 3  ;;  %1295 = vmatprep.mubr.bf16.mxu1 %v1014_v9  ;;  %v4828_v9 = vld [vmem:[%s6078_s1 + $0x1c8] sm:$0xff]  }
  0x54   :  { %4342 = vmatpush3.bf16.msra.mxu0 %v4763_v12  ;;  %v4789_v12 = vld [vmem:[%s6078_s1 + $0x300] sm:$0xff]  }
  0x55   :  { %4343 = vmatprep.subr.bf16.mxu0 %v4765_v14  ;;  %v995_v14 = vrot.slane %v993_v8, 3  ;;  %v1400_v8 = vsel %vm1391_vm2, %v1398_v2, %v1399_v63 }
  0x56   :  { %4370 = vmatpush3.bf16.msra.mxu1 %v4764_v13  ;;  %v992_v13 = vrot.slane %v990_v7, 2  ;;  %v4826_v7 = vld [vmem:[%s6078_s1 + $0x180] sm:$0xff]  }
  0x57   :  { %4371 = vmatprep.subr.bf16.mxu1 %v4766_v15  ;;  %v4790_v15 = vld [vmem:[%s6078_s1 + $0x380] sm:$0xff]  }
  0x58   :  { %4344 = vmatpush3.bf16.msra.mxu0 %v4767_v16  ;;  %v4791_v16 = vld [vmem:[%s6078_s1 + $0x348] sm:$0xff]  }
  0x59   :  { %4345 = vmatprep.subr.bf16.mxu0 %v4769_v18  ;;  %v988_v18 = vor.u32 %v987_v11, %v984_v4  ;;  %v4831_v11 = vld [vmem:[%s6078_s1 + $0x150] sm:$0xff]  }
  0x5a   :  { %4372 = vmatpush3.bf16.msra.mxu1 %v4768_v17  ;;  %v963_v17 = vsel %vm946_vm1, %v954_v6, %v962_v10  ;;  %v4827_v6 = vld [vmem:[%s6078_s1 + $0x148] sm:$0xff]  }
  0x5b   :  { %4373 = vmatprep.subr.bf16.mxu1 %v4770_v19  ;;  %v996_v19 = vor.u32 %v995_v14, %v992_v13  ;;  %v4832_v13 = vld [vmem:[%s6078_s1 + $0x1d0] sm:$0xff]  }
  0x5c   :  { %4346 = vmatpush3.bf16.msra.mxu0 %v4771_v20  ;;  %v4792_v20 = vld [vmem:[%s6078_s1 + $0x3c8] sm:$0xff]   ;;  %v4833_v14 = vld [vmem:[%s6078_s1 + $0x110] sm:$0xff]  }
  0x5d   :  { %4347 = vmatprep.subr.bf16.mxu0 %v4773_v22  ;;  %v997_v22 = vsel %vm946_vm1, %v988_v18, %v996_v19  ;;  %v4837_v18 = vld [vmem:[%s6078_s1 + $0x118] sm:$0xff]  }
  0x5e   :  { %4374 = vmatpush3.bf16.msra.mxu1 %v4772_v21  ;;  %v4793_v21 = vld [vmem:[%s6078_s1 + $0x308] sm:$0xff]  }
  0x5f   :  { %4375 = vmatprep.subr.bf16.mxu1 %v4774_v23  ;;  %v4795_v23 = vld [vmem:[%s6078_s1 + $0x350] sm:$0xff]  }
  0x60   :  { %4348 = vmatpush3.bf16.msra.mxu0 %v4775_v24  ;;  %v4794_v24 = vld [vmem:[%s6078_s1 + $0x388] sm:$0xff]  }
  0x61   :  { %4389 = vmatprep.subr.bf16.mxu0 %v4787_v31  ;;  %v4801_v31 = vld [vmem:[%s6078_s1 + $0x318] sm:$0xff]  }
  0x62   :  { %4376 = vmatpush3.bf16.msra.mxu1 %v4776_v26  ;;  %v4797_v26 = vld [vmem:[%s6078_s1 + $0x310] sm:$0xff]  }
  0x63   :  { %4417 = vmatprep.subr.bf16.mxu1 %v4788_v55  ;;  %1248 = vmatmul.mubr.bf16.vlgmr.msra.gmra.mrb[16].mxu0 %v963_v17  ;;  %v1402_v55 = vrot.slane %v5381_v45, 3  ;;  %v4818_v45 = vld [vmem:[%s6078_s1 + $0x3b8] sm:$0xff]  }
  0x64   :  { %4390 = vmatpush3.bf16.msra.mxu0 %v4789_v12  ;;  %1255 = vmatprep.mubr.bf16.mxu0 %v979_v56  ;;  %v4977_v56 = vld [vmem:[%s6079_s0 + $0x10] sm:$0xff]  ;;  %v4830_v12 = vld [vmem:[%s6078_s1 + $0x188] sm:$0xff]   ;;  %v4836_v17 = vld [vmem:[%s6078_s1 + $0x1d8] sm:$0xff]  }
  0x65   :  { %4391 = vmatprep.subr.bf16.mxu0 %v4791_v16  ;;  %1296 = vmatmul.mubr.bf16.vlgmr.msra.gmra.mrb[16].mxu1 %v997_v22  ;;  %v3797_v57 = vcombine.low %v1314_v54, %v4977_v56  ;;  %v3798_v58 = vcombine.high %v1314_v54, %v4977_v56  ;;  %v1403_v5 = vsel %vm1391_vm2, %v1401_v36, %v1402_v55  ;;  %v4834_v16 = vld [vmem:[%s6078_s1 + $0x190] sm:$0xff]   ;;  %v4841_v22 = vld [vmem:[%s6078_s1 + $0x120] sm:$0xff]  }
  0x66   :  { %4418 = vmatpush3.bf16.msra.mxu1 %v4790_v15  ;;  %1303 = vmatprep.mubr.bf16.mxu1 %v1013_v44  ;;  %v4824_v44 = vld [vmem:[%s6078_s1 + $0x1c0] sm:$0xff]   ;;  %v4835_v15 = vld [vmem:[%s6078_s1 + $0x158] sm:$0xff]  }
  0x67   :  { %4419 = vmatprep.subr.bf16.mxu1 %v4792_v20  ;;  %v1392_v0 = vrot.slane %v3797_v57, 3  ;;  %v1395_v1 = vrot.slane %v3798_v58, 3  ;;  %v4838_v20 = vld [vmem:[%s6078_s1 + $0x198] sm:$0xff]   ;;  %v4863_v57 = vld [vmem:[%s6078_s1 + $0x40] sm:$0xff]  }
  0x68   :  { %4392 = vmatpush3.bf16.msra.mxu0 %v4793_v21  ;;  %v4840_v21 = vld [vmem:[%s6078_s1 + $0x1e0] sm:$0xff]  }
  0x69   :  { %4393 = vmatprep.subr.bf16.mxu0 %v4795_v23  ;;  %v1397_v49 = vsel %vm1391_vm2, %v1395_v1, %v1396_v52  ;;  %v1394_v4 = vsel %vm1391_vm2, %v1392_v0, %v1393_v61  ;;  %v4843_v23 = vld [vmem:[%s6078_s1 + $0x168] sm:$0xff]   ;;  %v4864_v58 = vld [vmem:[%s6078_s1 + $0xc0] sm:$0xff]  }
  0x6a   :  { %4420 = vmatpush3.bf16.msra.mxu1 %v4794_v24  ;;  %v4842_v24 = vld [vmem:[%s6078_s1 + $0x1a0] sm:$0xff]  }
  0x6b   :  { %1256 = vmatmul.mubr.bf16.gmra.mrb[20].mxu0 %v962_v10  ;;  %4421 = vmatprep.subr.bf16.mxu1 %v4796_v25  ;;  %v4829_v10 = vld [vmem:[%s6078_s1 + $0x108] sm:$0xff]  }
  0x6c   :  { %4394 = vmatpush3.bf16.msra.mxu0 %v4797_v26  ;;  %1636 = vmatprep.mubr.bf16.mxu0 %v1397_v49  ;;  %v4844_v25 = vld [vmem:[%s6078_s1 + $0x1e8] sm:$0xff]  }
  0x6d   :  { %4395 = vmatprep.subr.bf16.mxu0 %v4799_v27  ;;  %1304 = vmatmul.mubr.bf16.gmra.mrb[20].mxu1 %v996_v19  ;;  %v4839_v19 = vld [vmem:[%s6078_s1 + $0x160] sm:$0xff]   ;;  %v4845_v26 = vld [vmem:[%s6078_s1 + $0x128] sm:$0xff]   ;;  %v4847_v27 = vld [vmem:[%s6078_s1 + $0x170] sm:$0xff]  }
  0x6e   :  { %4422 = vmatpush3.bf16.msra.mxu1 %v4798_v28  ;;  %1684 = vmatprep.mubr.bf16.mxu1 %v1403_v5  ;;  %v4846_v28 = vld [vmem:[%s6078_s1 + $0x1a8] sm:$0xff]  }
  0x6f   :  { %4423 = vmatprep.subr.bf16.mxu1 %v4800_v30  ;;  %v4848_v30 = vld [vmem:[%s6078_s1 + $0x1f0] sm:$0xff]  }
  0x70   :  { %4396 = vmatpush3.bf16.msra.mxu0 %v4801_v31  ;;  %v4849_v31 = vld [vmem:[%s6078_s1 + $0x130] sm:$0xff]  }
  0x71   :  { %4397 = vmatprep.subr.bf16.mxu0 %v4803_v32  ;;  %v4851_v32 = vld [vmem:[%s6078_s1 + $0x178] sm:$0xff]  }
  0x72   :  { %4424 = vmatpush3.bf16.msra.mxu1 %v4802_v34  ;;  %v4850_v34 = vld [vmem:[%s6078_s1 + $0x1b0] sm:$0xff]  }
  0x73   :  { %4425 = vmatprep.subr.bf16.mxu1 %v4804_v33  ;;  %v4852_v33 = vld [vmem:[%s6078_s1 + $0x1f8] sm:$0xff]  }
  0x74   :  { %4398 = vmatpush3.bf16.msra.mxu0 %v4805_v37  ;;  %v4853_v37 = vld [vmem:[%s6078_s1 + $0x138] sm:$0xff]  }
  0x75   :  { %4399 = vmatprep.subr.bf16.mxu0 %v4807_v39  ;;  %v3839_v39 = vld [vmem:[%s6079_s0 + $0x40] sm:$0xff] }
  0x76   :  { %4426 = vmatpush3.bf16.msra.mxu1 %v4806_v35  ;;  %v5610_v35 = vld [vmem:[%s6079_s0 + $0x50] sm:$0xff] }
  0x77   :  { %4427 = vmatprep.subr.bf16.mxu1 %v4808_v41  ;;  %v4854_v41 = vld [vmem:[%s6078_s1 + $0x1b8] sm:$0xff]  }
  0x78   :  { %4400 = vmatpush3.bf16.msra.mxu0 %v4809_v42  ;;  %v3845_v42 = vld [vmem:[%s6079_s0 + $0x60] sm:$0x77] }
  0x79   :  { %4401 = vmatprep.subr.bf16.mxu0 %v4811_v43  ;;  %v5619_v43 = vcombine.low %v3839_v39, %v5610_v35 }
  0x7a   :  { %4428 = vmatpush3.bf16.msra.mxu1 %v4810_v46  ;;  %v5622_v46 = vcombine.high %v3839_v39, %v5610_v35  ;;  %v4876_v39 = vld [vmem:[%s6078_s1 + $0xd8] sm:$0xff]  }
  0x7b   :  { %4429 = vmatprep.subr.bf16.mxu1 %v4812_v47  ;;  %v3840_v47 = vld [vmem:[%s6079_s0 + $0x48] sm:$0xff] }
  0x7c   :  { %4402 = vmatpush3.bf16.msra.mxu0 %v4813_v48  ;;  %v5630_v48 = vld [vmem:[%s6079_s0 + $0x58] sm:$0xff]  ;;  %v1928_v38 = vshrl.u32 %v5622_v46, 16 }
  0x7d   :  { %4403 = vmatprep.subr.bf16.mxu0 %v4815_v50  ;;  %v5632_v50 = vcombine.low %v3845_v42, %v3845_v42  ;;  %v5641_v54 = vcombine.high %v3840_v47, %v5630_v48 }
  0x7e   :  { %4430 = vmatpush3.bf16.msra.mxu1 %v4814_v51  ;;  %v3916_v51 = vcombine.high %v3845_v42, %v3845_v42  ;;  %v4878_v42 = vld [vmem:[%s6078_s1 + $0x98] sm:$0xff]  }
  0x7f   :  { %4431 = vmatprep.subr.bf16.mxu1 %v4816_v53  ;;  %v5638_v53 = vcombine.low %v3840_v47, %v5630_v48  ;;  %v1952_v60 = vshrl.u32 %v5641_v54, 16  ;;  %v1923_v0 = vshll.u32 %v5632_v50, 16  ;;  %v4879_v47 = vld [vmem:[%s6078_s1 + $0x60] sm:$0xff]  }
  0x80   :  { %4404 = vmatpush3.bf16.msra.mxu0 %v4817_v29  ;;  %v1935_v59 = vshll.u32 %v3916_v51, 16 }
  0x81   :  { %4445 = vmatprep.subr.bf16.mxu0 %v4823_v40  ;;  %v1918_v40 = vshll.u32 %v5619_v43, 16  ;;  %v1942_v36 = vshll.u32 %v5638_v53, 16  ;;  %v1925_v5 = vrot.slane %v1923_v0, 1  ;;  %v4898_v0 = vld [vmem:[%s6078_s1 + $0x280] sm:$0xff]  }
  0x82   :  { %4432 = vmatpush3.bf16.msra.mxu1 %v4818_v45  ;;  %v1916_v45 = vshrl.u32 %v5619_v43, 16  ;;  %v1937_v1 = vrot.slane %v1935_v59, 1  ;;  %v4891_v59 = vld [vmem:[%s6078_s1 + $0x78] sm:$0xff]  }
  0x83   :  { %1637 = vmatmul.mubr.bf16.vlgmr.msra.gmra.mrb[24].mxu0 %v1394_v4  ;;  %4473 = vmatprep.subr.bf16.mxu1 %v4824_v44  ;;  %v1940_v44 = vshrl.u32 %v5638_v53, 16  ;;  %v1920_v4 = vrot.slane %v1918_v40, 1  ;;  %v4897_v40 = vld [vmem:[%s6078_s1 + $0x200] sm:$0xff]  }
  0x84   :  { %4446 = vmatpush3.bf16.msra.mxu0 %v4825_v3  ;;  %1644 = vmatprep.mubr.bf16.mxu0 %v1396_v52  ;;  %v3846_v52 = vld [vmem:[%s6079_s0 + $0x68] sm:$0x77] }
  0x85   :  { %4447 = vmatprep.subr.bf16.mxu0 %v4827_v6  ;;  %1685 = vmatmul.mubr.bf16.vlgmr.msra.gmra.mrb[24].mxu1 %v1400_v8  ;;  %v5645_v29 = vcombine.low %v3846_v52, %v3846_v52  ;;  %v3918_v56 = vcombine.high %v3846_v52, %v3846_v52  ;;  %v4865_v6 = vld [vmem:[%s6078_s1] sm:$0xff]   ;;  %v1944_v8 = vrot.slane %v1942_v36, 1  ;;  %v4902_v36 = vld [vmem:[%s6078_s1 + $0x288] sm:$0xff]  }
  0x86   :  { %4474 = vmatpush3.bf16.msra.mxu1 %v4826_v7  ;;  %1692 = vmatprep.mubr.bf16.mxu1 %v1402_v55  ;;  %v1930_v55 = vshll.u32 %v5622_v46, 16  ;;  %v4882_v52 = vld [vmem:[%s6078_s1 + $0xa0] sm:$0xff]  }
  0x87   :  { %4475 = vmatprep.subr.bf16.mxu1 %v4828_v9  ;;  %v1947_v9 = vshll.u32 %v5645_v29, 16 }
  0x88   :  { %4448 = vmatpush3.bf16.msra.mxu0 %v4829_v10  ;;  %v1932_v62 = vrot.slane %v1930_v55, 1  ;;  %v4866_v10 = vld [vmem:[%s6078_s1 + $0x80] sm:$0xff]   ;;  %v4884_v55 = vld [vmem:[%s6078_s1 + $0xe8] sm:$0xff]  }
  0x89   :  { %4449 = vmatprep.subr.bf16.mxu0 %v4831_v11  ;;  %v4867_v11 = vld [vmem:[%s6078_s1 + $0x48] sm:$0xff]  }
  0x8a   :  { %4476 = vmatpush3.bf16.msra.mxu1 %v4830_v12  ;;  %v1933_v3 = vor.u32 %v1932_v62, %v1928_v38  ;;  %v4883_v38 = vld [vmem:[%s6078_s1 + $0x68] sm:$0xff]   ;;  %v4895_v62 = vld [vmem:[%s6078_s1 + $0x240] sm:$0xff]  }
  0x8b   :  { %1645 = vmatmul.mubr.bf16.gmra.mrb[28].mxu0 %v1393_v61  ;;  %4477 = vmatprep.subr.bf16.mxu1 %v4832_v13  ;;  %v1954_v61 = vshll.u32 %v5641_v54, 16  ;;  %v1921_v13 = vor.u32 %v1920_v4, %v1916_v45  ;;  %v4894_v45 = vld [vmem:[%s6078_s1 + $0xb8] sm:$0xff]   ;;  %v4905_v4 = vld [vmem:[%s6078_s1 + $0x250] sm:$0xff]  }
  0x8c   :  { %4450 = vmatpush3.bf16.msra.mxu0 %v4833_v14  ;;  %v1938_v12 = vsel %vm178_vm0, %v1933_v3, %v1937_v1  ;;  %v3843_v3 = vld [vmem:[%s6079_s0 + $0x60] sm:$0x33] }
  0x8d   :  { %4451 = vmatprep.subr.bf16.mxu0 %v4835_v15  ;;  %1693 = vmatmul.mubr.bf16.gmra.mrb[28].mxu1 %v1399_v63  ;;  %v1959_v63 = vshll.u32 %v3918_v56, 16  ;;  %v1956_v2 = vrot.slane %v1954_v61, 1  ;;  %v1945_v15 = vor.u32 %v1944_v8, %v1940_v44  ;;  %v4893_v61 = vld [vmem:[%s6078_s1 + $0x38] sm:$0xff]   ;;  %v4901_v44 = vld [vmem:[%s6078_s1 + $0x208] sm:$0xff]   ;;  %v4909_v8 = vld [vmem:[%s6078_s1 + $0x290] sm:$0xff]  }
  0x8e   :  { %4478 = vmatpush3.bf16.msra.mxu1 %v4834_v16  ;;  %2207 = vmatprep.mubr.bf16.mxu0 %v1938_v12  ;;  %v1949_v16 = vrot.slane %v1947_v9, 1  ;;  %v4913_v12 = vld [vmem:[%s6078_s1 + $0x218] sm:$0xff]  }
  0x8f   :  { %4479 = vmatprep.subr.bf16.mxu1 %v4836_v17  ;;  %v1961_v49 = vrot.slane %v1959_v63, 1  ;;  %v1957_v7 = vor.u32 %v1956_v2, %v1952_v60  ;;  %v4868_v17 = vld [vmem:[%s6078_s1 + $0xc8] sm:$0xff]   ;;  %v4892_v60 = vld [vmem:[%s6078_s1 + $0xf8] sm:$0xff]   ;;  %v4896_v63 = vld [vmem:[%s6078_s1 + $0x2c0] sm:$0xff]  }
  0x90   :  { %4452 = vmatpush3.bf16.msra.mxu0 %v4837_v18  ;;  %v1926_v18 = vsel %vm178_vm0, %v1921_v13, %v1925_v5  ;;  %v4900_v2 = vld [vmem:[%s6078_s1 + $0x2c8] sm:$0xff]   ;;  %v4914_v13 = vld [vmem:[%s6078_s1 + $0x298] sm:$0xff]  }
  0x91   :  { %4453 = vmatprep.subr.bf16.mxu0 %v4839_v19  ;;  %v1962_v14 = vsel %vm178_vm0, %v1957_v7, %v1961_v49  ;;  %v4869_v19 = vld [vmem:[%s6078_s1 + $0x8] sm:$0xff]   ;;  %v4908_v7 = vld [vmem:[%s6078_s1 + $0x210] sm:$0xff]  }
  0x92   :  { %4480 = vmatpush3.bf16.msra.mxu1 %v4838_v20  ;;  %2255 = vmatprep.mubr.bf16.mxu1 %v1962_v14  ;;  %v1966_v20 = vshrl.u32 %v3916_v51, 16  ;;  %v4881_v51 = vld [vmem:[%s6078_s1 + $0x20] sm:$0xff]  }
  0x93   :  { %4481 = vmatprep.subr.bf16.mxu1 %v4840_v21  ;;  %v1950_v21 = vsel %vm178_vm0, %v1945_v15, %v1949_v16  ;;  %v4915_v14 = vld [vmem:[%s6078_s1 + $0x260] sm:$0xff]  }
  0x94   :  { %4454 = vmatpush3.bf16.msra.mxu0 %v4841_v22  ;;  %v4870_v22 = vld [vmem:[%s6078_s1 + $0x88] sm:$0xff]   ;;  %v4916_v15 = vld [vmem:[%s6078_s1 + $0x2e0] sm:$0xff]  }
  0x95   :  { %4455 = vmatprep.subr.bf16.mxu0 %v4843_v23  ;;  %v1972_v23 = vshrl.u32 %v3918_v56, 16  ;;  %v4888_v56 = vld [vmem:[%s6078_s1 + $0xf0] sm:$0xff]  }
  0x96   :  { %4482 = vmatpush3.bf16.msra.mxu1 %v4842_v24  ;;  %v4871_v24 = vld [vmem:[%s6078_s1 + $0x50] sm:$0xff]  }
  0x97   :  { %4483 = vmatprep.subr.bf16.mxu1 %v4844_v25  ;;  %v1968_v25 = vor.u32 %v1966_v20, %v1937_v1  ;;  %v4899_v1 = vld [vmem:[%s6078_s1 + $0x248] sm:$0xff]  }
  0x98   :  { %4456 = vmatpush3.bf16.msra.mxu0 %v4845_v26  ;;  %v1963_v26 = vshrl.u32 %v5632_v50, 16  ;;  %v4880_v50 = vld [vmem:[%s6078_s1 + $0xe0] sm:$0xff]   ;;  %v4921_v20 = vld [vmem:[%s6078_s1 + $0x228] sm:$0xff]  }
  0x99   :  { %4457 = vmatprep.subr.bf16.mxu0 %v4847_v27  ;;  %v4872_v27 = vld [vmem:[%s6078_s1 + $0xd0] sm:$0xff]  }
  0x9a   :  { %4484 = vmatpush3.bf16.msra.mxu1 %v4846_v28  ;;  %v1974_v28 = vor.u32 %v1972_v23, %v1961_v49  ;;  %v3952_v49 = vcombine.high %v3843_v3, %v3843_v3  ;;  %v4924_v23 = vld [vmem:[%s6078_s1 + $0x2f0] sm:$0xff]  }
  0x9b   :  { %4485 = vmatprep.subr.bf16.mxu1 %v4848_v30  ;;  %v1969_v30 = vshrl.u32 %v5645_v29, 16  ;;  %v4887_v29 = vld [vmem:[%s6078_s1 + $0x70] sm:$0xff]  }
  0x9c   :  { %4458 = vmatpush3.bf16.msra.mxu0 %v4849_v31  ;;  %v4873_v31 = vld [vmem:[%s6078_s1 + $0x10] sm:$0xff]  }
  0x9d   :  { %4459 = vmatprep.subr.bf16.mxu0 %v4851_v32  ;;  %v4874_v32 = vld [vmem:[%s6078_s1 + $0x90] sm:$0xff]  }
  0x9e   :  { %4486 = vmatpush3.bf16.msra.mxu1 %v4850_v34  ;;  %v1965_v34 = vor.u32 %v1963_v26, %v1925_v5  ;;  %v3844_v5 = vld [vmem:[%s6079_s0 + $0x68] sm:$0x33]  ;;  %v4927_v26 = vld [vmem:[%s6078_s1 + $0x278] sm:$0xff]  }
  0x9f   :  { %4487 = vmatprep.subr.bf16.mxu1 %v4852_v33  ;;  %v4875_v33 = vld [vmem:[%s6078_s1 + $0x58] sm:$0xff]   ;;  %v3953_v9 = vcombine.low %v3844_v5, %v3844_v5 }
  0xa0   :  { %4460 = vmatpush3.bf16.msra.mxu0 %v4853_v37  ;;  %v1971_v37 = vor.u32 %v1969_v30, %v1949_v16  ;;  %v4917_v16 = vld [vmem:[%s6078_s1 + $0x220] sm:$0xff]  }
  0xa1   :  { %4501 = vmatprep.subr.bf16.mxu0 %v4863_v57  ;;  %v4889_v57 = vld [vmem:[%s6078_s1 + $0x30] sm:$0xff]   ;;  %v3987_v30 = vld [vmem:[%s6079_s0 + $0x40] sm:$0xcc] }
  0xa2   :  { %4488 = vmatpush3.bf16.msra.mxu1 %v4854_v41  ;;  %v4877_v41 = vld [vmem:[%s6078_s1 + $0x18] sm:$0xff]  }
  0xa3   :  { %4529 = vmatprep.subr.bf16.mxu1 %v4864_v58  ;;  %2208 = vmatmul.mubr.bf16.vlgmr.msra.gmra.mrb[32].mxu0 %v1926_v18  ;;  %v4890_v58 = vld [vmem:[%s6078_s1 + $0xb0] sm:$0xff]   ;;  %v4919_v18 = vld [vmem:[%s6078_s1 + $0x268] sm:$0xff]  }
  0xa4   :  { %4502 = vmatpush3.bf16.msra.mxu0 %v4865_v6  ;;  %2215 = vmatprep.mubr.bf16.mxu0 %v1968_v25  ;;  %v3951_v6 = vcombine.low %v3843_v3, %v3843_v3  ;;  %v4926_v25 = vld [vmem:[%s6078_s1 + $0x2b0] sm:$0xff]  }
  0xa5   :  { %2256 = vmatmul.mubr.bf16.vlgmr.msra.gmra.mrb[32].mxu1 %v1950_v21  ;;  %4503 = vmatprep.subr.bf16.mxu0 %v4867_v11  ;;  %v4912_v11 = vld [vmem:[%s6078_s1 + $0x2d8] sm:$0xff]   ;;  %v4922_v21 = vld [vmem:[%s6078_s1 + $0x2a8] sm:$0xff]  }
  0xa6   :  { %4530 = vmatpush3.bf16.msra.mxu1 %v4866_v10  ;;  %2263 = vmatprep.mubr.bf16.mxu1 %v1974_v28  ;;  %v4911_v10 = vld [vmem:[%s6078_s1 + $0x258] sm:$0xff]  }
  0xa7   :  { %4531 = vmatprep.subr.bf16.mxu1 %v4868_v17  ;;  %v4918_v17 = vld [vmem:[%s6078_s1 + $0x2a0] sm:$0xff]   ;;  %v4929_v28 = vld [vmem:[%s6078_s1 + $0x238] sm:$0xff]  }
  0xa8   :  { %4504 = vmatpush3.bf16.msra.mxu0 %v4869_v19  ;;  %v4920_v19 = vld [vmem:[%s6078_s1 + $0x2e8] sm:$0xff]  }
  0xa9   :  { %4505 = vmatprep.subr.bf16.mxu0 %v4871_v24  ;;  %v4925_v24 = vld [vmem:[%s6078_s1 + $0x230] sm:$0xff]  }
  0xaa   :  { %4532 = vmatpush3.bf16.msra.mxu1 %v4870_v22  ;;  %v4923_v22 = vld [vmem:[%s6078_s1 + $0x270] sm:$0xff]  }
  0xab   :  { %4533 = vmatprep.subr.bf16.mxu1 %v4872_v27  ;;  %2216 = vmatmul.mubr.bf16.gmra.mrb[36].mxu0 %v1965_v34  ;;  %v4928_v27 = vld [vmem:[%s6078_s1 + $0x2f8] sm:$0xff]   ;;  %v4060_v34 = vcombine.high %v3987_v30, %v5610_v35 }
  0xac   :  { %4506 = vmatpush3.bf16.msra.mxu0 %v4873_v31  ;;  %2513 = vmatprep.mubr.bf16.mxu0 %v5622_v46  ;;  %v4885_v46 = vld [vmem:[%s6078_s1 + $0x28] sm:$0xff]   ;;  %v4930_v31 = vld [vmem:[%s6078_s1 + $0x2b8] sm:$0xff]  }
  0xad   :  { %2264 = vmatmul.mubr.bf16.gmra.mrb[36].mxu1 %v1971_v37  ;;  %4507 = vmatprep.subr.bf16.mxu0 %v4875_v33  ;;  %v5871_v33 = vld [vmem:[%s6079_s0 + $0x64] ss:$16 sps:$4 sm:$0x1f]   ;;  %v3988_v37 = vld [vmem:[%s6079_s0 + $0x48] sm:$0xcc] }
  0xae   :  { %4534 = vmatpush3.bf16.msra.mxu1 %v4874_v32  ;;  %2561 = vmatprep.mubr.bf16.mxu1 %v5641_v54  ;;  %v4886_v54 = vld [vmem:[%s6078_s1 + $0xa8] sm:$0xff]   ;;  %v4059_v32 = vcombine.low %v3987_v30, %v5610_v35  ;;  %v5883_v35 = vld [vmem:[%s6079_s0 + $0x60] ss:$16 sps:$4 sm:$0x1f]  }
  0xaf   :  { %4535 = vmatprep.subr.bf16.mxu1 %v4876_v39  ;;  %v4941_v39 = vld [vmem:[%s6078_s1 + $0x340] sm:$0xff]   ;;  %v2693_v3 = vshll.u32 %v5883_v35, 16  ;;  %v4949_v30 = vld [vmem:[%s6078_s1 + $0x350] sm:$0xff]  }
  0xb0   :  { %4508 = vmatpush3.bf16.msra.mxu0 %v4877_v41  ;;  %v2699_v41 = vshrl.u32 %v4060_v34, 16 }
  0xb1   :  { %4509 = vmatprep.subr.bf16.mxu0 %v4879_v47  ;;  %v4062_v47 = vcombine.high %v3988_v37, %v5630_v48 }
  0xb2   :  { %4536 = vmatpush3.bf16.msra.mxu1 %v4878_v42  ;;  %v2702_v42 = vshll.u32 %v4060_v34, 16 }
  0xb3   :  { %4537 = vmatprep.subr.bf16.mxu1 %v4880_v50  ;;  %v2707_v50 = vshrl.u32 %v5871_v33, 16 }
  0xb4   :  { %4510 = vmatpush3.bf16.msra.mxu0 %v4881_v51  ;;  %v2710_v51 = vshll.u32 %v5871_v33, 16 }
  0xb5   :  { %4511 = vmatprep.subr.bf16.mxu0 %v4883_v38  ;;  %v2701_v38 = vrot.slane %v2699_v41, 2 }
  0xb6   :  { %4538 = vmatpush3.bf16.msra.mxu1 %v4882_v52  ;;  %v2682_v52 = vshrl.u32 %v4059_v32, 16 }
  0xb7   :  { %4539 = vmatprep.subr.bf16.mxu1 %v4884_v55  ;;  %v2704_v55 = vrot.slane %v2702_v42, 3 }
  0xb8   :  { %4512 = vmatpush3.bf16.msra.mxu0 %v4885_v46  ;;  %v4061_v46 = vcombine.low %v3988_v37, %v5630_v48 }
  0xb9   :  { %4513 = vmatprep.subr.bf16.mxu0 %v4887_v29  ;;  %v2733_v29 = vshrl.u32 %v4062_v47, 16 }
  0xba   :  { %4540 = vmatpush3.bf16.msra.mxu1 %v4886_v54  ;;  %v5891_v54 = vld [vmem:[%s6079_s0 + $0x6c] ss:$16 sps:$4 sm:$0x1f]  }
  0xbb   :  { %4541 = vmatprep.subr.bf16.mxu1 %v4888_v56  ;;  %v2709_v56 = vrot.slane %v2707_v50, 2  ;;  %v2741_v48 = vshrl.u32 %v5891_v54, 16 }
  0xbc   :  { %4514 = vmatpush3.bf16.msra.mxu0 %v4889_v57  ;;  %v2712_v57 = vrot.slane %v2710_v51, 3  ;;  %v4953_v51 = vld [vmem:[%s6078_s1 + $0x358] sm:$0xff]  }
  0xbd   :  { %4515 = vmatprep.subr.bf16.mxu0 %v4891_v59  ;;  %v2736_v59 = vshll.u32 %v4062_v47, 16  ;;  %v4951_v47 = vld [vmem:[%s6078_s1 + $0x310] sm:$0xff]  }
  0xbe   :  { %4542 = vmatpush3.bf16.msra.mxu1 %v4890_v58  ;;  %v5896_v58 = vld [vmem:[%s6079_s0 + $0x68] ss:$16 sps:$4 sm:$0x1f]  }
  0xbf   :  { %4543 = vmatprep.subr.bf16.mxu1 %v4892_v60  ;;  %v2684_v60 = vrot.slane %v2682_v52, 2 }
  0xc0   :  { %4516 = vmatpush3.bf16.msra.mxu0 %v4893_v61  ;;  %v2705_v61 = vor.u32 %v2704_v55, %v2701_v38  ;;  %v4952_v55 = vld [vmem:[%s6078_s1 + $0x390] sm:$0xff]  }
  0xc1   :  { %4557 = vmatprep.subr.bf16.mxu0 %v4895_v62  ;;  %v2744_v62 = vshll.u32 %v5891_v54, 16 }
  0xc2   :  { %4544 = vmatpush3.bf16.msra.mxu1 %v4894_v45  ;;  %v2735_v45 = vrot.slane %v2733_v29, 2 }
  0xc3   :  { %4585 = vmatprep.subr.bf16.mxu1 %v4896_v63  ;;  %2514 = vmatmul.mubr.bf16.vlgmr.msra.gmra.mrb[40].mxu0 %v5619_v43  ;;  %v4906_v43 = vld [vmem:[%s6078_s1 + $0x2d0] sm:$0xff]   ;;  %v4942_v63 = vld [vmem:[%s6078_s1 + $0x3c0] sm:$0xff]  }
  0xc4   :  { %4558 = vmatpush3.bf16.msra.mxu0 %v4897_v40  ;;  %2521 = vmatprep.mubr.bf16.mxu0 %v3952_v49  ;;  %v2713_v40 = vor.u32 %v2712_v57, %v2709_v56  ;;  %v2716_v49 = vshrl.u32 %v4061_v46, 16  ;;  %v4954_v56 = vld [vmem:[%s6078_s1 + $0x3d8] sm:$0xff]  }
  0xc5   :  { %2562 = vmatmul.mubr.bf16.vlgmr.msra.gmra.mrb[40].mxu1 %v5638_v53  ;;  %4559 = vmatprep.subr.bf16.mxu0 %v4899_v1  ;;  %v3954_v53 = vcombine.high %v3844_v5, %v3844_v5  ;;  %v2685_v1 = vshll.u32 %v4059_v32, 16  ;;  %v4948_v32 = vld [vmem:[%s6078_s1 + $0x388] sm:$0xff]  }
  0xc6   :  { %4586 = vmatpush3.bf16.msra.mxu1 %v4898_v0  ;;  %v2738_v0 = vrot.slane %v2736_v59, 3  ;;  %v4955_v59 = vld [vmem:[%s6078_s1 + $0x318] sm:$0xff]  }
  0xc7   :  { %4587 = vmatprep.subr.bf16.mxu1 %v4900_v2  ;;  %2569 = vmatprep.mubr.bf16.mxu1 %v3954_v53  ;;  %v2690_v2 = vshrl.u32 %v5883_v35, 16  ;;  %v2687_v5 = vrot.slane %v2685_v1, 3 }
  0xc8   :  { %4560 = vmatpush3.bf16.msra.mxu0 %v4901_v44  ;;  %v2743_v44 = vrot.slane %v2741_v48, 2  ;;  %v4958_v48 = vld [vmem:[%s6078_s1 + $0x3e0] sm:$0xff]  }
  0xc9   :  { %4561 = vmatprep.subr.bf16.mxu0 %v4905_v4  ;;  %v2714_v4 = vsel %vm946_vm1, %v2705_v61, %v2713_v40 }
  0xca   :  { %4588 = vmatpush3.bf16.msra.mxu1 %v4902_v36  ;;  %v2746_v36 = vrot.slane %v2744_v62, 3 }
  0xcb   :  { %4589 = vmatprep.subr.bf16.mxu1 %v4906_v43  ;;  %2522 = vmatmul.mubr.bf16.gmra.mrb[44].mxu0 %v3951_v6  ;;  %v2739_v43 = vor.u32 %v2738_v0, %v2735_v45  ;;  %v2692_v6 = vrot.slane %v2690_v2, 2  ;;  %v4956_v45 = vld [vmem:[%s6078_s1 + $0x398] sm:$0xff]   ;;  %v4961_v0 = vld [vmem:[%s6078_s1 + $0x368] sm:$0xff]   ;;  %v4960_v2 = vld [vmem:[%s6078_s1 + $0x3a0] sm:$0xff]  }
  0xcc   :  { %4562 = vmatpush3.bf16.msra.mxu0 %v4908_v7  ;;  %2981 = vmatprep.mubr.bf16.mxu0 %v2714_v4  ;;  %v2747_v53 = vor.u32 %v2746_v36, %v2743_v44  ;;  %v2695_v7 = vrot.slane %v2693_v3, 3  ;;  %v4962_v3 = vld [vmem:[%s6078_s1 + $0x3e8] sm:$0xff]  }
  0xcd   :  { %2570 = vmatmul.mubr.bf16.gmra.mrb[44].mxu1 %v3953_v9  ;;  %4563 = vmatprep.subr.bf16.mxu0 %v4911_v10  ;;  %v2719_v9 = vshll.u32 %v4061_v46, 16  ;;  %v2688_v10 = vor.u32 %v2687_v5, %v2684_v60  ;;  %v4957_v60 = vld [vmem:[%s6078_s1 + $0x360] sm:$0xff]  }
  0xce   :  { %4590 = vmatpush3.bf16.msra.mxu1 %v4909_v8  ;;  %v2718_v8 = vrot.slane %v2716_v49, 2 }
  0xcf   :  { %4591 = vmatprep.subr.bf16.mxu1 %v4912_v11  ;;  %v2724_v11 = vshrl.u32 %v5896_v58, 16 }
  0xd0   :  { %4564 = vmatpush3.bf16.msra.mxu0 %v4913_v12  ;;  %v2727_v12 = vshll.u32 %v5896_v58, 16 }
  0xd1   :  { %4565 = vmatprep.subr.bf16.mxu0 %v4915_v14  ;;  %v2696_v14 = vor.u32 %v2695_v7, %v2692_v6  ;;  %v4965_v6 = vld [vmem:[%s6078_s1 + $0x370] sm:$0xff]  }
  0xd2   :  { %4592 = vmatpush3.bf16.msra.mxu1 %v4914_v13  ;;  %v2748_v13 = vsel %vm946_vm1, %v2739_v43, %v2747_v53  ;;  %v4963_v43 = vld [vmem:[%s6078_s1 + $0x328] sm:$0xff]  }
  0xd3   :  { %4593 = vmatprep.subr.bf16.mxu1 %v4916_v15  ;;  %v2721_v15 = vrot.slane %v2719_v9, 3  ;;  %3029 = vmatprep.mubr.bf16.mxu1 %v2748_v13  ;;  %v4968_v13 = vld [vmem:[%s6078_s1 + $0x3b0] sm:$0xff]  }
  0xd4   :  { %4566 = vmatpush3.bf16.msra.mxu0 %v4917_v16  ;;  %v4943_v16 = vld [vmem:[%s6078_s1 + $0x300] sm:$0xff]  }
  0xd5   :  { %4567 = vmatprep.subr.bf16.mxu0 %v4919_v18  ;;  %v2729_v18 = vrot.slane %v2727_v12, 3  ;;  %v4969_v12 = vld [vmem:[%s6078_s1 + $0x378] sm:$0xff]  }
  0xd6   :  { %4594 = vmatpush3.bf16.msra.mxu1 %v4918_v17  ;;  %v2726_v17 = vrot.slane %v2724_v11, 2  ;;  %v4967_v11 = vld [vmem:[%s6078_s1 + $0x330] sm:$0xff]  }
  0xd7   :  { %4595 = vmatprep.subr.bf16.mxu1 %v4920_v19  ;;  %v4944_v19 = vld [vmem:[%s6078_s1 + $0x380] sm:$0xff]  }
  0xd8   :  { %4568 = vmatpush3.bf16.msra.mxu0 %v4921_v20  ;;  %v4945_v20 = vld [vmem:[%s6078_s1 + $0x348] sm:$0xff]  }
  0xd9   :  { %4569 = vmatprep.subr.bf16.mxu0 %v4923_v22  ;;  %v2722_v22 = vor.u32 %v2721_v15, %v2718_v8  ;;  %v4964_v8 = vld [vmem:[%s6078_s1 + $0x3a8] sm:$0xff]   ;;  %v3128_v15 = vrot.slane %v5871_v33, 3 }
  0xda   :  { %4596 = vmatpush3.bf16.msra.mxu1 %v4922_v21  ;;  %v2697_v21 = vsel %vm946_vm1, %v2688_v10, %v2696_v14  ;;  %v4966_v10 = vld [vmem:[%s6078_s1 + $0x3f0] sm:$0xff]  }
  0xdb   :  { %4597 = vmatprep.subr.bf16.mxu1 %v4924_v23  ;;  %v2730_v23 = vor.u32 %v2729_v18, %v2726_v17  ;;  %v4970_v17 = vld [vmem:[%s6078_s1 + $0x3f8] sm:$0xff]  }
  0xdc   :  { %4570 = vmatpush3.bf16.msra.mxu0 %v4925_v24  ;;  %v4946_v24 = vld [vmem:[%s6078_s1 + $0x3c8] sm:$0xff]   ;;  %v4971_v18 = vld [vmem:[%s6078_s1 + $0x338] sm:$0xff]  }
  0xdd   :  { %4571 = vmatprep.subr.bf16.mxu0 %v4927_v26  ;;  %v4947_v26 = vld [vmem:[%s6078_s1 + $0x308] sm:$0xff]  }
  0xde   :  { %4598 = vmatpush3.bf16.msra.mxu1 %v4926_v25 }
  0xdf   :  { %4599 = vmatprep.subr.bf16.mxu1 %v4928_v27 }
  0xe0   :  { %4572 = vmatpush3.bf16.msra.mxu0 %v4929_v28  ;;  %v2731_v28 = vsel %vm946_vm1, %v2722_v22, %v2730_v23 }
  0xe1   :  { %4613 = vmatprep.subr.bf16.mxu0 %v4941_v39  ;;  %v4950_v39 = vld [vmem:[%s6078_s1 + $0x3d0] sm:$0xff]  }
  0xe2   :  { %4600 = vmatpush3.bf16.msra.mxu1 %v4930_v31 }
  0xe3   :  { %4641 = vmatprep.subr.bf16.mxu1 %v4942_v63  ;;  %2982 = vmatmul.mubr.bf16.vlgmr.msra.gmra.mrb[48].mxu0 %v2697_v21  ;;  %v4959_v63 = vld [vmem:[%s6078_s1 + $0x320] sm:$0xff]   ;;  %v4980_v21 = vld [vmem:[%s6079_s0 + $0x58] sm:$0xff] }
  0xe4   :  { %4614 = vmatpush3.bf16.msra.mxu0 %v4943_v16  ;;  %2989 = vmatprep.mubr.bf16.mxu0 %v2713_v40  ;;  %v4100_v16 = vld [vmem:[%s6079_s0 + $0x48] sm:$0x88] }
  0xe5   :  { %4615 = vmatprep.subr.bf16.mxu0 %v4945_v20  ;;  %3030 = vmatmul.mubr.bf16.vlgmr.msra.gmra.mrb[48].mxu1 %v2731_v28  ;;  %v4167_v22 = vcombine.low %v4100_v16, %v4980_v21 }
  0xe6   :  { %4642 = vmatpush3.bf16.msra.mxu1 %v4944_v19  ;;  %3037 = vmatprep.mubr.bf16.mxu1 %v2747_v53  ;;  %v4979_v19 = vld [vmem:[%s6079_s0 + $0x50] sm:$0xff] }
  0xe7   :  { %4643 = vmatprep.subr.bf16.mxu1 %v4946_v24  ;;  %v4168_v24 = vcombine.high %v4100_v16, %v4980_v21 }
  0xe8   :  { %4616 = vmatpush3.bf16.msra.mxu0 %v4947_v26 }
  0xe9   :  { %4617 = vmatprep.subr.bf16.mxu0 %v4949_v30  ;;  %v4972_v30 = vld [vmem:[%s6078_s1 + $0x3b8] sm:$0xff]  }
  0xea   :  { %4644 = vmatpush3.bf16.msra.mxu1 %v4948_v32  ;;  %v3133_v32 = vrot.slane %v4168_v24, 3 }
  0xeb   :  { %2990 = vmatmul.mubr.bf16.gmra.mrb[52].mxu0 %v2696_v14  ;;  %4645 = vmatprep.subr.bf16.mxu1 %v4950_v39  ;;  %v4099_v14 = vld [vmem:[%s6079_s0 + $0x40] sm:$0x88] }
  0xec   :  { %4618 = vmatpush3.bf16.msra.mxu0 %v4951_v47  ;;  %v4165_v20 = vcombine.low %v4099_v14, %v4979_v19  ;;  %v4166_v33 = vcombine.high %v4099_v14, %v4979_v19 }
  0xed   :  { %4619 = vmatprep.subr.bf16.mxu0 %v4953_v51  ;;  %3038 = vmatmul.mubr.bf16.gmra.mrb[52].mxu1 %v2730_v23  ;;  %v3125_v23 = vrot.slane %v5883_v35, 3 }
  0xee   :  { %4646 = vmatpush3.bf16.msra.mxu1 %v4952_v55  ;;  %v3124_v26 = vrot.slane %v4165_v20, 3 }
  0xef   :  { %4647 = vmatprep.subr.bf16.mxu1 %v4954_v56 }
  0xf0   :  { %4620 = vmatpush3.bf16.msra.mxu0 %v4955_v59  ;;  %v3126_v39 = vsel %vm1391_vm2, %v3124_v26, %v3125_v23 }
  0xf1   :  { %4621 = vmatprep.subr.bf16.mxu0 %v4957_v60 }
  0xf2   :  { %4648 = vmatpush3.bf16.msra.mxu1 %v4956_v45 }
  0xf3   :  { %4649 = vmatprep.subr.bf16.mxu1 %v4958_v48 }
  0xf4   :  { %4622 = vmatpush3.bf16.msra.mxu0 %v4959_v63 }
  0xf5   :  { %4623 = vmatprep.subr.bf16.mxu0 %v4961_v0 }
  0xf6   :  { %v4237_v25 = vpop.f32.mrb[0].mxu0  ;;  %4650 = vmatpush3.bf16.msra.mxu1 %v4960_v2 }
  0xf7   :  { %v4265_v27 = vpop.f32.mrb[0].mxu1  ;;  %v4238_v31 = vpop.f32.mrb[1].mxu0  ;;  %4651 = vmatprep.subr.bf16.mxu1 %v4962_v3 }
  0xf8   :  { %v4239_v34 = vadd.f32 %v4238_v31, %v4237_v25  ;;  %v4266_v37 = vpop.f32.mrb[1].mxu1  ;;  %v4240_v42 = vpop.f32.mrb[2].mxu0  ;;  %4624 = vmatpush3.bf16.msra.mxu0 %v4963_v43  ;;  %v3134_v25 = vrot.slane %v5891_v54, 3  ;;  %v3130_v31 = vrot.slane %v4167_v22, 3 }
  0xf9   :  { %v4267_v41 = vadd.f32 %v4266_v37, %v4265_v27  ;;  %v4268_v50 = vpop.f32.mrb[2].mxu1  ;;  %v4241_v38 = vpop.f32.mrb[3].mxu0  ;;  %4625 = vmatprep.subr.bf16.mxu0 %v4965_v6  ;;  %v3127_v27 = vrot.slane %v4166_v33, 3 }
  0xfa   :  { %v4242_v46 = vadd.f32 %v4241_v38, %v4240_v42  ;;  %v4269_v29 = vpop.f32.mrb[3].mxu1  ;;  %4652 = vmatpush3.bf16.msra.mxu1 %v4964_v8  ;;  %v3135_v42 = vsel %vm1391_vm2, %v3133_v32, %v3134_v25 }
  0xfb   :  { %v5941_v52 = vadd.f32 %v4267_v41, %v4239_v34  ;;  %v4270_v57 = vadd.f32 %v4269_v29, %v4268_v50  ;;  %4653 = vmatprep.subr.bf16.mxu1 %v4966_v10  ;;  %v3131_v34 = vrot.slane %v5896_v58, 3  ;;  %v3129_v35 = vsel %vm1391_vm2, %v3127_v27, %v3128_v15  ;;  %3416 = vmatprep.mubr.bf16.mxu1 %v3135_v42 }
  0xfc   :  { %4626 = vmatpush3.bf16.msra.mxu0 %v4967_v11  ;;  %3368 = vmatprep.mubr.bf16.mxu0 %v3129_v35 }
  0xfd   :  { %v5955_v61 = vadd.f32 %v4270_v57, %v4242_v46  ;;  %4627 = vmatprep.subr.bf16.mxu0 %v4969_v12  ;;  %v3132_v58 = vsel %vm1391_vm2, %v3130_v31, %v3131_v34 }
  0xfe   :  { %v4243_v62 = vpop.f32.mrb[4].mxu0  ;;  %4654 = vmatpush3.bf16.msra.mxu1 %v4968_v13 }
  0xff   :  { %v4244_v1 = vpop.f32.mrb[5].mxu0  ;;  %4655 = vmatprep.subr.bf16.mxu1 %v4970_v17 }
 0x100   :  { %v4271_v40 = vpop.f32.mrb[4].mxu1  ;;  %v4245_v44 = vadd.f32 %v4244_v1, %v4243_v62  ;;  %v4246_v4 = vpop.f32.mrb[6].mxu0  ;;  %4628 = vmatpush3.bf16.msra.mxu0 %v4971_v18 }
 0x101   :  { %v4272_v36 = vpop.f32.mrb[5].mxu1  ;;  %v4247_v7 = vpop.f32.mrb[7].mxu0 }
 0x102   :  { %v4273_v49 = vadd.f32 %v4272_v36, %v4271_v40  ;;  %v4274_v5 = vpop.f32.mrb[6].mxu1  ;;  %4656 = vmatpush3.bf16.msra.mxu1 %v4972_v30 }
 0x103   :  { %v4275_v9 = vpop.f32.mrb[7].mxu1  ;;  %3369 = vmatmul.mubr.bf16.vlgmr.msra.gmra.mrb[56].mxu0 %v3126_v39 }
 0x104   :  { %v5981_v53 = vadd.f32 %v4273_v49, %v4245_v44  ;;  %3376 = vmatprep.mubr.bf16.mxu0 %v3128_v15 }
 0x105   :  { %3417 = vmatmul.mubr.bf16.vlgmr.msra.gmra.mrb[56].mxu1 %v3132_v58 }
 0x106   :  { %3424 = vmatprep.mubr.bf16.mxu1 %v3134_v25 }
 0x10b   :  { %3377 = vmatmul.mubr.bf16.gmra.mrb[60].mxu0 %v3125_v23 }
 0x10d   :  { %3425 = vmatmul.mubr.bf16.gmra.mrb[60].mxu1 %v3131_v34 }
 0x116   :  { %v4293_v28 = vpop.f32.mrb[8].mxu0 }
 0x117   :  { %v4294_v37 = vpop.f32.mrb[9].mxu0 }
 0x118   :  { %v4321_v54 = vpop.f32.mrb[8].mxu1  ;;  %v4296_v41 = vpop.f32.mrb[10].mxu0  ;;  %v4295_v47 = vadd.f32 %v4294_v37, %v4293_v28 }
 0x119   :  { %v4322_v50 = vpop.f32.mrb[9].mxu1  ;;  %v4297_v51 = vpop.f32.mrb[11].mxu0 }
 0x11a   :  { %v4323_v38 = vadd.f32 %v4322_v50, %v4321_v54  ;;  %v4324_v55 = vpop.f32.mrb[10].mxu1  ;;  %v4298_v46 = vadd.f32 %v4297_v51, %v4296_v41  ;;  %v780_v29 = vadd.f32 %v4295_v47, %v5941_v52  ;;  %v6033_v51 = vld [vmem:[%s6080_s2] ss:$0 sm:$0xff] }
 0x11b   :  { %v4325_v56 = vpop.f32.mrb[11].mxu1 }
 0x11c   :  { %v783_v57 = vadd.f32 %v4298_v46, %v5955_v61  ;;  %v4326_v59 = vadd.f32 %v4325_v56, %v4324_v55  ;;  %v828_v60 = vadd.f32 %v4323_v38, %v780_v29 }
 0x11e   :  { %v831_v45 = vadd.f32 %v4326_v59, %v783_v57  ;;  %v4299_v48 = vpop.f32.mrb[12].mxu0 }
 0x11f   :  { %v4300_v62 = vpop.f32.mrb[13].mxu0 }
 0x120   :  { %v4301_v63 = vadd.f32 %v4300_v62, %v4299_v48  ;;  %v4327_v40 = vpop.f32.mrb[12].mxu1  ;;  %v4302_v0 = vpop.f32.mrb[14].mxu0 }
 0x121   :  { %v4328_v1 = vpop.f32.mrb[13].mxu1  ;;  %v4303_v2 = vpop.f32.mrb[15].mxu0 }
 0x122   :  { %v788_v44 = vadd.f32 %v4301_v63, %v5981_v53  ;;  %v4329_v36 = vadd.f32 %v4328_v1, %v4327_v40  ;;  %v4330_v52 = vpop.f32.mrb[14].mxu1  ;;  %v6039_v63 = vld [vmem:[%s6080_s2 + $0x1] ss:$0 sm:$0xff] }
 0x123   :  { %v4331_v3 = vpop.f32.mrb[15].mxu1 }
 0x124   :  { %v836_v49 = vadd.f32 %v4329_v36, %v788_v44 }
 0x136   :  { %v4349_v61 = vpop.f32.mrb[16].mxu0 }
 0x137   :  { %v4350_v4 = vpop.f32.mrb[17].mxu0 }
 0x138   :  { %v4351_v43 = vadd.f32 %v4350_v4, %v4349_v61  ;;  %v4352_v5 = vpop.f32.mrb[18].mxu0  ;;  %v4377_v6 = vpop.f32.mrb[16].mxu1 }
 0x139   :  { %v4353_v7 = vpop.f32.mrb[19].mxu0  ;;  %v4378_v8 = vpop.f32.mrb[17].mxu1 }
 0x13a   :  { %v4354_v9 = vadd.f32 %v4353_v7, %v4352_v5  ;;  %v4379_v10 = vadd.f32 %v4378_v8, %v4377_v6  ;;  %v4380_v11 = vpop.f32.mrb[18].mxu1 }
 0x13b   :  { %v4381_v12 = vpop.f32.mrb[19].mxu1 }
 0x13c   :  { %v1298_v13 = vadd.f32 %v4379_v10, %v4351_v43  ;;  %v4382_v14 = vadd.f32 %v4381_v12, %v4380_v11 }
 0x13e   :  { %v4355_v53 = vpop.f32.mrb[20].mxu0  ;;  %v1311_v15 = vadd.f32 %v1298_v13, %v828_v60  ;;  %v1301_v16 = vadd.f32 %v4382_v14, %v4354_v9 }
 0x13f   :  { %v4356_v17 = vpop.f32.mrb[21].mxu0 }
 0x140   :  { %v4357_v18 = vadd.f32 %v4356_v17, %v4355_v53  ;;  %v4358_v19 = vpop.f32.mrb[22].mxu0  ;;  %v1312_v20 = vadd.f32 %v1301_v16, %v831_v45  ;;  %v4383_v33 = vpop.f32.mrb[20].mxu1 }
 0x141   :  { %v4359_v21 = vpop.f32.mrb[23].mxu0  ;;  %v4384_v22 = vpop.f32.mrb[21].mxu1 }
 0x142   :  { %v4385_v23 = vadd.f32 %v4384_v22, %v4383_v33  ;;  %v4386_v24 = vpop.f32.mrb[22].mxu1 }
 0x143   :  { %v4387_v25 = vpop.f32.mrb[23].mxu1 }
 0x144   :  { %v1306_v26 = vadd.f32 %v4385_v23, %v4357_v18 }
 0x146   :  { %v1313_v27 = vadd.f32 %v1306_v26, %v836_v49  ;;  %v6046_v49 = vld [vmem:[%s6080_s2 + $0x2] ss:$0 sm:$0xff] }
 0x156   :  { %v4405_v28 = vpop.f32.mrb[24].mxu0 }
 0x157   :  { %v4406_v30 = vpop.f32.mrb[25].mxu0 }
 0x158   :  { %v4407_v31 = vadd.f32 %v4406_v30, %v4405_v28  ;;  %v4408_v32 = vpop.f32.mrb[26].mxu0  ;;  %v4433_v34 = vpop.f32.mrb[24].mxu1 }
 0x159   :  { %v4409_v37 = vpop.f32.mrb[27].mxu0  ;;  %v4434_v35 = vpop.f32.mrb[25].mxu1 }
 0x15a   :  { %v4410_v39 = vadd.f32 %v4409_v37, %v4408_v32  ;;  %v4435_v54 = vadd.f32 %v4434_v35, %v4433_v34  ;;  %v4436_v41 = vpop.f32.mrb[26].mxu1 }
 0x15b   :  { %v4437_v42 = vpop.f32.mrb[27].mxu1 }
 0x15c   :  { %v1687_v47 = vadd.f32 %v4435_v54, %v4407_v31  ;;  %v4438_v50 = vadd.f32 %v4437_v42, %v4436_v41 }
 0x15e   :  { %v4411_v38 = vpop.f32.mrb[28].mxu0  ;;  %v1700_v55 = vadd.f32 %v1687_v47, %v1311_v15  ;;  %v1690_v46 = vadd.f32 %v4438_v50, %v4410_v39 }
 0x15f   :  { %v4412_v58 = vpop.f32.mrb[29].mxu0 }
 0x160   :  { %v4413_v29 = vadd.f32 %v4412_v58, %v4411_v38  ;;  %v4414_v56 = vpop.f32.mrb[30].mxu0  ;;  %v1708_v57 = vadd.f32 %v6033_v51, %v1700_v55  ;;  %v1701_v59 = vadd.f32 %v1690_v46, %v1312_v20  ;;  %v4439_v60 = vpop.f32.mrb[28].mxu1 }
 0x161   :  { %v4415_v45 = vpop.f32.mrb[31].mxu0  ;;  %v4440_v48 = vpop.f32.mrb[29].mxu1 }
 0x162   :  { %vm1711_vm3 = vcmp.ge.f32.partialorder %v1708_v57, 0.0  ;;  %v1714_v62 = vmul.f32 0.2, %v1708_v57  ;;  %v1709_v40 = vadd.f32 %v6033_v51, %v1701_v59  ;;  %v4441_v0 = vadd.f32 %v4440_v48, %v4439_v60  ;;  %v4442_v1 = vpop.f32.mrb[30].mxu1 }
 0x163   :  { %v4443_v2 = vpop.f32.mrb[31].mxu1 }
 0x164   :  { %v1717_v44 = vsel %vm1711_vm3, %v1708_v57, %v1714_v62  ;;  %vm1712_vm4 = vcmp.ge.f32.partialorder %v1709_v40, 0.0  ;;  %v1715_v36 = vmul.f32 0.2, %v1709_v40  ;;  %v1695_v52 = vadd.f32 %v4441_v0, %v4413_v29 }
 0x165   :  { %v1725_v3 = vmul.f32 %v6039_v63, %v1717_v44 }
 0x166   :  { %v1718_v61 = vsel %vm1712_vm4, %v1709_v40, %v1715_v36  ;;  %v1702_v4 = vadd.f32 %v1695_v52, %v1313_v27 }
 0x167   :  { %v1726_v43 = vmul.f32 %v6039_v63, %v1718_v61  ;;  %v1733_v6 = vadd.f32 %v6046_v49, %v1725_v3 }
 0x168   :  { %v1710_v5 = vadd.f32 %v6033_v51, %v1702_v4 }
 0x169   :  { %v1734_v7 = vadd.f32 %v6046_v49, %v1726_v43 }
 0x16a   :  { %vm1713_vm5 = vcmp.ge.f32.partialorder %v1710_v5, 0.0  ;;  %v1716_v8 = vmul.f32 0.2, %v1710_v5 }
 0x16b   :  { %v4219_v9 = vpack.c.bf16 %v1734_v7, %v1733_v6 }
 0x16c   :  { %v1719_v10 = vsel %vm1713_vm5, %v1710_v5, %v1716_v8 }
 0x16d   :  { %4220 = vst [vmem:[%s6081_s3] sm:$0xff] %v4219_v9   ;;  %v1727_v11 = vmul.f32 %v6039_v63, %v1719_v10 }
 0x16f   :  { %v1735_v12 = vadd.f32 %v6046_v49, %v1727_v11 }
 0x171   :  { %v4212_v13 = vpack.c.bf16 %v1735_v12, %v1735_v12 }
 0x173   :  { %1751 = vst [vmem:[%s6081_s3 + $0x8] sm:$0x3] %v4212_v13 }
 0x176   :  { %v4461_v14 = vpop.f32.mrb[32].mxu0 }
 0x177   :  { %v4462_v15 = vpop.f32.mrb[33].mxu0 }
 0x178   :  { %v4489_v53 = vpop.f32.mrb[32].mxu1  ;;  %v4463_v16 = vadd.f32 %v4462_v15, %v4461_v14  ;;  %v4464_v18 = vpop.f32.mrb[34].mxu0 }
 0x179   :  { %v4490_v17 = vpop.f32.mrb[33].mxu1  ;;  %v4465_v33 = vpop.f32.mrb[35].mxu0 }
 0x17a   :  { %v4491_v19 = vadd.f32 %v4490_v17, %v4489_v53  ;;  %v4492_v20 = vpop.f32.mrb[34].mxu1  ;;  %v4466_v21 = vadd.f32 %v4465_v33, %v4464_v18 }
 0x17b   :  { %v4493_v22 = vpop.f32.mrb[35].mxu1 }
 0x17c   :  { %v2258_v23 = vadd.f32 %v4491_v19, %v4463_v16  ;;  %v4494_v24 = vadd.f32 %v4493_v22, %v4492_v20 }
 0x17e   :  { %v2261_v25 = vadd.f32 %v4494_v24, %v4466_v21  ;;  %v4467_v26 = vpop.f32.mrb[36].mxu0 }
 0x17f   :  { %v4468_v28 = vpop.f32.mrb[37].mxu0 }
 0x180   :  { %v4495_v27 = vpop.f32.mrb[36].mxu1  ;;  %v4469_v30 = vadd.f32 %v4468_v28, %v4467_v26  ;;  %v4470_v32 = vpop.f32.mrb[38].mxu0 }
 0x181   :  { %v4496_v31 = vpop.f32.mrb[37].mxu1  ;;  %v4471_v35 = vpop.f32.mrb[39].mxu0 }
 0x182   :  { %v4497_v34 = vadd.f32 %v4496_v31, %v4495_v27  ;;  %v4498_v37 = vpop.f32.mrb[38].mxu1 }
 0x183   :  { %v4499_v39 = vpop.f32.mrb[39].mxu1 }
 0x184   :  { %v2266_v54 = vadd.f32 %v4497_v34, %v4469_v30 }
 0x196   :  { %v4517_v41 = vpop.f32.mrb[40].mxu0 }
 0x197   :  { %v4518_v47 = vpop.f32.mrb[41].mxu0 }
 0x198   :  { %v4545_v42 = vpop.f32.mrb[40].mxu1  ;;  %v4519_v50 = vadd.f32 %v4518_v47, %v4517_v41  ;;  %v4520_v55 = vpop.f32.mrb[42].mxu0 }
 0x199   :  { %v4546_v38 = vpop.f32.mrb[41].mxu1  ;;  %v4521_v29 = vpop.f32.mrb[43].mxu0 }
 0x19a   :  { %v4547_v46 = vadd.f32 %v4546_v38, %v4545_v42  ;;  %v4548_v58 = vpop.f32.mrb[42].mxu1  ;;  %v2516_v56 = vadd.f32 %v4519_v50, %v2258_v23  ;;  %v4522_v57 = vadd.f32 %v4521_v29, %v4520_v55 }
 0x19b   :  { %v4549_v59 = vpop.f32.mrb[43].mxu1 }
 0x19c   :  { %v4550_v60 = vadd.f32 %v4549_v59, %v4548_v58  ;;  %v2564_v45 = vadd.f32 %v4547_v46, %v2516_v56  ;;  %v2519_v48 = vadd.f32 %v4522_v57, %v2261_v25 }
 0x19e   :  { %v2567_v62 = vadd.f32 %v4550_v60, %v2519_v48  ;;  %v4523_v40 = vpop.f32.mrb[44].mxu0 }
 0x19f   :  { %v4524_v0 = vpop.f32.mrb[45].mxu0 }
 0x1a0   :  { %v4551_v1 = vpop.f32.mrb[44].mxu1  ;;  %v4525_v2 = vadd.f32 %v4524_v0, %v4523_v40  ;;  %v4526_v36 = vpop.f32.mrb[46].mxu0 }
 0x1a1   :  { %v4552_v44 = vpop.f32.mrb[45].mxu1  ;;  %v4527_v61 = vpop.f32.mrb[47].mxu0 }
 0x1a2   :  { %v4553_v52 = vadd.f32 %v4552_v44, %v4551_v1  ;;  %v4554_v3 = vpop.f32.mrb[46].mxu1  ;;  %v2524_v4 = vadd.f32 %v4525_v2, %v2266_v54 }
 0x1a3   :  { %v4555_v43 = vpop.f32.mrb[47].mxu1 }
 0x1a4   :  { %v2572_v5 = vadd.f32 %v4553_v52, %v2524_v4 }
 0x1b6   :  { %v4573_v6 = vpop.f32.mrb[48].mxu0 }
 0x1b7   :  { %v4574_v7 = vpop.f32.mrb[49].mxu0 }
 0x1b8   :  { %v4575_v8 = vadd.f32 %v4574_v7, %v4573_v6  ;;  %v4576_v9 = vpop.f32.mrb[50].mxu0  ;;  %v4601_v10 = vpop.f32.mrb[48].mxu1 }
 0x1b9   :  { %v4577_v11 = vpop.f32.mrb[51].mxu0  ;;  %v4602_v12 = vpop.f32.mrb[49].mxu1 }
 0x1ba   :  { %v4578_v13 = vadd.f32 %v4577_v11, %v4576_v9  ;;  %v4603_v14 = vadd.f32 %v4602_v12, %v4601_v10  ;;  %v4604_v53 = vpop.f32.mrb[50].mxu1 }
 0x1bb   :  { %v4605_v15 = vpop.f32.mrb[51].mxu1 }
 0x1bc   :  { %v3032_v16 = vadd.f32 %v4603_v14, %v4575_v8  ;;  %v4606_v17 = vadd.f32 %v4605_v15, %v4604_v53 }
 0x1be   :  { %v4579_v18 = vpop.f32.mrb[52].mxu0  ;;  %v3045_v19 = vadd.f32 %v3032_v16, %v2564_v45  ;;  %v3035_v20 = vadd.f32 %v4606_v17, %v4578_v13 }
 0x1bf   :  { %v4580_v33 = vpop.f32.mrb[53].mxu0 }
 0x1c0   :  { %v4581_v21 = vadd.f32 %v4580_v33, %v4579_v18  ;;  %v4582_v22 = vpop.f32.mrb[54].mxu0  ;;  %v3046_v23 = vadd.f32 %v3035_v20, %v2567_v62  ;;  %v4607_v24 = vpop.f32.mrb[52].mxu1 }
 0x1c1   :  { %v4583_v25 = vpop.f32.mrb[55].mxu0  ;;  %v4608_v26 = vpop.f32.mrb[53].mxu1 }
 0x1c2   :  { %v4609_v27 = vadd.f32 %v4608_v26, %v4607_v24  ;;  %v4610_v28 = vpop.f32.mrb[54].mxu1 }
 0x1c3   :  { %v4611_v30 = vpop.f32.mrb[55].mxu1 }
 0x1c4   :  { %v3040_v31 = vadd.f32 %v4609_v27, %v4581_v21 }
 0x1c6   :  { %v3047_v32 = vadd.f32 %v3040_v31, %v2572_v5 }
 0x1d6   :  { %v4629_v34 = vpop.f32.mrb[56].mxu0 }
 0x1d7   :  { %v4630_v37 = vpop.f32.mrb[57].mxu0 }
 0x1d8   :  { %v4631_v35 = vadd.f32 %v4630_v37, %v4629_v34  ;;  %v4632_v39 = vpop.f32.mrb[58].mxu0  ;;  %v4657_v54 = vpop.f32.mrb[56].mxu1 }
 0x1d9   :  { %v4633_v41 = vpop.f32.mrb[59].mxu0  ;;  %v4658_v42 = vpop.f32.mrb[57].mxu1 }
 0x1da   :  { %v4634_v47 = vadd.f32 %v4633_v41, %v4632_v39  ;;  %v4659_v50 = vadd.f32 %v4658_v42, %v4657_v54  ;;  %v4660_v38 = vpop.f32.mrb[58].mxu1 }
 0x1db   :  { %v4661_v55 = vpop.f32.mrb[59].mxu1 }
 0x1dc   :  { %v3419_v46 = vadd.f32 %v4659_v50, %v4631_v35  ;;  %v4662_v58 = vadd.f32 %v4661_v55, %v4660_v38 }
 0x1de   :  { %v4635_v29 = vpop.f32.mrb[60].mxu0  ;;  %v3432_v56 = vadd.f32 %v3419_v46, %v3045_v19  ;;  %v3422_v57 = vadd.f32 %v4662_v58, %v4634_v47 }
 0x1df   :  { %v4636_v59 = vpop.f32.mrb[61].mxu0 }
 0x1e0   :  { %v4637_v60 = vadd.f32 %v4636_v59, %v4635_v29  ;;  %v4638_v45 = vpop.f32.mrb[62].mxu0  ;;  %v3440_v48 = vadd.f32 %v6033_v51, %v3432_v56  ;;  %v3433_v62 = vadd.f32 %v3422_v57, %v3046_v23  ;;  %v4663_v40 = vpop.f32.mrb[60].mxu1 }
 0x1e1   :  { %v4639_v0 = vpop.f32.mrb[63].mxu0  ;;  %v4664_v1 = vpop.f32.mrb[61].mxu1 }
 0x1e2   :  { %vm3443_vm6 = vcmp.ge.f32.partialorder %v3440_v48, 0.0  ;;  %v3446_v2 = vmul.f32 0.2, %v3440_v48  ;;  %v3441_v44 = vadd.f32 %v6033_v51, %v3433_v62  ;;  %v4665_v36 = vadd.f32 %v4664_v1, %v4663_v40  ;;  %v4666_v52 = vpop.f32.mrb[62].mxu1 }
 0x1e3   :  { %v4667_v3 = vpop.f32.mrb[63].mxu1 }
 0x1e4   :  { %v3449_v61 = vsel %vm3443_vm6, %v3440_v48, %v3446_v2  ;;  %vm3444_vm7 = vcmp.ge.f32.partialorder %v3441_v44, 0.0  ;;  %v3447_v4 = vmul.f32 0.2, %v3441_v44  ;;  %v3427_v43 = vadd.f32 %v4665_v36, %v4637_v60 }
 0x1e5   :  { %v3457_v5 = vmul.f32 %v6039_v63, %v3449_v61 }
 0x1e6   :  { %v3450_v6 = vsel %vm3444_vm7, %v3441_v44, %v3447_v4  ;;  %v3434_v7 = vadd.f32 %v3427_v43, %v3047_v32 }
 0x1e7   :  { %v3465_v8 = vadd.f32 %v6046_v49, %v3457_v5  ;;  %v3458_v9 = vmul.f32 %v6039_v63, %v3450_v6 }
 0x1e8   :  { %v3442_v10 = vadd.f32 %v6033_v51, %v3434_v7 }
 0x1e9   :  { %v4213_v11 = vpack.c.bf16 %v3465_v8, %v3465_v8  ;;  %v3466_v12 = vadd.f32 %v6046_v49, %v3458_v9 }
 0x1ea   :  { %vm3445_vm8 = vcmp.ge.f32.partialorder %v3442_v10, 0.0  ;;  %v3448_v13 = vmul.f32 0.2, %v3442_v10 }
 0x1eb   :  { %4207 = vst [vmem:[%s6081_s3 + $0xc] sm:$0xf] %v4213_v11  ;;  %v4214_v14 = vpack.c.bf16 %v3466_v12, %v3466_v12 }
 0x1ec   :  { %v3451_v53 = vsel %vm3445_vm8, %v3442_v10, %v3448_v13 }
 0x1ed   :  { %4208 = vst [vmem:[%s6081_s3 + $0x10] sm:$0xf] %v4214_v14  ;;  %v3459_v15 = vmul.f32 %v6039_v63, %v3451_v53 }
 0x1ef   :  { %v3467_v16 = vadd.f32 %v6046_v49, %v3459_v15 }
 0x1f1   :  { %v4215_v51 = vpack.c.bf16 %v3467_v16, %v3467_v16 }
 0x1f3   :  { %4209 = vst [vmem:[%s6081_s3 + $0x14] sm:$0x3] %v4215_v51 }

// kernel: discriminator_forward.7
= control target key start
LH: loop header
LB: loop body
LE: loop exit
PB: predicated region body
PF: predicated region fallthrough
CT: control target
= control target key end

     0   :  { %vm4671_vm0 = vmmov 0   ;;  %s5626_s1 = inlined_call_operand.vmem [shape: bf16[4,512,128], index: 1, kind: input, shape index: {}]   ;;  %s5627_s0 = inlined_call_operand.vmem [shape: bf16[2,5,512], index: 0, kind: input, shape index: {}]   ;;  %s5628_s3 = inlined_call_operand.vmem [shape: bf16[1,128,128], index: 3, kind: input, shape index: {}]   ;;  %s5629_s2 = inlined_call_operand.vmem [shape: f32[8,128], index: 2, kind: input, shape index: {}]   ;;  %s5630_s4 = inlined_call_operand.vmem [shape: f32[2,1,128], index: 4, kind: output, shape index: {}]  }
   0x1   :  { %v4358_v0 = vld [vmem:[%s5626_s1 + $0x140] sm:$0xff]   ;;  %v4362_v4 = vld [vmem:[%s5626_s1 + $0x148] sm:$0xff]   ;;  %v4366_v8 = vld [vmem:[%s5626_s1 + $0x150] sm:$0xff]  }
   0x2   :  { %v4359_v1 = vld [vmem:[%s5626_s1 + $0x1c0] sm:$0xff]   ;;  %3946 = vmatprep.subr.bf16.mxu0 %v4358_v0  ;;  %v4363_v5 = vld [vmem:[%s5626_s1 + $0x1c8] sm:$0xff]   ;;  %v4367_v9 = vld [vmem:[%s5626_s1 + $0x1d0] sm:$0xff]  }
   0x3   :  { %v4360_v2 = vld [vmem:[%s5626_s1 + $0x100] sm:$0xff]   ;;  %3968 = vmatprep.subr.bf16.mxu1 %v4359_v1  ;;  %v4364_v6 = vld [vmem:[%s5626_s1 + $0x108] sm:$0xff]   ;;  %v4368_v10 = vld [vmem:[%s5626_s1 + $0x110] sm:$0xff]  }
   0x4   :  { %v4361_v3 = vld [vmem:[%s5626_s1 + $0x180] sm:$0xff]   ;;  %3947 = vmatpush3.bf16.msra.mxu0 %v4360_v2  ;;  %v4365_v7 = vld [vmem:[%s5626_s1 + $0x188] sm:$0xff]   ;;  %v4369_v11 = vld [vmem:[%s5626_s1 + $0x190] sm:$0xff]  }
   0x5   :  { %3969 = vmatpush3.bf16.msra.mxu1 %v4361_v3  ;;  %3948 = vmatprep.subr.bf16.mxu0 %v4362_v4  ;;  %v4370_v12 = vld [vmem:[%s5626_s1 + $0x158] sm:$0xff]   ;;  %v4374_v16 = vld [vmem:[%s5626_s1 + $0x160] sm:$0xff]   ;;  %v4378_v20 = vld [vmem:[%s5626_s1 + $0x168] sm:$0xff]  }
   0x6   :  { %3970 = vmatprep.subr.bf16.mxu1 %v4363_v5  ;;  %v4371_v13 = vld [vmem:[%s5626_s1 + $0x1d8] sm:$0xff]   ;;  %v4375_v17 = vld [vmem:[%s5626_s1 + $0x1e0] sm:$0xff]   ;;  %v4379_v21 = vld [vmem:[%s5626_s1 + $0x1e8] sm:$0xff]  }
   0x7   :  { %v4372_v14 = vld [vmem:[%s5626_s1 + $0x118] sm:$0xff]   ;;  %v4376_v18 = vld [vmem:[%s5626_s1 + $0x120] sm:$0xff]   ;;  %v4380_v22 = vld [vmem:[%s5626_s1 + $0x128] sm:$0xff]  }
   0x8   :  { %3949 = vmatpush3.bf16.msra.mxu0 %v4364_v6  ;;  %v4373_v15 = vld [vmem:[%s5626_s1 + $0x198] sm:$0xff]   ;;  %v4377_v19 = vld [vmem:[%s5626_s1 + $0x1a0] sm:$0xff]   ;;  %v4381_v23 = vld [vmem:[%s5626_s1 + $0x1a8] sm:$0xff]  }
   0x9   :  { %3971 = vmatpush3.bf16.msra.mxu1 %v4365_v7  ;;  %3950 = vmatprep.subr.bf16.mxu0 %v4366_v8  ;;  %v4382_v24 = vld [vmem:[%s5626_s1 + $0x170] sm:$0xff]   ;;  %v4386_v28 = vld [vmem:[%s5626_s1 + $0x178] sm:$0xff]   ;;  %v84_v32 = vld [vmem:[%s5627_s0] sm:$0x33] }
   0xa   :  { %3972 = vmatprep.subr.bf16.mxu1 %v4367_v9  ;;  %v4383_v25 = vld [vmem:[%s5626_s1 + $0x1f0] sm:$0xff]   ;;  %v4387_v29 = vld [vmem:[%s5626_s1 + $0x1f8] sm:$0xff]   ;;  %v85_v33 = vld [vmem:[%s5627_s0 + $0x8] sm:$0x33]  ;;  %v3307_v34 = vcombine.low %v84_v32, %v84_v32  ;;  %v3308_v35 = vcombine.high %v84_v32, %v84_v32 }
   0xb   :  { %v4384_v26 = vld [vmem:[%s5626_s1 + $0x130] sm:$0xff]   ;;  %v4388_v30 = vld [vmem:[%s5626_s1 + $0x138] sm:$0xff]   ;;  %v3309_v36 = vcombine.low %v85_v33, %v85_v33  ;;  %v3310_v37 = vcombine.high %v85_v33, %v85_v33  ;;  %v4394_v38 = vld [vmem:[%s5626_s1 + $0x40] sm:$0xff]  }
   0xc   :  { %3951 = vmatpush3.bf16.msra.mxu0 %v4368_v10  ;;  %v4385_v27 = vld [vmem:[%s5626_s1 + $0x1b0] sm:$0xff]   ;;  %v4389_v31 = vld [vmem:[%s5626_s1 + $0x1b8] sm:$0xff]   ;;  %v4395_v39 = vld [vmem:[%s5626_s1 + $0xc0] sm:$0xff]   ;;  %v169_v40 = vshrl.u32 %v3308_v35, 16  ;;  %v171_v41 = vshll.u32 %v3308_v35, 16  ;;  %v162_v44 = vshrl.u32 %v3307_v34, 16 }
   0xd   :  { %3973 = vmatpush3.bf16.msra.mxu1 %v4369_v11  ;;  %3952 = vmatprep.subr.bf16.mxu0 %v4370_v12  ;;  %v183_v42 = vshrl.u32 %v3310_v37, 16  ;;  %v185_v43 = vshll.u32 %v3310_v37, 16  ;;  %v164_v45 = vshll.u32 %v3307_v34, 16  ;;  %v176_v46 = vshrl.u32 %v3309_v36, 16  ;;  %v4396_v50 = vld [vmem:[%s5626_s1] sm:$0xff]   ;;  %v4398_v56 = vld [vmem:[%s5626_s1 + $0x48] sm:$0xff]  }
   0xe   :  { %3974 = vmatprep.subr.bf16.mxu1 %v4371_v13  ;;  %v178_v47 = vshll.u32 %v3309_v36, 16  ;;  %v173_v48 = vrot.slane %v171_v41, 1  ;;  %v4397_v51 = vld [vmem:[%s5626_s1 + $0x80] sm:$0xff]   ;;  %v4399_v59 = vld [vmem:[%s5626_s1 + $0xc8] sm:$0xff]   ;;  %v4402_v62 = vld [vmem:[%s5626_s1 + $0x50] sm:$0xff]  }
   0xf   :  { %v187_v49 = vrot.slane %v185_v43, 1  ;;  %v166_v52 = vrot.slane %v164_v45, 1  ;;  %v4400_v60 = vld [vmem:[%s5626_s1 + $0x8] sm:$0xff]   ;;  %v4403_v63 = vld [vmem:[%s5626_s1 + $0xd0] sm:$0xff]   ;;  %v4406_v2 = vld [vmem:[%s5626_s1 + $0x58] sm:$0xff]  }
  0x10   :  { %3953 = vmatpush3.bf16.msra.mxu0 %v4372_v14  ;;  %v180_v53 = vrot.slane %v178_v47, 1  ;;  %v174_v54 = vor.u32 %v173_v48, %v169_v40  ;;  %v4401_v61 = vld [vmem:[%s5626_s1 + $0x88] sm:$0xff]   ;;  %v4404_v0 = vld [vmem:[%s5626_s1 + $0x10] sm:$0xff]   ;;  %v4407_v3 = vld [vmem:[%s5626_s1 + $0xd8] sm:$0xff]  }
  0x11   :  { %3975 = vmatpush3.bf16.msra.mxu1 %v4373_v15  ;;  %3954 = vmatprep.subr.bf16.mxu0 %v4374_v16  ;;  %v188_v55 = vor.u32 %v187_v49, %v183_v42  ;;  %v167_v57 = vor.u32 %v166_v52, %v162_v44  ;;  %v4405_v1 = vld [vmem:[%s5626_s1 + $0x90] sm:$0xff]   ;;  %v4408_v4 = vld [vmem:[%s5626_s1 + $0x18] sm:$0xff]   ;;  %v4410_v6 = vld [vmem:[%s5626_s1 + $0x60] sm:$0xff]  }
  0x12   :  { %3976 = vmatprep.subr.bf16.mxu1 %v4375_v17  ;;  %v181_v58 = vor.u32 %v180_v53, %v176_v46  ;;  %417 = vmatprep.mubr.bf16.mxu0 %v174_v54  ;;  %v4409_v5 = vld [vmem:[%s5626_s1 + $0x98] sm:$0xff]   ;;  %v4411_v7 = vld [vmem:[%s5626_s1 + $0xe0] sm:$0xff]   ;;  %v4414_v10 = vld [vmem:[%s5626_s1 + $0x68] sm:$0xff]  }
  0x13   :  { %457 = vmatprep.mubr.bf16.mxu1 %v188_v55  ;;  %v4412_v8 = vld [vmem:[%s5626_s1 + $0x20] sm:$0xff]   ;;  %v4415_v11 = vld [vmem:[%s5626_s1 + $0xe8] sm:$0xff]   ;;  %v4418_v14 = vld [vmem:[%s5626_s1 + $0x70] sm:$0xff]  }
  0x14   :  { %3955 = vmatpush3.bf16.msra.mxu0 %v4376_v18  ;;  %v4413_v9 = vld [vmem:[%s5626_s1 + $0xa0] sm:$0xff]   ;;  %v4416_v12 = vld [vmem:[%s5626_s1 + $0x28] sm:$0xff]   ;;  %v4419_v15 = vld [vmem:[%s5626_s1 + $0xf0] sm:$0xff]  }
  0x15   :  { %3977 = vmatpush3.bf16.msra.mxu1 %v4377_v19  ;;  %3956 = vmatprep.subr.bf16.mxu0 %v4378_v20  ;;  %v4417_v13 = vld [vmem:[%s5626_s1 + $0xa8] sm:$0xff]   ;;  %v4420_v16 = vld [vmem:[%s5626_s1 + $0x30] sm:$0xff]   ;;  %v4422_v18 = vld [vmem:[%s5626_s1 + $0x78] sm:$0xff]  }
  0x16   :  { %3978 = vmatprep.subr.bf16.mxu1 %v4379_v21  ;;  %v4421_v17 = vld [vmem:[%s5626_s1 + $0xb0] sm:$0xff]   ;;  %v4423_v19 = vld [vmem:[%s5626_s1 + $0xf8] sm:$0xff]   ;;  %v4434_v32 = vld [vmem:[%s5626_s1 + $0x248] sm:$0xff]  }
  0x17   :  { %v4424_v20 = vld [vmem:[%s5626_s1 + $0x38] sm:$0xff]   ;;  %v4435_v33 = vld [vmem:[%s5626_s1 + $0x2c8] sm:$0xff]   ;;  %v4438_v36 = vld [vmem:[%s5626_s1 + $0x250] sm:$0xff]  }
  0x18   :  { %3957 = vmatpush3.bf16.msra.mxu0 %v4380_v22  ;;  %v4425_v21 = vld [vmem:[%s5626_s1 + $0xb8] sm:$0xff]   ;;  %v18_v22 = vld [vmem:[%s5627_s0] sm:$0x11]  ;;  %v4436_v34 = vld [vmem:[%s5626_s1 + $0x208] sm:$0xff]  }
  0x19   :  { %3979 = vmatpush3.bf16.msra.mxu1 %v4381_v23  ;;  %3958 = vmatprep.subr.bf16.mxu0 %v4382_v24  ;;  %v19_v23 = vld [vmem:[%s5627_s0 + $0x8] sm:$0x11]  ;;  %v3344_v24 = vcombine.high %v18_v22, %v18_v22  ;;  %v4439_v37 = vld [vmem:[%s5626_s1 + $0x2d0] sm:$0xff]   ;;  %v4442_v40 = vld [vmem:[%s5626_s1 + $0x258] sm:$0xff]  }
  0x1a   :  { %3980 = vmatprep.subr.bf16.mxu1 %v4383_v25  ;;  %v4430_v25 = vld [vmem:[%s5626_s1 + $0x240] sm:$0xff]   ;;  %v4437_v35 = vld [vmem:[%s5626_s1 + $0x288] sm:$0xff]   ;;  %v4443_v41 = vld [vmem:[%s5626_s1 + $0x2d8] sm:$0xff]  }
  0x1b   :  { %v4444_v42 = vld [vmem:[%s5626_s1 + $0x218] sm:$0xff]   ;;  %v4446_v44 = vld [vmem:[%s5626_s1 + $0x260] sm:$0xff]   ;;  %v4450_v48 = vld [vmem:[%s5626_s1 + $0x268] sm:$0xff]  }
  0x1c   :  { %3959 = vmatpush3.bf16.msra.mxu0 %v4384_v26  ;;  %v3346_v26 = vcombine.high %v19_v23, %v19_v23  ;;  %v4445_v43 = vld [vmem:[%s5626_s1 + $0x298] sm:$0xff]   ;;  %v4447_v45 = vld [vmem:[%s5626_s1 + $0x2e0] sm:$0xff]   ;;  %v4451_v49 = vld [vmem:[%s5626_s1 + $0x2e8] sm:$0xff]  }
  0x1d   :  { %3981 = vmatpush3.bf16.msra.mxu1 %v4385_v27  ;;  %3960 = vmatprep.subr.bf16.mxu0 %v4386_v28  ;;  %v4431_v27 = vld [vmem:[%s5626_s1 + $0x2c0] sm:$0xff]   ;;  %v4454_v52 = vld [vmem:[%s5626_s1 + $0x270] sm:$0xff]  }
  0x1e   :  { %3982 = vmatprep.subr.bf16.mxu1 %v4387_v29  ;;  %v4432_v28 = vld [vmem:[%s5626_s1 + $0x200] sm:$0xff]   ;;  %v3343_v29 = vcombine.low %v18_v22, %v18_v22  ;;  %v4455_v53 = vld [vmem:[%s5626_s1 + $0x2f0] sm:$0xff]  }
  0x1f   :  { %v4448_v46 = vld [vmem:[%s5626_s1 + $0x220] sm:$0xff]   ;;  %v4456_v54 = vld [vmem:[%s5626_s1 + $0x230] sm:$0xff]  }
  0x20   :  { %3961 = vmatpush3.bf16.msra.mxu0 %v4388_v30  ;;  %v3345_v30 = vcombine.low %v19_v23, %v19_v23  ;;  %v4449_v47 = vld [vmem:[%s5626_s1 + $0x2a0] sm:$0xff]   ;;  %v4457_v55 = vld [vmem:[%s5626_s1 + $0x2b0] sm:$0xff]  }
  0x21   :  { %3983 = vmatpush3.bf16.msra.mxu1 %v4389_v31  ;;  %3990 = vmatprep.subr.bf16.mxu0 %v4394_v38  ;;  %v4433_v31 = vld [vmem:[%s5626_s1 + $0x280] sm:$0xff]   ;;  %v4440_v38 = vld [vmem:[%s5626_s1 + $0x210] sm:$0xff]  }
  0x22   :  { %4012 = vmatprep.subr.bf16.mxu1 %v4395_v39  ;;  %v4441_v39 = vld [vmem:[%s5626_s1 + $0x290] sm:$0xff]   ;;  %v4482_v22 = vld [vmem:[%s5626_s1 + $0x360] sm:$0xff]  }
  0x23   :  { %418 = vmatmul.mubr.bf16.vlgmr.msra.gmra.mrb[0].mxu0 %v167_v57  ;;  %v4459_v57 = vld [vmem:[%s5626_s1 + $0x2f8] sm:$0xff]   ;;  %v4483_v23 = vld [vmem:[%s5626_s1 + $0x3e0] sm:$0xff]  }
  0x24   :  { %458 = vmatmul.mubr.bf16.vlgmr.msra.gmra.mrb[0].mxu1 %v181_v58  ;;  %3991 = vmatpush3.bf16.msra.mxu0 %v4396_v50  ;;  %v4452_v50 = vld [vmem:[%s5626_s1 + $0x228] sm:$0xff]   ;;  %v4460_v58 = vld [vmem:[%s5626_s1 + $0x238] sm:$0xff]  }
  0x25   :  { %4013 = vmatpush3.bf16.msra.mxu1 %v4397_v51  ;;  %3992 = vmatprep.subr.bf16.mxu0 %v4398_v56  ;;  %v4453_v51 = vld [vmem:[%s5626_s1 + $0x2a8] sm:$0xff]   ;;  %v4458_v56 = vld [vmem:[%s5626_s1 + $0x278] sm:$0xff]  }
  0x26   :  { %4014 = vmatprep.subr.bf16.mxu1 %v4399_v59  ;;  %703 = vmatprep.mubr.bf16.mxu0 %v3344_v24  ;;  %v4461_v59 = vld [vmem:[%s5626_s1 + $0x2b8] sm:$0xff]   ;;  %v4484_v24 = vld [vmem:[%s5626_s1 + $0x320] sm:$0xff]  }
  0x27   :  { %743 = vmatprep.mubr.bf16.mxu1 %v3346_v26  ;;  %v4486_v26 = vld [vmem:[%s5626_s1 + $0x368] sm:$0xff]  }
  0x28   :  { %3993 = vmatpush3.bf16.msra.mxu0 %v4400_v60  ;;  %v751_v60 = vld [vmem:[%s5627_s0] sm:$0x22] }
  0x29   :  { %4015 = vmatpush3.bf16.msra.mxu1 %v4401_v61  ;;  %3994 = vmatprep.subr.bf16.mxu0 %v4402_v62  ;;  %v752_v61 = vld [vmem:[%s5627_s0 + $0x8] sm:$0x22]  ;;  %v3443_v62 = vcombine.low %v751_v60, %v751_v60 }
  0x2a   :  { %4016 = vmatprep.subr.bf16.mxu1 %v4403_v63  ;;  %v3444_v63 = vcombine.high %v751_v60, %v751_v60 }
  0x2c   :  { %3995 = vmatpush3.bf16.msra.mxu0 %v4404_v0  ;;  %v3445_v0 = vcombine.low %v752_v61, %v752_v61 }
  0x2d   :  { %4017 = vmatpush3.bf16.msra.mxu1 %v4405_v1  ;;  %3996 = vmatprep.subr.bf16.mxu0 %v4406_v2  ;;  %v4466_v1 = vld [vmem:[%s5626_s1 + $0x340] sm:$0xff]   ;;  %v3446_v2 = vcombine.high %v752_v61, %v752_v61 }
  0x2e   :  { %4018 = vmatprep.subr.bf16.mxu1 %v4407_v3  ;;  %v4467_v3 = vld [vmem:[%s5626_s1 + $0x3c0] sm:$0xff]  }
  0x30   :  { %3997 = vmatpush3.bf16.msra.mxu0 %v4408_v4  ;;  %v828_v4 = vrot.slane %v3443_v62, 1 }
  0x31   :  { %4019 = vmatpush3.bf16.msra.mxu1 %v4409_v5  ;;  %3998 = vmatprep.subr.bf16.mxu0 %v4410_v6  ;;  %v829_v5 = vrot.slane %v3444_v63, 1  ;;  %v830_v6 = vrot.slane %v3445_v0, 1  ;;  %v4503_v0 = vld [vmem:[%s5626_s1 + $0x140] sm:$0xff]  }
  0x32   :  { %4020 = vmatprep.subr.bf16.mxu1 %v4411_v7  ;;  %v4468_v7 = vld [vmem:[%s5626_s1 + $0x300] sm:$0xff]  }
  0x34   :  { %3999 = vmatpush3.bf16.msra.mxu0 %v4412_v8  ;;  %v831_v8 = vrot.slane %v3446_v2, 1  ;;  %v4506_v2 = vld [vmem:[%s5626_s1 + $0x148] sm:$0xff]  }
  0x35   :  { %4021 = vmatpush3.bf16.msra.mxu1 %v4413_v9  ;;  %4000 = vmatprep.subr.bf16.mxu0 %v4414_v10  ;;  %v4469_v9 = vld [vmem:[%s5626_s1 + $0x380] sm:$0xff]   ;;  %v4470_v10 = vld [vmem:[%s5626_s1 + $0x348] sm:$0xff]  }
  0x36   :  { %4022 = vmatprep.subr.bf16.mxu1 %v4415_v11  ;;  %v4471_v11 = vld [vmem:[%s5626_s1 + $0x3c8] sm:$0xff]  }
  0x38   :  { %4001 = vmatpush3.bf16.msra.mxu0 %v4416_v12  ;;  %v4472_v12 = vld [vmem:[%s5626_s1 + $0x308] sm:$0xff]  }
  0x39   :  { %4023 = vmatpush3.bf16.msra.mxu1 %v4417_v13  ;;  %4002 = vmatprep.subr.bf16.mxu0 %v4418_v14  ;;  %v4473_v13 = vld [vmem:[%s5626_s1 + $0x388] sm:$0xff]   ;;  %v4474_v14 = vld [vmem:[%s5626_s1 + $0x350] sm:$0xff]  }
  0x3a   :  { %4024 = vmatprep.subr.bf16.mxu1 %v4419_v15  ;;  %v4475_v15 = vld [vmem:[%s5626_s1 + $0x3d0] sm:$0xff]  }
  0x3c   :  { %4003 = vmatpush3.bf16.msra.mxu0 %v4420_v16  ;;  %v4476_v16 = vld [vmem:[%s5626_s1 + $0x310] sm:$0xff]  }
  0x3d   :  { %4025 = vmatpush3.bf16.msra.mxu1 %v4421_v17  ;;  %4004 = vmatprep.subr.bf16.mxu0 %v4422_v18  ;;  %v4477_v17 = vld [vmem:[%s5626_s1 + $0x390] sm:$0xff]   ;;  %v4478_v18 = vld [vmem:[%s5626_s1 + $0x358] sm:$0xff]  }
  0x3e   :  { %4026 = vmatprep.subr.bf16.mxu1 %v4423_v19  ;;  %v4479_v19 = vld [vmem:[%s5626_s1 + $0x3d8] sm:$0xff]  }
  0x40   :  { %4005 = vmatpush3.bf16.msra.mxu0 %v4424_v20  ;;  %v4480_v20 = vld [vmem:[%s5626_s1 + $0x318] sm:$0xff]  }
  0x41   :  { %4027 = vmatpush3.bf16.msra.mxu1 %v4425_v21  ;;  %4034 = vmatprep.subr.bf16.mxu0 %v4430_v25  ;;  %v4481_v21 = vld [vmem:[%s5626_s1 + $0x398] sm:$0xff]   ;;  %v4485_v25 = vld [vmem:[%s5626_s1 + $0x3a0] sm:$0xff]  }
  0x42   :  { %4056 = vmatprep.subr.bf16.mxu1 %v4431_v27  ;;  %v4487_v27 = vld [vmem:[%s5626_s1 + $0x3e8] sm:$0xff]  }
  0x43   :  { %704 = vmatmul.mubr.bf16.vlgmr.msra.gmra.mrb[4].mxu0 %v3343_v29  ;;  %v4489_v29 = vld [vmem:[%s5626_s1 + $0x3a8] sm:$0xff]  }
  0x44   :  { %744 = vmatmul.mubr.bf16.vlgmr.msra.gmra.mrb[4].mxu1 %v3345_v30  ;;  %4035 = vmatpush3.bf16.msra.mxu0 %v4432_v28  ;;  %v4488_v28 = vld [vmem:[%s5626_s1 + $0x328] sm:$0xff]   ;;  %v4490_v30 = vld [vmem:[%s5626_s1 + $0x370] sm:$0xff]  }
  0x45   :  { %4057 = vmatpush3.bf16.msra.mxu1 %v4433_v31  ;;  %4036 = vmatprep.subr.bf16.mxu0 %v4434_v32  ;;  %v4491_v31 = vld [vmem:[%s5626_s1 + $0x3f0] sm:$0xff]  }
  0x46   :  { %4058 = vmatprep.subr.bf16.mxu1 %v4435_v33  ;;  %1060 = vmatprep.mubr.bf16.mxu0 %v829_v5  ;;  %v4492_v32 = vld [vmem:[%s5626_s1 + $0x330] sm:$0xff]   ;;  %v4505_v5 = vld [vmem:[%s5628_s3 + $0x8] sm:$0xff]  }
  0x47   :  { %1100 = vmatprep.mubr.bf16.mxu1 %v831_v8  ;;  %v4493_v33 = vld [vmem:[%s5626_s1 + $0x3b0] sm:$0xff]  }
  0x48   :  { %4037 = vmatpush3.bf16.msra.mxu0 %v4436_v34  ;;  %v4494_v34 = vld [vmem:[%s5626_s1 + $0x378] sm:$0xff]   ;;  %v4508_v8 = vld [vmem:[%s5628_s3 + $0x10] sm:$0xff]  }
  0x49   :  { %4059 = vmatpush3.bf16.msra.mxu1 %v4437_v35  ;;  %4038 = vmatprep.subr.bf16.mxu0 %v4438_v36  ;;  %v4495_v35 = vld [vmem:[%s5626_s1 + $0x3f8] sm:$0xff]  }
  0x4a   :  { %4060 = vmatprep.subr.bf16.mxu1 %v4439_v37  ;;  %v4496_v36 = vld [vmem:[%s5626_s1 + $0x338] sm:$0xff]  }
  0x4b   :  { %v4497_v37 = vld [vmem:[%s5626_s1 + $0x3b8] sm:$0xff]  }
  0x4c   :  { %4039 = vmatpush3.bf16.msra.mxu0 %v4440_v38  ;;  %v1109_v38 = vld [vmem:[%s5627_s0] sm:$0x66] }
  0x4d   :  { %4061 = vmatpush3.bf16.msra.mxu1 %v4441_v39  ;;  %4040 = vmatprep.subr.bf16.mxu0 %v4442_v40  ;;  %v1110_v39 = vld [vmem:[%s5627_s0 + $0x8] sm:$0x66]  ;;  %v3543_v40 = vcombine.low %v1109_v38, %v1109_v38 }
  0x4e   :  { %4062 = vmatprep.subr.bf16.mxu1 %v4443_v41  ;;  %v3544_v41 = vcombine.high %v1109_v38, %v1109_v38  ;;  %v4531_v38 = vld [vmem:[%s5626_s1] sm:$0xff]  }
  0x50   :  { %4041 = vmatpush3.bf16.msra.mxu0 %v4444_v42  ;;  %v3545_v42 = vcombine.low %v1110_v39, %v1110_v39 }
  0x51   :  { %4063 = vmatpush3.bf16.msra.mxu1 %v4445_v43  ;;  %4042 = vmatprep.subr.bf16.mxu0 %v4446_v44  ;;  %v3546_v43 = vcombine.high %v1110_v39, %v1110_v39  ;;  %v1195_v44 = vshrl.u32 %v3544_v41, 16  ;;  %v4534_v39 = vld [vmem:[%s5626_s1 + $0x48] sm:$0xff]  }
  0x52   :  { %4064 = vmatprep.subr.bf16.mxu1 %v4447_v45  ;;  %v1198_v45 = vshll.u32 %v3544_v41, 16  ;;  %v4538_v41 = vld [vmem:[%s5626_s1 + $0x50] sm:$0xff]  }
  0x54   :  { %4043 = vmatpush3.bf16.msra.mxu0 %v4448_v46  ;;  %v1211_v46 = vshrl.u32 %v3546_v43, 16 }
  0x55   :  { %4065 = vmatpush3.bf16.msra.mxu1 %v4449_v47  ;;  %4044 = vmatprep.subr.bf16.mxu0 %v4450_v48  ;;  %v1214_v47 = vshll.u32 %v3546_v43, 16  ;;  %v1187_v48 = vshrl.u32 %v3543_v40, 16 }
  0x56   :  { %4066 = vmatprep.subr.bf16.mxu1 %v4451_v49  ;;  %v1190_v49 = vshll.u32 %v3543_v40, 16  ;;  %v4535_v40 = vld [vmem:[%s5626_s1 + $0x8] sm:$0xff]  }
  0x58   :  { %4045 = vmatpush3.bf16.msra.mxu0 %v4452_v50  ;;  %v1203_v50 = vshrl.u32 %v3545_v42, 16 }
  0x59   :  { %4067 = vmatpush3.bf16.msra.mxu1 %v4453_v51  ;;  %4046 = vmatprep.subr.bf16.mxu0 %v4454_v52  ;;  %v1206_v51 = vshll.u32 %v3545_v42, 16  ;;  %v1197_v52 = vrot.slane %v1195_v44, 1  ;;  %v4539_v44 = vld [vmem:[%s5626_s1 + $0x10] sm:$0xff]  }
  0x5a   :  { %4068 = vmatprep.subr.bf16.mxu1 %v4455_v53  ;;  %v1200_v53 = vrot.slane %v1198_v45, 2 }
  0x5c   :  { %4047 = vmatpush3.bf16.msra.mxu0 %v4456_v54  ;;  %v1213_v54 = vrot.slane %v1211_v46, 1  ;;  %v1201_v60 = vor.u32 %v1200_v53, %v1197_v52  ;;  %v4542_v53 = vld [vmem:[%s5626_s1 + $0x58] sm:$0xff]  }
  0x5d   :  { %4069 = vmatpush3.bf16.msra.mxu1 %v4457_v55  ;;  %4048 = vmatprep.subr.bf16.mxu0 %v4458_v56  ;;  %v1216_v55 = vrot.slane %v1214_v47, 2  ;;  %v1189_v56 = vrot.slane %v1187_v48, 1 }
  0x5e   :  { %4070 = vmatprep.subr.bf16.mxu1 %v4459_v57  ;;  %v1192_v57 = vrot.slane %v1190_v49, 2 }
  0x5f   :  { %v1217_v61 = vor.u32 %v1216_v55, %v1213_v54  ;;  %v4543_v55 = vld [vmem:[%s5626_s1 + $0x18] sm:$0xff]  }
  0x60   :  { %4049 = vmatpush3.bf16.msra.mxu0 %v4460_v58  ;;  %v1205_v58 = vrot.slane %v1203_v50, 1  ;;  %v1193_v62 = vor.u32 %v1192_v57, %v1189_v56  ;;  %v4546_v56 = vld [vmem:[%s5626_s1 + $0x60] sm:$0xff]  }
  0x61   :  { %4071 = vmatpush3.bf16.msra.mxu1 %v4461_v59  ;;  %4078 = vmatprep.subr.bf16.mxu0 %v4466_v1  ;;  %v1208_v59 = vrot.slane %v1206_v51, 2  ;;  %v4504_v1 = vld [vmem:[%s5626_s1 + $0x100] sm:$0xff]  }
  0x62   :  { %4100 = vmatprep.subr.bf16.mxu1 %v4467_v3  ;;  %v4670_v3 = vmov 0.0   ;;  %v4547_v57 = vld [vmem:[%s5626_s1 + $0x20] sm:$0xff]  }
  0x63   :  { %1061 = vmatmul.mubr.bf16.vlgmr.msra.gmra.mrb[8].mxu0 %v828_v4  ;;  %v1209_v63 = vor.u32 %v1208_v59, %v1205_v58  ;;  %v4502_v4 = vld [vmem:[%s5628_s3] sm:$0xff]   ;;  %v4550_v58 = vld [vmem:[%s5626_s1 + $0x68] sm:$0xff]  }
  0x64   :  { %1101 = vmatmul.mubr.bf16.vlgmr.msra.gmra.mrb[8].mxu1 %v830_v6  ;;  %4079 = vmatpush3.bf16.msra.mxu0 %v4468_v7  ;;  %v4507_v6 = vld [vmem:[%s5626_s1 + $0x108] sm:$0xff]   ;;  %v4509_v7 = vld [vmem:[%s5626_s1 + $0x150] sm:$0xff]  }
  0x65   :  { %4101 = vmatpush3.bf16.msra.mxu1 %v4469_v9  ;;  %4080 = vmatprep.subr.bf16.mxu0 %v4470_v10  ;;  %v4510_v9 = vld [vmem:[%s5626_s1 + $0x110] sm:$0xff]   ;;  %v4511_v10 = vld [vmem:[%s5628_s3 + $0x18] sm:$0xff]   ;;  %v4551_v59 = vld [vmem:[%s5626_s1 + $0x28] sm:$0xff]  }
  0x66   :  { %4102 = vmatprep.subr.bf16.mxu1 %v4471_v11  ;;  %1446 = vmatprep.mubr.bf16.mxu0 %v1201_v60  ;;  %v4512_v11 = vld [vmem:[%s5626_s1 + $0x158] sm:$0xff]   ;;  %v4554_v60 = vld [vmem:[%s5626_s1 + $0x70] sm:$0xff]  }
  0x67   :  { %1486 = vmatprep.mubr.bf16.mxu1 %v1217_v61  ;;  %v4555_v61 = vld [vmem:[%s5626_s1 + $0x30] sm:$0xff]  }
  0x68   :  { %4081 = vmatpush3.bf16.msra.mxu0 %v4472_v12  ;;  %v4513_v12 = vld [vmem:[%s5626_s1 + $0x118] sm:$0xff]  }
  0x69   :  { %4103 = vmatpush3.bf16.msra.mxu1 %v4473_v13  ;;  %4082 = vmatprep.subr.bf16.mxu0 %v4474_v14  ;;  %v4514_v13 = vld [vmem:[%s5628_s3 + $0x20] sm:$0xff]  }
  0x6a   :  { %4104 = vmatprep.subr.bf16.mxu1 %v4475_v15  ;;  %v4515_v14 = vld [vmem:[%s5626_s1 + $0x160] sm:$0xff]  }
  0x6b   :  { %v4516_v15 = vld [vmem:[%s5626_s1 + $0x120] sm:$0xff]  }
  0x6c   :  { %4083 = vmatpush3.bf16.msra.mxu0 %v4476_v16  ;;  %v4517_v16 = vld [vmem:[%s5628_s3 + $0x28] sm:$0xff]  }
  0x6d   :  { %4105 = vmatpush3.bf16.msra.mxu1 %v4477_v17  ;;  %4084 = vmatprep.subr.bf16.mxu0 %v4478_v18  ;;  %v4518_v17 = vld [vmem:[%s5626_s1 + $0x168] sm:$0xff]  }
  0x6e   :  { %4106 = vmatprep.subr.bf16.mxu1 %v4479_v19  ;;  %v4519_v18 = vld [vmem:[%s5626_s1 + $0x128] sm:$0xff]   ;;  %v4520_v19 = vld [vmem:[%s5628_s3 + $0x30] sm:$0xff]  }
  0x70   :  { %4085 = vmatpush3.bf16.msra.mxu0 %v4480_v20  ;;  %v4521_v20 = vld [vmem:[%s5626_s1 + $0x170] sm:$0xff]  }
  0x71   :  { %4107 = vmatpush3.bf16.msra.mxu1 %v4481_v21  ;;  %4086 = vmatprep.subr.bf16.mxu0 %v4482_v22  ;;  %v4522_v21 = vld [vmem:[%s5626_s1 + $0x130] sm:$0xff]   ;;  %v4523_v22 = vld [vmem:[%s5628_s3 + $0x38] sm:$0xff]  }
  0x72   :  { %4108 = vmatprep.subr.bf16.mxu1 %v4483_v23  ;;  %v4524_v23 = vld [vmem:[%s5626_s1 + $0x178] sm:$0xff]  }
  0x74   :  { %4087 = vmatpush3.bf16.msra.mxu0 %v4484_v24  ;;  %v4526_v24 = vld [vmem:[%s5626_s1 + $0x1c0] sm:$0xff]  }
  0x75   :  { %4109 = vmatpush3.bf16.msra.mxu1 %v4485_v25  ;;  %4088 = vmatprep.subr.bf16.mxu0 %v4486_v26  ;;  %v3592_v25 = vld [vmem:[%s5627_s0 + $0x10] sm:$0x33]  ;;  %v4525_v26 = vld [vmem:[%s5626_s1 + $0x138] sm:$0xff]  }
  0x76   :  { %4110 = vmatprep.subr.bf16.mxu1 %v4487_v27  ;;  %v3659_v27 = vcombine.high %v3592_v25, %v3592_v25 }
  0x78   :  { %4089 = vmatpush3.bf16.msra.mxu0 %v4488_v28  ;;  %v3658_v28 = vcombine.low %v3592_v25, %v3592_v25 }
  0x79   :  { %4111 = vmatpush3.bf16.msra.mxu1 %v4489_v29  ;;  %4090 = vmatprep.subr.bf16.mxu0 %v4490_v30  ;;  %v1782_v29 = vshll.u32 %v3659_v27, 16 }
  0x7a   :  { %4112 = vmatprep.subr.bf16.mxu1 %v4491_v31  ;;  %v1775_v30 = vshll.u32 %v3658_v28, 16  ;;  %v1780_v31 = vshrl.u32 %v3659_v27, 16 }
  0x7c   :  { %4091 = vmatpush3.bf16.msra.mxu0 %v4492_v32  ;;  %v1784_v32 = vrot.slane %v1782_v29, 1 }
  0x7d   :  { %4113 = vmatpush3.bf16.msra.mxu1 %v4493_v33  ;;  %4092 = vmatprep.subr.bf16.mxu0 %v4494_v34  ;;  %v1773_v33 = vshrl.u32 %v3658_v28, 16  ;;  %v1777_v34 = vrot.slane %v1775_v30, 1  ;;  %v4597_v28 = vld [vmem:[%s5626_s1 + $0x260] sm:$0xff]  }
  0x7e   :  { %4114 = vmatprep.subr.bf16.mxu1 %v4495_v35  ;;  %v1785_v35 = vor.u32 %v1784_v32, %v1780_v31 }
  0x80   :  { %4093 = vmatpush3.bf16.msra.mxu0 %v4496_v36  ;;  %v4530_v36 = vld [vmem:[%s5626_s1 + $0x40] sm:$0xff]  }
  0x81   :  { %4115 = vmatpush3.bf16.msra.mxu1 %v4497_v37  ;;  %4316 = vmatprep.subr.bf16.mxu0 %v4670_v3  ;;  %v1778_v37 = vor.u32 %v1777_v34, %v1773_v33 }
  0x82   :  { %4131 = vmatprep.subr.bf16.mxu1 %v4503_v0  ;;  %v3590_v0 = vld [vmem:[%s5627_s0 + $0x10] sm:$0x11] }
  0x83   :  { %1447 = vmatmul.mubr.bf16.vlgmr.msra.gmra.mrb[12].mxu0 %v1193_v62  ;;  %v4558_v62 = vld [vmem:[%s5626_s1 + $0x78] sm:$0xff]  }
  0x84   :  { %1487 = vmatmul.mubr.bf16.vlgmr.msra.gmra.mrb[12].mxu1 %v1209_v63  ;;  %4317 = vmatpush3.bf16.msra.mxu0 %v4502_v4  ;;  %v4561_v63 = vld [vmem:[%s5626_s1 + $0x38] sm:$0xff]  }
  0x85   :  { %4132 = vmatpush3.bf16.msra.mxu1 %v4504_v1  ;;  %4318 = vmatprep.subr.bf16.mxu0 %v4670_v3  ;;  %v3695_v1 = vcombine.high %v3590_v0, %v3590_v0 }
  0x86   :  { %4133 = vmatprep.subr.bf16.mxu1 %v4506_v2  ;;  %4332 = vmatprep.mubr.msk.bf16.mxu0 %vm4671_vm0, %v4670_v3  ;;  %v3694_v2 = vcombine.low %v3590_v0, %v3590_v0  ;;  %v4637_v0 = vld [vmem:[%s5626_s1 + $0x368] sm:$0xff]  }
  0x87   :  { %2028 = vmatprep.mubr.bf16.mxu1 %v1785_v35  ;;  %v4599_v35 = vld [vmem:[%s5626_s1 + $0x220] sm:$0xff]  }
  0x88   :  { %4319 = vmatpush3.bf16.msra.mxu0 %v4505_v5 }
  0x89   :  { %4134 = vmatpush3.bf16.msra.mxu1 %v4507_v6  ;;  %4320 = vmatprep.subr.bf16.mxu0 %v4670_v3 }
  0x8a   :  { %4135 = vmatprep.subr.bf16.mxu1 %v4509_v7 }
  0x8c   :  { %4321 = vmatpush3.bf16.msra.mxu0 %v4508_v8 }
  0x8d   :  { %4136 = vmatpush3.bf16.msra.mxu1 %v4510_v9  ;;  %4322 = vmatprep.subr.bf16.mxu0 %v4670_v3 }
  0x8e   :  { %4137 = vmatprep.subr.bf16.mxu1 %v4512_v11 }
  0x90   :  { %4323 = vmatpush3.bf16.msra.mxu0 %v4511_v10 }
  0x91   :  { %4324 = vmatprep.subr.bf16.mxu0 %v4670_v3  ;;  %4138 = vmatpush3.bf16.msra.mxu1 %v4513_v12 }
  0x92   :  { %4139 = vmatprep.subr.bf16.mxu1 %v4515_v14 }
  0x94   :  { %4325 = vmatpush3.bf16.msra.mxu0 %v4514_v13 }
  0x95   :  { %4326 = vmatprep.subr.bf16.mxu0 %v4670_v3  ;;  %4140 = vmatpush3.bf16.msra.mxu1 %v4516_v15 }
  0x96   :  { %4141 = vmatprep.subr.bf16.mxu1 %v4518_v17  ;;  %v4581_v17 = vld [vmem:[%s5626_s1 + $0x200] sm:$0xff]  }
  0x98   :  { %4327 = vmatpush3.bf16.msra.mxu0 %v4517_v16  ;;  %v4580_v16 = vld [vmem:[%s5626_s1 + $0x240] sm:$0xff]  }
  0x99   :  { %4328 = vmatprep.subr.bf16.mxu0 %v4670_v3  ;;  %4142 = vmatpush3.bf16.msra.mxu1 %v4519_v18  ;;  %v4585_v18 = vld [vmem:[%s5626_s1 + $0x248] sm:$0xff]  }
  0x9a   :  { %4143 = vmatprep.subr.bf16.mxu1 %v4521_v20  ;;  %v4589_v20 = vld [vmem:[%s5626_s1 + $0x250] sm:$0xff]  }
  0x9c   :  { %4329 = vmatpush3.bf16.msra.mxu0 %v4520_v19  ;;  %v4587_v19 = vld [vmem:[%s5626_s1 + $0x208] sm:$0xff]  }
  0x9d   :  { %4330 = vmatprep.subr.bf16.mxu0 %v4670_v3  ;;  %4144 = vmatpush3.bf16.msra.mxu1 %v4522_v21  ;;  %v4591_v21 = vld [vmem:[%s5626_s1 + $0x210] sm:$0xff]  }
  0x9e   :  { %4145 = vmatprep.subr.bf16.mxu1 %v4524_v23  ;;  %v4595_v23 = vld [vmem:[%s5626_s1 + $0x218] sm:$0xff]  }
  0xa0   :  { %4331 = vmatpush3.bf16.msra.mxu0 %v4523_v22  ;;  %v4593_v22 = vld [vmem:[%s5626_s1 + $0x258] sm:$0xff]  }
  0xa1   :  { %4153 = vmatprep.subr.bf16.mxu0 %v4526_v24  ;;  %4146 = vmatpush3.bf16.msra.mxu1 %v4525_v26 }
  0xa2   :  { %4175 = vmatprep.subr.bf16.mxu1 %v4530_v36 }
  0xa4   :  { %2029 = vmatmul.mubr.bf16.vlgmr.msra.gmra.mrb[16].mxu1 %v1778_v37  ;;  %v4601_v37 = vld [vmem:[%s5626_s1 + $0x268] sm:$0xff]  }
  0xa5   :  { %4176 = vmatpush3.bf16.msra.mxu1 %v4531_v38  ;;  %2314 = vmatprep.mubr.bf16.mxu1 %v3695_v1 }
  0xa6   :  { %4177 = vmatprep.subr.bf16.mxu1 %v4534_v39  ;;  %v4603_v39 = vld [vmem:[%s5626_s1 + $0x228] sm:$0xff]  }
  0xa9   :  { %4178 = vmatpush3.bf16.msra.mxu1 %v4535_v40  ;;  %v4605_v40 = vld [vmem:[%s5626_s1 + $0x270] sm:$0xff]  }
  0xaa   :  { %4179 = vmatprep.subr.bf16.mxu1 %v4538_v41  ;;  %v4607_v41 = vld [vmem:[%s5626_s1 + $0x230] sm:$0xff]  }
  0xad   :  { %4180 = vmatpush3.bf16.msra.mxu1 %v4539_v44  ;;  %v3730_v44 = vld [vmem:[%s5627_s0 + $0x10] sm:$0x22] }
  0xae   :  { %4181 = vmatprep.subr.bf16.mxu1 %v4542_v53  ;;  %v4625_v53 = vld [vmem:[%s5626_s1 + $0x350] sm:$0xff]  }
  0xb1   :  { %4182 = vmatpush3.bf16.msra.mxu1 %v4543_v55  ;;  %v4629_v55 = vld [vmem:[%s5626_s1 + $0x358] sm:$0xff]  }
  0xb2   :  { %4183 = vmatprep.subr.bf16.mxu1 %v4546_v56  ;;  %v4631_v56 = vld [vmem:[%s5626_s1 + $0x318] sm:$0xff]  }
  0xb5   :  { %4184 = vmatpush3.bf16.msra.mxu1 %v4547_v57  ;;  %v4633_v57 = vld [vmem:[%s5626_s1 + $0x360] sm:$0xff]  }
  0xb6   :  { %4185 = vmatprep.subr.bf16.mxu1 %v4550_v58  ;;  %v4635_v58 = vld [vmem:[%s5626_s1 + $0x320] sm:$0xff]  }
  0xb9   :  { %4186 = vmatpush3.bf16.msra.mxu1 %v4551_v59 }
  0xba   :  { %4187 = vmatprep.subr.bf16.mxu1 %v4554_v60 }
  0xbd   :  { %4188 = vmatpush3.bf16.msra.mxu1 %v4555_v61 }
  0xbe   :  { %4189 = vmatprep.subr.bf16.mxu1 %v4558_v62 }
  0xc1   :  { %4190 = vmatpush3.bf16.msra.mxu1 %v4561_v63  ;;  %v5328_v63 = vld [vmem:[%s5627_s0 + $0x18] sm:$0x33] }
  0xc2   :  { %4219 = vmatprep.subr.bf16.mxu1 %v4580_v16 }
  0xc4   :  { %2315 = vmatmul.mubr.bf16.vlgmr.msra.gmra.mrb[20].mxu1 %v3694_v2 }
  0xc5   :  { %4220 = vmatpush3.bf16.msra.mxu1 %v4581_v17 }
  0xc6   :  { %4221 = vmatprep.subr.bf16.mxu1 %v4585_v18 }
  0xc9   :  { %4222 = vmatpush3.bf16.msra.mxu1 %v4587_v19 }
  0xca   :  { %4223 = vmatprep.subr.bf16.mxu1 %v4589_v20  ;;  %v3580_v20 = vld [vmem:[%s5629_s2 + $0x1] ss:$0 sm:$0xff] }
  0xcd   :  { %4224 = vmatpush3.bf16.msra.mxu1 %v4591_v21  ;;  %v4645_v21 = vld [vmem:[%s5626_s1 + $0x378] sm:$0xff]  }
  0xce   :  { %4225 = vmatprep.subr.bf16.mxu1 %v4593_v22 }
  0xd1   :  { %4226 = vmatpush3.bf16.msra.mxu1 %v4595_v23 }
  0xd2   :  { %4227 = vmatprep.subr.bf16.mxu1 %v4597_v28  ;;  %v4647_v28 = vld [vmem:[%s5626_s1 + $0x338] sm:$0xff]  }
  0xd5   :  { %4228 = vmatpush3.bf16.msra.mxu1 %v4599_v35 }
  0xd6   :  { %4229 = vmatprep.subr.bf16.mxu1 %v4601_v37 }
  0xd9   :  { %4230 = vmatpush3.bf16.msra.mxu1 %v4603_v39 }
  0xda   :  { %4231 = vmatprep.subr.bf16.mxu1 %v4605_v40  ;;  %v4527_v40 = vld [vmem:[%s5626_s1 + $0x180] sm:$0xff]  }
  0xdd   :  { %4232 = vmatpush3.bf16.msra.mxu1 %v4607_v41 }
  0xf6   :  { %v3962_v42 = vpop.f32.mrb[0].mxu0 }
  0xf7   :  { %v3984_v43 = vpop.f32.mrb[0].mxu1  ;;  %v3963_v45 = vpop.f32.mrb[1].mxu0 }
  0xf8   :  { %v3985_v46 = vpop.f32.mrb[1].mxu1  ;;  %v3964_v47 = vadd.f32 %v3963_v45, %v3962_v42  ;;  %v3965_v49 = vpop.f32.mrb[2].mxu0  ;;  %v4609_v42 = vld [vmem:[%s5626_s1 + $0x278] sm:$0xff]   ;;  %v3797_v45 = vcombine.high %v3730_v44, %v3730_v44 }
  0xf9   :  { %v3986_v48 = vadd.f32 %v3985_v46, %v3984_v43  ;;  %v3987_v50 = vpop.f32.mrb[2].mxu1  ;;  %v3966_v51 = vpop.f32.mrb[3].mxu0  ;;  %4233 = vmatprep.subr.bf16.mxu1 %v4609_v42  ;;  %v4611_v43 = vld [vmem:[%s5626_s1 + $0x238] sm:$0xff]   ;;  %v3796_v46 = vcombine.low %v3730_v44, %v3730_v44  ;;  %v4533_v44 = vld [vmem:[%s5626_s1 + $0x188] sm:$0xff]  }
  0xfa   :  { %v3988_v52 = vpop.f32.mrb[3].mxu1  ;;  %4234 = vmatpush3.bf16.msra.mxu1 %v4611_v43  ;;  %v4617_v50 = vld [vmem:[%s5626_s1 + $0x300] sm:$0xff]   ;;  %v4621_v51 = vld [vmem:[%s5626_s1 + $0x348] sm:$0xff]  }
  0xfb   :  { %v460_v54 = vadd.f32 %v3986_v48, %v3964_v47  ;;  %v2439_v47 = vrot.slane %v3797_v45, 1  ;;  %v4616_v48 = vld [vmem:[%s5626_s1 + $0x340] sm:$0xff]   ;;  %v2438_v49 = vrot.slane %v3796_v46, 1  ;;  %v4623_v52 = vld [vmem:[%s5626_s1 + $0x308] sm:$0xff]   ;;  %v4536_v45 = vld [vmem:[%s5626_s1 + $0x1d0] sm:$0xff]  }
  0xfc   :  { %4263 = vmatprep.subr.bf16.mxu1 %v4616_v48  ;;  %v4532_v43 = vld [vmem:[%s5626_s1 + $0x1c8] sm:$0xff]   ;;  %v4537_v46 = vld [vmem:[%s5626_s1 + $0x190] sm:$0xff]   ;;  %v4541_v48 = vld [vmem:[%s5626_s1 + $0x198] sm:$0xff]  }
  0xfd   :  { %2670 = vmatprep.mubr.bf16.mxu1 %v2439_v47  ;;  %v4540_v47 = vld [vmem:[%s5626_s1 + $0x1d8] sm:$0xff]  }
  0xfe   :  { %2671 = vmatmul.mubr.bf16.vlgmr.msra.gmra.mrb[24].mxu1 %v2438_v49  ;;  %v4544_v49 = vld [vmem:[%s5626_s1 + $0x1e0] sm:$0xff]  }
  0xff   :  { %4264 = vmatpush3.bf16.msra.mxu1 %v4617_v50  ;;  %v4545_v50 = vld [vmem:[%s5626_s1 + $0x1a0] sm:$0xff]  }
 0x100   :  { %4265 = vmatprep.subr.bf16.mxu1 %v4621_v51  ;;  %v4548_v51 = vld [vmem:[%s5626_s1 + $0x1e8] sm:$0xff]  }
 0x103   :  { %4266 = vmatpush3.bf16.msra.mxu1 %v4623_v52  ;;  %v3660_v52 = vcombine.low %v5328_v63, %v5328_v63 }
 0x104   :  { %4267 = vmatprep.subr.bf16.mxu1 %v4625_v53  ;;  %v4549_v53 = vld [vmem:[%s5626_s1 + $0x1a8] sm:$0xff]  }
 0x116   :  { %v4006_v4 = vpop.f32.mrb[4].mxu0 }
 0x117   :  { %v4028_v5 = vpop.f32.mrb[4].mxu1  ;;  %v4007_v6 = vpop.f32.mrb[5].mxu0 }
 0x118   :  { %v4029_v7 = vpop.f32.mrb[5].mxu1  ;;  %v4008_v8 = vadd.f32 %v4007_v6, %v4006_v4  ;;  %v4009_v10 = vpop.f32.mrb[6].mxu0 }
 0x119   :  { %v4030_v9 = vadd.f32 %v4029_v7, %v4028_v5  ;;  %v4031_v11 = vpop.f32.mrb[6].mxu1  ;;  %v4010_v12 = vpop.f32.mrb[7].mxu0  ;;  %v3661_v10 = vcombine.high %v5328_v63, %v5328_v63 }
 0x11a   :  { %v4032_v13 = vpop.f32.mrb[7].mxu1  ;;  %v706_v14 = vadd.f32 %v4008_v8, %v460_v54  ;;  %v4627_v54 = vld [vmem:[%s5626_s1 + $0x310] sm:$0xff]   ;;  %v4639_v8 = vld [vmem:[%s5626_s1 + $0x328] sm:$0xff]   ;;  %v3579_v11 = vld [vmem:[%s5629_s2] ss:$0 sm:$0xff] }
 0x11b   :  { %4268 = vmatpush3.bf16.msra.mxu1 %v4627_v54  ;;  %v4641_v12 = vld [vmem:[%s5626_s1 + $0x370] sm:$0xff]   ;;  %v1796_v18 = vshll.u32 %v3661_v10, 16 }
 0x11c   :  { %v746_v15 = vadd.f32 %v4030_v9, %v706_v14  ;;  %4269 = vmatprep.subr.bf16.mxu1 %v4629_v55  ;;  %v3832_v14 = vld [vmem:[%s5627_s0 + $0x10] sm:$0x66]  ;;  %v1789_v55 = vshll.u32 %v3660_v52, 16 }
 0x11d   :  { %v3899_v16 = vcombine.high %v3832_v14, %v3832_v14  ;;  %v3898_v19 = vcombine.low %v3832_v14, %v3832_v14  ;;  %v4552_v54 = vld [vmem:[%s5626_s1 + $0x1f0] sm:$0xff]  }
 0x11e   :  { %v4577_v14 = vld [vmem:[%s5626_s1 + $0xb0] sm:$0xff]  }
 0x11f   :  { %4270 = vmatpush3.bf16.msra.mxu1 %v4631_v56  ;;  %v2804_v22 = vshrl.u32 %v3899_v16, 16  ;;  %v2807_v23 = vshll.u32 %v3899_v16, 16  ;;  %v4553_v56 = vld [vmem:[%s5626_s1 + $0x1b0] sm:$0xff]   ;;  %v3731_v16 = vld [vmem:[%s5627_s0 + $0x18] sm:$0x22] }
 0x120   :  { %4271 = vmatprep.subr.bf16.mxu1 %v4633_v57  ;;  %v4556_v57 = vld [vmem:[%s5626_s1 + $0x1f8] sm:$0xff]  }
 0x123   :  { %4272 = vmatpush3.bf16.msra.mxu1 %v4635_v58  ;;  %v1787_v58 = vshrl.u32 %v3660_v52, 16  ;;  %v4632_v52 = vld [vmem:[%s5626_s1 + $0x3d8] sm:$0xff]  }
 0x124   :  { %4273 = vmatprep.subr.bf16.mxu1 %v4637_v0  ;;  %v4565_v0 = vld [vmem:[%s5626_s1 + $0x80] sm:$0xff]  }
 0x127   :  { %4274 = vmatpush3.bf16.msra.mxu1 %v4639_v8  ;;  %v4571_v8 = vld [vmem:[%s5626_s1 + $0x98] sm:$0xff]  }
 0x128   :  { %4275 = vmatprep.subr.bf16.mxu1 %v4641_v12  ;;  %v4575_v12 = vld [vmem:[%s5626_s1 + $0xa8] sm:$0xff]  }
 0x136   :  { %v4050_v24 = vpop.f32.mrb[8].mxu0 }
 0x137   :  { %v4072_v25 = vpop.f32.mrb[8].mxu1  ;;  %v4051_v26 = vpop.f32.mrb[9].mxu0 }
 0x138   :  { %v4073_v27 = vpop.f32.mrb[9].mxu1  ;;  %v4052_v29 = vadd.f32 %v4051_v26, %v4050_v24  ;;  %v4053_v31 = vpop.f32.mrb[10].mxu0  ;;  %v2799_v26 = vshll.u32 %v3898_v19, 16 }
 0x139   :  { %v4074_v30 = vadd.f32 %v4073_v27, %v4072_v25  ;;  %v4075_v32 = vpop.f32.mrb[10].mxu1  ;;  %v4054_v33 = vpop.f32.mrb[11].mxu0  ;;  %v2796_v25 = vshrl.u32 %v3898_v19, 16  ;;  %v1794_v27 = vshrl.u32 %v3661_v10, 16  ;;  %v4573_v10 = vld [vmem:[%s5626_s1 + $0xa0] sm:$0xff]  }
 0x13a   :  { %v4076_v34 = vpop.f32.mrb[11].mxu1  ;;  %v3581_v32 = vld [vmem:[%s5629_s2 + $0x2] ss:$0 sm:$0xff]  ;;  %v1798_v33 = vrot.slane %v1796_v18, 1  ;;  %v2801_v35 = vrot.slane %v2799_v26, 2  ;;  %v3799_v18 = vcombine.high %v3731_v16, %v3731_v16  ;;  %v4594_v26 = vld [vmem:[%s5626_s1 + $0x290] sm:$0xff]  }
 0x13b   :  { %v1103_v36 = vadd.f32 %v4074_v30, %v4052_v29  ;;  %v2806_v29 = vrot.slane %v2804_v22, 1  ;;  %v2809_v30 = vrot.slane %v2807_v23, 2  ;;  %v2798_v34 = vrot.slane %v2796_v25, 1  ;;  %v4584_v19 = vld [vmem:[%s5626_s1 + $0x2c0] sm:$0xff]   ;;  %v4588_v23 = vld [vmem:[%s5626_s1 + $0x2c8] sm:$0xff]   ;;  %v4592_v25 = vld [vmem:[%s5626_s1 + $0x2d0] sm:$0xff]  }
 0x13c   :  { %v1799_v41 = vor.u32 %v1798_v33, %v1794_v27  ;;  %v2441_v22 = vrot.slane %v3799_v18, 1  ;;  %v4596_v27 = vld [vmem:[%s5626_s1 + $0x2d8] sm:$0xff]   ;;  %v4606_v33 = vld [vmem:[%s5626_s1 + $0x2a8] sm:$0xff]  }
 0x13d   :  { %v1108_v38 = vadd.f32 %v1103_v36, %v746_v15  ;;  %v4643_v15 = vld [vmem:[%s5626_s1 + $0x330] sm:$0xff]   ;;  %v2810_v37 = vor.u32 %v2809_v30, %v2806_v29  ;;  %v4600_v29 = vld [vmem:[%s5626_s1 + $0x2e0] sm:$0xff]  }
 0x13e   :  { %4276 = vmatpush3.bf16.msra.mxu1 %v4643_v15  ;;  %v4578_v15 = vld [vmem:[%s5626_s1 + $0xf8] sm:$0xff]   ;;  %v4602_v30 = vld [vmem:[%s5626_s1 + $0x2a0] sm:$0xff]  }
 0x13f   :  { %4277 = vmatprep.subr.bf16.mxu1 %v4645_v21  ;;  %3055 = vmatprep.mubr.bf16.mxu1 %v2810_v37  ;;  %v4586_v21 = vld [vmem:[%s5626_s1 + $0x280] sm:$0xff]  }
 0x142   :  { %4278 = vmatpush3.bf16.msra.mxu1 %v4647_v28  ;;  %v4598_v28 = vld [vmem:[%s5626_s1 + $0x298] sm:$0xff]  }
 0x143   :  { %4336 = vmatprep.subr.bf16.mxu1 %v4670_v3 }
 0x156   :  { %v4094_v59 = vpop.f32.mrb[12].mxu0 }
 0x157   :  { %v4116_v60 = vpop.f32.mrb[12].mxu1  ;;  %v4095_v61 = vpop.f32.mrb[13].mxu0 }
 0x158   :  { %v4117_v62 = vpop.f32.mrb[13].mxu1  ;;  %v4096_v1 = vadd.f32 %v4095_v61, %v4094_v59  ;;  %v4097_v4 = vpop.f32.mrb[14].mxu0  ;;  %v1791_v59 = vrot.slane %v1789_v55, 1  ;;  %v4562_v61 = vld [vmem:[%s5626_s1 + $0xc0] sm:$0xff]  }
 0x159   :  { %v4118_v2 = vadd.f32 %v4117_v62, %v4116_v60  ;;  %v4119_v5 = vpop.f32.mrb[14].mxu1  ;;  %v4098_v6 = vpop.f32.mrb[15].mxu0  ;;  %v4557_v60 = vld [vmem:[%s5626_s1 + $0x1b8] sm:$0xff]   ;;  %v4567_v4 = vld [vmem:[%s5626_s1 + $0x88] sm:$0xff]   ;;  %v4638_v55 = vld [vmem:[%s5626_s1 + $0x3a0] sm:$0xff]  }
 0x15a   :  { %v4120_v7 = vpop.f32.mrb[15].mxu1  ;;  %v3591_v62 = vld [vmem:[%s5627_s0 + $0x18] sm:$0x11]  ;;  %v1792_v63 = vor.u32 %v1791_v59, %v1787_v58  ;;  %v4568_v5 = vld [vmem:[%s5626_s1 + $0xd0] sm:$0xff]   ;;  %v4642_v58 = vld [vmem:[%s5626_s1 + $0x3a8] sm:$0xff]  }
 0x15b   :  { %v1489_v9 = vadd.f32 %v4118_v2, %v4096_v1  ;;  %v3697_v1 = vcombine.high %v3591_v62, %v3591_v62  ;;  %v4566_v2 = vld [vmem:[%s5626_s1 + $0xc8] sm:$0xff]   ;;  %v4569_v6 = vld [vmem:[%s5626_s1 + $0x90] sm:$0xff]   ;;  %v4570_v7 = vld [vmem:[%s5626_s1 + $0xd8] sm:$0xff]  }
 0x15d   :  { %v1494_v13 = vadd.f32 %v1489_v9, %v1108_v38  ;;  %v2802_v38 = vor.u32 %v2801_v35, %v2798_v34  ;;  %v4572_v9 = vld [vmem:[%s5626_s1 + $0xe0] sm:$0xff]   ;;  %v4608_v35 = vld [vmem:[%s5626_s1 + $0x2f0] sm:$0xff]  }
 0x15f   :  { %v1500_v17 = vadd.f32 %v3579_v11, %v1494_v13  ;;  %3056 = vmatmul.mubr.bf16.vlgmr.msra.gmra.mrb[28].mxu1 %v2802_v38  ;;  %v4574_v11 = vld [vmem:[%s5626_s1 + $0xe8] sm:$0xff]   ;;  %v4576_v13 = vld [vmem:[%s5626_s1 + $0xf0] sm:$0xff]  }
 0x160   :  { %4352 = vmatprep.mubr.msk.bf16.mxu1 %vm4671_vm0, %v4670_v3 }
 0x161   :  { %vm1501_vm1 = vcmp.ge.f32.partialorder %v1500_v17, 0.0  ;;  %v1502_v24 = vmul.f32 0.2, %v1500_v17 }
 0x163   :  { %v1503_v31 = vsel %vm1501_vm1, %v1500_v17, %v1502_v24  ;;  %v4579_v17 = vld [vmem:[%s5626_s1 + $0xb8] sm:$0xff]   ;;  %v4590_v24 = vld [vmem:[%s5626_s1 + $0x288] sm:$0xff]  }
 0x164   :  { %v1509_v36 = vmul.f32 %v3580_v20, %v1503_v31  ;;  %v3696_v20 = vcombine.low %v3591_v62, %v3591_v62  ;;  %v4604_v31 = vld [vmem:[%s5626_s1 + $0x2e8] sm:$0xff]  }
 0x166   :  { %v1515_v39 = vadd.f32 %v3581_v32, %v1509_v36  ;;  %v3833_v32 = vld [vmem:[%s5627_s0 + $0x18] sm:$0x66]  ;;  %v4610_v36 = vld [vmem:[%s5626_s1 + $0x2b0] sm:$0xff]  }
 0x167   :  { %v3901_v34 = vcombine.high %v3833_v32, %v3833_v32 }
 0x168   :  { %v1516_v42 = vpack.c.bf16 %v1515_v39, %v1515_v39  ;;  %v4612_v39 = vld [vmem:[%s5626_s1 + $0x2f8] sm:$0xff]  }
 0x169   :  { %v2820_v37 = vshrl.u32 %v3901_v34, 16  ;;  %v2823_v38 = vshll.u32 %v3901_v34, 16  ;;  %v4658_v34 = vld [vmem:[%s5628_s3 + $0x20] sm:$0xff]  }
 0x16a   :  { %4333 = vmatmul.mubr.bf16.vlgmr.msra.gmra.mrb[16].mxu0 %v1516_v42 }
 0x16b   :  { %4154 = vmatpush3.bf16.msra.mxu0 %v4527_v40  ;;  %2068 = vmatprep.mubr.bf16.mxu0 %v1799_v41  ;;  %v3798_v40 = vcombine.low %v3731_v16, %v3731_v16  ;;  %v4615_v41 = vld [vmem:[%s5626_s1 + $0x2b8] sm:$0xff]   ;;  %v2822_v42 = vrot.slane %v2820_v37, 1 }
 0x16c   :  { %4155 = vmatprep.subr.bf16.mxu0 %v4532_v43  ;;  %v2825_v43 = vrot.slane %v2823_v38, 2  ;;  %v4659_v38 = vld [vmem:[%s5628_s3 + $0x28] sm:$0xff]  }
 0x16f   :  { %4156 = vmatpush3.bf16.msra.mxu0 %v4533_v44  ;;  %v4620_v44 = vld [vmem:[%s5626_s1 + $0x3c0] sm:$0xff]  }
 0x170   :  { %4157 = vmatprep.subr.bf16.mxu0 %v4536_v45  ;;  %v2440_v45 = vrot.slane %v3798_v40, 1  ;;  %v4661_v40 = vld [vmem:[%s5628_s3 + $0x38] sm:$0xff]  }
 0x173   :  { %4158 = vmatpush3.bf16.msra.mxu0 %v4537_v46  ;;  %v4622_v46 = vld [vmem:[%s5626_s1 + $0x380] sm:$0xff]  }
 0x174   :  { %4159 = vmatprep.subr.bf16.mxu0 %v4540_v47  ;;  %v2826_v47 = vor.u32 %v2825_v43, %v2822_v42 }
 0x177   :  { %4160 = vmatpush3.bf16.msra.mxu0 %v4541_v48  ;;  %v4624_v48 = vld [vmem:[%s5626_s1 + $0x3c8] sm:$0xff]   ;;  %v4147_v59 = vpop.f32.mrb[16].mxu1 }
 0x178   :  { %4161 = vmatprep.subr.bf16.mxu0 %v4544_v49  ;;  %v4626_v49 = vld [vmem:[%s5626_s1 + $0x388] sm:$0xff]  }
 0x17b   :  { %4162 = vmatpush3.bf16.msra.mxu0 %v4545_v50  ;;  %v4628_v50 = vld [vmem:[%s5626_s1 + $0x3d0] sm:$0xff]  }
 0x17c   :  { %4163 = vmatprep.subr.bf16.mxu0 %v4548_v51  ;;  %v4630_v51 = vld [vmem:[%s5626_s1 + $0x390] sm:$0xff]  }
 0x17f   :  { %4164 = vmatpush3.bf16.msra.mxu0 %v4549_v53  ;;  %v4634_v53 = vld [vmem:[%s5626_s1 + $0x398] sm:$0xff]  }
 0x180   :  { %4165 = vmatprep.subr.bf16.mxu0 %v4552_v54  ;;  %v4636_v54 = vld [vmem:[%s5626_s1 + $0x3e0] sm:$0xff]  }
 0x183   :  { %4166 = vmatpush3.bf16.msra.mxu0 %v4553_v56  ;;  %v4640_v56 = vld [vmem:[%s5626_s1 + $0x3e8] sm:$0xff]  }
 0x184   :  { %4167 = vmatprep.subr.bf16.mxu0 %v4556_v57  ;;  %v3900_v57 = vcombine.low %v3833_v32, %v3833_v32 }
 0x187   :  { %4168 = vmatpush3.bf16.msra.mxu0 %v4557_v60  ;;  %v4644_v60 = vld [vmem:[%s5626_s1 + $0x3f0] sm:$0xff]  }
 0x188   :  { %4197 = vmatprep.subr.bf16.mxu0 %v4562_v61  ;;  %v4148_v61 = vpop.f32.mrb[17].mxu1 }
 0x189   :  { %v5556_v62 = vadd.f32 %v4148_v61, %v4147_v59 }
 0x18a   :  { %2069 = vmatmul.mubr.bf16.vlgmr.msra.gmra.mrb[20].mxu0 %v1792_v63  ;;  %v4150_v63 = vpop.f32.mrb[18].mxu1 }
 0x18b   :  { %4198 = vmatpush3.bf16.msra.mxu0 %v4565_v0  ;;  %2354 = vmatprep.mubr.bf16.mxu0 %v3697_v1  ;;  %v2812_v0 = vshrl.u32 %v3900_v57, 16  ;;  %v2815_v1 = vshll.u32 %v3900_v57, 16 }
 0x18c   :  { %4199 = vmatprep.subr.bf16.mxu0 %v4566_v2  ;;  %v4151_v2 = vpop.f32.mrb[19].mxu1 }
 0x18f   :  { %4200 = vmatpush3.bf16.msra.mxu0 %v4567_v4  ;;  %v4646_v4 = vld [vmem:[%s5626_s1 + $0x3b0] sm:$0xff]  }
 0x190   :  { %4201 = vmatprep.subr.bf16.mxu0 %v4568_v5  ;;  %v4650_v5 = vld [vmem:[%s5626_s1 + $0x3f8] sm:$0xff]  }
 0x193   :  { %4202 = vmatpush3.bf16.msra.mxu0 %v4569_v6 }
 0x194   :  { %4203 = vmatprep.subr.bf16.mxu0 %v4570_v7 }
 0x197   :  { %4204 = vmatpush3.bf16.msra.mxu0 %v4571_v8  ;;  %v4191_v6 = vpop.f32.mrb[20].mxu1  ;;  %v2814_v8 = vrot.slane %v2812_v0, 1 }
 0x198   :  { %4205 = vmatprep.subr.bf16.mxu0 %v4572_v9  ;;  %v4192_v7 = vpop.f32.mrb[21].mxu1  ;;  %v2817_v9 = vrot.slane %v2815_v1, 2 }
 0x19b   :  { %4206 = vmatpush3.bf16.msra.mxu0 %v4573_v10  ;;  %v5564_v10 = vadd.f32 %v4192_v7, %v4191_v6  ;;  %v3934_v6 = vld [vmem:[%s5629_s2] ss:$0 sm:$0xff] }
 0x19c   :  { %4207 = vmatprep.subr.bf16.mxu0 %v4574_v11  ;;  %v4194_v11 = vpop.f32.mrb[22].mxu1 }
 0x19f   :  { %4208 = vmatpush3.bf16.msra.mxu0 %v4575_v12  ;;  %v4651_v12 = vld [vmem:[%s5626_s1 + $0x3b8] sm:$0xff]  }
 0x1a0   :  { %4209 = vmatprep.subr.bf16.mxu0 %v4576_v13  ;;  %v4195_v13 = vpop.f32.mrb[23].mxu1 }
 0x1a3   :  { %4210 = vmatpush3.bf16.msra.mxu0 %v4577_v14  ;;  %v2818_v14 = vor.u32 %v2817_v9, %v2814_v8 }
 0x1a4   :  { %4211 = vmatprep.subr.bf16.mxu0 %v4578_v15 }
 0x1a7   :  { %4212 = vmatpush3.bf16.msra.mxu0 %v4579_v17 }
 0x1a8   :  { %4241 = vmatprep.subr.bf16.mxu0 %v4584_v19 }
 0x1aa   :  { %2355 = vmatmul.mubr.bf16.vlgmr.msra.gmra.mrb[24].mxu0 %v3696_v20  ;;  %v4654_v20 = vld [vmem:[%s5628_s3] sm:$0xff]  }
 0x1ab   :  { %4242 = vmatpush3.bf16.msra.mxu0 %v4586_v21  ;;  %2710 = vmatprep.mubr.bf16.mxu0 %v2441_v22  ;;  %v4655_v21 = vld [vmem:[%s5628_s3 + $0x8] sm:$0xff]   ;;  %v4656_v22 = vld [vmem:[%s5628_s3 + $0x10] sm:$0xff]  }
 0x1ac   :  { %4243 = vmatprep.subr.bf16.mxu0 %v4588_v23  ;;  %4337 = vmatpush3.bf16.msra.mxu1 %v4654_v20  ;;  %v1533_v23 = vld [vmem:[%s5629_s2 + $0x3] sm:$0x1] }
 0x1ad   :  { %4338 = vmatprep.subr.bf16.mxu1 %v4670_v3 }
 0x1af   :  { %4244 = vmatpush3.bf16.msra.mxu0 %v4590_v24 }
 0x1b0   :  { %4245 = vmatprep.subr.bf16.mxu0 %v4592_v25  ;;  %4339 = vmatpush3.bf16.msra.mxu1 %v4655_v21  ;;  %v4657_v25 = vld [vmem:[%s5628_s3 + $0x18] sm:$0xff]  }
 0x1b1   :  { %4340 = vmatprep.subr.bf16.mxu1 %v4670_v3 }
 0x1b3   :  { %4246 = vmatpush3.bf16.msra.mxu0 %v4594_v26 }
 0x1b4   :  { %4247 = vmatprep.subr.bf16.mxu0 %v4596_v27  ;;  %4341 = vmatpush3.bf16.msra.mxu1 %v4656_v22 }
 0x1b5   :  { %4342 = vmatprep.subr.bf16.mxu1 %v4670_v3 }
 0x1b7   :  { %4248 = vmatpush3.bf16.msra.mxu0 %v4598_v28 }
 0x1b8   :  { %4249 = vmatprep.subr.bf16.mxu0 %v4600_v29  ;;  %4343 = vmatpush3.bf16.msra.mxu1 %v4657_v25 }
 0x1b9   :  { %4344 = vmatprep.subr.bf16.mxu1 %v4670_v3 }
 0x1bb   :  { %4250 = vmatpush3.bf16.msra.mxu0 %v4602_v30 }
 0x1bc   :  { %4251 = vmatprep.subr.bf16.mxu0 %v4604_v31  ;;  %4345 = vmatpush3.bf16.msra.mxu1 %v4658_v34 }
 0x1bd   :  { %4346 = vmatprep.subr.bf16.mxu1 %v4670_v3 }
 0x1bf   :  { %4252 = vmatpush3.bf16.msra.mxu0 %v4606_v33 }
 0x1c0   :  { %4253 = vmatprep.subr.bf16.mxu0 %v4608_v35  ;;  %4347 = vmatpush3.bf16.msra.mxu1 %v4659_v38 }
 0x1c1   :  { %4348 = vmatprep.subr.bf16.mxu1 %v4670_v3 }
 0x1c3   :  { %4254 = vmatpush3.bf16.msra.mxu0 %v4610_v36 }
 0x1c4   :  { %4255 = vmatprep.subr.bf16.mxu0 %v4612_v39  ;;  %v4660_v39 = vld [vmem:[%s5628_s3 + $0x30] sm:$0xff]  }
 0x1c5   :  { %4349 = vmatpush3.bf16.msra.mxu1 %v4660_v39 }
 0x1c6   :  { %4350 = vmatprep.subr.bf16.mxu1 %v4670_v3 }
 0x1c7   :  { %4256 = vmatpush3.bf16.msra.mxu0 %v4615_v41 }
 0x1c8   :  { %4285 = vmatprep.subr.bf16.mxu0 %v4620_v44 }
 0x1c9   :  { %4351 = vmatpush3.bf16.msra.mxu1 %v4661_v40 }
 0x1ca   :  { %2711 = vmatmul.mubr.bf16.vlgmr.msra.gmra.mrb[28].mxu0 %v2440_v45 }
 0x1cb   :  { %4286 = vmatpush3.bf16.msra.mxu0 %v4622_v46  ;;  %3095 = vmatprep.mubr.bf16.mxu0 %v2826_v47 }
 0x1cc   :  { %4287 = vmatprep.subr.bf16.mxu0 %v4624_v48 }
 0x1cf   :  { %4288 = vmatpush3.bf16.msra.mxu0 %v4626_v49 }
 0x1d0   :  { %4289 = vmatprep.subr.bf16.mxu0 %v4628_v50 }
 0x1d1   :  { %v4235_v15 = vpop.f32.mrb[24].mxu1 }
 0x1d2   :  { %v4236_v16 = vpop.f32.mrb[25].mxu1 }
 0x1d3   :  { %4290 = vmatpush3.bf16.msra.mxu0 %v4630_v51  ;;  %v5569_v17 = vadd.f32 %v4236_v16, %v4235_v15  ;;  %v4238_v18 = vpop.f32.mrb[26].mxu1  ;;  %v3142_v16 = vld [vmem:[%s5629_s2 + $0x3] sm:$0x1] }
 0x1d4   :  { %4291 = vmatprep.subr.bf16.mxu0 %v4632_v52  ;;  %v4239_v19 = vpop.f32.mrb[27].mxu1 }
 0x1d7   :  { %4292 = vmatpush3.bf16.msra.mxu0 %v4634_v53 }
 0x1d8   :  { %4293 = vmatprep.subr.bf16.mxu0 %v4636_v54 }
 0x1db   :  { %4294 = vmatpush3.bf16.msra.mxu0 %v4638_v55 }
 0x1dc   :  { %4295 = vmatprep.subr.bf16.mxu0 %v4640_v56 }
 0x1df   :  { %4296 = vmatpush3.bf16.msra.mxu0 %v4642_v58 }
 0x1e0   :  { %4297 = vmatprep.subr.bf16.mxu0 %v4644_v60 }
 0x1e3   :  { %4298 = vmatpush3.bf16.msra.mxu0 %v4646_v4 }
 0x1e4   :  { %4299 = vmatprep.subr.bf16.mxu0 %v4650_v5 }
 0x1e7   :  { %4300 = vmatpush3.bf16.msra.mxu0 %v4651_v12  ;;  %v3936_v12 = vld [vmem:[%s5629_s2 + $0x2] ss:$0 sm:$0xff] }
 0x1ea   :  { %3096 = vmatmul.mubr.bf16.vlgmr.msra.gmra.mrb[32].mxu0 %v2818_v14 }
 0x232   :  { %v4279_v24 = vpop.f32.mrb[28].mxu1 }
 0x233   :  { %v4280_v26 = vpop.f32.mrb[29].mxu1 }
 0x234   :  { %v4281_v28 = vadd.f32 %v4280_v26, %v4279_v24  ;;  %v4282_v29 = vpop.f32.mrb[30].mxu1 }
 0x235   :  { %v4283_v32 = vpop.f32.mrb[31].mxu1 }
 0x23d   :  { %v1616_v27 = vpop.f32.mrb[16].mxu0 }
 0x23e   :  { %v1617_v30 = vadd.f32 %v1616_v27, %v1533_v23  ;;  %v4334_v31 = vpop.f32.mrb[17].mxu0 }
 0x23f   :  { %v1619_v33 = vpop.f32.mrb[18].mxu0 }
 0x240   :  { %v1622_v35 = vsub.f32 0.0, %v1617_v30  ;;  %v4335_v36 = vpop.f32.mrb[19].mxu0 }
 0x242   :  { %v1623_v37 = vmul.f32 1.442695, %v1622_v35 }
 0x244   :  { %4662 = vpow2.f32 %v1623_v37 }
 0x24e   :  { %v4663_v41 = vpop.eup %4662 }
 0x24f   :  { %v1625_v42 = vadd.f32 1.0, %v4663_v41 }
 0x251   :  { %4664 = vrcp.f32 %v1625_v42 }
 0x25b   :  { %v4665_v43 = vpop.eup %4664 }
 0x25c   :  { %1628 = vst [vmem:[%s5630_s4] sm:$0x1] %v4665_v43 }
 0x25d   :  { %v4169_v44 = vpop.f32.mrb[20].mxu0 }
 0x25e   :  { %v4170_v45 = vpop.f32.mrb[21].mxu0 }
 0x25f   :  { %v4171_v46 = vadd.f32 %v4170_v45, %v4169_v44  ;;  %v4172_v47 = vpop.f32.mrb[22].mxu0 }
 0x260   :  { %v4173_v48 = vpop.f32.mrb[23].mxu0 }
 0x261   :  { %v2071_v49 = vadd.f32 %v4171_v46, %v5556_v62 }
 0x263   :  { %v2317_v50 = vadd.f32 %v5564_v10, %v2071_v49  ;;  %v3935_v10 = vld [vmem:[%s5629_s2 + $0x1] ss:$0 sm:$0xff] }
 0x27d   :  { %v4213_v51 = vpop.f32.mrb[24].mxu0 }
 0x27e   :  { %v4214_v3 = vpop.f32.mrb[25].mxu0 }
 0x27f   :  { %v4215_v52 = vadd.f32 %v4214_v3, %v4213_v51  ;;  %v4216_v53 = vpop.f32.mrb[26].mxu0 }
 0x280   :  { %v4217_v54 = vpop.f32.mrb[27].mxu0 }
 0x281   :  { %v2357_v55 = vadd.f32 %v4215_v52, %v2317_v50 }
 0x29d   :  { %v4257_v56 = vpop.f32.mrb[28].mxu0 }
 0x29e   :  { %v4258_v57 = vpop.f32.mrb[29].mxu0 }
 0x29f   :  { %v4259_v58 = vadd.f32 %v4258_v57, %v4257_v56  ;;  %v4260_v59 = vpop.f32.mrb[30].mxu0 }
 0x2a0   :  { %v4261_v60 = vpop.f32.mrb[31].mxu0 }
 0x2a1   :  { %v2713_v61 = vadd.f32 %v4259_v58, %v5569_v17 }
 0x2a3   :  { %v2718_v63 = vadd.f32 %v2713_v61, %v2357_v55 }
 0x2bd   :  { %v4301_v0 = vpop.f32.mrb[32].mxu0 }
 0x2be   :  { %v4302_v1 = vpop.f32.mrb[33].mxu0 }
 0x2bf   :  { %v4303_v2 = vadd.f32 %v4302_v1, %v4301_v0  ;;  %v4304_v62 = vpop.f32.mrb[34].mxu0 }
 0x2c0   :  { %v4305_v4 = vpop.f32.mrb[35].mxu0 }
 0x2c1   :  { %v3098_v5 = vadd.f32 %v4303_v2, %v4281_v28 }
 0x2c3   :  { %v3103_v7 = vadd.f32 %v3098_v5, %v2718_v63 }
 0x2c5   :  { %v3109_v8 = vadd.f32 %v3934_v6, %v3103_v7 }
 0x2c7   :  { %vm3110_vm2 = vcmp.ge.f32.partialorder %v3109_v8, 0.0  ;;  %v3111_v9 = vmul.f32 0.2, %v3109_v8 }
 0x2c9   :  { %v3112_v11 = vsel %vm3110_vm2, %v3109_v8, %v3111_v9 }
 0x2ca   :  { %v3118_v13 = vmul.f32 %v3935_v10, %v3112_v11 }
 0x2cc   :  { %v3124_v14 = vadd.f32 %v3936_v12, %v3118_v13 }
 0x2ce   :  { %v3125_v15 = vpack.c.bf16 %v3124_v14, %v3124_v14 }
 0x2d0   :  { %4353 = vmatmul.mubr.bf16.vlgmr.msra.gmra.mrb[32].mxu1 %v3125_v15 }
 0x3a3   :  { %v3225_v17 = vpop.f32.mrb[32].mxu1 }
 0x3a4   :  { %v3226_v18 = vadd.f32 %v3225_v17, %v3142_v16  ;;  %v4354_v19 = vpop.f32.mrb[33].mxu1 }
 0x3a5   :  { %v3228_v20 = vpop.f32.mrb[34].mxu1 }
 0x3a6   :  { %v3231_v21 = vsub.f32 0.0, %v3226_v18  ;;  %v4355_v22 = vpop.f32.mrb[35].mxu1 }
 0x3a8   :  { %v3232_v23 = vmul.f32 1.442695, %v3231_v21 }
 0x3aa   :  { %4666 = vpow2.f32 %v3232_v23 }
 0x3b4   :  { %v4667_v24 = vpop.eup %4666 }
 0x3b5   :  { %v3234_v25 = vadd.f32 1.0, %v4667_v24 }
 0x3b7   :  { %4668 = vrcp.f32 %v3234_v25 }
 0x3c1   :  { %v4669_v26 = vpop.eup %4668 }
 0x3c2   :  { %3945 = vst [vmem:[%s5630_s4 + $0x1] sm:$0x1] %v4669_v26 }

// kernel: discriminator_forward.6
= control target key start
LH: loop header
LB: loop body
LE: loop exit
PB: predicated region body
PF: predicated region fallthrough
CT: control target
= control target key end

     0   :  { %s5250_s1 = inlined_call_operand.vmem [shape: bf16[4,512,128], index: 1, kind: input, shape index: {}]   ;;  %s5251_s0 = inlined_call_operand.vmem [shape: bf16[2,10,512], index: 0, kind: input, shape index: {}]   ;;  %s5252_s2 = inlined_call_operand.vmem [shape: f32[8,128], index: 2, kind: input, shape index: {}]   ;;  %s5253_s3 = inlined_call_operand.vmem [shape: bf16[2,6,128], index: 3, kind: output, shape index: {}]  }
   0x1   :  { %v4075_v0 = vld [vmem:[%s5250_s1 + $0x140] sm:$0xff]   ;;  %v4079_v4 = vld [vmem:[%s5250_s1 + $0x148] sm:$0xff]   ;;  %v4083_v8 = vld [vmem:[%s5250_s1 + $0x150] sm:$0xff]  }
   0x2   :  { %v4076_v1 = vld [vmem:[%s5250_s1 + $0x1c0] sm:$0xff]   ;;  %3723 = vmatprep.subr.bf16.mxu0 %v4075_v0  ;;  %v4080_v5 = vld [vmem:[%s5250_s1 + $0x1c8] sm:$0xff]   ;;  %v4084_v9 = vld [vmem:[%s5250_s1 + $0x1d0] sm:$0xff]  }
   0x3   :  { %v4077_v2 = vld [vmem:[%s5250_s1 + $0x100] sm:$0xff]   ;;  %3745 = vmatprep.subr.bf16.mxu1 %v4076_v1  ;;  %v4081_v6 = vld [vmem:[%s5250_s1 + $0x108] sm:$0xff]   ;;  %v4085_v10 = vld [vmem:[%s5250_s1 + $0x110] sm:$0xff]  }
   0x4   :  { %v4078_v3 = vld [vmem:[%s5250_s1 + $0x180] sm:$0xff]   ;;  %3724 = vmatpush3.bf16.msra.mxu0 %v4077_v2  ;;  %v4082_v7 = vld [vmem:[%s5250_s1 + $0x188] sm:$0xff]   ;;  %v4086_v11 = vld [vmem:[%s5250_s1 + $0x190] sm:$0xff]  }
   0x5   :  { %3746 = vmatpush3.bf16.msra.mxu1 %v4078_v3  ;;  %3725 = vmatprep.subr.bf16.mxu0 %v4079_v4  ;;  %v4087_v12 = vld [vmem:[%s5250_s1 + $0x158] sm:$0xff]   ;;  %v4091_v16 = vld [vmem:[%s5250_s1 + $0x160] sm:$0xff]   ;;  %v4095_v20 = vld [vmem:[%s5250_s1 + $0x168] sm:$0xff]  }
   0x6   :  { %3747 = vmatprep.subr.bf16.mxu1 %v4080_v5  ;;  %v4088_v13 = vld [vmem:[%s5250_s1 + $0x1d8] sm:$0xff]   ;;  %v4092_v17 = vld [vmem:[%s5250_s1 + $0x1e0] sm:$0xff]   ;;  %v4096_v21 = vld [vmem:[%s5250_s1 + $0x1e8] sm:$0xff]  }
   0x7   :  { %v4089_v14 = vld [vmem:[%s5250_s1 + $0x118] sm:$0xff]   ;;  %v4093_v18 = vld [vmem:[%s5250_s1 + $0x120] sm:$0xff]   ;;  %v4097_v22 = vld [vmem:[%s5250_s1 + $0x128] sm:$0xff]  }
   0x8   :  { %3726 = vmatpush3.bf16.msra.mxu0 %v4081_v6  ;;  %v4090_v15 = vld [vmem:[%s5250_s1 + $0x198] sm:$0xff]   ;;  %v4094_v19 = vld [vmem:[%s5250_s1 + $0x1a0] sm:$0xff]   ;;  %v4098_v23 = vld [vmem:[%s5250_s1 + $0x1a8] sm:$0xff]  }
   0x9   :  { %3748 = vmatpush3.bf16.msra.mxu1 %v4082_v7  ;;  %3727 = vmatprep.subr.bf16.mxu0 %v4083_v8  ;;  %v4099_v24 = vld [vmem:[%s5250_s1 + $0x170] sm:$0xff]   ;;  %v4103_v28 = vld [vmem:[%s5250_s1 + $0x178] sm:$0xff]   ;;  %v81_v32 = vld [vmem:[%s5251_s0] sm:$0xff] }
   0xa   :  { %3749 = vmatprep.subr.bf16.mxu1 %v4084_v9  ;;  %v4100_v25 = vld [vmem:[%s5250_s1 + $0x1f0] sm:$0xff]   ;;  %v4104_v29 = vld [vmem:[%s5250_s1 + $0x1f8] sm:$0xff]   ;;  %v82_v33 = vld [vmem:[%s5251_s0 + $0x8] sm:$0xff]  ;;  %v3098_v34 = vcombine.low %v81_v32, %v81_v32  ;;  %v3099_v35 = vcombine.high %v81_v32, %v81_v32 }
   0xb   :  { %v4101_v26 = vld [vmem:[%s5250_s1 + $0x130] sm:$0xff]   ;;  %v4105_v30 = vld [vmem:[%s5250_s1 + $0x138] sm:$0xff]   ;;  %v3100_v36 = vcombine.low %v82_v33, %v82_v33  ;;  %v3101_v37 = vcombine.high %v82_v33, %v82_v33  ;;  %v4111_v38 = vld [vmem:[%s5250_s1 + $0x40] sm:$0xff]  }
   0xc   :  { %3728 = vmatpush3.bf16.msra.mxu0 %v4085_v10  ;;  %v4102_v27 = vld [vmem:[%s5250_s1 + $0x1b0] sm:$0xff]   ;;  %v4106_v31 = vld [vmem:[%s5250_s1 + $0x1b8] sm:$0xff]   ;;  %v4112_v39 = vld [vmem:[%s5250_s1 + $0xc0] sm:$0xff]   ;;  %v166_v40 = vshrl.u32 %v3099_v35, 16  ;;  %v168_v41 = vshll.u32 %v3099_v35, 16  ;;  %v159_v44 = vshrl.u32 %v3098_v34, 16 }
   0xd   :  { %3750 = vmatpush3.bf16.msra.mxu1 %v4086_v11  ;;  %3729 = vmatprep.subr.bf16.mxu0 %v4087_v12  ;;  %v180_v42 = vshrl.u32 %v3101_v37, 16  ;;  %v182_v43 = vshll.u32 %v3101_v37, 16  ;;  %v161_v45 = vshll.u32 %v3098_v34, 16  ;;  %v173_v46 = vshrl.u32 %v3100_v36, 16  ;;  %v4113_v50 = vld [vmem:[%s5250_s1] sm:$0xff]   ;;  %v4115_v56 = vld [vmem:[%s5250_s1 + $0x48] sm:$0xff]  }
   0xe   :  { %3751 = vmatprep.subr.bf16.mxu1 %v4088_v13  ;;  %v175_v47 = vshll.u32 %v3100_v36, 16  ;;  %v170_v48 = vrot.slane %v168_v41, 1  ;;  %v4114_v51 = vld [vmem:[%s5250_s1 + $0x80] sm:$0xff]   ;;  %v4116_v59 = vld [vmem:[%s5250_s1 + $0xc8] sm:$0xff]   ;;  %v4119_v62 = vld [vmem:[%s5250_s1 + $0x50] sm:$0xff]  }
   0xf   :  { %v184_v49 = vrot.slane %v182_v43, 1  ;;  %v163_v52 = vrot.slane %v161_v45, 1  ;;  %v4117_v60 = vld [vmem:[%s5250_s1 + $0x8] sm:$0xff]   ;;  %v4120_v63 = vld [vmem:[%s5250_s1 + $0xd0] sm:$0xff]   ;;  %v4123_v2 = vld [vmem:[%s5250_s1 + $0x58] sm:$0xff]  }
  0x10   :  { %3730 = vmatpush3.bf16.msra.mxu0 %v4089_v14  ;;  %v177_v53 = vrot.slane %v175_v47, 1  ;;  %v171_v54 = vor.u32 %v170_v48, %v166_v40  ;;  %v4118_v61 = vld [vmem:[%s5250_s1 + $0x88] sm:$0xff]   ;;  %v4121_v0 = vld [vmem:[%s5250_s1 + $0x10] sm:$0xff]   ;;  %v4124_v3 = vld [vmem:[%s5250_s1 + $0xd8] sm:$0xff]  }
  0x11   :  { %3752 = vmatpush3.bf16.msra.mxu1 %v4090_v15  ;;  %3731 = vmatprep.subr.bf16.mxu0 %v4091_v16  ;;  %v185_v55 = vor.u32 %v184_v49, %v180_v42  ;;  %v164_v57 = vor.u32 %v163_v52, %v159_v44  ;;  %v4122_v1 = vld [vmem:[%s5250_s1 + $0x90] sm:$0xff]   ;;  %v4125_v4 = vld [vmem:[%s5250_s1 + $0x18] sm:$0xff]   ;;  %v4127_v6 = vld [vmem:[%s5250_s1 + $0x60] sm:$0xff]  }
  0x12   :  { %3753 = vmatprep.subr.bf16.mxu1 %v4092_v17  ;;  %v178_v58 = vor.u32 %v177_v53, %v173_v46  ;;  %414 = vmatprep.mubr.bf16.mxu0 %v171_v54  ;;  %v4126_v5 = vld [vmem:[%s5250_s1 + $0x98] sm:$0xff]   ;;  %v4128_v7 = vld [vmem:[%s5250_s1 + $0xe0] sm:$0xff]   ;;  %v4131_v10 = vld [vmem:[%s5250_s1 + $0x68] sm:$0xff]  }
  0x13   :  { %454 = vmatprep.mubr.bf16.mxu1 %v185_v55  ;;  %v4129_v8 = vld [vmem:[%s5250_s1 + $0x20] sm:$0xff]   ;;  %v4132_v11 = vld [vmem:[%s5250_s1 + $0xe8] sm:$0xff]   ;;  %v4135_v14 = vld [vmem:[%s5250_s1 + $0x70] sm:$0xff]  }
  0x14   :  { %3732 = vmatpush3.bf16.msra.mxu0 %v4093_v18  ;;  %v4130_v9 = vld [vmem:[%s5250_s1 + $0xa0] sm:$0xff]   ;;  %v4133_v12 = vld [vmem:[%s5250_s1 + $0x28] sm:$0xff]   ;;  %v4136_v15 = vld [vmem:[%s5250_s1 + $0xf0] sm:$0xff]  }
  0x15   :  { %3754 = vmatpush3.bf16.msra.mxu1 %v4094_v19  ;;  %3733 = vmatprep.subr.bf16.mxu0 %v4095_v20  ;;  %v4134_v13 = vld [vmem:[%s5250_s1 + $0xa8] sm:$0xff]   ;;  %v4137_v16 = vld [vmem:[%s5250_s1 + $0x30] sm:$0xff]   ;;  %v4139_v18 = vld [vmem:[%s5250_s1 + $0x78] sm:$0xff]  }
  0x16   :  { %3755 = vmatprep.subr.bf16.mxu1 %v4096_v21  ;;  %v4138_v17 = vld [vmem:[%s5250_s1 + $0xb0] sm:$0xff]   ;;  %v4140_v19 = vld [vmem:[%s5250_s1 + $0xf8] sm:$0xff]   ;;  %v4151_v32 = vld [vmem:[%s5250_s1 + $0x248] sm:$0xff]  }
  0x17   :  { %v4141_v20 = vld [vmem:[%s5250_s1 + $0x38] sm:$0xff]   ;;  %v4152_v33 = vld [vmem:[%s5250_s1 + $0x2c8] sm:$0xff]   ;;  %v4155_v36 = vld [vmem:[%s5250_s1 + $0x250] sm:$0xff]  }
  0x18   :  { %3734 = vmatpush3.bf16.msra.mxu0 %v4097_v22  ;;  %v4142_v21 = vld [vmem:[%s5250_s1 + $0xb8] sm:$0xff]   ;;  %v15_v22 = vld [vmem:[%s5251_s0] sm:$0x77]  ;;  %v4153_v34 = vld [vmem:[%s5250_s1 + $0x208] sm:$0xff]  }
  0x19   :  { %3756 = vmatpush3.bf16.msra.mxu1 %v4098_v23  ;;  %3735 = vmatprep.subr.bf16.mxu0 %v4099_v24  ;;  %v16_v23 = vld [vmem:[%s5251_s0 + $0x8] sm:$0x77]  ;;  %v3135_v24 = vcombine.high %v15_v22, %v15_v22  ;;  %v4156_v37 = vld [vmem:[%s5250_s1 + $0x2d0] sm:$0xff]   ;;  %v4159_v40 = vld [vmem:[%s5250_s1 + $0x258] sm:$0xff]  }
  0x1a   :  { %3757 = vmatprep.subr.bf16.mxu1 %v4100_v25  ;;  %v4147_v25 = vld [vmem:[%s5250_s1 + $0x240] sm:$0xff]   ;;  %v4154_v35 = vld [vmem:[%s5250_s1 + $0x288] sm:$0xff]   ;;  %v4160_v41 = vld [vmem:[%s5250_s1 + $0x2d8] sm:$0xff]  }
  0x1b   :  { %v4161_v42 = vld [vmem:[%s5250_s1 + $0x218] sm:$0xff]   ;;  %v4163_v44 = vld [vmem:[%s5250_s1 + $0x260] sm:$0xff]   ;;  %v4167_v48 = vld [vmem:[%s5250_s1 + $0x268] sm:$0xff]  }
  0x1c   :  { %3736 = vmatpush3.bf16.msra.mxu0 %v4101_v26  ;;  %v3137_v26 = vcombine.high %v16_v23, %v16_v23  ;;  %v4162_v43 = vld [vmem:[%s5250_s1 + $0x298] sm:$0xff]   ;;  %v4164_v45 = vld [vmem:[%s5250_s1 + $0x2e0] sm:$0xff]   ;;  %v4168_v49 = vld [vmem:[%s5250_s1 + $0x2e8] sm:$0xff]  }
  0x1d   :  { %3758 = vmatpush3.bf16.msra.mxu1 %v4102_v27  ;;  %3737 = vmatprep.subr.bf16.mxu0 %v4103_v28  ;;  %v4148_v27 = vld [vmem:[%s5250_s1 + $0x2c0] sm:$0xff]   ;;  %v4171_v52 = vld [vmem:[%s5250_s1 + $0x270] sm:$0xff]  }
  0x1e   :  { %3759 = vmatprep.subr.bf16.mxu1 %v4104_v29  ;;  %v4149_v28 = vld [vmem:[%s5250_s1 + $0x200] sm:$0xff]   ;;  %v3134_v29 = vcombine.low %v15_v22, %v15_v22  ;;  %v4172_v53 = vld [vmem:[%s5250_s1 + $0x2f0] sm:$0xff]  }
  0x1f   :  { %v4165_v46 = vld [vmem:[%s5250_s1 + $0x220] sm:$0xff]   ;;  %v4173_v54 = vld [vmem:[%s5250_s1 + $0x230] sm:$0xff]  }
  0x20   :  { %3738 = vmatpush3.bf16.msra.mxu0 %v4105_v30  ;;  %v3136_v30 = vcombine.low %v16_v23, %v16_v23  ;;  %v4166_v47 = vld [vmem:[%s5250_s1 + $0x2a0] sm:$0xff]   ;;  %v4174_v55 = vld [vmem:[%s5250_s1 + $0x2b0] sm:$0xff]  }
  0x21   :  { %3760 = vmatpush3.bf16.msra.mxu1 %v4106_v31  ;;  %3767 = vmatprep.subr.bf16.mxu0 %v4111_v38  ;;  %v4150_v31 = vld [vmem:[%s5250_s1 + $0x280] sm:$0xff]   ;;  %v4157_v38 = vld [vmem:[%s5250_s1 + $0x210] sm:$0xff]  }
  0x22   :  { %3789 = vmatprep.subr.bf16.mxu1 %v4112_v39  ;;  %v4158_v39 = vld [vmem:[%s5250_s1 + $0x290] sm:$0xff]  }
  0x23   :  { %415 = vmatmul.mubr.bf16.vlgmr.msra.gmra.mrb[0].mxu0 %v164_v57  ;;  %v4176_v57 = vld [vmem:[%s5250_s1 + $0x2f8] sm:$0xff]  }
  0x24   :  { %455 = vmatmul.mubr.bf16.vlgmr.msra.gmra.mrb[0].mxu1 %v178_v58  ;;  %3768 = vmatpush3.bf16.msra.mxu0 %v4113_v50  ;;  %v4169_v50 = vld [vmem:[%s5250_s1 + $0x228] sm:$0xff]   ;;  %v4177_v58 = vld [vmem:[%s5250_s1 + $0x238] sm:$0xff]  }
  0x25   :  { %3790 = vmatpush3.bf16.msra.mxu1 %v4114_v51  ;;  %3769 = vmatprep.subr.bf16.mxu0 %v4115_v56  ;;  %v4170_v51 = vld [vmem:[%s5250_s1 + $0x2a8] sm:$0xff]   ;;  %v4175_v56 = vld [vmem:[%s5250_s1 + $0x278] sm:$0xff]  }
  0x26   :  { %3791 = vmatprep.subr.bf16.mxu1 %v4116_v59  ;;  %700 = vmatprep.mubr.bf16.mxu0 %v3135_v24  ;;  %v4178_v59 = vld [vmem:[%s5250_s1 + $0x2b8] sm:$0xff]  }
  0x27   :  { %740 = vmatprep.mubr.bf16.mxu1 %v3137_v26 }
  0x28   :  { %3770 = vmatpush3.bf16.msra.mxu0 %v4117_v60  ;;  %v748_v60 = vld [vmem:[%s5251_s0] sm:$0xee] }
  0x29   :  { %3792 = vmatpush3.bf16.msra.mxu1 %v4118_v61  ;;  %3771 = vmatprep.subr.bf16.mxu0 %v4119_v62  ;;  %v4689_v61 = vld [vmem:[%s5251_s0 + $0x10] sm:$0x11]  ;;  %v749_v62 = vld [vmem:[%s5251_s0 + $0x8] sm:$0xee] }
  0x2a   :  { %3793 = vmatprep.subr.bf16.mxu1 %v4120_v63  ;;  %v3234_v63 = vcombine.low %v748_v60, %v4689_v61 }
  0x2c   :  { %3772 = vmatpush3.bf16.msra.mxu0 %v4121_v0  ;;  %v3235_v0 = vcombine.high %v748_v60, %v4689_v61 }
  0x2d   :  { %3794 = vmatpush3.bf16.msra.mxu1 %v4122_v1  ;;  %3773 = vmatprep.subr.bf16.mxu0 %v4123_v2  ;;  %v4699_v1 = vld [vmem:[%s5251_s0 + $0x18] sm:$0x11] }
  0x2e   :  { %3795 = vmatprep.subr.bf16.mxu1 %v4124_v3  ;;  %v3236_v2 = vcombine.low %v749_v62, %v4699_v1  ;;  %v3237_v3 = vcombine.high %v749_v62, %v4699_v1 }
  0x30   :  { %3774 = vmatpush3.bf16.msra.mxu0 %v4125_v4  ;;  %v4183_v4 = vld [vmem:[%s5250_s1 + $0x340] sm:$0xff]  }
  0x31   :  { %3796 = vmatpush3.bf16.msra.mxu1 %v4126_v5  ;;  %3775 = vmatprep.subr.bf16.mxu0 %v4127_v6  ;;  %v842_v5 = vshrl.u32 %v3235_v0, 16  ;;  %v845_v6 = vshll.u32 %v3235_v0, 16 }
  0x32   :  { %3797 = vmatprep.subr.bf16.mxu1 %v4128_v7  ;;  %v834_v7 = vshrl.u32 %v3234_v63, 16 }
  0x34   :  { %3776 = vmatpush3.bf16.msra.mxu0 %v4129_v8  ;;  %v837_v8 = vshll.u32 %v3234_v63, 16  ;;  %v4219_v63 = vld [vmem:[%s5250_s1 + $0x140] sm:$0xff]  }
  0x35   :  { %3798 = vmatpush3.bf16.msra.mxu1 %v4130_v9  ;;  %3777 = vmatprep.subr.bf16.mxu0 %v4131_v10  ;;  %v4184_v9 = vld [vmem:[%s5250_s1 + $0x3c0] sm:$0xff]   ;;  %v858_v10 = vshrl.u32 %v3237_v3, 16 }
  0x36   :  { %3799 = vmatprep.subr.bf16.mxu1 %v4132_v11  ;;  %v861_v11 = vshll.u32 %v3237_v3, 16  ;;  %v4220_v3 = vld [vmem:[%s5250_s1 + $0x1c0] sm:$0xff]  }
  0x38   :  { %3778 = vmatpush3.bf16.msra.mxu0 %v4133_v12  ;;  %v850_v12 = vshrl.u32 %v3236_v2, 16 }
  0x39   :  { %3800 = vmatpush3.bf16.msra.mxu1 %v4134_v13  ;;  %3779 = vmatprep.subr.bf16.mxu0 %v4135_v14  ;;  %v853_v13 = vshll.u32 %v3236_v2, 16  ;;  %v844_v14 = vrot.slane %v842_v5, 1 }
  0x3a   :  { %3801 = vmatprep.subr.bf16.mxu1 %v4136_v15  ;;  %v847_v15 = vrot.slane %v845_v6, 2  ;;  %v4223_v6 = vld [vmem:[%s5250_s1 + $0x148] sm:$0xff]  }
  0x3b   :  { %v855_v22 = vrot.slane %v853_v13, 2  ;;  %v4230_v13 = vld [vmem:[%s5250_s1 + $0x190] sm:$0xff]  }
  0x3c   :  { %3780 = vmatpush3.bf16.msra.mxu0 %v4137_v16  ;;  %v836_v16 = vrot.slane %v834_v7, 1  ;;  %v848_v23 = vor.u32 %v847_v15, %v844_v14  ;;  %v4224_v7 = vld [vmem:[%s5250_s1 + $0x1c8] sm:$0xff]   ;;  %v4231_v14 = vld [vmem:[%s5250_s1 + $0x158] sm:$0xff]  }
  0x3d   :  { %3802 = vmatpush3.bf16.msra.mxu1 %v4138_v17  ;;  %3781 = vmatprep.subr.bf16.mxu0 %v4139_v18  ;;  %v839_v17 = vrot.slane %v837_v8, 2  ;;  %v4185_v18 = vld [vmem:[%s5250_s1 + $0x300] sm:$0xff]   ;;  %v4225_v8 = vld [vmem:[%s5250_s1 + $0x108] sm:$0xff]   ;;  %v4232_v15 = vld [vmem:[%s5250_s1 + $0x1d8] sm:$0xff]  }
  0x3e   :  { %3803 = vmatprep.subr.bf16.mxu1 %v4140_v19  ;;  %v860_v19 = vrot.slane %v858_v10, 1  ;;  %v4227_v10 = vld [vmem:[%s5250_s1 + $0x150] sm:$0xff]  }
  0x3f   :  { %v840_v24 = vor.u32 %v839_v17, %v836_v16  ;;  %v4233_v16 = vld [vmem:[%s5250_s1 + $0x118] sm:$0xff]  }
  0x40   :  { %3782 = vmatpush3.bf16.msra.mxu0 %v4141_v20  ;;  %v863_v20 = vrot.slane %v861_v11, 2  ;;  %v4228_v11 = vld [vmem:[%s5250_s1 + $0x1d0] sm:$0xff]   ;;  %v4234_v17 = vld [vmem:[%s5250_s1 + $0x198] sm:$0xff]  }
  0x41   :  { %3804 = vmatpush3.bf16.msra.mxu1 %v4142_v21  ;;  %3811 = vmatprep.subr.bf16.mxu0 %v4147_v25  ;;  %v852_v21 = vrot.slane %v850_v12, 1  ;;  %v4186_v25 = vld [vmem:[%s5250_s1 + $0x380] sm:$0xff]   ;;  %v4229_v12 = vld [vmem:[%s5250_s1 + $0x110] sm:$0xff]  }
  0x42   :  { %3833 = vmatprep.subr.bf16.mxu1 %v4148_v27  ;;  %v864_v26 = vor.u32 %v863_v20, %v860_v19  ;;  %v4236_v19 = vld [vmem:[%s5250_s1 + $0x1e0] sm:$0xff]  }
  0x43   :  { %701 = vmatmul.mubr.bf16.vlgmr.msra.gmra.mrb[4].mxu0 %v3134_v29  ;;  %v856_v27 = vor.u32 %v855_v22, %v852_v21  ;;  %v4188_v29 = vld [vmem:[%s5250_s1 + $0x3c8] sm:$0xff]   ;;  %v4237_v20 = vld [vmem:[%s5250_s1 + $0x120] sm:$0xff]  }
  0x44   :  { %741 = vmatmul.mubr.bf16.vlgmr.msra.gmra.mrb[4].mxu1 %v3136_v30  ;;  %3812 = vmatpush3.bf16.msra.mxu0 %v4149_v28  ;;  %v4187_v28 = vld [vmem:[%s5250_s1 + $0x348] sm:$0xff]   ;;  %v4238_v21 = vld [vmem:[%s5250_s1 + $0x1a0] sm:$0xff]  }
  0x45   :  { %3834 = vmatpush3.bf16.msra.mxu1 %v4150_v31  ;;  %3813 = vmatprep.subr.bf16.mxu0 %v4151_v32  ;;  %v4189_v30 = vld [vmem:[%s5250_s1 + $0x308] sm:$0xff]   ;;  %v4191_v32 = vld [vmem:[%s5250_s1 + $0x350] sm:$0xff]  }
  0x46   :  { %3835 = vmatprep.subr.bf16.mxu1 %v4152_v33  ;;  %1093 = vmatprep.mubr.bf16.mxu0 %v848_v23  ;;  %v4190_v31 = vld [vmem:[%s5250_s1 + $0x388] sm:$0xff]   ;;  %v4192_v33 = vld [vmem:[%s5250_s1 + $0x3d0] sm:$0xff]  }
  0x47   :  { %1133 = vmatprep.mubr.bf16.mxu1 %v864_v26  ;;  %v4239_v22 = vld [vmem:[%s5250_s1 + $0x168] sm:$0xff]   ;;  %v4243_v26 = vld [vmem:[%s5250_s1 + $0x170] sm:$0xff]  }
  0x48   :  { %3814 = vmatpush3.bf16.msra.mxu0 %v4153_v34  ;;  %v4193_v34 = vld [vmem:[%s5250_s1 + $0x310] sm:$0xff]   ;;  %v4240_v23 = vld [vmem:[%s5250_s1 + $0x1e8] sm:$0xff]  }
  0x49   :  { %3836 = vmatpush3.bf16.msra.mxu1 %v4154_v35  ;;  %3815 = vmatprep.subr.bf16.mxu0 %v4155_v36  ;;  %v4194_v35 = vld [vmem:[%s5250_s1 + $0x390] sm:$0xff]   ;;  %v4195_v36 = vld [vmem:[%s5250_s1 + $0x358] sm:$0xff]  }
  0x4a   :  { %3837 = vmatprep.subr.bf16.mxu1 %v4156_v37  ;;  %v4196_v37 = vld [vmem:[%s5250_s1 + $0x3d8] sm:$0xff]  }
  0x4c   :  { %3816 = vmatpush3.bf16.msra.mxu0 %v4157_v38  ;;  %v4197_v38 = vld [vmem:[%s5250_s1 + $0x318] sm:$0xff]  }
  0x4d   :  { %3838 = vmatpush3.bf16.msra.mxu1 %v4158_v39  ;;  %3817 = vmatprep.subr.bf16.mxu0 %v4159_v40  ;;  %v4198_v39 = vld [vmem:[%s5250_s1 + $0x398] sm:$0xff]   ;;  %v4199_v40 = vld [vmem:[%s5250_s1 + $0x360] sm:$0xff]  }
  0x4e   :  { %3839 = vmatprep.subr.bf16.mxu1 %v4160_v41  ;;  %v4200_v41 = vld [vmem:[%s5250_s1 + $0x3e0] sm:$0xff]  }
  0x50   :  { %3818 = vmatpush3.bf16.msra.mxu0 %v4161_v42  ;;  %v4201_v42 = vld [vmem:[%s5250_s1 + $0x320] sm:$0xff]  }
  0x51   :  { %3840 = vmatpush3.bf16.msra.mxu1 %v4162_v43  ;;  %3819 = vmatprep.subr.bf16.mxu0 %v4163_v44  ;;  %v4202_v43 = vld [vmem:[%s5250_s1 + $0x3a0] sm:$0xff]   ;;  %v4203_v44 = vld [vmem:[%s5250_s1 + $0x368] sm:$0xff]  }
  0x52   :  { %3841 = vmatprep.subr.bf16.mxu1 %v4164_v45  ;;  %v4204_v45 = vld [vmem:[%s5250_s1 + $0x3e8] sm:$0xff]  }
  0x54   :  { %3820 = vmatpush3.bf16.msra.mxu0 %v4165_v46  ;;  %v4205_v46 = vld [vmem:[%s5250_s1 + $0x328] sm:$0xff]  }
  0x55   :  { %3842 = vmatpush3.bf16.msra.mxu1 %v4166_v47  ;;  %3821 = vmatprep.subr.bf16.mxu0 %v4167_v48  ;;  %v4206_v47 = vld [vmem:[%s5250_s1 + $0x3a8] sm:$0xff]   ;;  %v4207_v48 = vld [vmem:[%s5250_s1 + $0x370] sm:$0xff]  }
  0x56   :  { %3843 = vmatprep.subr.bf16.mxu1 %v4168_v49  ;;  %v4208_v49 = vld [vmem:[%s5250_s1 + $0x3f0] sm:$0xff]  }
  0x58   :  { %3822 = vmatpush3.bf16.msra.mxu0 %v4169_v50  ;;  %v4209_v50 = vld [vmem:[%s5250_s1 + $0x330] sm:$0xff]  }
  0x59   :  { %3844 = vmatpush3.bf16.msra.mxu1 %v4170_v51  ;;  %3823 = vmatprep.subr.bf16.mxu0 %v4171_v52  ;;  %v4210_v51 = vld [vmem:[%s5250_s1 + $0x3b0] sm:$0xff]   ;;  %v4211_v52 = vld [vmem:[%s5250_s1 + $0x378] sm:$0xff]  }
  0x5a   :  { %3845 = vmatprep.subr.bf16.mxu1 %v4172_v53  ;;  %v4212_v53 = vld [vmem:[%s5250_s1 + $0x3f8] sm:$0xff]  }
  0x5c   :  { %3824 = vmatpush3.bf16.msra.mxu0 %v4173_v54  ;;  %v4213_v54 = vld [vmem:[%s5250_s1 + $0x338] sm:$0xff]  }
  0x5d   :  { %3846 = vmatpush3.bf16.msra.mxu1 %v4174_v55  ;;  %3825 = vmatprep.subr.bf16.mxu0 %v4175_v56  ;;  %v4214_v55 = vld [vmem:[%s5250_s1 + $0x3b8] sm:$0xff]   ;;  %v1142_v56 = vld [vmem:[%s5251_s0] sm:$0xcc] }
  0x5e   :  { %3847 = vmatprep.subr.bf16.mxu1 %v4176_v57  ;;  %v3334_v57 = vcombine.low %v1142_v56, %v4689_v61 }
  0x60   :  { %3826 = vmatpush3.bf16.msra.mxu0 %v4177_v58  ;;  %v3335_v58 = vcombine.high %v1142_v56, %v4689_v61  ;;  %v1219_v0 = vrot.slane %v3334_v57, 2  ;;  %v4221_v61 = vld [vmem:[%s5250_s1 + $0x100] sm:$0xff]   ;;  %v4259_v56 = vld [vmem:[%s5250_s1 + $0x48] sm:$0xff]  }
  0x61   :  { %3848 = vmatpush3.bf16.msra.mxu1 %v4178_v59  ;;  %3855 = vmatprep.subr.bf16.mxu0 %v4183_v4  ;;  %v1143_v59 = vld [vmem:[%s5251_s0 + $0x8] sm:$0xcc] }
  0x62   :  { %3877 = vmatprep.subr.bf16.mxu1 %v4184_v9  ;;  %v3336_v60 = vcombine.low %v1143_v59, %v4699_v1  ;;  %v3337_v62 = vcombine.high %v1143_v59, %v4699_v1  ;;  %v1220_v2 = vrot.slane %v3335_v58, 2  ;;  %v4222_v1 = vld [vmem:[%s5250_s1 + $0x180] sm:$0xff]   ;;  %v4226_v9 = vld [vmem:[%s5250_s1 + $0x188] sm:$0xff]  }
  0x63   :  { %1094 = vmatmul.mubr.bf16.vlgmr.msra.gmra.mrb[8].mxu0 %v840_v24  ;;  %v4241_v24 = vld [vmem:[%s5250_s1 + $0x128] sm:$0xff]  }
  0x64   :  { %1134 = vmatmul.mubr.bf16.vlgmr.msra.gmra.mrb[8].mxu1 %v856_v27  ;;  %3856 = vmatpush3.bf16.msra.mxu0 %v4185_v18  ;;  %v1221_v4 = vrot.slane %v3336_v60, 2  ;;  %v1222_v5 = vrot.slane %v3337_v62, 2  ;;  %v4235_v18 = vld [vmem:[%s5250_s1 + $0x160] sm:$0xff]   ;;  %v4244_v27 = vld [vmem:[%s5250_s1 + $0x1f0] sm:$0xff]   ;;  %v4260_v62 = vld [vmem:[%s5250_s1 + $0xc8] sm:$0xff]  }
  0x65   :  { %3878 = vmatpush3.bf16.msra.mxu1 %v4186_v25  ;;  %3857 = vmatprep.subr.bf16.mxu0 %v4187_v28  ;;  %v4242_v25 = vld [vmem:[%s5250_s1 + $0x1a8] sm:$0xff]   ;;  %v4245_v28 = vld [vmem:[%s5250_s1 + $0x130] sm:$0xff]  }
  0x66   :  { %3879 = vmatprep.subr.bf16.mxu1 %v4188_v29  ;;  %1451 = vmatprep.mubr.bf16.mxu0 %v1220_v2  ;;  %v4246_v29 = vld [vmem:[%s5250_s1 + $0x1b0] sm:$0xff]  }
  0x67   :  { %1491 = vmatprep.mubr.bf16.mxu1 %v1222_v5  ;;  %v4263_v2 = vld [vmem:[%s5250_s1 + $0x50] sm:$0xff]   ;;  %v4267_v5 = vld [vmem:[%s5250_s1 + $0x58] sm:$0xff]  }
  0x68   :  { %3858 = vmatpush3.bf16.msra.mxu0 %v4189_v30  ;;  %v4247_v30 = vld [vmem:[%s5250_s1 + $0x178] sm:$0xff]  }
  0x69   :  { %3880 = vmatpush3.bf16.msra.mxu1 %v4190_v31  ;;  %3859 = vmatprep.subr.bf16.mxu0 %v4191_v32  ;;  %v4248_v31 = vld [vmem:[%s5250_s1 + $0x1f8] sm:$0xff]  }
  0x6a   :  { %3881 = vmatprep.subr.bf16.mxu1 %v4192_v33  ;;  %v4249_v32 = vld [vmem:[%s5250_s1 + $0x138] sm:$0xff]  }
  0x6b   :  { %v4250_v33 = vld [vmem:[%s5250_s1 + $0x1b8] sm:$0xff]  }
  0x6c   :  { %3860 = vmatpush3.bf16.msra.mxu0 %v4193_v34  ;;  %v3375_v34 = vld [vmem:[%s5251_s0 + $0x20] sm:$0xff] }
  0x6d   :  { %3882 = vmatpush3.bf16.msra.mxu1 %v4194_v35  ;;  %3861 = vmatprep.subr.bf16.mxu0 %v4195_v36  ;;  %v3441_v35 = vcombine.low %v3375_v34, %v3375_v34  ;;  %v3442_v36 = vcombine.high %v3375_v34, %v3375_v34  ;;  %v4295_v34 = vld [vmem:[%s5250_s1 + $0x248] sm:$0xff]  }
  0x6e   :  { %3883 = vmatprep.subr.bf16.mxu1 %v4196_v37  ;;  %v3376_v37 = vld [vmem:[%s5251_s0 + $0x28] sm:$0xff] }
  0x70   :  { %3862 = vmatpush3.bf16.msra.mxu0 %v4197_v38  ;;  %v3443_v38 = vcombine.low %v3376_v37, %v3376_v37 }
  0x71   :  { %3884 = vmatpush3.bf16.msra.mxu1 %v4198_v39  ;;  %3863 = vmatprep.subr.bf16.mxu0 %v4199_v40  ;;  %v3444_v39 = vcombine.high %v3376_v37, %v3376_v37  ;;  %v4255_v40 = vld [vmem:[%s5250_s1 + $0x40] sm:$0xff]   ;;  %v4298_v37 = vld [vmem:[%s5250_s1 + $0x288] sm:$0xff]  }
  0x72   :  { %3885 = vmatprep.subr.bf16.mxu1 %v4200_v41  ;;  %v1674_v41 = vshrl.u32 %v3442_v36, 16 }
  0x74   :  { %3864 = vmatpush3.bf16.msra.mxu0 %v4201_v42  ;;  %v1676_v42 = vshll.u32 %v3442_v36, 16  ;;  %v4297_v36 = vld [vmem:[%s5250_s1 + $0x208] sm:$0xff]  }
  0x75   :  { %3886 = vmatpush3.bf16.msra.mxu1 %v4202_v43  ;;  %3865 = vmatprep.subr.bf16.mxu0 %v4203_v44  ;;  %v1667_v43 = vshrl.u32 %v3441_v35, 16  ;;  %v1669_v44 = vshll.u32 %v3441_v35, 16  ;;  %v4296_v35 = vld [vmem:[%s5250_s1 + $0x2c8] sm:$0xff]  }
  0x76   :  { %3887 = vmatprep.subr.bf16.mxu1 %v4204_v45  ;;  %v4256_v45 = vld [vmem:[%s5250_s1 + $0xc0] sm:$0xff]  }
  0x78   :  { %3866 = vmatpush3.bf16.msra.mxu0 %v4205_v46  ;;  %v1688_v46 = vshrl.u32 %v3444_v39, 16 }
  0x79   :  { %3888 = vmatpush3.bf16.msra.mxu1 %v4206_v47  ;;  %3867 = vmatprep.subr.bf16.mxu0 %v4207_v48  ;;  %v1690_v47 = vshll.u32 %v3444_v39, 16  ;;  %v1681_v48 = vshrl.u32 %v3443_v38, 16  ;;  %v4300_v39 = vld [vmem:[%s5250_s1 + $0x2d0] sm:$0xff]  }
  0x7a   :  { %3889 = vmatprep.subr.bf16.mxu1 %v4208_v49  ;;  %v1683_v49 = vshll.u32 %v3443_v38, 16  ;;  %v4299_v38 = vld [vmem:[%s5250_s1 + $0x250] sm:$0xff]  }
  0x7c   :  { %3868 = vmatpush3.bf16.msra.mxu0 %v4209_v50  ;;  %v1678_v50 = vrot.slane %v1676_v42, 1  ;;  %v4303_v42 = vld [vmem:[%s5250_s1 + $0x258] sm:$0xff]  }
  0x7d   :  { %3890 = vmatpush3.bf16.msra.mxu1 %v4210_v51  ;;  %3869 = vmatprep.subr.bf16.mxu0 %v4211_v52  ;;  %v1671_v51 = vrot.slane %v1669_v44, 1  ;;  %v4257_v52 = vld [vmem:[%s5250_s1] sm:$0xff]   ;;  %v4305_v44 = vld [vmem:[%s5250_s1 + $0x218] sm:$0xff]  }
  0x7e   :  { %3891 = vmatprep.subr.bf16.mxu1 %v4212_v53  ;;  %v1692_v53 = vrot.slane %v1690_v47, 1  ;;  %v1679_v57 = vor.u32 %v1678_v50, %v1674_v41  ;;  %v4302_v41 = vld [vmem:[%s5250_s1 + $0x290] sm:$0xff]   ;;  %v4308_v47 = vld [vmem:[%s5250_s1 + $0x2e0] sm:$0xff]   ;;  %v4311_v50 = vld [vmem:[%s5250_s1 + $0x268] sm:$0xff]  }
  0x7f   :  { %v1672_v58 = vor.u32 %v1671_v51, %v1667_v43  ;;  %v4304_v43 = vld [vmem:[%s5250_s1 + $0x2d8] sm:$0xff]   ;;  %v4312_v51 = vld [vmem:[%s5250_s1 + $0x2e8] sm:$0xff]  }
  0x80   :  { %3870 = vmatpush3.bf16.msra.mxu0 %v4213_v54  ;;  %v1685_v54 = vrot.slane %v1683_v49, 1  ;;  %v1693_v59 = vor.u32 %v1692_v53, %v1688_v46  ;;  %v4307_v46 = vld [vmem:[%s5250_s1 + $0x260] sm:$0xff]   ;;  %v4314_v53 = vld [vmem:[%s5250_s1 + $0x2a8] sm:$0xff]  }
  0x81   :  { %3892 = vmatpush3.bf16.msra.mxu1 %v4214_v55  ;;  %3899 = vmatprep.subr.bf16.mxu0 %v4219_v63  ;;  %v4258_v55 = vld [vmem:[%s5250_s1 + $0x80] sm:$0xff]   ;;  %v4261_v63 = vld [vmem:[%s5250_s1 + $0x8] sm:$0xff]  }
  0x82   :  { %3921 = vmatprep.subr.bf16.mxu1 %v4220_v3  ;;  %v1686_v60 = vor.u32 %v1685_v54, %v1681_v48  ;;  %v4264_v3 = vld [vmem:[%s5250_s1 + $0xd0] sm:$0xff]   ;;  %v4309_v48 = vld [vmem:[%s5250_s1 + $0x220] sm:$0xff]  }
  0x83   :  { %1452 = vmatmul.mubr.bf16.vlgmr.msra.gmra.mrb[12].mxu0 %v1219_v0  ;;  %v4262_v0 = vld [vmem:[%s5250_s1 + $0x88] sm:$0xff]   ;;  %v4310_v49 = vld [vmem:[%s5250_s1 + $0x2a0] sm:$0xff]   ;;  %v4315_v54 = vld [vmem:[%s5250_s1 + $0x270] sm:$0xff]  }
  0x84   :  { %1492 = vmatmul.mubr.bf16.vlgmr.msra.gmra.mrb[12].mxu1 %v1221_v4  ;;  %3900 = vmatpush3.bf16.msra.mxu0 %v4221_v61  ;;  %v4265_v61 = vld [vmem:[%s5250_s1 + $0x10] sm:$0xff]  }
  0x85   :  { %3922 = vmatpush3.bf16.msra.mxu1 %v4222_v1  ;;  %3901 = vmatprep.subr.bf16.mxu0 %v4223_v6  ;;  %v4266_v4 = vld [vmem:[%s5250_s1 + $0x90] sm:$0xff]   ;;  %v4268_v1 = vld [vmem:[%s5250_s1 + $0xd8] sm:$0xff]  }
  0x86   :  { %3923 = vmatprep.subr.bf16.mxu1 %v4224_v7  ;;  %1922 = vmatprep.mubr.bf16.mxu0 %v1679_v57  ;;  %v4269_v6 = vld [vmem:[%s5250_s1 + $0x18] sm:$0xff]   ;;  %v4318_v57 = vld [vmem:[%s5250_s1 + $0x2b0] sm:$0xff]  }
  0x87   :  { %1962 = vmatprep.mubr.bf16.mxu1 %v1693_v59  ;;  %v4270_v7 = vld [vmem:[%s5250_s1 + $0x98] sm:$0xff]  }
  0x88   :  { %3902 = vmatpush3.bf16.msra.mxu0 %v4225_v8  ;;  %v4271_v8 = vld [vmem:[%s5250_s1 + $0x60] sm:$0xff]   ;;  %v4320_v59 = vld [vmem:[%s5250_s1 + $0x2f8] sm:$0xff]  }
  0x89   :  { %3924 = vmatpush3.bf16.msra.mxu1 %v4226_v9  ;;  %3903 = vmatprep.subr.bf16.mxu0 %v4227_v10  ;;  %v4272_v9 = vld [vmem:[%s5250_s1 + $0xe0] sm:$0xff]  }
  0x8a   :  { %3925 = vmatprep.subr.bf16.mxu1 %v4228_v11  ;;  %v4273_v10 = vld [vmem:[%s5250_s1 + $0x20] sm:$0xff]  }
  0x8b   :  { %v4274_v11 = vld [vmem:[%s5250_s1 + $0xa0] sm:$0xff]  }
  0x8c   :  { %3904 = vmatpush3.bf16.msra.mxu0 %v4229_v12  ;;  %v4275_v12 = vld [vmem:[%s5250_s1 + $0x68] sm:$0xff]  }
  0x8d   :  { %3926 = vmatpush3.bf16.msra.mxu1 %v4230_v13  ;;  %3905 = vmatprep.subr.bf16.mxu0 %v4231_v14  ;;  %v4276_v13 = vld [vmem:[%s5250_s1 + $0xe8] sm:$0xff]  }
  0x8e   :  { %3927 = vmatprep.subr.bf16.mxu1 %v4232_v15  ;;  %v4277_v14 = vld [vmem:[%s5250_s1 + $0x28] sm:$0xff]  }
  0x8f   :  { %v4278_v15 = vld [vmem:[%s5250_s1 + $0xa8] sm:$0xff]  }
  0x90   :  { %3906 = vmatpush3.bf16.msra.mxu0 %v4233_v16  ;;  %v4279_v16 = vld [vmem:[%s5250_s1 + $0x70] sm:$0xff]  }
  0x91   :  { %3928 = vmatpush3.bf16.msra.mxu1 %v4234_v17  ;;  %3907 = vmatprep.subr.bf16.mxu0 %v4235_v18  ;;  %v4280_v17 = vld [vmem:[%s5250_s1 + $0xf0] sm:$0xff]  }
  0x92   :  { %3929 = vmatprep.subr.bf16.mxu1 %v4236_v19  ;;  %v4281_v18 = vld [vmem:[%s5250_s1 + $0x30] sm:$0xff]  }
  0x93   :  { %v4282_v19 = vld [vmem:[%s5250_s1 + $0xb0] sm:$0xff]  }
  0x94   :  { %3908 = vmatpush3.bf16.msra.mxu0 %v4237_v20  ;;  %v4283_v20 = vld [vmem:[%s5250_s1 + $0x78] sm:$0xff]  }
  0x95   :  { %3930 = vmatpush3.bf16.msra.mxu1 %v4238_v21  ;;  %3909 = vmatprep.subr.bf16.mxu0 %v4239_v22  ;;  %v4284_v21 = vld [vmem:[%s5250_s1 + $0xf8] sm:$0xff]  }
  0x96   :  { %3931 = vmatprep.subr.bf16.mxu1 %v4240_v23  ;;  %v4285_v22 = vld [vmem:[%s5250_s1 + $0x38] sm:$0xff]  }
  0x97   :  { %v4286_v23 = vld [vmem:[%s5250_s1 + $0xb8] sm:$0xff]  }
  0x98   :  { %3910 = vmatpush3.bf16.msra.mxu0 %v4241_v24  ;;  %v3373_v24 = vld [vmem:[%s5251_s0 + $0x20] sm:$0x77] }
  0x99   :  { %3932 = vmatpush3.bf16.msra.mxu1 %v4242_v25  ;;  %3911 = vmatprep.subr.bf16.mxu0 %v4243_v26  ;;  %v3478_v25 = vcombine.high %v3373_v24, %v3373_v24  ;;  %v3374_v26 = vld [vmem:[%s5251_s0 + $0x28] sm:$0x77] }
  0x9a   :  { %3933 = vmatprep.subr.bf16.mxu1 %v4244_v27  ;;  %v3480_v27 = vcombine.high %v3374_v26, %v3374_v26 }
  0x9c   :  { %3912 = vmatpush3.bf16.msra.mxu0 %v4245_v28  ;;  %v4291_v28 = vld [vmem:[%s5250_s1 + $0x240] sm:$0xff]  }
  0x9d   :  { %3934 = vmatpush3.bf16.msra.mxu1 %v4246_v29  ;;  %3913 = vmatprep.subr.bf16.mxu0 %v4247_v30  ;;  %v4292_v29 = vld [vmem:[%s5250_s1 + $0x2c0] sm:$0xff]   ;;  %v3477_v30 = vcombine.low %v3373_v24, %v3373_v24 }
  0x9e   :  { %3935 = vmatprep.subr.bf16.mxu1 %v4248_v31  ;;  %v4293_v31 = vld [vmem:[%s5250_s1 + $0x200] sm:$0xff]  }
  0xa0   :  { %3914 = vmatpush3.bf16.msra.mxu0 %v4249_v32  ;;  %v3479_v32 = vcombine.low %v3374_v26, %v3374_v26 }
  0xa1   :  { %3936 = vmatpush3.bf16.msra.mxu1 %v4250_v33  ;;  %3943 = vmatprep.subr.bf16.mxu0 %v4255_v40  ;;  %v4294_v33 = vld [vmem:[%s5250_s1 + $0x280] sm:$0xff]   ;;  %v4301_v40 = vld [vmem:[%s5250_s1 + $0x210] sm:$0xff]  }
  0xa2   :  { %3965 = vmatprep.subr.bf16.mxu1 %v4256_v45  ;;  %v4306_v45 = vld [vmem:[%s5250_s1 + $0x298] sm:$0xff]  }
  0xa3   :  { %1923 = vmatmul.mubr.bf16.vlgmr.msra.gmra.mrb[16].mxu0 %v1672_v58  ;;  %v4319_v58 = vld [vmem:[%s5250_s1 + $0x278] sm:$0xff]  }
  0xa4   :  { %1963 = vmatmul.mubr.bf16.vlgmr.msra.gmra.mrb[16].mxu1 %v1686_v60  ;;  %3944 = vmatpush3.bf16.msra.mxu0 %v4257_v52  ;;  %v4313_v52 = vld [vmem:[%s5250_s1 + $0x228] sm:$0xff]   ;;  %v4321_v60 = vld [vmem:[%s5250_s1 + $0x238] sm:$0xff]  }
  0xa5   :  { %3966 = vmatpush3.bf16.msra.mxu1 %v4258_v55  ;;  %3945 = vmatprep.subr.bf16.mxu0 %v4259_v56  ;;  %v4316_v55 = vld [vmem:[%s5250_s1 + $0x2f0] sm:$0xff]  }
  0xa6   :  { %3967 = vmatprep.subr.bf16.mxu1 %v4260_v62  ;;  %2208 = vmatprep.mubr.bf16.mxu0 %v3478_v25  ;;  %v4317_v56 = vld [vmem:[%s5250_s1 + $0x230] sm:$0xff]   ;;  %v4322_v62 = vld [vmem:[%s5250_s1 + $0x2b8] sm:$0xff]  }
  0xa7   :  { %2248 = vmatprep.mubr.bf16.mxu1 %v3480_v27  ;;  %v4330_v27 = vld [vmem:[%s5250_s1 + $0x380] sm:$0xff]  }
  0xa8   :  { %3946 = vmatpush3.bf16.msra.mxu0 %v4261_v63  ;;  %v3513_v63 = vld [vmem:[%s5251_s0 + $0x20] sm:$0xee] }
  0xa9   :  { %3968 = vmatpush3.bf16.msra.mxu1 %v4262_v0  ;;  %3947 = vmatprep.subr.bf16.mxu0 %v4263_v2  ;;  %v5115_v0 = vld [vmem:[%s5251_s0 + $0x30] sm:$0x11] }
  0xaa   :  { %3969 = vmatprep.subr.bf16.mxu1 %v4264_v3  ;;  %v3581_v2 = vcombine.low %v3513_v63, %v5115_v0  ;;  %v3582_v3 = vcombine.high %v3513_v63, %v5115_v0  ;;  %v4352_v63 = vld [vmem:[%s5250_s1 + $0x3f0] sm:$0xff]  }
  0xac   :  { %3948 = vmatpush3.bf16.msra.mxu0 %v4265_v61  ;;  %v3514_v61 = vld [vmem:[%s5251_s0 + $0x28] sm:$0xee] }
  0xad   :  { %3970 = vmatpush3.bf16.msra.mxu1 %v4266_v4  ;;  %3949 = vmatprep.subr.bf16.mxu0 %v4267_v5  ;;  %v5125_v4 = vld [vmem:[%s5251_s0 + $0x38] sm:$0x11] }
  0xae   :  { %3971 = vmatprep.subr.bf16.mxu1 %v4268_v1  ;;  %v3583_v5 = vcombine.low %v3514_v61, %v5125_v4  ;;  %v3584_v1 = vcombine.high %v3514_v61, %v5125_v4  ;;  %v4355_v61 = vld [vmem:[%s5250_s1 + $0x378] sm:$0xff]  }
  0xb0   :  { %3950 = vmatpush3.bf16.msra.mxu0 %v4269_v6  ;;  %v4327_v6 = vld [vmem:[%s5250_s1 + $0x340] sm:$0xff]  }
  0xb1   :  { %3972 = vmatpush3.bf16.msra.mxu1 %v4270_v7  ;;  %3951 = vmatprep.subr.bf16.mxu0 %v4271_v8  ;;  %v2349_v7 = vshrl.u32 %v3582_v3, 16  ;;  %v2352_v8 = vshll.u32 %v3582_v3, 16  ;;  %v4354_v3 = vld [vmem:[%s5250_s1 + $0x3b0] sm:$0xff]  }
  0xb2   :  { %3973 = vmatprep.subr.bf16.mxu1 %v4272_v9  ;;  %v2341_v9 = vshrl.u32 %v3581_v2, 16 }
  0xb4   :  { %3952 = vmatpush3.bf16.msra.mxu0 %v4273_v10  ;;  %v2344_v10 = vshll.u32 %v3581_v2, 16  ;;  %v4353_v2 = vld [vmem:[%s5250_s1 + $0x330] sm:$0xff]  }
  0xb5   :  { %3974 = vmatpush3.bf16.msra.mxu1 %v4274_v11  ;;  %3953 = vmatprep.subr.bf16.mxu0 %v4275_v12  ;;  %v2365_v11 = vshrl.u32 %v3584_v1, 16  ;;  %v2368_v12 = vshll.u32 %v3584_v1, 16  ;;  %v4357_v1 = vld [vmem:[%s5250_s1 + $0x338] sm:$0xff]  }
  0xb6   :  { %3975 = vmatprep.subr.bf16.mxu1 %v4276_v13  ;;  %v2357_v13 = vshrl.u32 %v3583_v5, 16 }
  0xb8   :  { %3954 = vmatpush3.bf16.msra.mxu0 %v4277_v14  ;;  %v2360_v14 = vshll.u32 %v3583_v5, 16  ;;  %v4356_v5 = vld [vmem:[%s5250_s1 + $0x3f8] sm:$0xff]  }
  0xb9   :  { %3976 = vmatpush3.bf16.msra.mxu1 %v4278_v15  ;;  %3955 = vmatprep.subr.bf16.mxu0 %v4279_v16  ;;  %v4328_v15 = vld [vmem:[%s5250_s1 + $0x3c0] sm:$0xff]   ;;  %v2351_v16 = vrot.slane %v2349_v7, 1 }
  0xba   :  { %3977 = vmatprep.subr.bf16.mxu1 %v4280_v17  ;;  %v2354_v17 = vrot.slane %v2352_v8, 2  ;;  %v2362_v24 = vrot.slane %v2360_v14, 2  ;;  %v3617_v7 = vld [vmem:[%s5251_s0 + $0x20] sm:$0xcc]  ;;  %v3618_v8 = vld [vmem:[%s5251_s0 + $0x28] sm:$0xcc] }
  0xbc   :  { %3956 = vmatpush3.bf16.msra.mxu0 %v4281_v18  ;;  %v2343_v18 = vrot.slane %v2341_v9, 1  ;;  %v2355_v25 = vor.u32 %v2354_v17, %v2351_v16  ;;  %v3683_v9 = vcombine.low %v3617_v7, %v5115_v0 }
  0xbd   :  { %3978 = vmatpush3.bf16.msra.mxu1 %v4282_v19  ;;  %3957 = vmatprep.subr.bf16.mxu0 %v4283_v20  ;;  %v2346_v19 = vrot.slane %v2344_v10, 2  ;;  %v4329_v20 = vld [vmem:[%s5250_s1 + $0x300] sm:$0xff]   ;;  %v3684_v10 = vcombine.high %v3617_v7, %v5115_v0 }
  0xbe   :  { %3979 = vmatprep.subr.bf16.mxu1 %v4284_v21  ;;  %v2367_v21 = vrot.slane %v2365_v11, 1  ;;  %v3685_v11 = vcombine.low %v3618_v8, %v5125_v4 }
  0xbf   :  { %v2347_v26 = vor.u32 %v2346_v19, %v2343_v18  ;;  %v2726_v14 = vrot.slane %v3684_v10, 2 }
  0xc0   :  { %3958 = vmatpush3.bf16.msra.mxu0 %v4285_v22  ;;  %v2370_v22 = vrot.slane %v2368_v12, 2  ;;  %v3686_v12 = vcombine.high %v3618_v8, %v5125_v4 }
  0xc1   :  { %3980 = vmatpush3.bf16.msra.mxu1 %v4286_v23  ;;  %3987 = vmatprep.subr.bf16.mxu0 %v4291_v28  ;;  %v2359_v23 = vrot.slane %v2357_v13, 1  ;;  %v2725_v13 = vrot.slane %v3683_v9, 2 }
  0xc2   :  { %4009 = vmatprep.subr.bf16.mxu1 %v4292_v29  ;;  %v2371_v28 = vor.u32 %v2370_v22, %v2367_v21  ;;  %v2728_v16 = vrot.slane %v3686_v12, 2 }
  0xc3   :  { %2209 = vmatmul.mubr.bf16.vlgmr.msra.gmra.mrb[20].mxu0 %v3477_v30  ;;  %v2363_v29 = vor.u32 %v2362_v24, %v2359_v23  ;;  %v4331_v30 = vld [vmem:[%s5250_s1 + $0x348] sm:$0xff]  }
  0xc4   :  { %2249 = vmatmul.mubr.bf16.vlgmr.msra.gmra.mrb[20].mxu1 %v3479_v32  ;;  %3988 = vmatpush3.bf16.msra.mxu0 %v4293_v31  ;;  %v4332_v31 = vld [vmem:[%s5250_s1 + $0x3c8] sm:$0xff]  }
  0xc5   :  { %4010 = vmatpush3.bf16.msra.mxu1 %v4294_v33  ;;  %3989 = vmatprep.subr.bf16.mxu0 %v4295_v34  ;;  %v4333_v32 = vld [vmem:[%s5250_s1 + $0x308] sm:$0xff]   ;;  %v4335_v34 = vld [vmem:[%s5250_s1 + $0x350] sm:$0xff]  }
  0xc6   :  { %4011 = vmatprep.subr.bf16.mxu1 %v4296_v35  ;;  %2600 = vmatprep.mubr.bf16.mxu0 %v2355_v25  ;;  %v4334_v33 = vld [vmem:[%s5250_s1 + $0x388] sm:$0xff]   ;;  %v4336_v35 = vld [vmem:[%s5250_s1 + $0x3d0] sm:$0xff]  }
  0xc7   :  { %2640 = vmatprep.mubr.bf16.mxu1 %v2371_v28 }
  0xc8   :  { %3990 = vmatpush3.bf16.msra.mxu0 %v4297_v36  ;;  %v4337_v36 = vld [vmem:[%s5250_s1 + $0x310] sm:$0xff]  }
  0xc9   :  { %4012 = vmatpush3.bf16.msra.mxu1 %v4298_v37  ;;  %3991 = vmatprep.subr.bf16.mxu0 %v4299_v38  ;;  %v4338_v37 = vld [vmem:[%s5250_s1 + $0x390] sm:$0xff]   ;;  %v4339_v38 = vld [vmem:[%s5250_s1 + $0x358] sm:$0xff]  }
  0xca   :  { %4013 = vmatprep.subr.bf16.mxu1 %v4300_v39  ;;  %v4340_v39 = vld [vmem:[%s5250_s1 + $0x3d8] sm:$0xff]  }
  0xcc   :  { %3992 = vmatpush3.bf16.msra.mxu0 %v4301_v40  ;;  %v4341_v40 = vld [vmem:[%s5250_s1 + $0x318] sm:$0xff]  }
  0xcd   :  { %4014 = vmatpush3.bf16.msra.mxu1 %v4302_v41  ;;  %3993 = vmatprep.subr.bf16.mxu0 %v4303_v42  ;;  %v4342_v41 = vld [vmem:[%s5250_s1 + $0x398] sm:$0xff]  }
  0xce   :  { %4015 = vmatprep.subr.bf16.mxu1 %v4304_v43  ;;  %v4343_v43 = vld [vmem:[%s5250_s1 + $0x360] sm:$0xff]  }
  0xd0   :  { %3994 = vmatpush3.bf16.msra.mxu0 %v4305_v44 }
  0xd1   :  { %4016 = vmatpush3.bf16.msra.mxu1 %v4306_v45  ;;  %3995 = vmatprep.subr.bf16.mxu0 %v4307_v46  ;;  %v4344_v45 = vld [vmem:[%s5250_s1 + $0x3e0] sm:$0xff]  }
  0xd2   :  { %4017 = vmatprep.subr.bf16.mxu1 %v4308_v47  ;;  %v4345_v47 = vld [vmem:[%s5250_s1 + $0x320] sm:$0xff]  }
  0xd4   :  { %3996 = vmatpush3.bf16.msra.mxu0 %v4309_v48 }
  0xd5   :  { %4018 = vmatpush3.bf16.msra.mxu1 %v4310_v49  ;;  %3997 = vmatprep.subr.bf16.mxu0 %v4311_v50  ;;  %v4346_v50 = vld [vmem:[%s5250_s1 + $0x3a0] sm:$0xff]  }
  0xd6   :  { %4019 = vmatprep.subr.bf16.mxu1 %v4312_v51 }
  0xd8   :  { %3998 = vmatpush3.bf16.msra.mxu0 %v4313_v52 }
  0xd9   :  { %4020 = vmatpush3.bf16.msra.mxu1 %v4314_v53  ;;  %3999 = vmatprep.subr.bf16.mxu0 %v4315_v54  ;;  %v4347_v53 = vld [vmem:[%s5250_s1 + $0x368] sm:$0xff]  }
  0xda   :  { %4021 = vmatprep.subr.bf16.mxu1 %v4316_v55 }
  0xdc   :  { %4000 = vmatpush3.bf16.msra.mxu0 %v4317_v56  ;;  %v4348_v56 = vld [vmem:[%s5250_s1 + $0x3e8] sm:$0xff]  }
  0xdd   :  { %4022 = vmatpush3.bf16.msra.mxu1 %v4318_v57  ;;  %4001 = vmatprep.subr.bf16.mxu0 %v4319_v58  ;;  %v4349_v58 = vld [vmem:[%s5250_s1 + $0x328] sm:$0xff]  }
  0xde   :  { %4023 = vmatprep.subr.bf16.mxu1 %v4320_v59 }
  0xe0   :  { %4002 = vmatpush3.bf16.msra.mxu0 %v4321_v60  ;;  %v4350_v60 = vld [vmem:[%s5250_s1 + $0x3a8] sm:$0xff]  }
  0xe1   :  { %4024 = vmatpush3.bf16.msra.mxu1 %v4322_v62  ;;  %4031 = vmatprep.subr.bf16.mxu0 %v4327_v6  ;;  %v4351_v62 = vld [vmem:[%s5250_s1 + $0x370] sm:$0xff]   ;;  %v4358_v6 = vld [vmem:[%s5250_s1 + $0x3b8] sm:$0xff]  }
  0xe2   :  { %4053 = vmatprep.subr.bf16.mxu1 %v4328_v15  ;;  %v2727_v15 = vrot.slane %v3685_v11, 2 }
  0xe3   :  { %2601 = vmatmul.mubr.bf16.vlgmr.msra.gmra.mrb[24].mxu0 %v2347_v26 }
  0xe4   :  { %2641 = vmatmul.mubr.bf16.vlgmr.msra.gmra.mrb[24].mxu1 %v2363_v29  ;;  %4032 = vmatpush3.bf16.msra.mxu0 %v4329_v20 }
  0xe5   :  { %4054 = vmatpush3.bf16.msra.mxu1 %v4330_v27  ;;  %4033 = vmatprep.subr.bf16.mxu0 %v4331_v30 }
  0xe6   :  { %4055 = vmatprep.subr.bf16.mxu1 %v4332_v31  ;;  %2957 = vmatprep.mubr.bf16.mxu0 %v2726_v14 }
  0xe7   :  { %2997 = vmatprep.mubr.bf16.mxu1 %v2728_v16 }
  0xe8   :  { %4034 = vmatpush3.bf16.msra.mxu0 %v4333_v32 }
  0xe9   :  { %4056 = vmatpush3.bf16.msra.mxu1 %v4334_v33  ;;  %4035 = vmatprep.subr.bf16.mxu0 %v4335_v34 }
  0xea   :  { %4057 = vmatprep.subr.bf16.mxu1 %v4336_v35 }
  0xec   :  { %4036 = vmatpush3.bf16.msra.mxu0 %v4337_v36 }
  0xed   :  { %4058 = vmatpush3.bf16.msra.mxu1 %v4338_v37  ;;  %4037 = vmatprep.subr.bf16.mxu0 %v4339_v38 }
  0xee   :  { %4059 = vmatprep.subr.bf16.mxu1 %v4340_v39 }
  0xf0   :  { %4038 = vmatpush3.bf16.msra.mxu0 %v4341_v40 }
  0xf1   :  { %4060 = vmatpush3.bf16.msra.mxu1 %v4342_v41  ;;  %4039 = vmatprep.subr.bf16.mxu0 %v4343_v43 }
  0xf2   :  { %4061 = vmatprep.subr.bf16.mxu1 %v4344_v45 }
  0xf4   :  { %4040 = vmatpush3.bf16.msra.mxu0 %v4345_v47 }
  0xf5   :  { %4062 = vmatpush3.bf16.msra.mxu1 %v4346_v50  ;;  %4041 = vmatprep.subr.bf16.mxu0 %v4347_v53  ;;  %v3370_v50 = vld [vmem:[%s5252_s2] ss:$0 sm:$0xff] }
  0xf6   :  { %v3739_v42 = vpop.f32.mrb[0].mxu0  ;;  %4063 = vmatprep.subr.bf16.mxu1 %v4348_v56  ;;  %v3372_v56 = vld [vmem:[%s5252_s2 + $0x2] ss:$0 sm:$0xff] }
  0xf7   :  { %v3761_v44 = vpop.f32.mrb[0].mxu1  ;;  %v3740_v46 = vpop.f32.mrb[1].mxu0 }
  0xf8   :  { %v3741_v48 = vadd.f32 %v3740_v46, %v3739_v42  ;;  %v3762_v49 = vpop.f32.mrb[1].mxu1  ;;  %v3742_v52 = vpop.f32.mrb[2].mxu0  ;;  %4042 = vmatpush3.bf16.msra.mxu0 %v4349_v58 }
  0xf9   :  { %v3763_v51 = vadd.f32 %v3762_v49, %v3761_v44  ;;  %v3764_v54 = vpop.f32.mrb[2].mxu1  ;;  %v3743_v57 = vpop.f32.mrb[3].mxu0  ;;  %4064 = vmatpush3.bf16.msra.mxu1 %v4350_v60  ;;  %4043 = vmatprep.subr.bf16.mxu0 %v4351_v62 }
  0xfa   :  { %v3765_v59 = vpop.f32.mrb[3].mxu1  ;;  %4065 = vmatprep.subr.bf16.mxu1 %v4352_v63  ;;  %v3371_v54 = vld [vmem:[%s5252_s2 + $0x1] ss:$0 sm:$0xff] }
  0xfb   :  { %v457_v55 = vadd.f32 %v3763_v51, %v3741_v48 }
  0xfc   :  { %4044 = vmatpush3.bf16.msra.mxu0 %v4353_v2 }
  0xfd   :  { %4066 = vmatpush3.bf16.msra.mxu1 %v4354_v3  ;;  %4045 = vmatprep.subr.bf16.mxu0 %v4355_v61 }
  0xfe   :  { %4067 = vmatprep.subr.bf16.mxu1 %v4356_v5 }
 0x100   :  { %4046 = vmatpush3.bf16.msra.mxu0 %v4357_v1 }
 0x101   :  { %4068 = vmatpush3.bf16.msra.mxu1 %v4358_v6 }
 0x103   :  { %2958 = vmatmul.mubr.bf16.vlgmr.msra.gmra.mrb[28].mxu0 %v2725_v13 }
 0x104   :  { %2998 = vmatmul.mubr.bf16.vlgmr.msra.gmra.mrb[28].mxu1 %v2727_v15 }
 0x116   :  { %v3783_v17 = vpop.f32.mrb[4].mxu0 }
 0x117   :  { %v3805_v18 = vpop.f32.mrb[4].mxu1  ;;  %v3784_v19 = vpop.f32.mrb[5].mxu0 }
 0x118   :  { %v3806_v20 = vpop.f32.mrb[5].mxu1  ;;  %v3785_v21 = vadd.f32 %v3784_v19, %v3783_v17  ;;  %v3786_v22 = vpop.f32.mrb[6].mxu0 }
 0x119   :  { %v3807_v0 = vadd.f32 %v3806_v20, %v3805_v18  ;;  %v3808_v23 = vpop.f32.mrb[6].mxu1  ;;  %v3787_v24 = vpop.f32.mrb[7].mxu0 }
 0x11a   :  { %v3809_v4 = vpop.f32.mrb[7].mxu1  ;;  %v703_v25 = vadd.f32 %v3785_v21, %v457_v55 }
 0x11c   :  { %v743_v26 = vadd.f32 %v3807_v0, %v703_v25 }
 0x136   :  { %v3827_v27 = vpop.f32.mrb[8].mxu0 }
 0x137   :  { %v3849_v28 = vpop.f32.mrb[8].mxu1  ;;  %v3828_v29 = vpop.f32.mrb[9].mxu0 }
 0x138   :  { %v3829_v30 = vadd.f32 %v3828_v29, %v3827_v27  ;;  %v3850_v31 = vpop.f32.mrb[9].mxu1  ;;  %v3830_v32 = vpop.f32.mrb[10].mxu0 }
 0x139   :  { %v3851_v33 = vadd.f32 %v3850_v31, %v3849_v28  ;;  %v3852_v34 = vpop.f32.mrb[10].mxu1  ;;  %v3831_v35 = vpop.f32.mrb[11].mxu0 }
 0x13a   :  { %v3853_v36 = vpop.f32.mrb[11].mxu1 }
 0x13b   :  { %v1136_v37 = vadd.f32 %v3851_v33, %v3829_v30 }
 0x13d   :  { %v1141_v38 = vadd.f32 %v1136_v37, %v743_v26 }
 0x156   :  { %v3871_v39 = vpop.f32.mrb[12].mxu0 }
 0x157   :  { %v3893_v40 = vpop.f32.mrb[12].mxu1  ;;  %v3872_v41 = vpop.f32.mrb[13].mxu0 }
 0x158   :  { %v3873_v42 = vadd.f32 %v3872_v41, %v3871_v39  ;;  %v3894_v43 = vpop.f32.mrb[13].mxu1  ;;  %v3874_v44 = vpop.f32.mrb[14].mxu0 }
 0x159   :  { %v3895_v45 = vadd.f32 %v3894_v43, %v3893_v40  ;;  %v3896_v46 = vpop.f32.mrb[14].mxu1  ;;  %v3875_v47 = vpop.f32.mrb[15].mxu0 }
 0x15a   :  { %v3897_v48 = vpop.f32.mrb[15].mxu1 }
 0x15b   :  { %v1494_v49 = vadd.f32 %v3895_v45, %v3873_v42 }
 0x15d   :  { %v1499_v51 = vadd.f32 %v1494_v49, %v1141_v38 }
 0x15f   :  { %v1505_v52 = vadd.f32 %v3370_v50, %v1499_v51 }
 0x161   :  { %vm1506_vm0 = vcmp.ge.f32.partialorder %v1505_v52, 0.0  ;;  %v1507_v53 = vmul.f32 0.2, %v1505_v52 }
 0x163   :  { %v1508_v55 = vsel %vm1506_vm0, %v1505_v52, %v1507_v53 }
 0x164   :  { %v1514_v57 = vmul.f32 %v3371_v54, %v1508_v55 }
 0x166   :  { %v1520_v58 = vadd.f32 %v3372_v56, %v1514_v57 }
 0x168   :  { %v1521_v59 = vpack.c.bf16 %v1520_v58, %v1520_v58 }
 0x16a   :  { %1522 = vst [vmem:[%s5253_s3] sm:$0x7] %v1521_v59 }
 0x176   :  { %v3915_v60 = vpop.f32.mrb[16].mxu0 }
 0x177   :  { %v3937_v62 = vpop.f32.mrb[16].mxu1  ;;  %v3916_v63 = vpop.f32.mrb[17].mxu0 }
 0x178   :  { %v3917_v2 = vadd.f32 %v3916_v63, %v3915_v60  ;;  %v3938_v3 = vpop.f32.mrb[17].mxu1  ;;  %v3918_v61 = vpop.f32.mrb[18].mxu0 }
 0x179   :  { %v3939_v5 = vadd.f32 %v3938_v3, %v3937_v62  ;;  %v3940_v1 = vpop.f32.mrb[18].mxu1  ;;  %v3919_v6 = vpop.f32.mrb[19].mxu0 }
 0x17a   :  { %v3941_v7 = vpop.f32.mrb[19].mxu1 }
 0x17b   :  { %v1965_v8 = vadd.f32 %v3939_v5, %v3917_v2 }
 0x196   :  { %v3959_v9 = vpop.f32.mrb[20].mxu0 }
 0x197   :  { %v3981_v10 = vpop.f32.mrb[20].mxu1  ;;  %v3960_v11 = vpop.f32.mrb[21].mxu0 }
 0x198   :  { %v3961_v12 = vadd.f32 %v3960_v11, %v3959_v9  ;;  %v3982_v13 = vpop.f32.mrb[21].mxu1  ;;  %v3962_v14 = vpop.f32.mrb[22].mxu0 }
 0x199   :  { %v3983_v15 = vadd.f32 %v3982_v13, %v3981_v10  ;;  %v3984_v16 = vpop.f32.mrb[22].mxu1  ;;  %v3963_v17 = vpop.f32.mrb[23].mxu0 }
 0x19a   :  { %v2211_v18 = vadd.f32 %v3961_v12, %v1965_v8  ;;  %v3985_v19 = vpop.f32.mrb[23].mxu1 }
 0x19c   :  { %v2251_v20 = vadd.f32 %v3983_v15, %v2211_v18 }
 0x1b6   :  { %v4003_v21 = vpop.f32.mrb[24].mxu0 }
 0x1b7   :  { %v4025_v0 = vpop.f32.mrb[24].mxu1  ;;  %v4004_v22 = vpop.f32.mrb[25].mxu0 }
 0x1b8   :  { %v4005_v23 = vadd.f32 %v4004_v22, %v4003_v21  ;;  %v4026_v24 = vpop.f32.mrb[25].mxu1  ;;  %v4006_v4 = vpop.f32.mrb[26].mxu0 }
 0x1b9   :  { %v4027_v25 = vadd.f32 %v4026_v24, %v4025_v0  ;;  %v4028_v26 = vpop.f32.mrb[26].mxu1  ;;  %v4007_v27 = vpop.f32.mrb[27].mxu0 }
 0x1ba   :  { %v4029_v28 = vpop.f32.mrb[27].mxu1 }
 0x1bb   :  { %v2643_v29 = vadd.f32 %v4027_v25, %v4005_v23 }
 0x1bd   :  { %v2648_v30 = vadd.f32 %v2643_v29, %v2251_v20 }
 0x1d6   :  { %v4047_v31 = vpop.f32.mrb[28].mxu0 }
 0x1d7   :  { %v4069_v32 = vpop.f32.mrb[28].mxu1  ;;  %v4048_v33 = vpop.f32.mrb[29].mxu0 }
 0x1d8   :  { %v4049_v34 = vadd.f32 %v4048_v33, %v4047_v31  ;;  %v4070_v35 = vpop.f32.mrb[29].mxu1  ;;  %v4050_v36 = vpop.f32.mrb[30].mxu0 }
 0x1d9   :  { %v4071_v37 = vadd.f32 %v4070_v35, %v4069_v32  ;;  %v4072_v38 = vpop.f32.mrb[30].mxu1  ;;  %v4051_v39 = vpop.f32.mrb[31].mxu0 }
 0x1da   :  { %v4073_v40 = vpop.f32.mrb[31].mxu1 }
 0x1db   :  { %v3000_v41 = vadd.f32 %v4071_v37, %v4049_v34 }
 0x1dd   :  { %v3005_v42 = vadd.f32 %v3000_v41, %v2648_v30 }
 0x1df   :  { %v3011_v43 = vadd.f32 %v3370_v50, %v3005_v42 }
 0x1e1   :  { %vm3012_vm1 = vcmp.ge.f32.partialorder %v3011_v43, 0.0  ;;  %v3013_v44 = vmul.f32 0.2, %v3011_v43 }
 0x1e3   :  { %v3014_v45 = vsel %vm3012_vm1, %v3011_v43, %v3013_v44 }
 0x1e4   :  { %v3020_v46 = vmul.f32 %v3371_v54, %v3014_v45 }
 0x1e6   :  { %v3026_v47 = vadd.f32 %v3372_v56, %v3020_v46 }
 0x1e8   :  { %v3027_v48 = vpack.c.bf16 %v3026_v47, %v3026_v47 }
 0x1ea   :  { %3722 = vst [vmem:[%s5253_s3 + $0x4] sm:$0x7] %v3027_v48 }

</bundles_post_ra>
